<compile_context>
chip_gen: v5e
topology: v5e:2x2
jax: 0.10.0
libtpu: 0.0.40
codegen_flags: <defaults>
</compile_context>

<pallas_src>
import jax
import jax.numpy as jnp
from jax.experimental import pallas as pl
from jax.experimental.pallas import tpu as pltpu

BN_EPS = 1e-5
NUM_CLASSES = 10
NOISE_DIM = 128
EMB_DIM = 128
PADDED_CLASSES = 16   # class axis zero-padded for the one-hot row-select matmul
OUT_DIM = 784
OUT_PAD = 896         # 7 * 128 -> lane-dense final matmul + unmasked output store


def _bn_relu(h, gamma, beta):
    """BatchNorm1d (training mode, biased variance, two-pass centered form) + ReLU."""
    mean = jnp.mean(h, axis=0, keepdims=True)
    centered = h - mean
    var = jnp.mean(centered * centered, axis=0, keepdims=True)
    hn = centered * jax.lax.rsqrt(var + BN_EPS) * gamma + beta
    return jnp.maximum(hn, 0.0)


def _mxu_dot(h_f32, w_bf16):
    """bf16 x bf16 MXU matmul with f32 accumulation."""
    return jnp.dot(h_f32.astype(jnp.bfloat16), w_bf16,
                   preferred_element_type=jnp.float32)


def cgan_generator_kernel(
    noise_ref,                     # (TB, 128)   f32      batch-tiled
    labels_ref,                    # (TB, 1)     int32    batch-tiled
    eprime_ref,                    # (16, 256)   f32      emb_pad @ W1[128:, :]
    w1a_ref,                       # (128, 256)  bf16     W1[:128, :]
    g1_ref, be1_ref,               # (1, 256)    f32
    w2_ref, g2_ref, be2_ref,       # (256, 512)  bf16, (1,512) f32 x2
    w3_ref, g3_ref, be3_ref,       # (512, 1024) bf16, (1,1024) f32 x2
    w4_ref, b4_ref,                # (1024, 896) bf16, (1,896) f32 (zero-padded cols)
    o_ref,                         # (TB, 896)   f32      batch-tiled
):
    TB = noise_ref.shape[0]

    # ---- embedding folded into layer 1: one_hot(labels) @ (emb @ W1b) ---------
    # Row-select done on the MXU in f32 -> the selection itself adds no rounding.
    lab = labels_ref[...]                                             # (TB, 1) int32
    cls = jax.lax.broadcasted_iota(jnp.int32, (TB, PADDED_CLASSES), 1)
    one_hot = (lab == cls).astype(jnp.float32)                        # (TB, 16)
    emb_contrib = jnp.dot(one_hot, eprime_ref[...],
                          preferred_element_type=jnp.float32)         # (TB, 256)

    # ---- layer 1: Linear(256,256) split over the concat boundary --------------
    # (Linear bias omitted: exactly cancelled by training-mode BN mean-subtract.)
    h = _mxu_dot(noise_ref[...], w1a_ref[...]) + emb_contrib
    h = _bn_relu(h, g1_ref[...], be1_ref[...])

    # ---- layer 2: Linear(256,512) + BN + ReLU ----------------------------------
    h = _mxu_dot(h, w2_ref[...])
    h = _bn_relu(h, g2_ref[...], be2_ref[...])

    # ---- layer 3: Linear(512,1024) + BN + ReLU ---------------------------------
    h = _mxu_dot(h, w3_ref[...])
    h = _bn_relu(h, g3_ref[...], be3_ref[...])

    # ---- layer 4: Linear(1024,784->896 padded) + Tanh, lane-dense store --------
    h = _mxu_dot(h, w4_ref[...]) + b4_ref[...]
    o_ref[...] = jnp.tanh(h)


def init_params(key):
    """Deterministic synthetic parameters matching the PyTorch module shapes."""
    ks = jax.random.split(key, 9)
    p = {}
    p["emb"] = jax.random.normal(ks[0], (NUM_CLASSES, EMB_DIM), jnp.float32)

    def linear(k, din, dout):
        kw, kb = jax.random.split(k)
        lim = 1.0 / jnp.sqrt(jnp.float32(din))
        w = jax.random.uniform(kw, (din, dout), jnp.float32, -lim, lim)  # (in, out)
        b = jax.random.uniform(kb, (1, dout), jnp.float32, -lim, lim)
        return w.astype(jnp.bfloat16), b   # weights streamed in bf16, biases f32

    p["w1"], p["b1"] = linear(ks[1], 256, 256)
    p["w2"], p["b2"] = linear(ks[2], 256, 512)
    p["w3"], p["b3"] = linear(ks[3], 512, 1024)
    p["w4"], p["b4"] = linear(ks[4], 1024, OUT_DIM)

    # BatchNorm1d affine params, perturbed so the BN path is actually exercised.
    p["g1"] = 1.0 + 0.1 * jax.random.normal(ks[5], (1, 256), jnp.float32)
    p["be1"] = 0.1 * jax.random.normal(ks[5], (1, 256), jnp.float32)
    p["g2"] = 1.0 + 0.1 * jax.random.normal(ks[6], (1, 512), jnp.float32)
    p["be2"] = 0.1 * jax.random.normal(ks[6], (1, 512), jnp.float32)
    p["g3"] = 1.0 + 0.1 * jax.random.normal(ks[7], (1, 1024), jnp.float32)
    p["be3"] = 0.1 * jax.random.normal(ks[7], (1, 1024), jnp.float32)
    return p


def pack_for_kernel(p):
    """Kernel-layout parameters: folded embedding, split W1, lane-padded layer 4."""
    kp = {}
    # W1 split over the concat boundary; embedding folded into the label half.
    kp["w1a"] = p["w1"][:NOISE_DIM, :]                                 # (128, 256) bf16
    emb_pad = jnp.zeros((PADDED_CLASSES, EMB_DIM), jnp.float32).at[:NUM_CLASSES].set(p["emb"])
    kp["eprime"] = jnp.dot(emb_pad.astype(jnp.bfloat16), p["w1"][NOISE_DIM:, :],
                           preferred_element_type=jnp.float32)         # (16, 256) f32
    kp["w2"] = p["w2"]
    kp["w3"] = p["w3"]
    # Lane-dense padding of the final layer (zero columns 784..895).
    kp["w4p"] = jnp.zeros((1024, OUT_PAD), jnp.bfloat16).at[:, :OUT_DIM].set(p["w4"])
    kp["b4p"] = jnp.zeros((1, OUT_PAD), jnp.float32).at[:, :OUT_DIM].set(p["b4"])
    for name in ("g1", "be1", "g2", "be2", "g3", "be3"):
        kp[name] = p[name]
    return kp


def conditional_generator_forward(noise, labels, kp, *, tile_b=128):
    """noise: (B,128) f32, labels: (B,) int32 in [0,10). Returns (B,784) f32.

    Batch is processed in tiles of size TB=min(B, tile_b); weights stay
    VMEM-resident across tiles.  BN statistics are per tile (== whole batch
    when B <= tile_b, matching PyTorch training-mode semantics exactly).
    """
    B = noise.shape[0]
    TB = B if B <= tile_b else tile_b
    assert B % TB == 0, f"batch {B} must be a multiple of the batch tile {TB}"
    grid = (B // TB,)

    labels2d = labels.reshape(B, 1).astype(jnp.int32)

    def tiled(shape):
        return pl.BlockSpec(shape, lambda i: (i, 0))

    def const(shape):
        return pl.BlockSpec(shape, lambda i: (0, 0))

    operands = (
        noise, labels2d,
        kp["eprime"], kp["w1a"], kp["g1"], kp["be1"],
        kp["w2"], kp["g2"], kp["be2"],
        kp["w3"], kp["g3"], kp["be3"],
        kp["w4p"], kp["b4p"],
    )
    in_specs = [
        tiled((TB, NOISE_DIM)), tiled((TB, 1)),
        const((PADDED_CLASSES, 256)), const((NOISE_DIM, 256)),
        const((1, 256)), const((1, 256)),
        const((256, 512)), const((1, 512)), const((1, 512)),
        const((512, 1024)), const((1, 1024)), const((1, 1024)),
        const((1024, OUT_PAD)), const((1, OUT_PAD)),
    ]

    out_padded = pl.pallas_call(
        cgan_generator_kernel,
        out_shape=jax.ShapeDtypeStruct((B, OUT_PAD), jnp.float32),
        grid=grid,
        in_specs=in_specs,
        out_specs=tiled((TB, OUT_PAD)),
        compiler_params=pltpu.CompilerParams(
            dimension_semantics=("parallel",),      # v7x: shard batch tiles over 2 TCs
            vmem_limit_bytes=16 << 20),
    )(*operands)

    return out_padded[:, :OUT_DIM]


def reference_forward(noise, labels, p):
    """Pure-JAX reference (faithful PyTorch path: gather + concat, biases kept,
    two-pass BN variance), using the same bf16-stored weights as the kernel."""
    x = jnp.concatenate([noise, p["emb"][labels]], axis=1)

    def dot_bf16(h, w):
        return jnp.dot(h.astype(jnp.bfloat16), w, preferred_element_type=jnp.float32)

    def bn_relu(h, g, b):
        m = jnp.mean(h, axis=0, keepdims=True)
        v = jnp.mean((h - m) ** 2, axis=0, keepdims=True)
        return jnp.maximum((h - m) / jnp.sqrt(v + BN_EPS) * g + b, 0.0)

    h = bn_relu(dot_bf16(x, p["w1"]) + p["b1"], p["g1"], p["be1"])
    h = bn_relu(dot_bf16(h, p["w2"]) + p["b2"], p["g2"], p["be2"])
    h = bn_relu(dot_bf16(h, p["w3"]) + p["b3"], p["g3"], p["be3"])
    return jnp.tanh(dot_bf16(h, p["w4"]) + p["b4"])


if __name__ == "__main__":
    key = jax.random.PRNGKey(0)
    k_par, k_noise, k_lab, k_noise2, k_lab2 = jax.random.split(key, 5)

    params = init_params(k_par)
    kparams = pack_for_kernel(params)

    # --- single-tile case (grid=(1,)): BN over the whole batch, exact PyTorch path
    B = 8
    noise = jax.random.normal(k_noise, (B, 128), jnp.float32)
    labels = jax.random.randint(k_lab, (B,), 0, NUM_CLASSES, jnp.int32)

    out = jax.block_until_ready(conditional_generator_forward(noise, labels, kparams))
    ref = reference_forward(noise, labels, params)
    assert out.shape == (B, OUT_DIM), out.shape
    max_err = float(jnp.max(jnp.abs(out - ref)))
    assert max_err < 5e-3, max_err

    # --- multi-tile case (grid=(2,)): weights stay resident across batch tiles;
    #     BN is per tile, so the reference is applied per tile as well.
    B2, TB2 = 32, 16
    noise2 = jax.random.normal(k_noise2, (B2, 128), jnp.float32)
    labels2 = jax.random.randint(k_lab2, (B2,), 0, NUM_CLASSES, jnp.int32)

    out2 = jax.block_until_ready(
        conditional_generator_forward(noise2, labels2, kparams, tile_b=TB2))
    ref2 = jnp.concatenate(
        [reference_forward(noise2[s:s + TB2], labels2[s:s + TB2], params)
         for s in range(0, B2, TB2)], axis=0)
    assert out2.shape == (B2, OUT_DIM), out2.shape
    max_err2 = float(jnp.max(jnp.abs(out2 - ref2)))
    assert max_err2 < 5e-3, max_err2

    print("KERNEL_OK")
</pallas_src>

<mosaic_0001>
module attributes {stable_mosaic.version = 11 : i64} {
  func.func @cgan_generator_kernel(%arg0: i32, %arg1: memref<8x128xf32, #tpu.memory_space<vmem>>, %arg2: memref<8x1xi32, #tpu.memory_space<vmem>>, %arg3: memref<16x256xf32, #tpu.memory_space<vmem>>, %arg4: memref<128x256xbf16, #tpu.memory_space<vmem>>, %arg5: memref<1x256xf32, #tpu.memory_space<vmem>>, %arg6: memref<1x256xf32, #tpu.memory_space<vmem>>, %arg7: memref<256x512xbf16, #tpu.memory_space<vmem>>, %arg8: memref<1x512xf32, #tpu.memory_space<vmem>>, %arg9: memref<1x512xf32, #tpu.memory_space<vmem>>, %arg10: memref<512x1024xbf16, #tpu.memory_space<vmem>>, %arg11: memref<1x1024xf32, #tpu.memory_space<vmem>>, %arg12: memref<1x1024xf32, #tpu.memory_space<vmem>>, %arg13: memref<1024x896xbf16, #tpu.memory_space<vmem>>, %arg14: memref<1x896xf32, #tpu.memory_space<vmem>>, %arg15: memref<8x896xf32, #tpu.memory_space<vmem>>) attributes {dimension_semantics = [#tpu.dimension_semantics<parallel>], iteration_bounds = array<i64: 1>, scalar_prefetch = 0 : i64, scratch_operands = 0 : i64, tpu.core_type = #tpu.core_type<tc>, window_params = [{transform_indices = @transform_0, window_bounds = array<i64: 8, 128>}, {transform_indices = @transform_1, window_bounds = array<i64: 8, 1>}, {pipeline_mode = #tpu.pipeline_mode<synchronous>, transform_indices = @transform_2, window_bounds = array<i64: 16, 256>}, {pipeline_mode = #tpu.pipeline_mode<synchronous>, transform_indices = @transform_3, window_bounds = array<i64: 128, 256>}, {pipeline_mode = #tpu.pipeline_mode<synchronous>, transform_indices = @transform_4, window_bounds = array<i64: 1, 256>}, {pipeline_mode = #tpu.pipeline_mode<synchronous>, transform_indices = @transform_5, window_bounds = array<i64: 1, 256>}, {pipeline_mode = #tpu.pipeline_mode<synchronous>, transform_indices = @transform_6, window_bounds = array<i64: 256, 512>}, {pipeline_mode = #tpu.pipeline_mode<synchronous>, transform_indices = @transform_7, window_bounds = array<i64: 1, 512>}, {pipeline_mode = #tpu.pipeline_mode<synchronous>, transform_indices = @transform_8, window_bounds = array<i64: 1, 512>}, {pipeline_mode = #tpu.pipeline_mode<synchronous>, transform_indices = @transform_9, window_bounds = array<i64: 512, 1024>}, {pipeline_mode = #tpu.pipeline_mode<synchronous>, transform_indices = @transform_10, window_bounds = array<i64: 1, 1024>}, {pipeline_mode = #tpu.pipeline_mode<synchronous>, transform_indices = @transform_11, window_bounds = array<i64: 1, 1024>}, {pipeline_mode = #tpu.pipeline_mode<synchronous>, transform_indices = @transform_12, window_bounds = array<i64: 1024, 896>}, {pipeline_mode = #tpu.pipeline_mode<synchronous>, transform_indices = @transform_13, window_bounds = array<i64: 1, 896>}, {transform_indices = @transform_14, window_bounds = array<i64: 8, 896>}]} {
    %c0 = arith.constant 0 : index
    %c0_0 = arith.constant 0 : index
    %0 = vector.load %arg2[%c0, %c0_0] : memref<8x1xi32, #tpu.memory_space<vmem>>, vector<8x1xi32>
    %1 = tpu.iota {dimensions = array<i32: 1>} : vector<8x16xi32>
    %2 = vector.broadcast %0 : vector<8x1xi32> to vector<8x16xi32>
    %3 = arith.cmpi eq, %2, %1 : vector<8x16xi32>
    %4 = arith.extui %3 : vector<8x16xi1> to vector<8x16xi32>
    %5 = arith.sitofp %4 : vector<8x16xi32> to vector<8x16xf32>
    %c0_1 = arith.constant 0 : index
    %c0_2 = arith.constant 0 : index
    %6 = vector.load %arg3[%c0_1, %c0_2] : memref<16x256xf32, #tpu.memory_space<vmem>>, vector<16x256xf32>
    %cst = arith.constant dense<0.000000e+00> : vector<8x256xf32>
    %7 = tpu.matmul %5, %6, %cst {dimension_numbers = #tpu.dot_dimension_numbers<[1], [0], [0], [1], [0, 0, 1, 1], [], []>} : vector<8x16xf32>, vector<16x256xf32>, vector<8x256xf32> -> vector<8x256xf32>
    %c0_3 = arith.constant 0 : index
    %c0_4 = arith.constant 0 : index
    %8 = vector.load %arg1[%c0_3, %c0_4] : memref<8x128xf32, #tpu.memory_space<vmem>>, vector<8x128xf32>
    %c0_5 = arith.constant 0 : index
    %c0_6 = arith.constant 0 : index
    %9 = vector.load %arg4[%c0_5, %c0_6] : memref<128x256xbf16, #tpu.memory_space<vmem>>, vector<128x256xbf16>
    %10 = arith.truncf %8 : vector<8x128xf32> to vector<8x128xbf16>
    %cst_7 = arith.constant dense<0.000000e+00> : vector<8x256xf32>
    %11 = tpu.matmul %10, %9, %cst_7 {dimension_numbers = #tpu.dot_dimension_numbers<[1], [0], [0], [1], [0, 0, 1, 1], [], []>} : vector<8x128xbf16>, vector<128x256xbf16>, vector<8x256xf32> -> vector<8x256xf32>
    %12 = arith.addf %11, %7 : vector<8x256xf32>
    %c0_8 = arith.constant 0 : index
    %c0_9 = arith.constant 0 : index
    %13 = vector.load %arg5[%c0_8, %c0_9] : memref<1x256xf32, #tpu.memory_space<vmem>>, vector<1x256xf32>
    %c0_10 = arith.constant 0 : index
    %c0_11 = arith.constant 0 : index
    %14 = vector.load %arg6[%c0_10, %c0_11] : memref<1x256xf32, #tpu.memory_space<vmem>>, vector<1x256xf32>
    %cst_12 = arith.constant dense<0.000000e+00> : vector<256xf32>
    %15 = vector.multi_reduction <add>, %12, %cst_12 [0] : vector<8x256xf32> to vector<256xf32>
    %16 = vector.shape_cast %15 : vector<256xf32> to vector<1x256xf32>
    %cst_13 = arith.constant 8.000000e+00 : f32
    %17 = vector.broadcast %cst_13 : f32 to vector<1x256xf32>
    %18 = arith.divf %16, %17 : vector<1x256xf32>
    %19 = vector.broadcast %18 : vector<1x256xf32> to vector<8x256xf32>
    %20 = arith.subf %12, %19 : vector<8x256xf32>
    %21 = arith.mulf %20, %20 : vector<8x256xf32>
    %cst_14 = arith.constant dense<0.000000e+00> : vector<256xf32>
    %22 = vector.multi_reduction <add>, %21, %cst_14 [0] : vector<8x256xf32> to vector<256xf32>
    %23 = vector.shape_cast %22 : vector<256xf32> to vector<1x256xf32>
    %cst_15 = arith.constant 8.000000e+00 : f32
    %24 = vector.broadcast %cst_15 : f32 to vector<1x256xf32>
    %25 = arith.divf %23, %24 : vector<1x256xf32>
    %cst_16 = arith.constant 9.99999974E-6 : f32
    %26 = vector.broadcast %cst_16 : f32 to vector<1x256xf32>
    %27 = arith.addf %25, %26 : vector<1x256xf32>
    %28 = math.rsqrt %27 : vector<1x256xf32>
    %29 = vector.broadcast %28 : vector<1x256xf32> to vector<8x256xf32>
    %30 = arith.mulf %20, %29 : vector<8x256xf32>
    %31 = vector.broadcast %13 : vector<1x256xf32> to vector<8x256xf32>
    %32 = arith.mulf %30, %31 : vector<8x256xf32>
    %33 = vector.broadcast %14 : vector<1x256xf32> to vector<8x256xf32>
    %34 = arith.addf %32, %33 : vector<8x256xf32>
    %cst_17 = arith.constant 0.000000e+00 : f32
    %35 = vector.broadcast %cst_17 : f32 to vector<8x256xf32>
    %36 = arith.maximumf %34, %35 : vector<8x256xf32>
    %c0_18 = arith.constant 0 : index
    %c0_19 = arith.constant 0 : index
    %37 = vector.load %arg7[%c0_18, %c0_19] : memref<256x512xbf16, #tpu.memory_space<vmem>>, vector<256x512xbf16>
    %38 = arith.truncf %36 : vector<8x256xf32> to vector<8x256xbf16>
    %cst_20 = arith.constant dense<0.000000e+00> : vector<8x512xf32>
    %39 = tpu.matmul %38, %37, %cst_20 {dimension_numbers = #tpu.dot_dimension_numbers<[1], [0], [0], [1], [0, 0, 1, 1], [], []>} : vector<8x256xbf16>, vector<256x512xbf16>, vector<8x512xf32> -> vector<8x512xf32>
    %c0_21 = arith.constant 0 : index
    %c0_22 = arith.constant 0 : index
    %40 = vector.load %arg8[%c0_21, %c0_22] : memref<1x512xf32, #tpu.memory_space<vmem>>, vector<1x512xf32>
    %c0_23 = arith.constant 0 : index
    %c0_24 = arith.constant 0 : index
    %41 = vector.load %arg9[%c0_23, %c0_24] : memref<1x512xf32, #tpu.memory_space<vmem>>, vector<1x512xf32>
    %cst_25 = arith.constant dense<0.000000e+00> : vector<512xf32>
    %42 = vector.multi_reduction <add>, %39, %cst_25 [0] : vector<8x512xf32> to vector<512xf32>
    %43 = vector.shape_cast %42 : vector<512xf32> to vector<1x512xf32>
    %cst_26 = arith.constant 8.000000e+00 : f32
    %44 = vector.broadcast %cst_26 : f32 to vector<1x512xf32>
    %45 = arith.divf %43, %44 : vector<1x512xf32>
    %46 = vector.broadcast %45 : vector<1x512xf32> to vector<8x512xf32>
    %47 = arith.subf %39, %46 : vector<8x512xf32>
    %48 = arith.mulf %47, %47 : vector<8x512xf32>
    %cst_27 = arith.constant dense<0.000000e+00> : vector<512xf32>
    %49 = vector.multi_reduction <add>, %48, %cst_27 [0] : vector<8x512xf32> to vector<512xf32>
    %50 = vector.shape_cast %49 : vector<512xf32> to vector<1x512xf32>
    %cst_28 = arith.constant 8.000000e+00 : f32
    %51 = vector.broadcast %cst_28 : f32 to vector<1x512xf32>
    %52 = arith.divf %50, %51 : vector<1x512xf32>
    %cst_29 = arith.constant 9.99999974E-6 : f32
    %53 = vector.broadcast %cst_29 : f32 to vector<1x512xf32>
    %54 = arith.addf %52, %53 : vector<1x512xf32>
    %55 = math.rsqrt %54 : vector<1x512xf32>
    %56 = vector.broadcast %55 : vector<1x512xf32> to vector<8x512xf32>
    %57 = arith.mulf %47, %56 : vector<8x512xf32>
    %58 = vector.broadcast %40 : vector<1x512xf32> to vector<8x512xf32>
    %59 = arith.mulf %57, %58 : vector<8x512xf32>
    %60 = vector.broadcast %41 : vector<1x512xf32> to vector<8x512xf32>
    %61 = arith.addf %59, %60 : vector<8x512xf32>
    %cst_30 = arith.constant 0.000000e+00 : f32
    %62 = vector.broadcast %cst_30 : f32 to vector<8x512xf32>
    %63 = arith.maximumf %61, %62 : vector<8x512xf32>
    %c0_31 = arith.constant 0 : index
    %c0_32 = arith.constant 0 : index
    %64 = vector.load %arg10[%c0_31, %c0_32] : memref<512x1024xbf16, #tpu.memory_space<vmem>>, vector<512x1024xbf16>
    %65 = arith.truncf %63 : vector<8x512xf32> to vector<8x512xbf16>
    %cst_33 = arith.constant dense<0.000000e+00> : vector<8x1024xf32>
    %66 = tpu.matmul %65, %64, %cst_33 {dimension_numbers = #tpu.dot_dimension_numbers<[1], [0], [0], [1], [0, 0, 1, 1], [], []>} : vector<8x512xbf16>, vector<512x1024xbf16>, vector<8x1024xf32> -> vector<8x1024xf32>
    %c0_34 = arith.constant 0 : index
    %c0_35 = arith.constant 0 : index
    %67 = vector.load %arg11[%c0_34, %c0_35] : memref<1x1024xf32, #tpu.memory_space<vmem>>, vector<1x1024xf32>
    %c0_36 = arith.constant 0 : index
    %c0_37 = arith.constant 0 : index
    %68 = vector.load %arg12[%c0_36, %c0_37] : memref<1x1024xf32, #tpu.memory_space<vmem>>, vector<1x1024xf32>
    %cst_38 = arith.constant dense<0.000000e+00> : vector<1024xf32>
    %69 = vector.multi_reduction <add>, %66, %cst_38 [0] : vector<8x1024xf32> to vector<1024xf32>
    %70 = vector.shape_cast %69 : vector<1024xf32> to vector<1x1024xf32>
    %cst_39 = arith.constant 8.000000e+00 : f32
    %71 = vector.broadcast %cst_39 : f32 to vector<1x1024xf32>
    %72 = arith.divf %70, %71 : vector<1x1024xf32>
    %73 = vector.broadcast %72 : vector<1x1024xf32> to vector<8x1024xf32>
    %74 = arith.subf %66, %73 : vector<8x1024xf32>
    %75 = arith.mulf %74, %74 : vector<8x1024xf32>
    %cst_40 = arith.constant dense<0.000000e+00> : vector<1024xf32>
    %76 = vector.multi_reduction <add>, %75, %cst_40 [0] : vector<8x1024xf32> to vector<1024xf32>
    %77 = vector.shape_cast %76 : vector<1024xf32> to vector<1x1024xf32>
    %cst_41 = arith.constant 8.000000e+00 : f32
    %78 = vector.broadcast %cst_41 : f32 to vector<1x1024xf32>
    %79 = arith.divf %77, %78 : vector<1x1024xf32>
    %cst_42 = arith.constant 9.99999974E-6 : f32
    %80 = vector.broadcast %cst_42 : f32 to vector<1x1024xf32>
    %81 = arith.addf %79, %80 : vector<1x1024xf32>
    %82 = math.rsqrt %81 : vector<1x1024xf32>
    %83 = vector.broadcast %82 : vector<1x1024xf32> to vector<8x1024xf32>
    %84 = arith.mulf %74, %83 : vector<8x1024xf32>
    %85 = vector.broadcast %67 : vector<1x1024xf32> to vector<8x1024xf32>
    %86 = arith.mulf %84, %85 : vector<8x1024xf32>
    %87 = vector.broadcast %68 : vector<1x1024xf32> to vector<8x1024xf32>
    %88 = arith.addf %86, %87 : vector<8x1024xf32>
    %cst_43 = arith.constant 0.000000e+00 : f32
    %89 = vector.broadcast %cst_43 : f32 to vector<8x1024xf32>
    %90 = arith.maximumf %88, %89 : vector<8x1024xf32>
    %c0_44 = arith.constant 0 : index
    %c0_45 = arith.constant 0 : index
    %91 = vector.load %arg13[%c0_44, %c0_45] : memref<1024x896xbf16, #tpu.memory_space<vmem>>, vector<1024x896xbf16>
    %92 = arith.truncf %90 : vector<8x1024xf32> to vector<8x1024xbf16>
    %cst_46 = arith.constant dense<0.000000e+00> : vector<8x896xf32>
    %93 = tpu.matmul %92, %91, %cst_46 {dimension_numbers = #tpu.dot_dimension_numbers<[1], [0], [0], [1], [0, 0, 1, 1], [], []>} : vector<8x1024xbf16>, vector<1024x896xbf16>, vector<8x896xf32> -> vector<8x896xf32>
    %c0_47 = arith.constant 0 : index
    %c0_48 = arith.constant 0 : index
    %94 = vector.load %arg14[%c0_47, %c0_48] : memref<1x896xf32, #tpu.memory_space<vmem>>, vector<1x896xf32>
    %95 = vector.broadcast %94 : vector<1x896xf32> to vector<8x896xf32>
    %96 = arith.addf %93, %95 : vector<8x896xf32>
    %97 = math.tanh %96 : vector<8x896xf32>
    %c0_49 = arith.constant 0 : index
    %c0_50 = arith.constant 0 : index
    %98 = vector.load %arg15[%c0_49, %c0_50] : memref<8x896xf32, #tpu.memory_space<vmem>>, vector<8x896xf32>
    tpu.vector_store %arg15[%c0_49, %c0_50], %97 {strides = array<i32>} : memref<8x896xf32, #tpu.memory_space<vmem>>, vector<8x896xf32>,
    return
  }
  func.func @transform_0(%arg0: i32) -> (i32, i32) {
    %c0_i32 = arith.constant 0 : i32
    %c0_i32_0 = arith.constant 0 : i32
    return %arg0, %c0_i32 : i32, i32
  }
  func.func @transform_1(%arg0: i32) -> (i32, i32) {
    %c0_i32 = arith.constant 0 : i32
    %c0_i32_0 = arith.constant 0 : i32
    return %arg0, %c0_i32 : i32, i32
  }
  func.func @transform_2(%arg0: i32) -> (i32, i32) {
    %c0_i32 = arith.constant 0 : i32
    %c0_i32_0 = arith.constant 0 : i32
    %c0_i32_1 = arith.constant 0 : i32
    return %c0_i32, %c0_i32_0 : i32, i32
  }
  func.func @transform_3(%arg0: i32) -> (i32, i32) {
    %c0_i32 = arith.constant 0 : i32
    %c0_i32_0 = arith.constant 0 : i32
    %c0_i32_1 = arith.constant 0 : i32
    return %c0_i32, %c0_i32_0 : i32, i32
  }
  func.func @transform_4(%arg0: i32) -> (i32, i32) {
    %c0_i32 = arith.constant 0 : i32
    %c0_i32_0 = arith.constant 0 : i32
    %c0_i32_1 = arith.constant 0 : i32
    return %c0_i32, %c0_i32_0 : i32, i32
  }
  func.func @transform_5(%arg0: i32) -> (i32, i32) {
    %c0_i32 = arith.constant 0 : i32
    %c0_i32_0 = arith.constant 0 : i32
    %c0_i32_1 = arith.constant 0 : i32
    return %c0_i32, %c0_i32_0 : i32, i32
  }
  func.func @transform_6(%arg0: i32) -> (i32, i32) {
    %c0_i32 = arith.constant 0 : i32
    %c0_i32_0 = arith.constant 0 : i32
    %c0_i32_1 = arith.constant 0 : i32
    return %c0_i32, %c0_i32_0 : i32, i32
  }
  func.func @transform_7(%arg0: i32) -> (i32, i32) {
    %c0_i32 = arith.constant 0 : i32
    %c0_i32_0 = arith.constant 0 : i32
    %c0_i32_1 = arith.constant 0 : i32
    return %c0_i32, %c0_i32_0 : i32, i32
  }
  func.func @transform_8(%arg0: i32) -> (i32, i32) {
    %c0_i32 = arith.constant 0 : i32
    %c0_i32_0 = arith.constant 0 : i32
    %c0_i32_1 = arith.constant 0 : i32
    return %c0_i32, %c0_i32_0 : i32, i32
  }
  func.func @transform_9(%arg0: i32) -> (i32, i32) {
    %c0_i32 = arith.constant 0 : i32
    %c0_i32_0 = arith.constant 0 : i32
    %c0_i32_1 = arith.constant 0 : i32
    return %c0_i32, %c0_i32_0 : i32, i32
  }
  func.func @transform_10(%arg0: i32) -> (i32, i32) {
    %c0_i32 = arith.constant 0 : i32
    %c0_i32_0 = arith.constant 0 : i32
    %c0_i32_1 = arith.constant 0 : i32
    return %c0_i32, %c0_i32_0 : i32, i32
  }
  func.func @transform_11(%arg0: i32) -> (i32, i32) {
    %c0_i32 = arith.constant 0 : i32
    %c0_i32_0 = arith.constant 0 : i32
    %c0_i32_1 = arith.constant 0 : i32
    return %c0_i32, %c0_i32_0 : i32, i32
  }
  func.func @transform_12(%arg0: i32) -> (i32, i32) {
    %c0_i32 = arith.constant 0 : i32
    %c0_i32_0 = arith.constant 0 : i32
    %c0_i32_1 = arith.constant 0 : i32
    return %c0_i32, %c0_i32_0 : i32, i32
  }
  func.func @transform_13(%arg0: i32) -> (i32, i32) {
    %c0_i32 = arith.constant 0 : i32
    %c0_i32_0 = arith.constant 0 : i32
    %c0_i32_1 = arith.constant 0 : i32
    return %c0_i32, %c0_i32_0 : i32, i32
  }
  func.func @transform_14(%arg0: i32) -> (i32, i32) {
    %c0_i32 = arith.constant 0 : i32
    %c0_i32_0 = arith.constant 0 : i32
    return %arg0, %c0_i32 : i32, i32
  }
}

</mosaic_0001>

<bundles_post_ra>
// kernel: tpu_custom_call.1
= control target key start
LH: loop header
LB: loop body
LE: loop exit
PB: predicated region body
PF: predicated region fallthrough
CT: control target
= control target key end

     0   :  { %19 = vsyncpa [#allocation3], 0  ;;  %s12011_s0 = inlined_call_operand.hbm [shape: f32[8,128], index: 0, kind: input, shape index: {}]   ;;  %s12012_s1 = inlined_call_operand.vmem [shape: s32[8,1], index: 1, kind: input, shape index: {}]   ;;  %s12013_s2 = inlined_call_operand.hbm [shape: f32[16,256], index: 2, kind: input, shape index: {}]   ;;  %s12014_s3 = inlined_call_operand.hbm [shape: bf16[128,256], index: 3, kind: input, shape index: {}]   ;;  %s12015_s4 = inlined_call_operand.hbm [shape: f32[1,256], index: 4, kind: input, shape index: {}]   ;;  %s12016_s5 = inlined_call_operand.hbm [shape: f32[1,256], index: 5, kind: input, shape index: {}]   ;;  %s12017_s6 = inlined_call_operand.hbm [shape: bf16[256,512], index: 6, kind: input, shape index: {}]   ;;  %s12018_s7 = inlined_call_operand.hbm [shape: f32[1,512], index: 7, kind: input, shape index: {}]   ;;  %s12019_s8 = inlined_call_operand.hbm [shape: f32[1,512], index: 8, kind: input, shape index: {}]   ;;  %s12020_s9 = inlined_call_operand.hbm [shape: bf16[512,1024], index: 9, kind: input, shape index: {}]   ;;  %s12021_s10 = inlined_call_operand.hbm [shape: f32[1,1024], index: 10, kind: input, shape index: {}]   ;;  %s12022_s11 = inlined_call_operand.hbm [shape: f32[1,1024], index: 11, kind: input, shape index: {}]   ;;  %s12023_s12 = inlined_call_operand.hbm [shape: bf16[1024,896], index: 12, kind: input, shape index: {}]   ;;  %s12024_s13 = inlined_call_operand.hbm [shape: f32[1,896], index: 13, kind: input, shape index: {}]   ;;  %s12025_s14 = inlined_call_operand.hbm [shape: f32[8,896], index: 14, kind: output, shape index: {}]  }
   0x1   :  { %20 = vsyncpa [#allocation6], 0 }
   0x2   :  { %21 = vsyncpa [#allocation9], 0 }
   0x3   :  { %22 = vsyncpa [#allocation12], 0 }
   0x4   :  { %23 = vsyncpa [#allocation15], 0 }
   0x5   :  { %24 = vsyncpa [#allocation18], 0 }
   0x6   :  { %25 = vsyncpa [#allocation21], 0  ;;  %s44_s15 = sshll.u32 %s12013_s2, 4  ;;  %s45_s15 = int_to_ptr.hbm [resolvable:$true] %s44_s15 }
   0x7   :  { %26 = vsyncpa [#allocation4], 0  ;;  %s11325_s16 = smov [#allocation5]   ;;  %s71_s20 = sshll.u32 %s12015_s4, 4  ;;  %s72_s20 = int_to_ptr.hbm [resolvable:$true] %s71_s20 }
   0x8   :  { %s46_s17 = sshll.u32 %s11325_s16, 4  ;;  %s11326_s21 = smov 256   ;;  %s47_s17 = int_to_ptr.vmem [resolvable:$true] %s46_s17 }
   0x9   :  { %s11327_s22 = smov 16   ;;  %s11328_s23 = smov [#allocation8]  }
   0xa   :  { %52 = dma.hbm_to_vmem [thread:$0]  %s45_s15, 512, %s47_s17, [#allocation6], %s11326_s21, %s11326_s21, %s11327_s22  }
   0xb   :  { %s73_s24 = sshll.u32 %s11328_s23, 4  ;;  %s92_s27 = sshll.u32 %s12017_s6, 4  ;;  %s74_s24 = int_to_ptr.vmem [resolvable:$true] %s73_s24  ;;  %s93_s27 = int_to_ptr.hbm [resolvable:$true] %s92_s27 }
   0xc   :  { %76 = dma.hbm_to_vmem [thread:$0]  %s72_s20, 32, %s74_s24, [#allocation9]  }
   0xd   :  { %s117_s29 = sshll.u32 %s12019_s8, 4  ;;  %s11329_s30 = smov [#allocation11]   ;;  %s118_s29 = int_to_ptr.hbm [resolvable:$true] %s117_s29 }
   0xe   :  { %s94_s16 = sshll.u32 %s11329_s30, 4  ;;  %s11330_s4 = smov [#allocation14]   ;;  %s95_s16 = int_to_ptr.vmem [resolvable:$true] %s94_s16 }
   0xf   :  { %100 = dma.hbm_to_vmem [thread:$0]  %s93_s27, 8192, %s95_s16, [#allocation12], %s11326_s21, %s11326_s21, %s11327_s22  }
  0x10   :  { %s119_s15 = sshll.u32 %s11330_s4, 4  ;;  %s141_s19 = sshll.u32 %s12021_s10, 4  ;;  %s120_s15 = int_to_ptr.vmem [resolvable:$true] %s119_s15  ;;  %s142_s19 = int_to_ptr.hbm [resolvable:$true] %s141_s19 }
  0x11   :  { %122 = dma.hbm_to_vmem [thread:$0]  %s118_s29, 64, %s120_s15, [#allocation15]  }
  0x12   :  { %s162_s23 = sshll.u32 %s12023_s12, 4  ;;  %s11331_s24 = smov [#allocation17]   ;;  %s163_s23 = int_to_ptr.hbm [resolvable:$true] %s162_s23 }
  0x13   :  { %s143_s8 = sshll.u32 %s11331_s24, 4  ;;  %s11332_s25 = smov [#allocation20]   ;;  %s144_s8 = int_to_ptr.vmem [resolvable:$true] %s143_s8 }
  0x14   :  { %146 = dma.hbm_to_vmem [thread:$0]  %s142_s19, 128, %s144_s8, [#allocation18]  }
  0x15   :  { %s164_s21 = sshll.u32 %s11332_s25, 4  ;;  %s11333_s22 = smov 448   ;;  %s165_s21 = int_to_ptr.vmem [resolvable:$true] %s164_s21 }
  0x16   :  { %s11334_s26 = smov 28   ;;  %s32_s2 = sshll.u32 %s12011_s0, 4  ;;  %s33_s2 = int_to_ptr.hbm [resolvable:$true] %s32_s2 }
  0x17   :  { %170 = dma.hbm_to_vmem [thread:$0]  %s163_s23, 57344, %s165_s21, [#allocation21], %s11333_s22, %s11333_s22, %s11334_s26  }
  0x18   :  { %s11335_s28 = smov [#allocation2]   ;;  %s57_s16 = sshll.u32 %s12014_s3, 4  ;;  %s58_s16 = int_to_ptr.hbm [resolvable:$true] %s57_s16 }
  0x19   :  { %s34_s29 = sshll.u32 %s11335_s28, 4  ;;  %s11336_s4 = smov [#allocation7]   ;;  %s35_s29 = int_to_ptr.vmem [resolvable:$true] %s34_s29 }
  0x1a   :  { %37 = dma.hbm_to_vmem [thread:$0]  %s33_s2, 128, %s35_s29, [#allocation3]  }
  0x1b   :  { %s59_s15 = sshll.u32 %s11336_s4, 4  ;;  %s11337_s17 = smov 128   ;;  %s60_s15 = int_to_ptr.vmem [resolvable:$true] %s59_s15 }
  0x1c   :  { %s11338_s18 = smov 8   ;;  %s82_s0 = sshll.u32 %s12016_s5, 4  ;;  %s83_s0 = int_to_ptr.hbm [resolvable:$true] %s82_s0 }
  0x1d   :  { %65 = dma.hbm_to_vmem [thread:$0]  %s58_s16, 2048, %s60_s15, [#allocation6], %s11337_s17, %s11337_s17, %s11338_s18  }
  0x1e   :  { %s11339_s20 = smov [#allocation10]   ;;  %s106_s3 = sshll.u32 %s12018_s7, 4  ;;  %s107_s3 = int_to_ptr.hbm [resolvable:$true] %s106_s3 }
  0x1f   :  { %s84_s23 = sshll.u32 %s11339_s20, 4  ;;  %s11340_s25 = smov [#allocation13]   ;;  %s85_s23 = int_to_ptr.vmem [resolvable:$true] %s84_s23 }
  0x20   :  { %87 = dma.hbm_to_vmem [thread:$0]  %s83_s0, 32, %s85_s23, [#allocation9]  }
  0x21   :  { %s108_s21 = sshll.u32 %s11340_s25, 4  ;;  %s127_s27 = sshll.u32 %s12020_s9, 4  ;;  %s109_s21 = int_to_ptr.vmem [resolvable:$true] %s108_s21  ;;  %s128_s27 = int_to_ptr.hbm [resolvable:$true] %s127_s27 }
  0x22   :  { %111 = dma.hbm_to_vmem [thread:$0]  %s107_s3, 64, %s109_s21, [#allocation12]  }
  0x23   :  { %s11341_s5 = smov [#allocation16]   ;;  %s152_s29 = sshll.u32 %s12022_s11, 4  ;;  %s153_s29 = int_to_ptr.hbm [resolvable:$true] %s152_s29 }
  0x24   :  { %s129_s10 = sshll.u32 %s11341_s5, 4  ;;  %s11342_s12 = smov 512   ;;  %s130_s10 = int_to_ptr.vmem [resolvable:$true] %s129_s10 }
  0x25   :  { %s11343_s7 = smov 32   ;;  %s11344_s30 = smov [#allocation19]  }
  0x26   :  { %135 = dma.hbm_to_vmem [thread:$0]  %s128_s27, 32768, %s130_s10, [#allocation15], %s11342_s12, %s11342_s12, %s11343_s7  }
  0x27   :  { %s154_s16 = sshll.u32 %s11344_s30, 4  ;;  %s176_s9 = sshll.u32 %s12024_s13, 4  ;;  %s155_s16 = int_to_ptr.vmem [resolvable:$true] %s154_s16  ;;  %s177_s9 = int_to_ptr.hbm [resolvable:$true] %s176_s9 }
  0x28   :  { %157 = dma.hbm_to_vmem [thread:$0]  %s153_s29, 128, %s155_s16, [#allocation18]  }
  0x29   :  { %s11345_s17 = smov [#allocation22]  }
  0x2a   :  { %s178_s18 = sshll.u32 %s11345_s17, 4  ;;  %s179_s18 = int_to_ptr.vmem [resolvable:$true] %s178_s18 }
  0x2b   :  { %181 = dma.hbm_to_vmem [thread:$0]  %s177_s9, 112, %s179_s18, [#allocation21]  }
  0x2c   :  { %11309 = dma.done.wait [#allocation3], 128  }
  0x2d   :  { %11310 = vsyncadd [#allocation3], 4294967168 }
  0x2e   :  { %11311 = dma.done.wait [#allocation6], 2560  }
  0x2f   :  { %11312 = vsyncadd [#allocation6], 4294964736 }
  0x30   :  { %11313 = dma.done.wait [#allocation9], 64  }
  0x31   :  { %11314 = vsyncadd [#allocation9], 4294967232 }
  0x32   :  { %11315 = dma.done.wait [#allocation12], 8256  }
  0x33   :  { %11316 = vsyncadd [#allocation12], 4294959040 }
  0x34   :  { %11317 = dma.done.wait [#allocation15], 32832  }
  0x35   :  { %11318 = vsyncadd [#allocation15], 4294934464 }
  0x36   :  { %11319 = dma.done.wait [#allocation18], 256  }
  0x37   :  { %11320 = vsyncadd [#allocation18], 4294967040 }
  0x38   :  { %11321 = dma.done.wait [#allocation21], 57456  }
  0x39   :  { %11322 = vsyncadd [#allocation21], 4294909840  ;;  %v11346_v0 = vmov 0   ;;  %v234_v1 = vld [vmem:[%s12012_s1] sm:$0xff]  ;;  %v7036_v2 = vld [vmem:[#allocation7 + $0x70] sm:$0xf]  ;;  %v235_v56 = vlaneseq }
  0x3a   :  { %10923 = vset.pattern.permute.xlu0 %v11346_v0  ;;  %v10129_v3 = vld [vmem:[#allocation7 + $0x74] sm:$0xf0]  ;;  %v10128_v5 = vld [vmem:[#allocation7 + $0x74] sm:$0xf]  ;;  %v7038_v6 = vld [vmem:[#allocation7 + $0x78] sm:$0xf0] }
  0x3b   :  { %238 = vperm.xlu0 %10923, %v234_v1   ;;  %v7037_v4 = vor.u32 %v10129_v3, %v7036_v2  ;;  %v7028_v7 = vld [vmem:[#allocation7 + $0x60] sm:$0xf]  ;;  %v7041_v8 = vor.u32 %v10128_v5, %v7038_v6  ;;  %v10127_v9 = vld [vmem:[#allocation7 + $0x64] sm:$0xf0]  ;;  %v10126_v10 = vld [vmem:[#allocation7 + $0x64] sm:$0xf] }
  0x3c   :  { %v7030_v11 = vld [vmem:[#allocation7 + $0x68] sm:$0xf0]  ;;  %v7029_v12 = vor.u32 %v10127_v9, %v7028_v7  ;;  %v7020_v14 = vld [vmem:[#allocation7 + $0x50] sm:$0xf]  ;;  %v10125_v15 = vld [vmem:[#allocation7 + $0x54] sm:$0xf0] }
  0x3d   :  { %389 = vmatpush.bf16.msra.mxu2 %v7037_v4  ;;  %402 = vmatpush.bf16.msra.mxu3 %v7041_v8  ;;  %v7033_v13 = vor.u32 %v10126_v10, %v7030_v11  ;;  %v10124_v16 = vld [vmem:[#allocation7 + $0x54] sm:$0xf]  ;;  %v7022_v17 = vld [vmem:[#allocation7 + $0x58] sm:$0xf0]  ;;  %v7021_v18 = vor.u32 %v10125_v15, %v7020_v14  ;;  %v7012_v20 = vld [vmem:[#allocation7 + $0x40] sm:$0xf] }
  0x3e   :  { %v7025_v19 = vor.u32 %v10124_v16, %v7022_v17  ;;  %v10123_v21 = vld [vmem:[#allocation7 + $0x44] sm:$0xf0]  ;;  %v10122_v22 = vld [vmem:[#allocation7 + $0x44] sm:$0xf]  ;;  %v7014_v23 = vld [vmem:[#allocation7 + $0x48] sm:$0xf0] }
  0x3f   :  { %v7013_v24 = vor.u32 %v10123_v21, %v7012_v20  ;;  %v245_v25 = vld [vmem:[#allocation5 + $0x10] sm:$0xff]  ;;  %v246_v26 = vld [vmem:[#allocation5 + $0x18] sm:$0xff]  ;;  %v7017_v27 = vor.u32 %v10122_v22, %v7014_v23  ;;  %v6996_v34 = vld [vmem:[#allocation7 + $0x20] sm:$0xf]  ;;  %v236_v57 = vand.u32 127, %v235_v56  ;;  %vm247_vm0 = vcmask 130048  }
  0x40   :  { %v7004_v28 = vld [vmem:[#allocation7 + $0x30] sm:$0xf]  ;;  %v10121_v29 = vld [vmem:[#allocation7 + $0x34] sm:$0xf0]  ;;  %265 = vmatpush.msra.mxu0 %v245_v25  ;;  %v10120_v30 = vld [vmem:[#allocation7 + $0x34] sm:$0xf]  ;;  %285 = vmatpush.msra.mxu1 %v246_v26 }
  0x41   :  { %390 = vmatpush.bf16.msra.mxu2 %v7029_v12  ;;  %403 = vmatpush.bf16.msra.mxu3 %v7033_v13  ;;  %v7006_v31 = vld [vmem:[#allocation7 + $0x38] sm:$0xf0]  ;;  %v7005_v32 = vor.u32 %v10121_v29, %v7004_v28  ;;  %v10119_v35 = vld [vmem:[#allocation7 + $0x24] sm:$0xf0]  ;;  %v10118_v36 = vld [vmem:[#allocation7 + $0x24] sm:$0xf] }
  0x42   :  { %v7009_v33 = vor.u32 %v10120_v30, %v7006_v31  ;;  %v6998_v37 = vld [vmem:[#allocation7 + $0x28] sm:$0xf0]  ;;  %v6997_v38 = vor.u32 %v10119_v35, %v6996_v34  ;;  %v6988_v40 = vld [vmem:[#allocation7 + $0x10] sm:$0xf]  ;;  %v10117_v41 = vld [vmem:[#allocation7 + $0x14] sm:$0xf0] }
  0x43   :  { %v7001_v39 = vor.u32 %v10118_v36, %v6998_v37  ;;  %v10116_v42 = vld [vmem:[#allocation7 + $0x14] sm:$0xf]  ;;  %v6990_v43 = vld [vmem:[#allocation7 + $0x18] sm:$0xf0]  ;;  %v6989_v44 = vor.u32 %v10117_v41, %v6988_v40  ;;  %v6980_v46 = vld [vmem:[#allocation7] sm:$0xf] }
  0x44   :  { %v6993_v45 = vor.u32 %v10116_v42, %v6990_v43  ;;  %v10115_v47 = vld [vmem:[#allocation7 + $0x4] sm:$0xf0]  ;;  %v10114_v48 = vld [vmem:[#allocation7 + $0x4] sm:$0xf]  ;;  %v6982_v49 = vld [vmem:[#allocation7 + $0x8] sm:$0xf0] }
  0x45   :  { %391 = vmatpush.bf16.msra.mxu2 %v7021_v18  ;;  %404 = vmatpush.bf16.msra.mxu3 %v7025_v19  ;;  %v6981_v50 = vor.u32 %v10115_v47, %v6980_v46  ;;  %v291_v51 = vld [vmem:[#allocation2] sm:$0xff]  ;;  %v6985_v52 = vor.u32 %v10114_v48, %v6982_v49  ;;  %v243_v54 = vld [vmem:[#allocation5] sm:$0xff]  ;;  %v244_v55 = vld [vmem:[#allocation5 + $0x8] sm:$0xff]  ;;  %v11347_v59 = vmov 0.0   ;;  %v11348_v1 = vmov 8.0   ;;  %s11349_s1 = smov [#allocation23]  }
  0x46   :  { %v308_v53 = vpack.c.bf16 %v291_v51, %v291_v51  ;;  %266 = vmatpush.msra.mxu0 %v243_v54  ;;  %286 = vmatpush.msra.mxu1 %v244_v55  ;;  %10924 = vrcp.f32 %v11348_v1  ;;  %v7156_v2 = vld [vmem:[#allocation11 + $0xe0] sm:$0xf]  ;;  %v10160_v3 = vld [vmem:[#allocation11 + $0xec] sm:$0xf0]  ;;  %v10158_v7 = vld [vmem:[#allocation11 + $0xe4] sm:$0xf] }
  0x47   :  { %v7284_v4 = vld [vmem:[#allocation11 + $0x1e0] sm:$0xf]  ;;  %v7157_v5 = vor.u32 %v10160_v3, %v7156_v2  ;;  %v10192_v6 = vld [vmem:[#allocation11 + $0x1ec] sm:$0xf0]  ;;  %v7158_v8 = vld [vmem:[#allocation11 + $0xf0] sm:$0xf0] }
  0x48   :  { %v7285_v9 = vor.u32 %v10192_v6, %v7284_v4  ;;  %v7161_v10 = vor.u32 %v10158_v7, %v7158_v8  ;;  %v10190_v11 = vld [vmem:[#allocation11 + $0x1e4] sm:$0xf]  ;;  %v7286_v12 = vld [vmem:[#allocation11 + $0x1f0] sm:$0xf0]  ;;  %v7140_v15 = vld [vmem:[#allocation11 + $0xc0] sm:$0xf] }
  0x49   :  { %392 = vmatpush.bf16.msra.mxu2 %v7013_v24  ;;  %405 = vmatpush.bf16.msra.mxu3 %v7017_v27  ;;  %v7289_v13 = vor.u32 %v10190_v11, %v7286_v12  ;;  %v10156_v16 = vld [vmem:[#allocation11 + $0xcc] sm:$0xf0]  ;;  %v7268_v17 = vld [vmem:[#allocation11 + $0x1c0] sm:$0xf]  ;;  %v10154_v20 = vld [vmem:[#allocation11 + $0xc4] sm:$0xf] }
  0x4a   :  { %882 = vmatpush.bf16.msrb.mxu0 %v7157_v5  ;;  %895 = vmatpush.bf16.msrb.mxu1 %v7285_v9  ;;  %v7141_v18 = vor.u32 %v10156_v16, %v7140_v15  ;;  %v10188_v19 = vld [vmem:[#allocation11 + $0x1cc] sm:$0xf0]  ;;  %v7142_v21 = vld [vmem:[#allocation11 + $0xd0] sm:$0xf0]  ;;  %v10186_v24 = vld [vmem:[#allocation11 + $0x1c4] sm:$0xf] }
  0x4b   :  { %v7269_v22 = vor.u32 %v10188_v19, %v7268_v17  ;;  %v7145_v23 = vor.u32 %v10154_v20, %v7142_v21  ;;  %v7270_v25 = vld [vmem:[#allocation11 + $0x1d0] sm:$0xf0]  ;;  %v7124_v28 = vld [vmem:[#allocation11 + $0xa0] sm:$0xf]  ;;  %v10152_v29 = vld [vmem:[#allocation11 + $0xac] sm:$0xf0] }
  0x4c   :  { %v11471_v14 = vpop.eup %10924  ;;  %v7273_v27 = vor.u32 %v10186_v24, %v7270_v25  ;;  %v7252_v30 = vld [vmem:[#allocation11 + $0x1a0] sm:$0xf]  ;;  %v7125_v31 = vor.u32 %v10152_v29, %v7124_v28  ;;  %v7126_v34 = vld [vmem:[#allocation11 + $0xb0] sm:$0xf0]  ;;  %v10182_v37 = vld [vmem:[#allocation11 + $0x1a4] sm:$0xf] }
  0x4d   :  { %393 = vmatpush.bf16.msra.mxu2 %v7005_v32  ;;  %406 = vmatpush.bf16.msra.mxu3 %v7009_v33  ;;  %v430_v26 = vmul.f32 8.0, %v11471_v14  ;;  %v10184_v32 = vld [vmem:[#allocation11 + $0x1ac] sm:$0xf0]  ;;  %v10150_v33 = vld [vmem:[#allocation11 + $0xa4] sm:$0xf]  ;;  %vm434_vm2 = vweird.f32 %v11471_v14  ;;  %s6957_s19 = sshll.u32 %s11349_s1, 4  ;;  %s6958_s19 = int_to_ptr.vmem [resolvable:$true] %s6957_s19 }
  0x4e   :  { %883 = vmatpush.bf16.msrb.mxu0 %v7141_v18  ;;  %896 = vmatpush.bf16.msrb.mxu1 %v7269_v22  ;;  %v7253_v35 = vor.u32 %v10184_v32, %v7252_v30  ;;  %v7129_v36 = vor.u32 %v10150_v33, %v7126_v34  ;;  %v7108_v41 = vld [vmem:[#allocation11 + $0x80] sm:$0xf]  ;;  %v10148_v42 = vld [vmem:[#allocation11 + $0x8c] sm:$0xf0]  ;;  %v10146_v48 = vld [vmem:[#allocation11 + $0x84] sm:$0xf] }
  0x4f   :  { %v7236_v43 = vld [vmem:[#allocation11 + $0x180] sm:$0xf]  ;;  %v7109_v46 = vor.u32 %v10148_v42, %v7108_v41  ;;  %v10180_v47 = vld [vmem:[#allocation11 + $0x18c] sm:$0xf0]  ;;  %v7110_v49 = vld [vmem:[#allocation11 + $0x90] sm:$0xf0] }
  0x50   :  { %v10178_v54 = vld [vmem:[#allocation11 + $0x184] sm:$0xf]  ;;  %v7238_v55 = vld [vmem:[#allocation11 + $0x190] sm:$0xf0]  ;;  %v7076_v12 = vld [vmem:[#allocation11 + $0x40] sm:$0xf] }
  0x51   :  { %394 = vmatpush.bf16.msra.mxu2 %v6997_v38  ;;  %407 = vmatpush.bf16.msra.mxu3 %v7001_v39  ;;  %v7254_v38 = vld [vmem:[#allocation11 + $0x1b0] sm:$0xf0]  ;;  %v431_v39 = vsub.f32 1.0, %v430_v26  ;;  %v7241_v56 = vor.u32 %v10178_v54, %v7238_v55  ;;  %v10142_v1 = vld [vmem:[#allocation11 + $0x64] sm:$0xf]  ;;  %s6959_s20 = sshll.u32 %s12025_s14, 4  ;;  %s6960_s20 = int_to_ptr.hbm [resolvable:$true] %s6959_s20 }
  0x52   :  { %884 = vmatpush.bf16.msrb.mxu0 %v7125_v31  ;;  %v7257_v40 = vor.u32 %v10182_v37, %v7254_v38  ;;  %897 = vmatpush.bf16.msrb.mxu1 %v7253_v35  ;;  %v7094_v5 = vld [vmem:[#allocation11 + $0x70] sm:$0xf0]  ;;  %v10174_v6 = vld [vmem:[#allocation11 + $0x164] sm:$0xf]  ;;  %v7204_v17 = vld [vmem:[#allocation11 + $0x140] sm:$0xf] }
  0x53   :  { %v7222_v7 = vld [vmem:[#allocation11 + $0x170] sm:$0xf0]  ;;  %v7097_v8 = vor.u32 %v10142_v1, %v7094_v5  ;;  %v10172_v18 = vld [vmem:[#allocation11 + $0x14c] sm:$0xf0]  ;;  %v10138_v19 = vld [vmem:[#allocation11 + $0x44] sm:$0xf] }
  0x54   :  { %v7225_v9 = vor.u32 %v10174_v6, %v7222_v7  ;;  %v7205_v22 = vor.u32 %v10172_v18, %v7204_v17  ;;  %v10170_v24 = vld [vmem:[#allocation11 + $0x144] sm:$0xf]  ;;  %v7206_v25 = vld [vmem:[#allocation11 + $0x150] sm:$0xf0]  ;;  %v7060_v30 = vld [vmem:[#allocation11 + $0x20] sm:$0xf] }
  0x55   :  { %395 = vmatpush.bf16.msra.mxu2 %v6989_v44  ;;  %408 = vmatpush.bf16.msra.mxu3 %v6993_v45  ;;  %v10136_v31 = vld [vmem:[#allocation11 + $0x2c] sm:$0xf0]  ;;  %v7188_v34 = vld [vmem:[#allocation11 + $0x120] sm:$0xf]  ;;  %v10166_v41 = vld [vmem:[#allocation11 + $0x124] sm:$0xf] }
  0x56   :  { %885 = vmatpush.bf16.msrb.mxu0 %v7109_v46  ;;  %v7061_v33 = vor.u32 %v10136_v31, %v7060_v30  ;;  %v10168_v35 = vld [vmem:[#allocation11 + $0x12c] sm:$0xf0]  ;;  %v7190_v42 = vld [vmem:[#allocation11 + $0x130] sm:$0xf0]  ;;  %v7044_v46 = vld [vmem:[#allocation11] sm:$0xf] }
  0x57   :  { %v7046_v54 = vld [vmem:[#allocation11 + $0x10] sm:$0xf0]  ;;  %v10193_v1 = vld [vmem:[#allocation11 + $0x1f4] sm:$0xf0]  ;;  %v7166_v5 = vld [vmem:[#allocation11 + $0xf8] sm:$0xf0] }
  0x58   :  { %v10191_v6 = vld [vmem:[#allocation11 + $0x1ec] sm:$0xf]  ;;  %v10189_v17 = vld [vmem:[#allocation11 + $0x1d4] sm:$0xf0] }
  0x59   :  { %396 = vmatpush.bf16.msra.mxu2 %v6981_v50  ;;  %409 = vmatpush.bf16.msra.mxu3 %v6985_v52  ;;  %v7237_v52 = vor.u32 %v10180_v47, %v7236_v43  ;;  %v10132_v47 = vld [vmem:[#allocation11 + $0xc] sm:$0xf0] }
  0x5b   :  { %898 = vmatpush.bf16.msrb.mxu1 %v7237_v52  ;;  %v10164_v52 = vld [vmem:[#allocation11 + $0x10c] sm:$0xf0] }
  0x5c   :  { %397 = vmatmul.bf16.vlgmr.msra.gmra.mxu2 %v308_v53  ;;  %410 = vmatmul.bf16.vlgmr.msra.gmra.mxu3 %v308_v53  ;;  %v7113_v53 = vor.u32 %v10146_v48, %v7110_v49  ;;  %v7172_v48 = vld [vmem:[#allocation11 + $0x100] sm:$0xf]  ;;  %v7045_v49 = vor.u32 %v10132_v47, %v7044_v46  ;;  %v10181_v46 = vld [vmem:[#allocation11 + $0x194] sm:$0xf0]  ;;  %v10147_v47 = vld [vmem:[#allocation11 + $0x8c] sm:$0xf] }
  0x5d   :  { %908 = vmatpush.bf16.msrb.mxu2 %v7161_v10  ;;  %921 = vmatpush.bf16.msrb.mxu3 %v7289_v13  ;;  %v10140_v13 = vld [vmem:[#allocation11 + $0x4c] sm:$0xf0] }
  0x5e   :  { %v7077_v16 = vor.u32 %v10140_v13, %v7076_v12 }
  0x61   :  { %909 = vmatpush.bf16.msrb.mxu2 %v7145_v23  ;;  %922 = vmatpush.bf16.msrb.mxu3 %v7273_v27  ;;  %v7078_v23 = vld [vmem:[#allocation11 + $0x50] sm:$0xf0]  ;;  %v7209_v27 = vor.u32 %v10170_v24, %v7206_v25  ;;  %v7278_v25 = vld [vmem:[#allocation11 + $0x1d8] sm:$0xf0] }
  0x62   :  { %v7081_v26 = vor.u32 %v10138_v19, %v7078_v23  ;;  %v10155_v19 = vld [vmem:[#allocation11 + $0xcc] sm:$0xf] }
  0x65   :  { %910 = vmatpush.bf16.msrb.mxu2 %v7129_v36  ;;  %923 = vmatpush.bf16.msrb.mxu3 %v7257_v40  ;;  %v10134_v36 = vld [vmem:[#allocation11 + $0x24] sm:$0xf]  ;;  %v7062_v40 = vld [vmem:[#allocation11 + $0x30] sm:$0xf0] }
  0x66   :  { %v7065_v43 = vor.u32 %v10134_v36, %v7062_v40  ;;  %v10151_v36 = vld [vmem:[#allocation11 + $0xac] sm:$0xf] }
  0x69   :  { %911 = vmatpush.bf16.msrb.mxu2 %v7113_v53  ;;  %924 = vmatpush.bf16.msrb.mxu3 %v7241_v56  ;;  %v10130_v53 = vld [vmem:[#allocation11 + $0x4] sm:$0xf] }
  0x6d   :  { %912 = vmatpush.bf16.msrb.mxu2 %v7097_v8  ;;  %925 = vmatpush.bf16.msrb.mxu3 %v7225_v9  ;;  %v7294_v8 = vld [vmem:[#allocation11 + $0x1f8] sm:$0xf0]  ;;  %v7148_v9 = vld [vmem:[#allocation11 + $0xc8] sm:$0xf] }
  0x6e   :  { %v7297_v13 = vor.u32 %v10191_v6, %v7294_v8  ;;  %v7102_v6 = vld [vmem:[#allocation11 + $0x78] sm:$0xf0] }
  0x6f   :  { %v7230_v8 = vld [vmem:[#allocation11 + $0x178] sm:$0xf0] }
  0x71   :  { %913 = vmatpush.bf16.msrb.mxu2 %v7081_v26  ;;  %926 = vmatpush.bf16.msrb.mxu3 %v7209_v27  ;;  %v7132_v27 = vld [vmem:[#allocation11 + $0xa8] sm:$0xf] }
  0x75   :  { %914 = vmatpush.bf16.msrb.mxu2 %v7065_v43  ;;  %v7116_v43 = vld [vmem:[#allocation11 + $0x88] sm:$0xf] }
  0xad   :  { %v239_v58 = vpop.permute.xlu0 %238 }
  0xae   :  { %vm240_vm1 = vcmp.eq.s32.totalorder %v239_v58, %v236_v57 }
  0xaf   :  { %v6975_v60 = vsel %vm240_vm1, 1.0, %v11347_v59  ;;  %v7092_v59 = vld [vmem:[#allocation11 + $0x60] sm:$0xf] }
  0xb0   :  { %6976 = vmatmul.msk.f32.vlgmr.msra.gmra.mxu0 %vm247_vm0, %v6975_v60  ;;  %6977 = vmatmul.msk.f32.vlgmr.msra.gmra.mxu1 %vm247_vm0, %v6975_v60  ;;  %v10144_v60 = vld [vmem:[#allocation11 + $0x6c] sm:$0xf0] }
  0xdf   :  { %v11467_v61 = vpop.f32.mrf.mxu2  ;;  %v11469_v62 = vpop.f32.mrf.mxu3 }
  0xe7   :  { %v400_v63 = vpop.f32.mrf.mxu2  ;;  %v413_v0 = vpop.f32.mrf.mxu3 }
  0xe8   :  { %v7093_v63 = vor.u32 %v10144_v60, %v7092_v59  ;;  %v10176_v0 = vld [vmem:[#allocation11 + $0x16c] sm:$0xf0]  ;;  %v10162_v59 = vld [vmem:[#allocation11 + $0x104] sm:$0xf]  ;;  %v7174_v60 = vld [vmem:[#allocation11 + $0x110] sm:$0xf0] }
  0xea   :  { %886 = vmatpush.bf16.msrb.mxu0 %v7093_v63  ;;  %v7177_v63 = vor.u32 %v10162_v59, %v7174_v60  ;;  %v7246_v59 = vld [vmem:[#allocation11 + $0x198] sm:$0xf0] }
  0xee   :  { %887 = vmatpush.bf16.msrb.mxu0 %v7077_v16  ;;  %v7276_v16 = vld [vmem:[#allocation11 + $0x1c8] sm:$0xf] }
  0xef   :  { %v7277_v18 = vor.u32 %v10189_v17, %v7276_v16  ;;  %v7212_v16 = vld [vmem:[#allocation11 + $0x148] sm:$0xf]  ;;  %v10173_v17 = vld [vmem:[#allocation11 + $0x154] sm:$0xf0] }
  0xf2   :  { %888 = vmatpush.bf16.msrb.mxu0 %v7061_v33  ;;  %v7260_v33 = vld [vmem:[#allocation11 + $0x1a8] sm:$0xf] }
  0xf6   :  { %889 = vmatpush.bf16.msrb.mxu0 %v7045_v49 }
 0x12d   :  { %v268_v44 = vpop.f32.mrf.mxu0  ;;  %v288_v45 = vpop.f32.mrf.mxu1 }
 0x12e   :  { %v11475_v50 = vadd.f32 %v11467_v61, %v268_v44  ;;  %v11478_v51 = vadd.f32 %v11469_v62, %v288_v45  ;;  %v432_v61 = vmul.f32 %v11471_v14, %v431_v39  ;;  %v7220_v62 = vld [vmem:[#allocation11 + $0x160] sm:$0xf]  ;;  %v7189_v39 = vor.u32 %v10168_v35, %v7188_v34  ;;  %v10185_v34 = vld [vmem:[#allocation11 + $0x1b4] sm:$0xf0] }
 0x12f   :  { %v7221_v4 = vor.u32 %v10176_v0, %v7220_v62  ;;  %v7193_v44 = vor.u32 %v10166_v41, %v7190_v42  ;;  %v10161_v62 = vld [vmem:[#allocation11 + $0xf4] sm:$0xf0]  ;;  %v7292_v0 = vld [vmem:[#allocation11 + $0x1e8] sm:$0xf]  ;;  %v7261_v35 = vor.u32 %v10185_v34, %v7260_v33  ;;  %v7262_v42 = vld [vmem:[#allocation11 + $0x1b8] sm:$0xf0] }
 0x130   :  { %v417_v57 = vrot.slane %v11475_v50, 4  ;;  %v423_v58 = vrot.slane %v11478_v51, 4  ;;  %v433_v15 = vadd.f32 %v11471_v14, %v432_v61  ;;  %v7164_v61 = vld [vmem:[#allocation11 + $0xe8] sm:$0xf]  ;;  %v10167_v33 = vld [vmem:[#allocation11 + $0x12c] sm:$0xf] }
 0x131   :  { %899 = vmatpush.bf16.msrb.mxu1 %v7221_v4  ;;  %927 = vmatpush.bf16.msrb.mxu3 %v7193_v44  ;;  %v10159_v4 = vld [vmem:[#allocation11 + $0xec] sm:$0xf]  ;;  %v10149_v44 = vld [vmem:[#allocation11 + $0x94] sm:$0xf0]  ;;  %v7198_v34 = vld [vmem:[#allocation11 + $0x138] sm:$0xf0] }
 0x132   :  { %v418_v2 = vadd.f32 %v417_v57, %v11475_v50  ;;  %v424_v3 = vadd.f32 %v423_v58, %v11478_v51  ;;  %v11488_v32 = vsel %vm434_vm2, %v11471_v14, %v433_v15  ;;  %v7173_v57 = vor.u32 %v10164_v52, %v7172_v48 }
 0x133   :  { %v7049_v58 = vor.u32 %v10130_v53, %v7046_v54  ;;  %v7169_v7 = vor.u32 %v10159_v4, %v7166_v5  ;;  %v7117_v52 = vor.u32 %v10149_v44, %v7116_v43  ;;  %v7118_v54 = vld [vmem:[#allocation11 + $0x98] sm:$0xf0]  ;;  %v10143_v4 = vld [vmem:[#allocation11 + $0x6c] sm:$0xf]  ;;  %v7201_v43 = vor.u32 %v10167_v33, %v7198_v34  ;;  %v7428_v33 = vld [vmem:[#allocation16 + $0x100] sm:$0xf] }
 0x134   :  { %v419_v10 = vrot.slane %v418_v2, 2  ;;  %v425_v11 = vrot.slane %v424_v3, 2  ;;  %v10131_v44 = vld [vmem:[#allocation11 + $0xc] sm:$0xf]  ;;  %v10230_v34 = vld [vmem:[#allocation16 + $0x11c] sm:$0xf0] }
 0x135   :  { %900 = vmatpush.bf16.msrb.mxu1 %v7205_v22  ;;  %915 = vmatpush.bf16.msrb.mxu2 %v7049_v58  ;;  %v7121_v58 = vor.u32 %v10147_v47, %v7118_v54  ;;  %v10163_v47 = vld [vmem:[#allocation11 + $0x10c] sm:$0xf] }
 0x136   :  { %v420_v20 = vadd.f32 %v419_v10, %v418_v2  ;;  %v426_v21 = vadd.f32 %v425_v11, %v424_v3  ;;  %v7165_v3 = vor.u32 %v10161_v62, %v7164_v61  ;;  %928 = vmatpush.bf16.msrb.mxu3 %v7177_v63  ;;  %v10157_v10 = vld [vmem:[#allocation11 + $0xd4] sm:$0xf0]  ;;  %v7100_v62 = vld [vmem:[#allocation11 + $0x68] sm:$0xf] }
 0x137   :  { %v7149_v15 = vor.u32 %v10157_v10, %v7148_v9 }
 0x138   :  { %v421_v28 = vrot.slane %v420_v20, 1  ;;  %v427_v29 = vrot.slane %v426_v21, 1  ;;  %934 = vmatpush.bf16.msra.mxu0 %v7165_v3  ;;  %v7228_v3 = vld [vmem:[#allocation11 + $0x168] sm:$0xf] }
 0x139   :  { %901 = vmatpush.bf16.msrb.mxu1 %v7189_v39  ;;  %960 = vmatpush.bf16.msra.mxu2 %v7169_v7  ;;  %v10175_v7 = vld [vmem:[#allocation11 + $0x16c] sm:$0xf] }
 0x13a   :  { %v422_v37 = vadd.f32 %v421_v28, %v420_v20  ;;  %v428_v38 = vadd.f32 %v427_v29, %v426_v21  ;;  %v7150_v20 = vld [vmem:[#allocation11 + $0xd8] sm:$0xf0]  ;;  %v10187_v21 = vld [vmem:[#allocation11 + $0x1cc] sm:$0xf]  ;;  %973 = vmatpush.bf16.msra.mxu3 %v7297_v13  ;;  %v10153_v28 = vld [vmem:[#allocation11 + $0xb4] sm:$0xf0] }
 0x13b   :  { %v7153_v24 = vor.u32 %v10155_v19, %v7150_v20  ;;  %v7281_v26 = vor.u32 %v10187_v21, %v7278_v25  ;;  %v7133_v31 = vor.u32 %v10153_v28, %v7132_v27  ;;  %v7084_v13 = vld [vmem:[#allocation11 + $0x48] sm:$0xf]  ;;  %v10139_v19 = vld [vmem:[#allocation11 + $0x4c] sm:$0xf]  ;;  %v7086_v20 = vld [vmem:[#allocation11 + $0x58] sm:$0xf0] }
 0x13c   :  { %v436_v45 = vmul.f32 %v11488_v32, %v422_v37  ;;  %v437_v14 = vmul.f32 %v11488_v32, %v428_v38  ;;  %935 = vmatpush.bf16.msra.mxu0 %v7149_v15  ;;  %v7134_v37 = vld [vmem:[#allocation11 + $0xb8] sm:$0xf0]  ;;  %v10183_v38 = vld [vmem:[#allocation11 + $0x1ac] sm:$0xf]  ;;  %v10141_v15 = vld [vmem:[#allocation11 + $0x54] sm:$0xf0] }
 0x13d   :  { %902 = vmatpush.bf16.msrb.mxu1 %v7173_v57  ;;  %961 = vmatpush.bf16.msra.mxu2 %v7153_v24  ;;  %v7137_v41 = vor.u32 %v10151_v36, %v7134_v37  ;;  %v10179_v57 = vld [vmem:[#allocation11 + $0x18c] sm:$0xf]  ;;  %v7214_v24 = vld [vmem:[#allocation11 + $0x158] sm:$0xf0]  ;;  %v7068_v25 = vld [vmem:[#allocation11 + $0x28] sm:$0xf] }
 0x13e   :  { %v11493_v55 = vsub.f32 %v11475_v50, %v436_v45  ;;  %v11496_v56 = vsub.f32 %v11478_v51, %v437_v14  ;;  %v7293_v51 = vor.u32 %v10193_v1, %v7292_v0  ;;  %974 = vmatpush.bf16.msra.mxu3 %v7281_v26  ;;  %v7265_v45 = vor.u32 %v10183_v38, %v7262_v42  ;;  %v7244_v14 = vld [vmem:[#allocation11 + $0x188] sm:$0xf]  ;;  %v10145_v0 = vld [vmem:[#allocation11 + $0x74] sm:$0xf0]  ;;  %v10171_v21 = vld [vmem:[#allocation11 + $0x14c] sm:$0xf] }
 0x13f   :  { %v7245_v53 = vor.u32 %v10181_v46, %v7244_v14  ;;  %v7249_v63 = vor.u32 %v10179_v57, %v7246_v59  ;;  %v10137_v26 = vld [vmem:[#allocation11 + $0x34] sm:$0xf0]  ;;  %v7217_v27 = vor.u32 %v10171_v21, %v7214_v24  ;;  %v7196_v28 = vld [vmem:[#allocation11 + $0x128] sm:$0xf] }
 0x140   :  { %v440_v2 = vmul.f32 %v11493_v55, %v11493_v55  ;;  %v441_v50 = vmul.f32 %v11496_v56, %v11496_v56  ;;  %936 = vmatpush.bf16.msra.mxu0 %v7133_v31  ;;  %v7070_v31 = vld [vmem:[#allocation11 + $0x38] sm:$0xf0]  ;;  %v7052_v37 = vld [vmem:[#allocation11 + $0x8] sm:$0xf] }
 0x141   :  { %947 = vmatpush.bf16.msra.mxu1 %v7293_v51  ;;  %962 = vmatpush.bf16.msra.mxu2 %v7137_v41  ;;  %v10177_v51 = vld [vmem:[#allocation11 + $0x174] sm:$0xf0]  ;;  %v10246_v21 = vld [vmem:[#allocation16 + $0x19c] sm:$0xf0] }
 0x142   :  { %v442_v11 = vrot.slane %v440_v2, 4  ;;  %v448_v12 = vrot.slane %v441_v50, 4  ;;  %975 = vmatpush.bf16.msra.mxu3 %v7265_v45  ;;  %v7229_v5 = vor.u32 %v10177_v51, %v7228_v3  ;;  %v10165_v41 = vld [vmem:[#allocation11 + $0x114] sm:$0xf0]  ;;  %v7054_v45 = vld [vmem:[#allocation11 + $0x18] sm:$0xf0] }
 0x143   :  { %v7057_v57 = vor.u32 %v10131_v44, %v7054_v45  ;;  %v10318_v24 = vld [vmem:[#allocation16 + $0x3dc] sm:$0xf0] }
 0x144   :  { %v443_v22 = vadd.f32 %v442_v11, %v440_v2  ;;  %v449_v23 = vadd.f32 %v448_v12, %v441_v50  ;;  %937 = vmatpush.bf16.msra.mxu0 %v7117_v52  ;;  %v7101_v50 = vor.u32 %v10145_v0, %v7100_v62  ;;  %v7105_v11 = vor.u32 %v10143_v4, %v7102_v6  ;;  %v7684_v45 = vld [vmem:[#allocation16 + $0x300] sm:$0xf] }
 0x145   :  { %948 = vmatpush.bf16.msra.mxu1 %v7277_v18  ;;  %963 = vmatpush.bf16.msra.mxu2 %v7121_v58  ;;  %v7233_v12 = vor.u32 %v10175_v7, %v7230_v8  ;;  %v7085_v18 = vor.u32 %v10141_v15, %v7084_v13 }
 0x146   :  { %v444_v29 = vrot.slane %v443_v22, 2  ;;  %v450_v30 = vrot.slane %v449_v23, 2  ;;  %976 = vmatpush.bf16.msra.mxu3 %v7249_v63  ;;  %v415_v63 = vld [vmem:[#allocation8] sm:$0x3] }
 0x147   :  { %v482_v4 = vperm.slane %v415_v63, 1 }
 0x148   :  { %v445_v39 = vadd.f32 %v444_v29, %v443_v22  ;;  %v451_v40 = vadd.f32 %v450_v30, %v449_v23  ;;  %938 = vmatpush.bf16.msra.mxu0 %v7101_v50  ;;  %v7213_v22 = vor.u32 %v10173_v17, %v7212_v16  ;;  %v7089_v23 = vor.u32 %v10139_v19, %v7086_v20  ;;  %v10169_v29 = vld [vmem:[#allocation11 + $0x134] sm:$0xf0]  ;;  %v10135_v30 = vld [vmem:[#allocation11 + $0x2c] sm:$0xf]  ;;  %v7492_v20 = vld [vmem:[#allocation16 + $0x180] sm:$0xf] }
 0x149   :  { %949 = vmatpush.bf16.msra.mxu1 %v7261_v35  ;;  %964 = vmatpush.bf16.msra.mxu2 %v7105_v11  ;;  %v7069_v35 = vor.u32 %v10137_v26, %v7068_v25  ;;  %v7197_v36 = vor.u32 %v10169_v29, %v7196_v28  ;;  %v7073_v38 = vor.u32 %v10135_v30, %v7070_v31  ;;  %v481_v50 = vperm.slane %v415_v63, 0  ;;  %v7460_v26 = vld [vmem:[#allocation16 + $0x140] sm:$0xf] }
 0x14a   :  { %v446_v48 = vrot.slane %v445_v39, 1  ;;  %v452_v49 = vrot.slane %v451_v40, 1  ;;  %977 = vmatpush.bf16.msra.mxu3 %v7233_v12  ;;  %v7748_v29 = vld [vmem:[#allocation16 + $0x380] sm:$0xf] }
 0x14b   :  { %v10310_v30 = vld [vmem:[#allocation16 + $0x39c] sm:$0xf0] }
 0x14c   :  { %v447_v60 = vadd.f32 %v446_v48, %v445_v39  ;;  %v453_v61 = vadd.f32 %v452_v49, %v451_v40  ;;  %939 = vmatpush.bf16.msra.mxu0 %v7085_v18  ;;  %v10133_v39 = vld [vmem:[#allocation11 + $0x14] sm:$0xf0]  ;;  %v7180_v40 = vld [vmem:[#allocation11 + $0x108] sm:$0xf]  ;;  %v7182_v48 = vld [vmem:[#allocation11 + $0x118] sm:$0xf0]  ;;  %v7749_v31 = vor.u32 %v10310_v30, %v7748_v29 }
 0x14d   :  { %950 = vmatpush.bf16.msra.mxu1 %v7245_v53  ;;  %965 = vmatpush.bf16.msra.mxu2 %v7089_v23  ;;  %v7053_v52 = vor.u32 %v10133_v39, %v7052_v37  ;;  %v7181_v53 = vor.u32 %v10165_v41, %v7180_v40  ;;  %v7185_v59 = vor.u32 %v10163_v47, %v7182_v48  ;;  %v7780_v23 = vld [vmem:[#allocation16 + $0x3c0] sm:$0xf] }
 0x14e   :  { %v454_v1 = vmul.f32 %v447_v60, %v11488_v32  ;;  %v455_v2 = vmul.f32 %v453_v61, %v11488_v32  ;;  %978 = vmatpush.bf16.msra.mxu3 %v7217_v27  ;;  %v7781_v25 = vor.u32 %v10318_v24, %v7780_v23  ;;  %v10238_v27 = vld [vmem:[#allocation16 + $0x15c] sm:$0xf0] }
 0x14f   :  { %v7461_v28 = vor.u32 %v10238_v27, %v7460_v26  ;;  %v10302_v37 = vld [vmem:[#allocation16 + $0x35c] sm:$0xf0] }
 0x150   :  { %v11504_v9 = vadd.f32 1e-05, %v454_v1  ;;  %v11506_v10 = vadd.f32 1e-05, %v455_v2  ;;  %940 = vmatpush.bf16.msra.mxu0 %v7069_v35  ;;  %v416_v2 = vld [vmem:[#allocation10] sm:$0x3]  ;;  %v7429_v35 = vor.u32 %v10230_v34, %v7428_v33 }
 0x151   :  { %951 = vmatpush.bf16.msra.mxu1 %v7229_v5  ;;  %966 = vmatpush.bf16.msra.mxu2 %v7073_v38  ;;  %v488_v7 = vperm.slane %v416_v2, 0  ;;  %v489_v11 = vperm.slane %v416_v2, 1  ;;  %v7396_v39 = vld [vmem:[#allocation16 + $0xc0] sm:$0xf] }
 0x152   :  { %10926 = vrsqrt.f32 %v11504_v9  ;;  %979 = vmatpush.bf16.msra.mxu3 %v7201_v43  ;;  %vm464_vm5 = vweird.f32 %v11504_v9  ;;  %vm474_vm7 = vweird.f32 %v11506_v10  ;;  %v10222_v40 = vld [vmem:[#allocation16 + $0xdc] sm:$0xf0] }
 0x153   :  { %10928 = vrsqrt.f32 %v11506_v10  ;;  %v8036_v41 = vld [vmem:[#allocation16 + $0x5c0] sm:$0xf] }
 0x154   :  { %941 = vmatpush.bf16.msra.mxu0 %v7053_v52  ;;  %v10382_v43 = vld [vmem:[#allocation16 + $0x5dc] sm:$0xf0] }
 0x155   :  { %952 = vmatpush.bf16.msra.mxu1 %v7213_v22  ;;  %967 = vmatpush.bf16.msra.mxu2 %v7057_v57  ;;  %v7493_v22 = vor.u32 %v10246_v21, %v7492_v20  ;;  %v8037_v44 = vor.u32 %v10382_v43, %v8036_v41  ;;  %v7364_v47 = vld [vmem:[#allocation16 + $0x80] sm:$0xf] }
 0x156   :  { %980 = vmatpush.bf16.msra.mxu3 %v7185_v59  ;;  %v10214_v48 = vld [vmem:[#allocation16 + $0x9c] sm:$0xf0] }
 0x157   :  { %v7365_v52 = vor.u32 %v10214_v48, %v7364_v47  ;;  %v7652_v57 = vld [vmem:[#allocation16 + $0x2c0] sm:$0xf]  ;;  %v10314_v47 = vld [vmem:[#allocation16 + $0x3c4] sm:$0xf] }
 0x158   :  { %v10927_v42 = vpop.eup %10926  ;;  %v8292_v59 = vld [vmem:[#allocation16 + $0x7c0] sm:$0xf] }
 0x159   :  { %v10929_v14 = vpop.eup %10928  ;;  %v459_v46 = vmul.f32 %v10927_v42, %v11504_v9  ;;  %953 = vmatpush.bf16.msra.mxu1 %v7197_v36  ;;  %vm465_vm3 = vweird.f32 %v10927_v42  ;;  %v7716_v36 = vld [vmem:[#allocation16 + $0x340] sm:$0xf] }
 0x15a   :  { %v469_v49 = vmul.f32 %v10929_v14, %v11506_v10  ;;  %vm475_vm4 = vweird.f32 %v10929_v14  ;;  %vm466_vm6 = vmor %vm464_vm5, %vm465_vm3  ;;  %v10254_v10 = vld [vmem:[#allocation16 + $0x1dc] sm:$0xf0]  ;;  %v7717_v38 = vor.u32 %v10302_v37, %v7716_v36  ;;  %v10242_v37 = vld [vmem:[#allocation16 + $0x184] sm:$0xf] }
 0x15b   :  { %v460_v54 = vmul.f32 %v10927_v42, %v459_v46  ;;  %vm476_vm8 = vmor %vm474_vm7, %vm475_vm4  ;;  %v7588_v20 = vld [vmem:[#allocation16 + $0x240] sm:$0xf] }
 0x15c   :  { %v470_v58 = vmul.f32 %v10929_v14, %v469_v49  ;;  %v8004_v49 = vld [vmem:[#allocation16 + $0x580] sm:$0xf] }
 0x15d   :  { %v461_v60 = vmul.f32 0.5, %v460_v54  ;;  %954 = vmatpush.bf16.msra.mxu1 %v7181_v53  ;;  %v10374_v53 = vld [vmem:[#allocation16 + $0x59c] sm:$0xf0] }
 0x15e   :  { %v471_v61 = vmul.f32 0.5, %v470_v58  ;;  %v8005_v54 = vor.u32 %v10374_v53, %v8004_v49  ;;  %v10286_v58 = vld [vmem:[#allocation16 + $0x2dc] sm:$0xf0]  ;;  %v7782_v49 = vld [vmem:[#allocation16 + $0x3e0] sm:$0xf0] }
 0x15f   :  { %v462_v62 = vsub.f32 1.5, %v461_v60  ;;  %v7653_v60 = vor.u32 %v10286_v58, %v7652_v57  ;;  %v10270_v21 = vld [vmem:[#allocation16 + $0x25c] sm:$0xf0]  ;;  %v7785_v58 = vor.u32 %v10314_v47, %v7782_v49  ;;  %v7686_v47 = vld [vmem:[#allocation16 + $0x320] sm:$0xf0] }
 0x160   :  { %v472_v0 = vsub.f32 1.5, %v471_v61  ;;  %v10446_v61 = vld [vmem:[#allocation16 + $0x7dc] sm:$0xf0] }
 0x161   :  { %v463_v1 = vmul.f32 %v10927_v42, %v462_v62  ;;  %v8293_v63 = vor.u32 %v10446_v61, %v8292_v59  ;;  %v7332_v62 = vld [vmem:[#allocation16 + $0x40] sm:$0xf]  ;;  %v7462_v61 = vld [vmem:[#allocation16 + $0x160] sm:$0xf0] }
 0x162   :  { %v473_v3 = vmul.f32 %v10929_v14, %v472_v0  ;;  %v10206_v0 = vld [vmem:[#allocation16 + $0x5c] sm:$0xf0] }
 0x163   :  { %v467_v51 = vsel %vm466_vm6, %v10927_v42, %v463_v1  ;;  %v7397_v42 = vor.u32 %v10222_v40, %v7396_v39  ;;  %v7972_v1 = vld [vmem:[#allocation16 + $0x540] sm:$0xf] }
 0x164   :  { %v478_v5 = vmul.f32 %v467_v51, %v11493_v55  ;;  %v477_v6 = vsel %vm476_vm8, %v10929_v14, %v473_v3  ;;  %v7524_v55 = vld [vmem:[#allocation16 + $0x1c0] sm:$0xf] }
 0x165   :  { %v479_v8 = vmul.f32 %v477_v6, %v11496_v56  ;;  %v7525_v56 = vor.u32 %v10254_v10, %v7524_v55  ;;  %v10294_v14 = vld [vmem:[#allocation16 + $0x31c] sm:$0xf0]  ;;  %v10250_v55 = vld [vmem:[#allocation16 + $0x1c4] sm:$0xf] }
 0x166   :  { %v485_v12 = vmul.f32 %v481_v50, %v478_v5  ;;  %v7685_v46 = vor.u32 %v10294_v14, %v7684_v45  ;;  %v7333_v50 = vor.u32 %v10206_v0, %v7332_v62  ;;  %v10366_v3 = vld [vmem:[#allocation16 + $0x55c] sm:$0xf0] }
 0x167   :  { %v486_v13 = vmul.f32 %v482_v4, %v479_v8  ;;  %v7973_v4 = vor.u32 %v10366_v3, %v7972_v1  ;;  %v7620_v5 = vld [vmem:[#allocation16 + $0x280] sm:$0xf] }
 0x168   :  { %v492_v15 = vadd.f32 %v488_v7, %v485_v12  ;;  %v10278_v6 = vld [vmem:[#allocation16 + $0x29c] sm:$0xf0] }
 0x169   :  { %v493_v9 = vadd.f32 %v489_v11, %v486_v13  ;;  %v8260_v7 = vld [vmem:[#allocation16 + $0x780] sm:$0xf]  ;;  %v7621_v11 = vor.u32 %v10278_v6, %v7620_v5 }
 0x16a   :  { %v494_v16 = vmax.f32 %v492_v15, 0.0  ;;  %v10438_v12 = vld [vmem:[#allocation16 + $0x79c] sm:$0xf0] }
 0x16b   :  { %v495_v17 = vmax.f32 %v493_v9, 0.0  ;;  %v8261_v13 = vor.u32 %v10438_v12, %v8260_v7  ;;  %v7300_v15 = vld [vmem:[#allocation16] sm:$0xf] }
 0x16c   :  { %v560_v18 = vpack.c.bf16 %v494_v16, %v494_v16  ;;  %v10198_v9 = vld [vmem:[#allocation16 + $0x1c] sm:$0xf0] }
 0x16d   :  { %v561_v19 = vpack.c.bf16 %v495_v17, %v495_v17  ;;  %v7940_v16 = vld [vmem:[#allocation16 + $0x500] sm:$0xf] }
 0x16e   :  { %890 = vmatmul.bf16.vlgmr.msrb.gmra.mxu0 %v560_v18  ;;  %916 = vmatmul.bf16.vlgmr.msrb.gmra.mxu2 %v560_v18  ;;  %v8228_v26 = vld [vmem:[#allocation16 + $0x740] sm:$0xf] }
 0x16f   :  { %903 = vmatmul.bf16.vlgmr.msrb.gmra.mxu1 %v561_v19  ;;  %929 = vmatmul.bf16.vlgmr.msrb.gmra.mxu3 %v561_v19  ;;  %v10430_v27 = vld [vmem:[#allocation16 + $0x75c] sm:$0xf0] }
 0x170   :  { %2670 = vmatpush.bf16.msrb.mxu0 %v7525_v56  ;;  %2683 = vmatpush.bf16.msrb.mxu1 %v7781_v25  ;;  %v7526_v56 = vld [vmem:[#allocation16 + $0x1e0] sm:$0xf0]  ;;  %v7589_v25 = vor.u32 %v10270_v21, %v7588_v20  ;;  %v8229_v29 = vor.u32 %v10430_v27, %v8228_v26  ;;  %v7908_v30 = vld [vmem:[#allocation16 + $0x4c0] sm:$0xf] }
 0x171   :  { %2696 = vmatpush.bf16.msrb.mxu2 %v8037_v44  ;;  %2709 = vmatpush.bf16.msrb.mxu3 %v8293_v63  ;;  %v7529_v24 = vor.u32 %v10250_v55, %v7526_v56  ;;  %v7556_v41 = vld [vmem:[#allocation16 + $0x200] sm:$0xf] }
 0x172   :  { %v8196_v43 = vld [vmem:[#allocation16 + $0x700] sm:$0xf] }
 0x173   :  { %v10342_v53 = vld [vmem:[#allocation16 + $0x49c] sm:$0xf0] }
 0x174   :  { %2671 = vmatpush.bf16.msrb.mxu0 %v7493_v22  ;;  %2684 = vmatpush.bf16.msrb.mxu1 %v7749_v31  ;;  %v10350_v31 = vld [vmem:[#allocation16 + $0x4dc] sm:$0xf0] }
 0x175   :  { %2697 = vmatpush.bf16.msrb.mxu2 %v8005_v54  ;;  %2710 = vmatpush.bf16.msrb.mxu3 %v8261_v13  ;;  %v7909_v36 = vor.u32 %v10350_v31, %v7908_v30  ;;  %v8164_v62 = vld [vmem:[#allocation16 + $0x6c0] sm:$0xf]  ;;  %v10218_v31 = vld [vmem:[#allocation16 + $0xc4] sm:$0xf] }
 0x176   :  { %v10414_v0 = vld [vmem:[#allocation16 + $0x6dc] sm:$0xf0] }
 0x177   :  { %v8165_v3 = vor.u32 %v10414_v0, %v8164_v62  ;;  %v7844_v7 = vld [vmem:[#allocation16 + $0x440] sm:$0xf]  ;;  %v8006_v62 = vld [vmem:[#allocation16 + $0x5a0] sm:$0xf0] }
 0x178   :  { %2672 = vmatpush.bf16.msrb.mxu0 %v7461_v28  ;;  %2685 = vmatpush.bf16.msrb.mxu1 %v7717_v38  ;;  %v7494_v38 = vld [vmem:[#allocation16 + $0x1a0] sm:$0xf0]  ;;  %v8132_v55 = vld [vmem:[#allocation16 + $0x680] sm:$0xf] }
 0x179   :  { %2698 = vmatpush.bf16.msrb.mxu2 %v7973_v4  ;;  %2711 = vmatpush.bf16.msrb.mxu3 %v8229_v29  ;;  %v7497_v40 = vor.u32 %v10242_v37, %v7494_v38  ;;  %v7750_v4 = vld [vmem:[#allocation16 + $0x3a0] sm:$0xf0]  ;;  %v7812_v26 = vld [vmem:[#allocation16 + $0x400] sm:$0xf] }
 0x17a   :  { %v10326_v27 = vld [vmem:[#allocation16 + $0x41c] sm:$0xf0]  ;;  %v8038_v37 = vld [vmem:[#allocation16 + $0x5e0] sm:$0xf0] }
 0x17b   :  { %v8100_v38 = vld [vmem:[#allocation16 + $0x640] sm:$0xf] }
 0x17c   :  { %2673 = vmatpush.bf16.msrb.mxu0 %v7429_v35  ;;  %2686 = vmatpush.bf16.msrb.mxu1 %v7685_v46  ;;  %v10422_v46 = vld [vmem:[#allocation16 + $0x71c] sm:$0xf0] }
 0x17d   :  { %v8197_v48 = vor.u32 %v10422_v46, %v8196_v43  ;;  %v8068_v0 = vld [vmem:[#allocation16 + $0x600] sm:$0xf] }
 0x17e   :  { %942 = vmatmul.bf16.vlgmr.msra.gmra.mxu0 %v560_v18  ;;  %968 = vmatmul.bf16.vlgmr.msra.gmra.mxu2 %v560_v18  ;;  %v7301_v18 = vor.u32 %v10198_v9, %v7300_v15 }
 0x17f   :  { %955 = vmatmul.bf16.vlgmr.msra.gmra.mxu1 %v561_v19  ;;  %981 = vmatmul.bf16.vlgmr.msra.gmra.mxu3 %v561_v19  ;;  %v10358_v19 = vld [vmem:[#allocation16 + $0x51c] sm:$0xf0] }
 0x180   :  { %2674 = vmatpush.bf16.msrb.mxu0 %v7397_v42  ;;  %2687 = vmatpush.bf16.msrb.mxu1 %v7653_v60  ;;  %v7941_v10 = vor.u32 %v10358_v19, %v7940_v16  ;;  %v10262_v42 = vld [vmem:[#allocation16 + $0x21c] sm:$0xf0]  ;;  %v10234_v60 = vld [vmem:[#allocation16 + $0x144] sm:$0xf] }
 0x181   :  { %v7557_v14 = vor.u32 %v10262_v42, %v7556_v41  ;;  %2712 = vmatpush.bf16.msrb.mxu3 %v8197_v48  ;;  %v7465_v63 = vor.u32 %v10234_v60, %v7462_v61  ;;  %v10226_v16 = vld [vmem:[#allocation16 + $0x104] sm:$0xf] }
 0x182   :  { %2699 = vmatpush.bf16.msrb.mxu2 %v7941_v10  ;;  %v10406_v10 = vld [vmem:[#allocation16 + $0x69c] sm:$0xf0] }
 0x184   :  { %2675 = vmatpush.bf16.msrb.mxu0 %v7365_v52  ;;  %2688 = vmatpush.bf16.msrb.mxu1 %v7621_v11  ;;  %v7876_v52 = vld [vmem:[#allocation16 + $0x480] sm:$0xf] }
 0x185   :  { %v7877_v59 = vor.u32 %v10342_v53, %v7876_v52  ;;  %v10334_v11 = vld [vmem:[#allocation16 + $0x45c] sm:$0xf0]  ;;  %2713 = vmatpush.bf16.msrb.mxu3 %v8165_v3  ;;  %v10282_v3 = vld [vmem:[#allocation16 + $0x2c4] sm:$0xf] }
 0x186   :  { %2700 = vmatpush.bf16.msrb.mxu2 %v7909_v36  ;;  %v7845_v9 = vor.u32 %v10334_v11, %v7844_v7  ;;  %v10378_v36 = vld [vmem:[#allocation16 + $0x5c4] sm:$0xf] }
 0x187   :  { %v8041_v43 = vor.u32 %v10378_v36, %v8038_v37  ;;  %v10442_v7 = vld [vmem:[#allocation16 + $0x7c4] sm:$0xf] }
 0x188   :  { %2676 = vmatpush.bf16.msrb.mxu0 %v7333_v50  ;;  %2689 = vmatpush.bf16.msrb.mxu1 %v7589_v25 }
 0x18a   :  { %2701 = vmatpush.bf16.msrb.mxu2 %v7877_v59 }
 0x18c   :  { %2677 = vmatpush.bf16.msrb.mxu0 %v7301_v18  ;;  %2690 = vmatpush.bf16.msrb.mxu1 %v7557_v14 }
 0x18e   :  { %2702 = vmatpush.bf16.msrb.mxu2 %v7845_v9  ;;  %v8294_v9 = vld [vmem:[#allocation16 + $0x7e0] sm:$0xf0] }
 0x190   :  { %2722 = vmatpush.bf16.msra.mxu0 %v7529_v24  ;;  %2735 = vmatpush.bf16.msra.mxu1 %v7785_v58  ;;  %v7718_v24 = vld [vmem:[#allocation16 + $0x360] sm:$0xf0] }
 0x194   :  { %2723 = vmatpush.bf16.msra.mxu0 %v7497_v40 }
 0x198   :  { %2724 = vmatpush.bf16.msra.mxu0 %v7465_v63  ;;  %v10370_v63 = vld [vmem:[#allocation16 + $0x584] sm:$0xf] }
 0x1eb   :  { %v891_v2 = vpop.f32.mrf.mxu0 }
 0x1ec   :  { %v904_v51 = vpop.f32.mrf.mxu1 }
 0x1ed   :  { %v11516_v8 = vadd.f32 %v904_v51, %v891_v2  ;;  %v10306_v51 = vld [vmem:[#allocation16 + $0x384] sm:$0xf] }
 0x1ee   :  { %v7753_v6 = vor.u32 %v10306_v51, %v7750_v4  ;;  %v8009_v4 = vor.u32 %v10370_v63, %v8006_v62 }
 0x1ef   :  { %v988_v17 = vrot.slane %v11516_v8, 4 }
 0x1f0   :  { %2736 = vmatpush.bf16.msra.mxu1 %v7753_v6  ;;  %v7654_v6 = vld [vmem:[#allocation16 + $0x2e0] sm:$0xf0] }
 0x1f1   :  { %v989_v22 = vadd.f32 %v988_v17, %v11516_v8  ;;  %v917_v23 = vpop.f32.mrf.mxu2  ;;  %v7430_v17 = vld [vmem:[#allocation16 + $0x120] sm:$0xf0] }
 0x1f2   :  { %v930_v28 = vpop.f32.mrf.mxu3  ;;  %v7433_v19 = vor.u32 %v10226_v16, %v7430_v17  ;;  %v10202_v16 = vld [vmem:[#allocation16 + $0x44] sm:$0xf] }
 0x1f3   :  { %v990_v33 = vrot.slane %v989_v22, 2  ;;  %v11520_v34 = vadd.f32 %v930_v28, %v917_v23  ;;  %v893_v35 = vpop.f32.mrf.mxu0  ;;  %v10298_v23 = vld [vmem:[#allocation16 + $0x344] sm:$0xf] }
 0x1f4   :  { %v906_v39 = vpop.f32.mrf.mxu1  ;;  %v7721_v25 = vor.u32 %v10298_v23, %v7718_v24  ;;  %2725 = vmatpush.bf16.msra.mxu0 %v7433_v19  ;;  %v7334_v19 = vld [vmem:[#allocation16 + $0x60] sm:$0xf0] }
 0x1f5   :  { %v991_v44 = vadd.f32 %v990_v33, %v989_v22  ;;  %v994_v45 = vrot.slane %v11520_v34, 4  ;;  %v8133_v22 = vor.u32 %v10406_v10, %v8132_v55  ;;  %v7398_v33 = vld [vmem:[#allocation16 + $0xe0] sm:$0xf0] }
 0x1f6   :  { %v7401_v35 = vor.u32 %v10218_v31, %v7398_v33  ;;  %2737 = vmatpush.bf16.msra.mxu1 %v7721_v25  ;;  %v10362_v55 = vld [vmem:[#allocation16 + $0x544] sm:$0xf] }
 0x1f7   :  { %v992_v54 = vrot.slane %v991_v44, 1  ;;  %v995_v57 = vadd.f32 %v994_v45, %v11520_v34  ;;  %2714 = vmatpush.bf16.msrb.mxu3 %v8133_v22  ;;  %v10290_v45 = vld [vmem:[#allocation16 + $0x304] sm:$0xf] }
 0x1f8   :  { %2726 = vmatpush.bf16.msra.mxu0 %v7401_v35  ;;  %v7689_v60 = vor.u32 %v10290_v45, %v7686_v47  ;;  %v7974_v10 = vld [vmem:[#allocation16 + $0x560] sm:$0xf0] }
 0x1f9   :  { %v993_v1 = vadd.f32 %v992_v54, %v991_v44  ;;  %v996_v2 = vrot.slane %v995_v57, 2  ;;  %v919_v50 = vpop.f32.mrf.mxu2  ;;  %v10398_v44 = vld [vmem:[#allocation16 + $0x65c] sm:$0xf0]  ;;  %v10210_v54 = vld [vmem:[#allocation16 + $0x84] sm:$0xf] }
 0x1fa   :  { %v932_v5 = vpop.f32.mrf.mxu3  ;;  %v8101_v46 = vor.u32 %v10398_v44, %v8100_v38  ;;  %v10390_v50 = vld [vmem:[#allocation16 + $0x61c] sm:$0xf0]  ;;  %2738 = vmatpush.bf16.msra.mxu1 %v7689_v60  ;;  %v10274_v25 = vld [vmem:[#allocation16 + $0x284] sm:$0xf] }
 0x1fb   :  { %v1012_v12 = vmul.f32 %v993_v1, %v11488_v32  ;;  %v997_v13 = vadd.f32 %v996_v2, %v995_v57  ;;  %v943_v15 = vpop.f32.mrf.mxu0  ;;  %v7366_v57 = vld [vmem:[#allocation16 + $0xa0] sm:$0xf0]  ;;  %v8069_v5 = vor.u32 %v10390_v50, %v8068_v0 }
 0x1fc   :  { %v956_v18 = vpop.f32.mrf.mxu1  ;;  %2715 = vmatpush.bf16.msrb.mxu3 %v8101_v46  ;;  %v7369_v61 = vor.u32 %v10210_v54, %v7366_v57  ;;  %v10434_v31 = vld [vmem:[#allocation16 + $0x784] sm:$0xf] }
 0x1fd   :  { %v11526_v56 = vsub.f32 %v11516_v8, %v1012_v12  ;;  %v998_v20 = vrot.slane %v997_v13, 1  ;;  %v11528_v21 = vadd.f32 %v956_v18, %v943_v15  ;;  %v7813_v8 = vor.u32 %v10326_v27, %v7812_v26  ;;  %v7622_v26 = vld [vmem:[#allocation16 + $0x2a0] sm:$0xf0] }
 0x1fe   :  { %2727 = vmatpush.bf16.msra.mxu0 %v7369_v61  ;;  %v7657_v15 = vor.u32 %v10282_v3, %v7654_v6  ;;  %v8297_v18 = vor.u32 %v10442_v7, %v8294_v9  ;;  %v8262_v33 = vld [vmem:[#allocation16 + $0x7a0] sm:$0xf0] }
 0x1ff   :  { %v1020_v28 = vmul.f32 %v11526_v56, %v11526_v56  ;;  %v999_v29 = vadd.f32 %v998_v20, %v997_v13  ;;  %v1000_v30 = vrot.slane %v11528_v21, 4  ;;  %2703 = vmatpush.bf16.msrb.mxu2 %v7813_v8  ;;  %v7625_v8 = vor.u32 %v10274_v25, %v7622_v26  ;;  %v10194_v38 = vld [vmem:[#allocation16 + $0x4] sm:$0xf] }
 0x200   :  { %2716 = vmatpush.bf16.msrb.mxu3 %v8069_v5  ;;  %2739 = vmatpush.bf16.msra.mxu1 %v7657_v15  ;;  %v7942_v44 = vld [vmem:[#allocation16 + $0x520] sm:$0xf0] }
 0x201   :  { %v1024_v39 = vrot.slane %v1020_v28, 4  ;;  %v1013_v40 = vmul.f32 %v999_v29, %v11488_v32  ;;  %v1001_v41 = vadd.f32 %v1000_v30, %v11528_v21  ;;  %v969_v42 = vpop.f32.mrf.mxu2  ;;  %v7337_v29 = vor.u32 %v10202_v16, %v7334_v19  ;;  %v10426_v57 = vld [vmem:[#allocation16 + $0x744] sm:$0xf] }
 0x202   :  { %v982_v14 = vpop.f32.mrf.mxu3  ;;  %v7977_v30 = vor.u32 %v10362_v55, %v7974_v10  ;;  %v10346_v0 = vld [vmem:[#allocation16 + $0x4c4] sm:$0xf] }
 0x203   :  { %v1025_v48 = vadd.f32 %v1024_v39, %v1020_v28  ;;  %v11536_v49 = vsub.f32 %v11520_v34, %v1013_v40  ;;  %v1002_v52 = vrot.slane %v1001_v41, 2  ;;  %v945_v53 = vpop.f32.mrf.mxu0  ;;  %2748 = vmatpush.bf16.msra.mxu2 %v8041_v43  ;;  %v11538_v58 = vadd.f32 %v982_v14, %v969_v42  ;;  %v7302_v39 = vld [vmem:[#allocation16 + $0x20] sm:$0xf0]  ;;  %2728 = vmatpush.bf16.msra.mxu0 %v7337_v29 }
 0x204   :  { %v958_v59 = vpop.f32.mrf.mxu1  ;;  %2761 = vmatpush.bf16.msra.mxu3 %v8297_v18  ;;  %v7305_v42 = vor.u32 %v10194_v38, %v7302_v39  ;;  %v10354_v43 = vld [vmem:[#allocation16 + $0x504] sm:$0xf]  ;;  %2740 = vmatpush.bf16.msra.mxu1 %v7625_v8 }
 0x205   :  { %v1026_v1 = vrot.slane %v1025_v48, 2  ;;  %v1021_v34 = vmul.f32 %v11536_v49, %v11536_v49  ;;  %v1003_v2 = vadd.f32 %v1002_v52, %v1001_v41  ;;  %v1006_v51 = vrot.slane %v11538_v58, 4  ;;  %v7590_v52 = vld [vmem:[#allocation16 + $0x260] sm:$0xf0] }
 0x206   :  { %v8265_v41 = vor.u32 %v10434_v31, %v8262_v33  ;;  %v7945_v47 = vor.u32 %v10354_v43, %v7942_v44  ;;  %v8230_v59 = vld [vmem:[#allocation16 + $0x760] sm:$0xf0]  ;;  %v11565_v43 = vld [vmem:[#allocation13] sm:$0xf] }
 0x207   :  { %v1027_v11 = vadd.f32 %v1026_v1, %v1025_v48  ;;  %v1030_v12 = vrot.slane %v1021_v34, 4  ;;  %v1004_v13 = vrot.slane %v1003_v2, 1  ;;  %v1007_v17 = vadd.f32 %v1006_v51, %v11538_v58  ;;  %2749 = vmatpush.bf16.msra.mxu2 %v8009_v4  ;;  %v10266_v48 = vld [vmem:[#allocation16 + $0x244] sm:$0xf]  ;;  %2729 = vmatpush.bf16.msra.mxu0 %v7305_v42 }
 0x208   :  { %2762 = vmatpush.bf16.msra.mxu3 %v8265_v41  ;;  %v7593_v54 = vor.u32 %v10266_v48, %v7590_v52  ;;  %v8233_v62 = vor.u32 %v10426_v57, %v8230_v59  ;;  %v10258_v50 = vld [vmem:[#allocation16 + $0x204] sm:$0xf]  ;;  %v11571_v57 = vld [vmem:[#allocation14] sm:$0xf] }
 0x209   :  { %v1028_v20 = vrot.slane %v1027_v11, 1  ;;  %v1031_v22 = vadd.f32 %v1030_v12, %v1021_v34  ;;  %v1005_v23 = vadd.f32 %v1004_v13, %v1003_v2  ;;  %v971_v24 = vpop.f32.mrf.mxu2  ;;  %v1008_v27 = vrot.slane %v1007_v17, 2  ;;  %v7558_v3 = vld [vmem:[#allocation16 + $0x220] sm:$0xf0] }
 0x20a   :  { %v984_v28 = vpop.f32.mrf.mxu3  ;;  %2741 = vmatpush.bf16.msra.mxu1 %v7593_v54  ;;  %v10418_v5 = vld [vmem:[#allocation16 + $0x704] sm:$0xf]  ;;  %v7561_v12 = vor.u32 %v10258_v50, %v7558_v3  ;;  %v1114_v3 = vperm.slane %v11571_v57, 0 }
 0x20b   :  { %v1029_v35 = vadd.f32 %v1028_v20, %v1027_v11  ;;  %v1032_v36 = vrot.slane %v1031_v22, 2  ;;  %v1014_v37 = vmul.f32 %v1005_v23, %v11488_v32  ;;  %v1009_v40 = vadd.f32 %v1008_v27, %v1007_v17  ;;  %2750 = vmatpush.bf16.msra.mxu2 %v7977_v30  ;;  %v8198_v6 = vld [vmem:[#allocation16 + $0x720] sm:$0xf0] }
 0x20c   :  { %2763 = vmatpush.bf16.msra.mxu3 %v8233_v62  ;;  %v10338_v13 = vld [vmem:[#allocation16 + $0x484] sm:$0xf]  ;;  %v8201_v9 = vor.u32 %v10418_v5, %v8198_v6  ;;  %v1101_v62 = vperm.slane %v11565_v43, 0 }
 0x20d   :  { %v1048_v45 = vmul.f32 %v1029_v35, %v11488_v32  ;;  %v1033_v14 = vadd.f32 %v1032_v36, %v1031_v22  ;;  %v11547_v46 = vsub.f32 %v11528_v21, %v1014_v37  ;;  %v1010_v53 = vrot.slane %v1009_v40, 1  ;;  %v7910_v21 = vld [vmem:[#allocation16 + $0x4e0] sm:$0xf0] }
 0x20e   :  { %v7913_v4 = vor.u32 %v10346_v0, %v7910_v21  ;;  %v7878_v16 = vld [vmem:[#allocation16 + $0x4a0] sm:$0xf0]  ;;  %2742 = vmatpush.bf16.msra.mxu1 %v7561_v12 }
 0x20f   :  { %v11549_v60 = vadd.f32 1e-05, %v1048_v45  ;;  %v1034_v61 = vrot.slane %v1033_v14, 1  ;;  %v1022_v63 = vmul.f32 %v11547_v46, %v11547_v46  ;;  %v1011_v1 = vadd.f32 %v1010_v53, %v1009_v40  ;;  %2751 = vmatpush.bf16.msra.mxu2 %v7945_v47  ;;  %v10410_v55 = vld [vmem:[#allocation16 + $0x6c4] sm:$0xf] }
 0x210   :  { %v7881_v19 = vor.u32 %v10338_v13, %v7878_v16  ;;  %2764 = vmatpush.bf16.msra.mxu3 %v8201_v9  ;;  %v8166_v20 = vld [vmem:[#allocation16 + $0x6e0] sm:$0xf0]  ;;  %v1102_v13 = vperm.slane %v11565_v43, 1  ;;  %v10255_v9 = vld [vmem:[#allocation16 + $0x1e4] sm:$0xf0] }
 0x211   :  { %10930 = vrsqrt.f32 %v11549_v60  ;;  %v1035_v34 = vadd.f32 %v1034_v61, %v1033_v14  ;;  %v1036_v2 = vrot.slane %v1022_v63, 4  ;;  %v1015_v51 = vmul.f32 %v1011_v1, %v11488_v32  ;;  %v10330_v24 = vld [vmem:[#allocation16 + $0x444] sm:$0xf] }
 0x212   :  { %v7846_v25 = vld [vmem:[#allocation16 + $0x460] sm:$0xf0]  ;;  %vm1062_vm10 = vweird.f32 %v11549_v60 }
 0x213   :  { %v1049_v7 = vmul.f32 %v1035_v34, %v11488_v32  ;;  %v1037_v11 = vadd.f32 %v1036_v2, %v1022_v63  ;;  %v11557_v15 = vsub.f32 %v11538_v58, %v1015_v51  ;;  %2752 = vmatpush.bf16.msra.mxu2 %v7913_v4  ;;  %v8169_v58 = vor.u32 %v10410_v55, %v8166_v20  ;;  %v10402_v30 = vld [vmem:[#allocation16 + $0x684] sm:$0xf] }
 0x214   :  { %v7849_v29 = vor.u32 %v10330_v24, %v7846_v25  ;;  %v8134_v8 = vld [vmem:[#allocation16 + $0x6a0] sm:$0xf0]  ;;  %v10247_v24 = vld [vmem:[#allocation16 + $0x1a4] sm:$0xf0] }
 0x215   :  { %v11559_v17 = vadd.f32 1e-05, %v1049_v7  ;;  %v1038_v18 = vrot.slane %v1037_v11, 2  ;;  %v1023_v10 = vmul.f32 %v11557_v15, %v11557_v15  ;;  %2765 = vmatpush.bf16.msra.mxu3 %v8169_v58  ;;  %v8137_v35 = vor.u32 %v10402_v30, %v8134_v8  ;;  %v10322_v37 = vld [vmem:[#allocation16 + $0x404] sm:$0xf] }
 0x216   :  { %v7814_v38 = vld [vmem:[#allocation16 + $0x420] sm:$0xf0]  ;;  %v7500_v58 = vld [vmem:[#allocation16 + $0x188] sm:$0xf] }
 0x217   :  { %v10931_v22 = vpop.eup %10930  ;;  %10932 = vrsqrt.f32 %v11559_v17  ;;  %v1039_v23 = vadd.f32 %v1038_v18, %v1037_v11  ;;  %v1042_v27 = vrot.slane %v1023_v10, 4  ;;  %2753 = vmatpush.bf16.msra.mxu2 %v7881_v19  ;;  %v7817_v41 = vor.u32 %v10322_v37, %v7814_v38  ;;  %v10394_v48 = vld [vmem:[#allocation16 + $0x644] sm:$0xf] }
 0x218   :  { %v1057_v26 = vmul.f32 %v10931_v22, %v11549_v60  ;;  %vm1063_vm9 = vweird.f32 %v10931_v22  ;;  %v8102_v52 = vld [vmem:[#allocation16 + $0x660] sm:$0xf0]  ;;  %vm1072_vm13 = vweird.f32 %v11559_v17 }
 0x219   :  { %v1040_v28 = vrot.slane %v1039_v23, 1  ;;  %v1043_v33 = vadd.f32 %v1042_v27, %v1023_v10  ;;  %2766 = vmatpush.bf16.msra.mxu3 %v8137_v35  ;;  %v8105_v54 = vor.u32 %v10394_v48, %v8102_v52  ;;  %vm1064_vm11 = vmor %vm1062_vm10, %vm1063_vm9  ;;  %v10386_v0 = vld [vmem:[#allocation16 + $0x604] sm:$0xf]  ;;  %v7788_v27 = vld [vmem:[#allocation16 + $0x3c8] sm:$0xf] }
 0x21a   :  { %v1058_v31 = vmul.f32 %v10931_v22, %v1057_v26  ;;  %v8070_v2 = vld [vmem:[#allocation16 + $0x620] sm:$0xf0]  ;;  %v10239_v35 = vld [vmem:[#allocation16 + $0x164] sm:$0xf0] }
 0x21b   :  { %v1041_v36 = vadd.f32 %v1040_v28, %v1039_v23  ;;  %v1044_v40 = vrot.slane %v1043_v33, 2  ;;  %2754 = vmatpush.bf16.msra.mxu2 %v7849_v29  ;;  %v8073_v51 = vor.u32 %v10386_v0, %v8070_v2  ;;  %v10319_v28 = vld [vmem:[#allocation16 + $0x3e4] sm:$0xf0] }
 0x21c   :  { %v1059_v39 = vmul.f32 0.5, %v1058_v31  ;;  %v7789_v37 = vor.u32 %v10319_v28, %v7788_v27  ;;  %v7436_v52 = vld [vmem:[#allocation16 + $0x108] sm:$0xf] }
 0x21d   :  { %v10933_v42 = vpop.eup %10932  ;;  %v1050_v44 = vmul.f32 %v1041_v36, %v11488_v32  ;;  %v1045_v47 = vadd.f32 %v1044_v40, %v1043_v33  ;;  %2767 = vmatpush.bf16.msra.mxu3 %v8105_v54  ;;  %v7468_v33 = vld [vmem:[#allocation16 + $0x148] sm:$0xf] }
 0x21e   :  { %v1060_v45 = vsub.f32 1.5, %v1059_v39  ;;  %v1067_v14 = vmul.f32 %v10933_v42, %v11559_v17  ;;  %vm1073_vm12 = vweird.f32 %v10933_v42  ;;  %v1115_v17 = vperm.slane %v11571_v57, 1  ;;  %v8044_v2 = vld [vmem:[#allocation16 + $0x5c8] sm:$0xf] }
 0x21f   :  { %v11569_v53 = vadd.f32 1e-05, %v1050_v44  ;;  %v1046_v63 = vrot.slane %v1045_v47, 1  ;;  %2755 = vmatpush.bf16.msra.mxu2 %v7817_v41  ;;  %vm1074_vm14 = vmor %vm1072_vm13, %vm1073_vm12  ;;  %v1103_v39 = vperm.slane %v11565_v43, 2  ;;  %v7756_v41 = vld [vmem:[#allocation16 + $0x388] sm:$0xf] }
 0x220   :  { %v1061_v59 = vmul.f32 %v10931_v22, %v1060_v45  ;;  %v1068_v61 = vmul.f32 %v10933_v42, %v1067_v14  ;;  %v7469_v45 = vor.u32 %v10239_v35, %v7468_v33  ;;  %v10367_v27 = vld [vmem:[#allocation16 + $0x564] sm:$0xf0] }
 0x221   :  { %10934 = vrsqrt.f32 %v11569_v53  ;;  %v1047_v34 = vadd.f32 %v1046_v63, %v1045_v47  ;;  %2768 = vmatpush.bf16.msra.mxu3 %v8073_v51  ;;  %vm1082_vm0 = vweird.f32 %v11569_v53  ;;  %v1116_v47 = vperm.slane %v11571_v57, 2  ;;  %v7724_v63 = vld [vmem:[#allocation16 + $0x348] sm:$0xf] }
 0x222   :  { %v1065_v1 = vsel %vm1064_vm11, %v10931_v22, %v1061_v59  ;;  %v1069_v21 = vmul.f32 0.5, %v1068_v61 }
 0x223   :  { %v1096_v50 = vmul.f32 %v1065_v1, %v11526_v56  ;;  %v1051_v4 = vmul.f32 %v1047_v34, %v11488_v32  ;;  %v7532_v56 = vld [vmem:[#allocation16 + $0x1c8] sm:$0xf] }
 0x224   :  { %v1070_v60 = vsub.f32 1.5, %v1069_v21  ;;  %v7533_v20 = vor.u32 %v10255_v9, %v7532_v56  ;;  %v7404_v1 = vld [vmem:[#allocation16 + $0xc8] sm:$0xf] }
 0x225   :  { %v1109_v5 = vmul.f32 %v1101_v62, %v1096_v50  ;;  %v11580_v7 = vadd.f32 1e-05, %v1051_v4  ;;  %v10303_v62 = vld [vmem:[#allocation16 + $0x364] sm:$0xf0] }
 0x226   :  { %v1071_v6 = vmul.f32 %v10933_v42, %v1070_v60  ;;  %v10383_v50 = vld [vmem:[#allocation16 + $0x5e4] sm:$0xf0]  ;;  %v7725_v51 = vor.u32 %v10303_v62, %v7724_v63 }
 0x227   :  { %v10935_v11 = vpop.eup %10934  ;;  %v1122_v12 = vadd.f32 %v1114_v3, %v1109_v5  ;;  %10936 = vrsqrt.f32 %v11580_v7  ;;  %vm1092_vm3 = vweird.f32 %v11580_v7  ;;  %v1104_v3 = vperm.slane %v11565_v43, 3  ;;  %v7692_v5 = vld [vmem:[#allocation16 + $0x308] sm:$0xf] }
 0x228   :  { %v1075_v16 = vsel %vm1074_vm14, %v10933_v42, %v1071_v6  ;;  %v1077_v18 = vmul.f32 %v10935_v11, %v11569_v53  ;;  %vm1083_vm15 = vweird.f32 %v10935_v11  ;;  %v10311_v42 = vld [vmem:[#allocation16 + $0x3a4] sm:$0xf0]  ;;  %v8045_v56 = vor.u32 %v10383_v50, %v8044_v2 }
 0x229   :  { %v1126_v19 = vmax.f32 %v1122_v12, 0.0  ;;  %v1097_v55 = vmul.f32 %v1075_v16, %v11536_v49  ;;  %v7501_v49 = vor.u32 %v10247_v24, %v7500_v58  ;;  %vm1084_vm1 = vmor %vm1082_vm0, %vm1083_vm15  ;;  %v10231_v53 = vld [vmem:[#allocation16 + $0x124] sm:$0xf0]  ;;  %v7757_v54 = vor.u32 %v10311_v42, %v7756_v41 }
 0x22a   :  { %v1078_v10 = vmul.f32 %v10935_v11, %v1077_v18  ;;  %v7437_v0 = vor.u32 %v10231_v53, %v7436_v52  ;;  %v10295_v6 = vld [vmem:[#allocation16 + $0x324] sm:$0xf0]  ;;  %v1117_v12 = vperm.slane %v11571_v57, 3 }
 0x22b   :  { %v11587_v22 = vpack.c.bf16 %v1126_v19, %v1126_v19  ;;  %v1110_v23 = vmul.f32 %v1102_v13, %v1097_v55  ;;  %v10215_v16 = vld [vmem:[#allocation16 + $0xa4] sm:$0xf0]  ;;  %v7693_v55 = vor.u32 %v10295_v6, %v7692_v5  ;;  %v7790_v5 = vld [vmem:[#allocation16 + $0x3e8] sm:$0xf0] }
 0x22c   :  { %v1079_v25 = vmul.f32 0.5, %v1078_v10  ;;  %v8012_v18 = vld [vmem:[#allocation16 + $0x588] sm:$0xf] }
 0x22d   :  { %v1123_v26 = vadd.f32 %v1115_v17, %v1110_v23  ;;  %2678 = vmatmul.bf16.vlgmr.msrb.gmra.mxu0 %v11587_v22  ;;  %v10937_v29 = vpop.eup %10936  ;;  %v10375_v19 = vld [vmem:[#allocation16 + $0x5a4] sm:$0xf0] }
 0x22e   :  { %v1080_v30 = vsub.f32 1.5, %v1079_v25  ;;  %2774 = vmatpush.bf16.msrb.mxu0 %v7533_v20  ;;  %v1087_v31 = vmul.f32 %v10937_v29, %v11580_v7  ;;  %vm1093_vm2 = vweird.f32 %v10937_v29  ;;  %v7372_v7 = vld [vmem:[#allocation16 + $0x88] sm:$0xf]  ;;  %v8013_v20 = vor.u32 %v10375_v19, %v8012_v18 }
 0x22f   :  { %v1127_v8 = vmax.f32 %v1123_v26, 0.0  ;;  %vm1094_vm4 = vmor %vm1092_vm3, %vm1093_vm2  ;;  %v7660_v17 = vld [vmem:[#allocation16 + $0x2c8] sm:$0xf]  ;;  %v7373_v57 = vor.u32 %v10215_v16, %v7372_v7  ;;  %v7470_v7 = vld [vmem:[#allocation16 + $0x168] sm:$0xf0] }
 0x230   :  { %v1081_v36 = vmul.f32 %v10935_v11, %v1080_v30  ;;  %v1088_v40 = vmul.f32 %v10937_v29, %v1087_v31  ;;  %v8300_v23 = vld [vmem:[#allocation16 + $0x7c8] sm:$0xf] }
 0x231   :  { %v11592_v38 = vpack.c.bf16 %v1127_v8, %v1127_v8  ;;  %v10447_v58 = vld [vmem:[#allocation16 + $0x7e4] sm:$0xf0] }
 0x232   :  { %v1085_v44 = vsel %vm1084_vm1, %v10935_v11, %v1081_v36  ;;  %2775 = vmatpush.bf16.msrb.mxu0 %v7501_v49  ;;  %v1089_v48 = vmul.f32 0.5, %v1088_v40  ;;  %v7340_v24 = vld [vmem:[#allocation16 + $0x48] sm:$0xf]  ;;  %v8301_v30 = vor.u32 %v10447_v58, %v8300_v23  ;;  %v10227_v23 = vld [vmem:[#allocation16 + $0x10c] sm:$0xf] }
 0x233   :  { %v1098_v14 = vmul.f32 %v1085_v44, %v11547_v46  ;;  %2691 = vmatmul.bf16.vlgmr.msrb.gmra.mxu1 %v11592_v38  ;;  %v10223_v46 = vld [vmem:[#allocation16 + $0xe4] sm:$0xf0]  ;;  %v7438_v58 = vld [vmem:[#allocation16 + $0x128] sm:$0xf0] }
 0x234   :  { %2787 = vmatpush.bf16.msrb.mxu1 %v7789_v37  ;;  %v1090_v61 = vsub.f32 1.5, %v1089_v48  ;;  %v7405_v13 = vor.u32 %v10223_v46, %v7404_v1  ;;  %v10207_v25 = vld [vmem:[#allocation16 + $0x64] sm:$0xf0] }
 0x235   :  { %v1111_v59 = vmul.f32 %v1103_v39, %v1098_v14  ;;  %v7980_v26 = vld [vmem:[#allocation16 + $0x548] sm:$0xf]  ;;  %v7341_v33 = vor.u32 %v10207_v25, %v7340_v24  ;;  %v7534_v14 = vld [vmem:[#allocation16 + $0x1e8] sm:$0xf0] }
 0x236   :  { %2776 = vmatpush.bf16.msrb.mxu0 %v7469_v45  ;;  %v1091_v34 = vmul.f32 %v10937_v29, %v1090_v61  ;;  %v7628_v49 = vld [vmem:[#allocation16 + $0x288] sm:$0xf]  ;;  %v7981_v35 = vor.u32 %v10367_v27, %v7980_v26  ;;  %v10251_v45 = vld [vmem:[#allocation16 + $0x1cc] sm:$0xf] }
 0x237   :  { %v1124_v21 = vadd.f32 %v1116_v47, %v1111_v59  ;;  %v10279_v8 = vld [vmem:[#allocation16 + $0x2a4] sm:$0xf0]  ;;  %v7537_v63 = vor.u32 %v10251_v45, %v7534_v14  ;;  %v10291_v14 = vld [vmem:[#allocation16 + $0x30c] sm:$0xf] }
 0x238   :  { %2788 = vmatpush.bf16.msrb.mxu1 %v7757_v54  ;;  %v1095_v4 = vsel %vm1094_vm4, %v10937_v29, %v1091_v34  ;;  %v8268_v36 = vld [vmem:[#allocation16 + $0x788] sm:$0xf]  ;;  %v7629_v44 = vor.u32 %v10279_v8, %v7628_v49  ;;  %v7502_v34 = vld [vmem:[#allocation16 + $0x1a8] sm:$0xf0]  ;;  %v7441_v49 = vor.u32 %v10227_v23, %v7438_v58 }
 0x239   :  { %v1128_v60 = vmax.f32 %v1124_v21, 0.0  ;;  %v1099_v11 = vmul.f32 %v1095_v4, %v11557_v15  ;;  %v10287_v15 = vld [vmem:[#allocation16 + $0x2e4] sm:$0xf0]  ;;  %v10243_v21 = vld [vmem:[#allocation16 + $0x18c] sm:$0xf] }
 0x23a   :  { %2777 = vmatpush.bf16.msrb.mxu0 %v7437_v0  ;;  %v7661_v29 = vor.u32 %v10287_v15, %v7660_v17  ;;  %v10439_v37 = vld [vmem:[#allocation16 + $0x7a4] sm:$0xf0]  ;;  %v10315_v4 = vld [vmem:[#allocation16 + $0x3cc] sm:$0xf]  ;;  %v7505_v6 = vor.u32 %v10243_v21, %v7502_v34 }
 0x23b   :  { %v11602_v9 = vpack.c.bf16 %v1128_v60, %v1128_v60  ;;  %v1112_v43 = vmul.f32 %v1104_v3, %v1099_v11  ;;  %v7308_v39 = vld [vmem:[#allocation16 + $0x8] sm:$0xf]  ;;  %v8269_v47 = vor.u32 %v10439_v37, %v8268_v36  ;;  %v7793_v18 = vor.u32 %v10315_v4, %v7790_v5  ;;  %v10307_v17 = vld [vmem:[#allocation16 + $0x38c] sm:$0xf] }
 0x23c   :  { %2789 = vmatpush.bf16.msrb.mxu1 %v7725_v51  ;;  %v10199_v40 = vld [vmem:[#allocation16 + $0x24] sm:$0xf0]  ;;  %v7758_v15 = vld [vmem:[#allocation16 + $0x3a8] sm:$0xf0] }
 0x23d   :  { %2704 = vmatmul.bf16.vlgmr.msrb.gmra.mxu2 %v11602_v9  ;;  %2730 = vmatmul.bf16.vlgmr.msra.gmra.mxu0 %v11587_v22  ;;  %v1125_v10 = vadd.f32 %v1117_v12, %v1112_v43  ;;  %v7948_v41 = vld [vmem:[#allocation16 + $0x508] sm:$0xf]  ;;  %v7309_v53 = vor.u32 %v10199_v40, %v7308_v39  ;;  %v7761_v25 = vor.u32 %v10307_v17, %v7758_v15  ;;  %v7406_v36 = vld [vmem:[#allocation16 + $0xe8] sm:$0xf0] }
 0x23e   :  { %2778 = vmatpush.bf16.msrb.mxu0 %v7405_v13  ;;  %2800 = vmatpush.bf16.msrb.mxu2 %v8045_v56  ;;  %v10359_v42 = vld [vmem:[#allocation16 + $0x524] sm:$0xf0]  ;;  %v10235_v56 = vld [vmem:[#allocation16 + $0x14c] sm:$0xf] }
 0x23f   :  { %v1129_v28 = vmax.f32 %v1125_v10, 0.0  ;;  %v7596_v48 = vld [vmem:[#allocation16 + $0x248] sm:$0xf]  ;;  %v7949_v54 = vor.u32 %v10359_v42, %v7948_v41  ;;  %v7473_v10 = vor.u32 %v10235_v56, %v7470_v7  ;;  %v10379_v37 = vld [vmem:[#allocation16 + $0x5cc] sm:$0xf] }
 0x240   :  { %2790 = vmatpush.bf16.msrb.mxu1 %v7693_v55  ;;  %v10271_v52 = vld [vmem:[#allocation16 + $0x264] sm:$0xf0]  ;;  %v8046_v39 = vld [vmem:[#allocation16 + $0x5e8] sm:$0xf0] }
 0x241   :  { %v11606_v31 = vpack.c.bf16 %v1129_v28, %v1129_v28  ;;  %v8236_v59 = vld [vmem:[#allocation16 + $0x748] sm:$0xf]  ;;  %v7597_v1 = vor.u32 %v10271_v52, %v7596_v48  ;;  %v8049_v52 = vor.u32 %v10379_v37, %v8046_v39  ;;  %v10283_v21 = vld [vmem:[#allocation16 + $0x2cc] sm:$0xf] }
 0x242   :  { %2779 = vmatpush.bf16.msrb.mxu0 %v7373_v57  ;;  %2801 = vmatpush.bf16.msrb.mxu2 %v8013_v20  ;;  %v10431_v61 = vld [vmem:[#allocation16 + $0x764] sm:$0xf0]  ;;  %v7662_v34 = vld [vmem:[#allocation16 + $0x2e8] sm:$0xf0] }
 0x243   :  { %2743 = vmatmul.bf16.vlgmr.msra.gmra.mxu1 %v11592_v38  ;;  %2717 = vmatmul.bf16.vlgmr.msrb.gmra.mxu3 %v11606_v31  ;;  %v7916_v62 = vld [vmem:[#allocation16 + $0x4c8] sm:$0xf]  ;;  %v8237_v46 = vor.u32 %v10431_v61, %v8236_v59  ;;  %v10371_v59 = vld [vmem:[#allocation16 + $0x58c] sm:$0xf] }
 0x244   :  { %2791 = vmatpush.bf16.msrb.mxu1 %v7661_v29  ;;  %2813 = vmatpush.bf16.msrb.mxu3 %v8301_v30  ;;  %v10351_v0 = vld [vmem:[#allocation16 + $0x4e4] sm:$0xf0]  ;;  %v10299_v29 = vld [vmem:[#allocation16 + $0x34c] sm:$0xf] }
 0x245   :  { %v7564_v2 = vld [vmem:[#allocation16 + $0x208] sm:$0xf]  ;;  %v7917_v51 = vor.u32 %v10351_v0, %v7916_v62  ;;  %v7726_v30 = vld [vmem:[#allocation16 + $0x368] sm:$0xf0] }
 0x246   :  { %2780 = vmatpush.bf16.msrb.mxu0 %v7341_v33  ;;  %2802 = vmatpush.bf16.msrb.mxu2 %v7981_v35  ;;  %v10263_v50 = vld [vmem:[#allocation16 + $0x224] sm:$0xf0]  ;;  %v10219_v35 = vld [vmem:[#allocation16 + $0xcc] sm:$0xf]  ;;  %v7729_v41 = vor.u32 %v10299_v29, %v7726_v30 }
 0x247   :  { %v8204_v3 = vld [vmem:[#allocation16 + $0x708] sm:$0xf]  ;;  %v7565_v13 = vor.u32 %v10263_v50, %v7564_v2  ;;  %v7409_v48 = vor.u32 %v10219_v35, %v7406_v36  ;;  %v8014_v61 = vld [vmem:[#allocation16 + $0x5a8] sm:$0xf0]  ;;  %v10248_v35 = vld [vmem:[#allocation16 + $0x1ac] sm:$0xf0] }
 0x248   :  { %2792 = vmatpush.bf16.msrb.mxu1 %v7629_v44  ;;  %2814 = vmatpush.bf16.msrb.mxu3 %v8269_v47  ;;  %v10423_v60 = vld [vmem:[#allocation16 + $0x724] sm:$0xf0]  ;;  %v7694_v47 = vld [vmem:[#allocation16 + $0x328] sm:$0xf0]  ;;  %v8017_v2 = vor.u32 %v10371_v59, %v8014_v61 }
 0x249   :  { %v7884_v11 = vld [vmem:[#allocation16 + $0x488] sm:$0xf]  ;;  %v8205_v16 = vor.u32 %v10423_v60, %v8204_v3  ;;  %v7697_v62 = vor.u32 %v10291_v14, %v7694_v47  ;;  %v10443_v50 = vld [vmem:[#allocation16 + $0x7cc] sm:$0xf] }
 0x24a   :  { %2781 = vmatpush.bf16.msrb.mxu0 %v7309_v53  ;;  %2803 = vmatpush.bf16.msrb.mxu2 %v7949_v54  ;;  %v10343_v12 = vld [vmem:[#allocation16 + $0x4a4] sm:$0xf0]  ;;  %v10211_v53 = vld [vmem:[#allocation16 + $0x8c] sm:$0xf] }
 0x24b   :  { %v8172_v19 = vld [vmem:[#allocation16 + $0x6c8] sm:$0xf]  ;;  %v7885_v43 = vor.u32 %v10343_v12, %v7884_v11  ;;  %v7374_v54 = vld [vmem:[#allocation16 + $0xa8] sm:$0xf0]  ;;  %v7665_v11 = vor.u32 %v10283_v21, %v7662_v34  ;;  %v10312_v21 = vld [vmem:[#allocation16 + $0x3ac] sm:$0xf0] }
 0x24c   :  { %2793 = vmatpush.bf16.msrb.mxu1 %v7597_v1  ;;  %2815 = vmatpush.bf16.msrb.mxu3 %v8237_v46  ;;  %v10415_v55 = vld [vmem:[#allocation16 + $0x6e4] sm:$0xf0]  ;;  %v7377_v46 = vor.u32 %v10211_v53, %v7374_v54  ;;  %v8302_v3 = vld [vmem:[#allocation16 + $0x7e8] sm:$0xf0]  ;;  %v7476_v53 = vld [vmem:[#allocation16 + $0x150] sm:$0xf] }
 0x24d   :  { %2756 = vmatmul.bf16.vlgmr.msra.gmra.mxu2 %v11602_v9  ;;  %2782 = vmatmul.bf16.vlgmr.msrb.gmra.mxu0 %v11587_v22  ;;  %v7852_v57 = vld [vmem:[#allocation16 + $0x448] sm:$0xf]  ;;  %v8173_v24 = vor.u32 %v10415_v55, %v8172_v19  ;;  %v7342_v60 = vld [vmem:[#allocation16 + $0x68] sm:$0xf0]  ;;  %v8305_v12 = vor.u32 %v10443_v50, %v8302_v3  ;;  %v10240_v54 = vld [vmem:[#allocation16 + $0x16c] sm:$0xf0] }
 0x24e   :  { %2826 = vmatpush.bf16.msra.mxu0 %v7537_v63  ;;  %2804 = vmatpush.bf16.msrb.mxu2 %v7917_v51  ;;  %v10335_v20 = vld [vmem:[#allocation16 + $0x464] sm:$0xf0]  ;;  %v10203_v51 = vld [vmem:[#allocation16 + $0x4c] sm:$0xf]  ;;  %v7477_v34 = vor.u32 %v10240_v54, %v7476_v53  ;;  %v7444_v50 = vld [vmem:[#allocation16 + $0x110] sm:$0xf] }
 0x24f   :  { %v8140_v26 = vld [vmem:[#allocation16 + $0x688] sm:$0xf]  ;;  %v7853_v27 = vor.u32 %v10335_v20, %v7852_v57  ;;  %v10363_v4 = vld [vmem:[#allocation16 + $0x54c] sm:$0xf]  ;;  %v7345_v7 = vor.u32 %v10203_v51, %v7342_v60  ;;  %v7540_v57 = vld [vmem:[#allocation16 + $0x1d0] sm:$0xf] }
 0x250   :  { %2794 = vmatpush.bf16.msrb.mxu1 %v7565_v13  ;;  %2816 = vmatpush.bf16.msrb.mxu3 %v8205_v16  ;;  %v10407_v28 = vld [vmem:[#allocation16 + $0x6a4] sm:$0xf0]  ;;  %v7982_v5 = vld [vmem:[#allocation16 + $0x568] sm:$0xf0]  ;;  %v10256_v20 = vld [vmem:[#allocation16 + $0x1ec] sm:$0xf0] }
 0x251   :  { %v7820_v8 = vld [vmem:[#allocation16 + $0x408] sm:$0xf]  ;;  %v8141_v40 = vor.u32 %v10407_v28, %v8140_v26  ;;  %v10275_v13 = vld [vmem:[#allocation16 + $0x28c] sm:$0xf]  ;;  %v7985_v16 = vor.u32 %v10363_v4, %v7982_v5  ;;  %v7541_v29 = vor.u32 %v10256_v20, %v7540_v57  ;;  %v10232_v3 = vld [vmem:[#allocation16 + $0x12c] sm:$0xf0] }
 0x252   :  { %2827 = vmatpush.bf16.msra.mxu0 %v7505_v6  ;;  %2805 = vmatpush.bf16.msrb.mxu2 %v7885_v43  ;;  %v10327_v33 = vld [vmem:[#allocation16 + $0x424] sm:$0xf0]  ;;  %v7630_v56 = vld [vmem:[#allocation16 + $0x2a8] sm:$0xf0]  ;;  %v10280_v53 = vld [vmem:[#allocation16 + $0x2ac] sm:$0xf0] }
 0x253   :  { %2795 = vmatmul.bf16.vlgmr.msrb.gmra.mxu1 %v11592_v38  ;;  %2769 = vmatmul.bf16.vlgmr.msra.gmra.mxu3 %v11606_v31  ;;  %v8108_v42 = vld [vmem:[#allocation16 + $0x648] sm:$0xf]  ;;  %v7821_v44 = vor.u32 %v10327_v33, %v7820_v8  ;;  %v8270_v19 = vld [vmem:[#allocation16 + $0x7a8] sm:$0xf0]  ;;  %v7508_v33 = vld [vmem:[#allocation16 + $0x190] sm:$0xf] }
 0x254   :  { %2839 = vmatpush.bf16.msra.mxu1 %v7793_v18  ;;  %2817 = vmatpush.bf16.msrb.mxu3 %v8173_v24  ;;  %v10399_v45 = vld [vmem:[#allocation16 + $0x664] sm:$0xf0]  ;;  %v10435_v18 = vld [vmem:[#allocation16 + $0x78c] sm:$0xf]  ;;  %v7509_v14 = vor.u32 %v10248_v35, %v7508_v33  ;;  %v7668_v33 = vld [vmem:[#allocation16 + $0x2d0] sm:$0xf] }
 0x255   :  { %v8109_v63 = vor.u32 %v10399_v45, %v8108_v42  ;;  %v8076_v0 = vld [vmem:[#allocation16 + $0x608] sm:$0xf]  ;;  %v10195_v43 = vld [vmem:[#allocation16 + $0xc] sm:$0xf]  ;;  %v8273_v23 = vor.u32 %v10435_v18, %v8270_v19  ;;  %v10320_v45 = vld [vmem:[#allocation16 + $0x3ec] sm:$0xf0] }
 0x256   :  { %2828 = vmatpush.bf16.msra.mxu0 %v7473_v10  ;;  %2806 = vmatpush.bf16.msrb.mxu2 %v7853_v27  ;;  %v10391_v1 = vld [vmem:[#allocation16 + $0x624] sm:$0xf0]  ;;  %v7310_v55 = vld [vmem:[#allocation16 + $0x28] sm:$0xf0]  ;;  %v7633_v10 = vor.u32 %v10275_v13, %v7630_v56  ;;  %v7445_v13 = vor.u32 %v10232_v3, %v7444_v50  ;;  %v10224_v18 = vld [vmem:[#allocation16 + $0xec] sm:$0xf0] }
 0x257   :  { %v8077_v6 = vor.u32 %v10391_v1, %v8076_v0  ;;  %v10355_v17 = vld [vmem:[#allocation16 + $0x50c] sm:$0xf]  ;;  %v7764_v1 = vld [vmem:[#allocation16 + $0x390] sm:$0xf] }
 0x258   :  { %2840 = vmatpush.bf16.msra.mxu1 %v7761_v25  ;;  %2818 = vmatpush.bf16.msrb.mxu3 %v8141_v40  ;;  %v7950_v15 = vld [vmem:[#allocation16 + $0x528] sm:$0xf0]  ;;  %v7313_v25 = vor.u32 %v10195_v43, %v7310_v55  ;;  %v7765_v60 = vor.u32 %v10312_v21, %v7764_v1  ;;  %v8052_v19 = vld [vmem:[#allocation16 + $0x5d0] sm:$0xf] }
 0x259   :  { %v10267_v58 = vld [vmem:[#allocation16 + $0x24c] sm:$0xf]  ;;  %v7953_v26 = vor.u32 %v10355_v17, %v7950_v15  ;;  %v10384_v43 = vld [vmem:[#allocation16 + $0x5ec] sm:$0xf0] }
 0x25a   :  { %2829 = vmatpush.bf16.msra.mxu0 %v7441_v49  ;;  %2807 = vmatpush.bf16.msrb.mxu2 %v7821_v44  ;;  %v7598_v24 = vld [vmem:[#allocation16 + $0x268] sm:$0xf0]  ;;  %v7796_v44 = vld [vmem:[#allocation16 + $0x3d0] sm:$0xf] }
 0x25b   :  { %v10427_v27 = vld [vmem:[#allocation16 + $0x74c] sm:$0xf]  ;;  %v7601_v8 = vor.u32 %v10267_v58, %v7598_v24  ;;  %v7797_v61 = vor.u32 %v10320_v45, %v7796_v44  ;;  %v7700_v58 = vld [vmem:[#allocation16 + $0x310] sm:$0xf] }
 0x25c   :  { %2841 = vmatpush.bf16.msra.mxu1 %v7729_v41  ;;  %2819 = vmatpush.bf16.msrb.mxu3 %v8109_v63  ;;  %v8238_v28 = vld [vmem:[#allocation16 + $0x768] sm:$0xf0]  ;;  %v10296_v24 = vld [vmem:[#allocation16 + $0x32c] sm:$0xf0] }
 0x25d   :  { %2808 = vmatmul.bf16.vlgmr.msrb.gmra.mxu2 %v11602_v9  ;;  %v10347_v30 = vld [vmem:[#allocation16 + $0x4cc] sm:$0xf]  ;;  %v8241_v36 = vor.u32 %v10427_v27, %v8238_v28  ;;  %v8020_v27 = vld [vmem:[#allocation16 + $0x590] sm:$0xf] }
 0x25e   :  { %2830 = vmatpush.bf16.msra.mxu0 %v7409_v48  ;;  %2852 = vmatpush.bf16.msra.mxu2 %v8049_v52  ;;  %v7918_v49 = vld [vmem:[#allocation16 + $0x4e8] sm:$0xf0]  ;;  %v10376_v28 = vld [vmem:[#allocation16 + $0x5ac] sm:$0xf0] }
 0x25f   :  { %v10259_v37 = vld [vmem:[#allocation16 + $0x20c] sm:$0xf]  ;;  %v7921_v41 = vor.u32 %v10347_v30, %v7918_v49  ;;  %v7701_v49 = vor.u32 %v10296_v24, %v7700_v58  ;;  %v10288_v35 = vld [vmem:[#allocation16 + $0x2ec] sm:$0xf0]  ;;  %v10236_v24 = vld [vmem:[#allocation16 + $0x154] sm:$0xf] }
 0x260   :  { %2842 = vmatpush.bf16.msra.mxu1 %v7697_v62  ;;  %2820 = vmatpush.bf16.msrb.mxu3 %v8077_v6  ;;  %v7566_v39 = vld [vmem:[#allocation16 + $0x228] sm:$0xf0]  ;;  %v7988_v44 = vld [vmem:[#allocation16 + $0x550] sm:$0xf] }
 0x261   :  { %v10419_v40 = vld [vmem:[#allocation16 + $0x70c] sm:$0xf]  ;;  %v7569_v52 = vor.u32 %v10259_v37, %v7566_v39  ;;  %v8021_v37 = vor.u32 %v10376_v28, %v8020_v27  ;;  %v8308_v39 = vld [vmem:[#allocation16 + $0x7d0] sm:$0xf] }
 0x262   :  { %2831 = vmatpush.bf16.msra.mxu0 %v7377_v46  ;;  %2853 = vmatpush.bf16.msra.mxu2 %v8017_v2  ;;  %v8206_v42 = vld [vmem:[#allocation16 + $0x728] sm:$0xf0]  ;;  %v10368_v45 = vld [vmem:[#allocation16 + $0x56c] sm:$0xf0] }
 0x263   :  { %2821 = vmatmul.bf16.vlgmr.msrb.gmra.mxu3 %v11606_v31  ;;  %v10339_v47 = vld [vmem:[#allocation16 + $0x48c] sm:$0xf]  ;;  %v8209_v59 = vor.u32 %v10419_v40, %v8206_v42  ;;  %v10448_v40 = vld [vmem:[#allocation16 + $0x7ec] sm:$0xf0] }
 0x264   :  { %2843 = vmatpush.bf16.msra.mxu1 %v7665_v11  ;;  %2865 = vmatpush.bf16.msra.mxu3 %v8305_v12  ;;  %v7886_v48 = vld [vmem:[#allocation16 + $0x4a8] sm:$0xf0]  ;;  %v7732_v11 = vld [vmem:[#allocation16 + $0x350] sm:$0xf] }
 0x265   :  { %v10411_v63 = vld [vmem:[#allocation16 + $0x6cc] sm:$0xf]  ;;  %v7889_v62 = vor.u32 %v10339_v47, %v7886_v48  ;;  %v10304_v12 = vld [vmem:[#allocation16 + $0x36c] sm:$0xf0]  ;;  %v7669_v47 = vor.u32 %v10288_v35, %v7668_v33  ;;  %v8309_v48 = vor.u32 %v10448_v40, %v8308_v39  ;;  %v7766_v35 = vld [vmem:[#allocation16 + $0x3b0] sm:$0xf0] }
 0x266   :  { %2832 = vmatpush.bf16.msra.mxu0 %v7345_v7  ;;  %2854 = vmatpush.bf16.msra.mxu2 %v7985_v16  ;;  %v8174_v0 = vld [vmem:[#allocation16 + $0x6e8] sm:$0xf0]  ;;  %v7412_v16 = vld [vmem:[#allocation16 + $0xd0] sm:$0xf]  ;;  %v7733_v17 = vor.u32 %v10304_v12, %v7732_v11  ;;  %v10228_v39 = vld [vmem:[#allocation16 + $0x114] sm:$0xf] }
 0x267   :  { %v10331_v46 = vld [vmem:[#allocation16 + $0x44c] sm:$0xf]  ;;  %v8177_v51 = vor.u32 %v10411_v63, %v8174_v0  ;;  %v7413_v20 = vor.u32 %v10224_v18, %v7412_v16  ;;  %v10208_v42 = vld [vmem:[#allocation16 + $0x6c] sm:$0xf0]  ;;  %v7446_v40 = vld [vmem:[#allocation16 + $0x130] sm:$0xf0] }
 0x268   :  { %2844 = vmatpush.bf16.msra.mxu1 %v7633_v10  ;;  %2866 = vmatpush.bf16.msra.mxu3 %v8273_v23  ;;  %v7854_v2 = vld [vmem:[#allocation16 + $0x468] sm:$0xf0]  ;;  %v8053_v23 = vor.u32 %v10384_v43, %v8052_v19  ;;  %v10440_v63 = vld [vmem:[#allocation16 + $0x7ac] sm:$0xf0] }
 0x269   :  { %v10403_v4 = vld [vmem:[#allocation16 + $0x68c] sm:$0xf]  ;;  %v7857_v5 = vor.u32 %v10331_v46, %v7854_v2  ;;  %v10200_v0 = vld [vmem:[#allocation16 + $0x2c] sm:$0xf0]  ;;  %v7542_v46 = vld [vmem:[#allocation16 + $0x1f0] sm:$0xf0] }
 0x26a   :  { %2833 = vmatpush.bf16.msra.mxu0 %v7313_v25  ;;  %2855 = vmatpush.bf16.msra.mxu2 %v7953_v26  ;;  %v8142_v6 = vld [vmem:[#allocation16 + $0x6a8] sm:$0xf0]  ;;  %v7380_v25 = vld [vmem:[#allocation16 + $0x90] sm:$0xf] }
 0x26b   :  { %v10323_v56 = vld [vmem:[#allocation16 + $0x40c] sm:$0xf]  ;;  %v8145_v55 = vor.u32 %v10403_v4, %v8142_v6  ;;  %v10216_v26 = vld [vmem:[#allocation16 + $0xac] sm:$0xf0] }
 0x26c   :  { %2845 = vmatpush.bf16.msra.mxu1 %v7601_v8  ;;  %2867 = vmatpush.bf16.msra.mxu3 %v8241_v36  ;;  %v7822_v7 = vld [vmem:[#allocation16 + $0x428] sm:$0xf0]  ;;  %v7381_v36 = vor.u32 %v10216_v26, %v7380_v25  ;;  %v7956_v1 = vld [vmem:[#allocation16 + $0x510] sm:$0xf]  ;;  %v7478_v25 = vld [vmem:[#allocation16 + $0x170] sm:$0xf0] }
 0x26d   :  { %2834 = vmatmul.bf16.vlgmr.msra.gmra.mxu0 %v11587_v22  ;;  %v7825_v15 = vor.u32 %v10323_v56, %v7822_v7  ;;  %v10395_v10 = vld [vmem:[#allocation16 + $0x64c] sm:$0xf]  ;;  %v10360_v21 = vld [vmem:[#allocation16 + $0x52c] sm:$0xf0]  ;;  %v10244_v56 = vld [vmem:[#allocation16 + $0x194] sm:$0xf]  ;;  %v7481_v33 = vor.u32 %v10236_v24, %v7478_v25 }
 0x26e   :  { %2878 = vmatpush.bf16.msrb.mxu0 %v7541_v29  ;;  %2856 = vmatpush.bf16.msra.mxu2 %v7921_v41  ;;  %v8110_v57 = vld [vmem:[#allocation16 + $0x668] sm:$0xf0]  ;;  %v7348_v41 = vld [vmem:[#allocation16 + $0x50] sm:$0xf]  ;;  %v7510_v7 = vld [vmem:[#allocation16 + $0x1b0] sm:$0xf0] }
 0x26f   :  { %v8113_v29 = vor.u32 %v10395_v10, %v8110_v57  ;;  %v10387_v30 = vld [vmem:[#allocation16 + $0x60c] sm:$0xf]  ;;  %v7349_v54 = vor.u32 %v10208_v42, %v7348_v41  ;;  %v7604_v3 = vld [vmem:[#allocation16 + $0x250] sm:$0xf]  ;;  %v10316_v10 = vld [vmem:[#allocation16 + $0x3d4] sm:$0xf]  ;;  %v7513_v57 = vor.u32 %v10244_v56, %v7510_v7 }
 0x270   :  { %2846 = vmatpush.bf16.msra.mxu1 %v7569_v52  ;;  %2868 = vmatpush.bf16.msra.mxu3 %v8209_v59  ;;  %v8078_v8 = vld [vmem:[#allocation16 + $0x628] sm:$0xf0]  ;;  %v7636_v52 = vld [vmem:[#allocation16 + $0x290] sm:$0xf]  ;;  %v7989_v59 = vor.u32 %v10368_v45, %v7988_v44  ;;  %v10284_v7 = vld [vmem:[#allocation16 + $0x2d4] sm:$0xf] }
 0x271   :  { %v7637_v2 = vor.u32 %v10280_v53, %v7636_v52  ;;  %v10272_v4 = vld [vmem:[#allocation16 + $0x26c] sm:$0xf0]  ;;  %v7449_v52 = vor.u32 %v10228_v39, %v7446_v40  ;;  %v10276_v24 = vld [vmem:[#allocation16 + $0x294] sm:$0xf] }
 0x272   :  { %2879 = vmatpush.bf16.msrb.mxu0 %v7509_v14  ;;  %2857 = vmatpush.bf16.msra.mxu2 %v7889_v62  ;;  %v8081_v14 = vor.u32 %v10387_v30, %v8078_v8  ;;  %v7316_v62 = vld [vmem:[#allocation16 + $0x10] sm:$0xf]  ;;  %v7605_v16 = vor.u32 %v10272_v4, %v7604_v3  ;;  %v10308_v8 = vld [vmem:[#allocation16 + $0x394] sm:$0xf] }
 0x273   :  { %2847 = vmatmul.bf16.vlgmr.msra.gmra.mxu1 %v11592_v38  ;;  %v10432_v6 = vld [vmem:[#allocation16 + $0x76c] sm:$0xf0]  ;;  %v7769_v44 = vor.u32 %v10308_v8, %v7766_v35  ;;  %v10292_v3 = vld [vmem:[#allocation16 + $0x314] sm:$0xf]  ;;  %v7548_v35 = vld [vmem:[#allocation16 + $0x1d8] sm:$0xf] }
 0x274   :  { %2891 = vmatpush.bf16.msrb.mxu1 %v7797_v61  ;;  %2869 = vmatpush.bf16.msra.mxu3 %v8177_v51  ;;  %v8276_v61 = vld [vmem:[#allocation16 + $0x790] sm:$0xf]  ;;  %v7317_v51 = vor.u32 %v10200_v0, %v7316_v62  ;;  %v8054_v62 = vld [vmem:[#allocation16 + $0x5f0] sm:$0xf0] }
 0x275   :  { %v8277_v50 = vor.u32 %v10440_v63, %v8276_v61  ;;  %v7924_v12 = vld [vmem:[#allocation16 + $0x4d0] sm:$0xf]  ;;  %v7414_v61 = vld [vmem:[#allocation16 + $0xf0] sm:$0xf0] }
 0x276   :  { %2880 = vmatpush.bf16.msrb.mxu0 %v7477_v34  ;;  %2858 = vmatpush.bf16.msra.mxu2 %v7857_v5  ;;  %v10252_v34 = vld [vmem:[#allocation16 + $0x1d4] sm:$0xf]  ;;  %v8244_v5 = vld [vmem:[#allocation16 + $0x750] sm:$0xf] }
 0x277   :  { %v7545_v11 = vor.u32 %v10252_v34, %v7542_v46  ;;  %v8245_v18 = vor.u32 %v10432_v6, %v8244_v5  ;;  %v7572_v19 = vld [vmem:[#allocation16 + $0x210] sm:$0xf]  ;;  %v10380_v63 = vld [vmem:[#allocation16 + $0x5d4] sm:$0xf] }
 0x278   :  { %2892 = vmatpush.bf16.msrb.mxu1 %v7765_v60  ;;  %2870 = vmatpush.bf16.msra.mxu3 %v8145_v55  ;;  %v7957_v60 = vor.u32 %v10360_v21, %v7956_v1  ;;  %v10264_v43 = vld [vmem:[#allocation16 + $0x22c] sm:$0xf0]  ;;  %v7382_v4 = vld [vmem:[#allocation16 + $0xb0] sm:$0xf0] }
 0x279   :  { %v10344_v58 = vld [vmem:[#allocation16 + $0x4ac] sm:$0xf0]  ;;  %v7573_v26 = vor.u32 %v10264_v43, %v7572_v19  ;;  %v10372_v5 = vld [vmem:[#allocation16 + $0x594] sm:$0xf] }
 0x27a   :  { %2881 = vmatpush.bf16.msrb.mxu0 %v7445_v13  ;;  %2859 = vmatpush.bf16.msra.mxu2 %v7825_v15  ;;  %v10352_v13 = vld [vmem:[#allocation16 + $0x4ec] sm:$0xf0]  ;;  %v8022_v6 = vld [vmem:[#allocation16 + $0x5b0] sm:$0xf0] }
 0x27b   :  { %v7925_v55 = vor.u32 %v10352_v13, %v7924_v12  ;;  %v10424_v15 = vld [vmem:[#allocation16 + $0x72c] sm:$0xf0]  ;;  %v8025_v19 = vor.u32 %v10372_v5, %v8022_v6  ;;  %v10444_v43 = vld [vmem:[#allocation16 + $0x7d4] sm:$0xf] }
 0x27c   :  { %2893 = vmatpush.bf16.msrb.mxu1 %v7733_v17  ;;  %2871 = vmatpush.bf16.msra.mxu3 %v8113_v29  ;;  %v8212_v17 = vld [vmem:[#allocation16 + $0x710] sm:$0xf]  ;;  %v7638_v25 = vld [vmem:[#allocation16 + $0x2b0] sm:$0xf0] }
 0x27d   :  { %2860 = vmatmul.bf16.vlgmr.msra.gmra.mxu2 %v11602_v9  ;;  %v8213_v27 = vor.u32 %v10424_v15, %v8212_v17  ;;  %v8180_v30 = vld [vmem:[#allocation16 + $0x6d0] sm:$0xf]  ;;  %v10204_v17 = vld [vmem:[#allocation16 + $0x54] sm:$0xf] }
 0x27e   :  { %2882 = vmatpush.bf16.msrb.mxu0 %v7413_v20  ;;  %2904 = vmatpush.bf16.msrb.mxu2 %v8053_v23  ;;  %v7798_v20 = vld [vmem:[#allocation16 + $0x3f0] sm:$0xf0]  ;;  %v7892_v23 = vld [vmem:[#allocation16 + $0x490] sm:$0xf] }
 0x27f   :  { %v7801_v28 = vor.u32 %v10316_v10, %v7798_v20  ;;  %v7893_v29 = vor.u32 %v10344_v58, %v7892_v23  ;;  %v8148_v42 = vld [vmem:[#allocation16 + $0x690] sm:$0xf]  ;;  %v7350_v15 = vld [vmem:[#allocation16 + $0x70] sm:$0xf0] }
 0x280   :  { %2894 = vmatpush.bf16.msrb.mxu1 %v7701_v49  ;;  %2872 = vmatpush.bf16.msra.mxu3 %v8081_v14  ;;  %v10416_v49 = vld [vmem:[#allocation16 + $0x6ec] sm:$0xf0]  ;;  %v10364_v10 = vld [vmem:[#allocation16 + $0x554] sm:$0xf] }
 0x281   :  { %v8181_v41 = vor.u32 %v10416_v49, %v8180_v30  ;;  %v10408_v14 = vld [vmem:[#allocation16 + $0x6ac] sm:$0xf0]  ;;  %v10196_v30 = vld [vmem:[#allocation16 + $0x14] sm:$0xf] }
 0x282   :  { %2883 = vmatpush.bf16.msrb.mxu0 %v7381_v36  ;;  %2905 = vmatpush.bf16.msrb.mxu2 %v8021_v37  ;;  %v7860_v36 = vld [vmem:[#allocation16 + $0x450] sm:$0xf]  ;;  %v8149_v0 = vor.u32 %v10408_v14, %v8148_v42  ;;  %v7318_v49 = vld [vmem:[#allocation16 + $0x30] sm:$0xf0] }
 0x283   :  { %2873 = vmatmul.bf16.vlgmr.msra.gmra.mxu3 %v11606_v31  ;;  %v10336_v37 = vld [vmem:[#allocation16 + $0x46c] sm:$0xf0]  ;;  %v10356_v8 = vld [vmem:[#allocation16 + $0x514] sm:$0xf] }
 0x284   :  { %2895 = vmatpush.bf16.msrb.mxu1 %v7669_v47  ;;  %2917 = vmatpush.bf16.msrb.mxu3 %v8309_v48  ;;  %v7861_v45 = vor.u32 %v10336_v37, %v7860_v36  ;;  %v10300_v47 = vld [vmem:[#allocation16 + $0x354] sm:$0xf]  ;;  %v7828_v53 = vld [vmem:[#allocation16 + $0x410] sm:$0xf]  ;;  %v10257_v36 = vld [vmem:[#allocation16 + $0x1f4] sm:$0xf0]  ;;  %v7641_v37 = vor.u32 %v10276_v24, %v7638_v25 }
 0x285   :  { %v7734_v48 = vld [vmem:[#allocation16 + $0x370] sm:$0xf0]  ;;  %v8116_v34 = vld [vmem:[#allocation16 + $0x650] sm:$0xf] }
 0x286   :  { %2884 = vmatpush.bf16.msrb.mxu0 %v7349_v54  ;;  %2906 = vmatpush.bf16.msrb.mxu2 %v7989_v59  ;;  %v10328_v54 = vld [vmem:[#allocation16 + $0x42c] sm:$0xf0]  ;;  %v10220_v59 = vld [vmem:[#allocation16 + $0xd4] sm:$0xf]  ;;  %v7737_v1 = vor.u32 %v10300_v47, %v7734_v48  ;;  %v7549_v47 = vor.u32 %v10257_v36, %v7548_v35 }
 0x287   :  { %v7829_v21 = vor.u32 %v10328_v54, %v7828_v53  ;;  %v10400_v46 = vld [vmem:[#allocation16 + $0x66c] sm:$0xf0]  ;;  %v10268_v40 = vld [vmem:[#allocation16 + $0x254] sm:$0xf]  ;;  %v7516_v53 = vld [vmem:[#allocation16 + $0x198] sm:$0xf] }
 0x288   :  { %2896 = vmatpush.bf16.msrb.mxu1 %v7637_v2  ;;  %2918 = vmatpush.bf16.msrb.mxu3 %v8277_v50  ;;  %v7417_v2 = vor.u32 %v10220_v59, %v7414_v61  ;;  %v8057_v50 = vor.u32 %v10380_v63, %v8054_v62  ;;  %v8084_v12 = vld [vmem:[#allocation16 + $0x610] sm:$0xf]  ;;  %v8246_v14 = vld [vmem:[#allocation16 + $0x770] sm:$0xf0]  ;;  %v10249_v54 = vld [vmem:[#allocation16 + $0x1b4] sm:$0xf0] }
 0x289   :  { %v10392_v56 = vld [vmem:[#allocation16 + $0x62c] sm:$0xf0]  ;;  %v10348_v48 = vld [vmem:[#allocation16 + $0x4d4] sm:$0xf] }
 0x28a   :  { %2885 = vmatpush.bf16.msrb.mxu0 %v7317_v51  ;;  %2907 = vmatpush.bf16.msrb.mxu2 %v7957_v60  ;;  %v7702_v51 = vld [vmem:[#allocation16 + $0x330] sm:$0xf0]  ;;  %v8085_v20 = vor.u32 %v10392_v56, %v8084_v12  ;;  %v7772_v56 = vld [vmem:[#allocation16 + $0x398] sm:$0xf] }
 0x28b   :  { %v10212_v60 = vld [vmem:[#allocation16 + $0x94] sm:$0xf]  ;;  %v7705_v13 = vor.u32 %v10292_v3, %v7702_v51  ;;  %v7484_v51 = vld [vmem:[#allocation16 + $0x158] sm:$0xf] }
 0x28c   :  { %2897 = vmatpush.bf16.msrb.mxu1 %v7605_v16  ;;  %2919 = vmatpush.bf16.msrb.mxu3 %v8245_v18  ;;  %v7670_v16 = vld [vmem:[#allocation16 + $0x2f0] sm:$0xf0]  ;;  %v7385_v18 = vor.u32 %v10212_v60, %v7382_v4  ;;  %v10241_v60 = vld [vmem:[#allocation16 + $0x174] sm:$0xf0] }
 0x28d   :  { %2886 = vmatmul.bf16.vlgmr.msrb.gmra.mxu0 %v11587_v22  ;;  %v7673_v23 = vor.u32 %v10284_v7, %v7670_v16  ;;  %v10260_v63 = vld [vmem:[#allocation16 + $0x214] sm:$0xf]  ;;  %v7485_v7 = vor.u32 %v10241_v60, %v7484_v51  ;;  %v10313_v16 = vld [vmem:[#allocation16 + $0x3b4] sm:$0xf0] }
 0x28e   :  { %2930 = vmatpush.bf16.msra.mxu0 %v7545_v11  ;;  %2908 = vmatpush.bf16.msrb.mxu2 %v7925_v55  ;;  %v8117_v11 = vor.u32 %v10400_v46, %v8116_v34  ;;  %v8310_v55 = vld [vmem:[#allocation16 + $0x7f0] sm:$0xf0]  ;;  %v7804_v34 = vld [vmem:[#allocation16 + $0x3d8] sm:$0xf]  ;;  %v7517_v46 = vor.u32 %v10249_v54, %v7516_v53 }
 0x28f   :  { %v8313_v58 = vor.u32 %v10444_v43, %v8310_v55  ;;  %v7574_v62 = vld [vmem:[#allocation16 + $0x230] sm:$0xf0]  ;;  %v7452_v43 = vld [vmem:[#allocation16 + $0x118] sm:$0xf] }
 0x290   :  { %2898 = vmatpush.bf16.msrb.mxu1 %v7573_v26  ;;  %2920 = vmatpush.bf16.msrb.mxu3 %v8213_v27  ;;  %v7353_v26 = vor.u32 %v10204_v17, %v7350_v15  ;;  %v7894_v3 = vld [vmem:[#allocation16 + $0x4b0] sm:$0xf0]  ;;  %v7577_v4 = vor.u32 %v10260_v63, %v7574_v62  ;;  %v10233_v55 = vld [vmem:[#allocation16 + $0x134] sm:$0xf0] }
 0x291   :  { %v10412_v12 = vld [vmem:[#allocation16 + $0x6d4] sm:$0xf]  ;;  %v7453_v25 = vor.u32 %v10233_v55, %v7452_v43  ;;  %v10289_v63 = vld [vmem:[#allocation16 + $0x2f4] sm:$0xf0]  ;;  %v10253_v55 = vld [vmem:[#allocation16 + $0x1dc] sm:$0xf] }
 0x292   :  { %2931 = vmatpush.bf16.msra.mxu0 %v7513_v57  ;;  %2909 = vmatpush.bf16.msrb.mxu2 %v7893_v29  ;;  %v7990_v57 = vld [vmem:[#allocation16 + $0x570] sm:$0xf0] }
 0x293   :  { %2899 = vmatmul.bf16.vlgmr.msrb.gmra.mxu1 %v11592_v38  ;;  %v7993_v27 = vor.u32 %v10364_v10, %v7990_v57  ;;  %v8278_v29 = vld [vmem:[#allocation16 + $0x7b0] sm:$0xf0]  ;;  %v7773_v10 = vor.u32 %v10313_v16, %v7772_v56  ;;  %v10441_v56 = vld [vmem:[#allocation16 + $0x7b4] sm:$0xf0] }
 0x294   :  { %2943 = vmatpush.bf16.msra.mxu1 %v7801_v28  ;;  %2921 = vmatpush.bf16.msrb.mxu3 %v8181_v41  ;;  %v10436_v28 = vld [vmem:[#allocation16 + $0x794] sm:$0xf]  ;;  %v7321_v41 = vor.u32 %v10196_v30, %v7318_v49  ;;  %v8060_v30 = vld [vmem:[#allocation16 + $0x5d8] sm:$0xf] }
 0x295   :  { %v8281_v39 = vor.u32 %v10436_v28, %v8278_v29  ;;  %v10404_v15 = vld [vmem:[#allocation16 + $0x694] sm:$0xf]  ;;  %v7420_v28 = vld [vmem:[#allocation16 + $0xd8] sm:$0xf] }
 0x296   :  { %2932 = vmatpush.bf16.msra.mxu0 %v7481_v33  ;;  %2910 = vmatpush.bf16.msrb.mxu2 %v7861_v45  ;;  %v7958_v33 = vld [vmem:[#allocation16 + $0x530] sm:$0xf0]  ;;  %v10225_v29 = vld [vmem:[#allocation16 + $0xf4] sm:$0xf0] }
 0x297   :  { %v7961_v42 = vor.u32 %v10356_v8, %v7958_v33  ;;  %v10428_v45 = vld [vmem:[#allocation16 + $0x754] sm:$0xf]  ;;  %v10385_v49 = vld [vmem:[#allocation16 + $0x5f4] sm:$0xf0] }
 0x298   :  { %2944 = vmatpush.bf16.msra.mxu1 %v7769_v44  ;;  %2922 = vmatpush.bf16.msrb.mxu3 %v8149_v0  ;;  %v7606_v44 = vld [vmem:[#allocation16 + $0x270] sm:$0xf0]  ;;  %v8249_v61 = vor.u32 %v10428_v45, %v8246_v14  ;;  %v10217_v45 = vld [vmem:[#allocation16 + $0xb4] sm:$0xf0] }
 0x299   :  { %v7609_v59 = vor.u32 %v10268_v40, %v7606_v44  ;;  %v10396_v36 = vld [vmem:[#allocation16 + $0x654] sm:$0xf]  ;;  %v8061_v40 = vor.u32 %v10385_v49, %v8060_v30  ;;  %v7388_v44 = vld [vmem:[#allocation16 + $0x98] sm:$0xf]  ;;  %v10245_v49 = vld [vmem:[#allocation16 + $0x19c] sm:$0xf] }
 0x29a   :  { %2933 = vmatpush.bf16.msra.mxu0 %v7449_v52  ;;  %2911 = vmatpush.bf16.msrb.mxu2 %v7829_v21  ;;  %v7926_v52 = vld [vmem:[#allocation16 + $0x4f0] sm:$0xf0]  ;;  %v8028_v14 = vld [vmem:[#allocation16 + $0x598] sm:$0xf] }
 0x29b   :  { %v7929_v0 = vor.u32 %v10348_v48, %v7926_v52  ;;  %v8214_v21 = vld [vmem:[#allocation16 + $0x730] sm:$0xf0]  ;;  %v10201_v16 = vld [vmem:[#allocation16 + $0x34] sm:$0xf0] }
 0x29c   :  { %2945 = vmatpush.bf16.msra.mxu1 %v7737_v1  ;;  %2923 = vmatpush.bf16.msrb.mxu3 %v8117_v11  ;;  %v10420_v1 = vld [vmem:[#allocation16 + $0x714] sm:$0xf]  ;;  %v10353_v30 = vld [vmem:[#allocation16 + $0x4f4] sm:$0xf0] }
 0x29d   :  { %2912 = vmatmul.bf16.vlgmr.msrb.gmra.mxu2 %v11602_v9  ;;  %v8217_v5 = vor.u32 %v10420_v1, %v8214_v21  ;;  %v10388_v53 = vld [vmem:[#allocation16 + $0x614] sm:$0xf]  ;;  %v8316_v21 = vld [vmem:[#allocation16 + $0x7d8] sm:$0xf] }
 0x29e   :  { %2934 = vmatpush.bf16.msra.mxu0 %v7417_v2  ;;  %2956 = vmatpush.bf16.msra.mxu2 %v8057_v50  ;;  %v10321_v2 = vld [vmem:[#allocation16 + $0x3f4] sm:$0xf0]  ;;  %v10340_v50 = vld [vmem:[#allocation16 + $0x494] sm:$0xf] }
 0x29f   :  { %v7805_v6 = vor.u32 %v10321_v2, %v7804_v34  ;;  %v7897_v11 = vor.u32 %v10340_v50, %v7894_v3  ;;  %v10449_v34 = vld [vmem:[#allocation16 + $0x7f4] sm:$0xf0] }
 0x2a0   :  { %2946 = vmatpush.bf16.msra.mxu1 %v7705_v13  ;;  %2924 = vmatpush.bf16.msrb.mxu3 %v8085_v20  ;;  %v8182_v13 = vld [vmem:[#allocation16 + $0x6f0] sm:$0xf0]  ;;  %v10209_v2 = vld [vmem:[#allocation16 + $0x74] sm:$0xf0] }
 0x2a1   :  { %v8185_v17 = vor.u32 %v10412_v12, %v8182_v13  ;;  %v8150_v20 = vld [vmem:[#allocation16 + $0x6b0] sm:$0xf0]  ;;  %v7996_v50 = vld [vmem:[#allocation16 + $0x558] sm:$0xf] }
 0x2a2   :  { %2935 = vmatpush.bf16.msra.mxu0 %v7385_v18  ;;  %2957 = vmatpush.bf16.msra.mxu2 %v8025_v19  ;;  %v10332_v18 = vld [vmem:[#allocation16 + $0x454] sm:$0xf]  ;;  %v8153_v8 = vor.u32 %v10404_v15, %v8150_v20  ;;  %v10369_v3 = vld [vmem:[#allocation16 + $0x574] sm:$0xf0] }
 0x2a3   :  { %2925 = vmatmul.bf16.vlgmr.msrb.gmra.mxu3 %v11606_v31  ;;  %v7862_v19 = vld [vmem:[#allocation16 + $0x470] sm:$0xf0]  ;;  %v7997_v12 = vor.u32 %v10369_v3, %v7996_v50  ;;  %v8284_v13 = vld [vmem:[#allocation16 + $0x798] sm:$0xf]  ;;  %v7774_v50 = vld [vmem:[#allocation16 + $0x3b8] sm:$0xf0] }
 0x2a4   :  { %2947 = vmatpush.bf16.msra.mxu1 %v7673_v23  ;;  %2969 = vmatpush.bf16.msra.mxu3 %v8313_v58  ;;  %v7865_v57 = vor.u32 %v10332_v18, %v7862_v19  ;;  %v7740_v23 = vld [vmem:[#allocation16 + $0x358] sm:$0xf] }
 0x2a5   :  { %v10305_v58 = vld [vmem:[#allocation16 + $0x374] sm:$0xf0] }
 0x2a6   :  { %2936 = vmatpush.bf16.msra.mxu0 %v7353_v26  ;;  %2958 = vmatpush.bf16.msra.mxu2 %v7993_v27  ;;  %v10324_v26 = vld [vmem:[#allocation16 + $0x414] sm:$0xf]  ;;  %v7741_v33 = vor.u32 %v10305_v58, %v7740_v23  ;;  %v7964_v18 = vld [vmem:[#allocation16 + $0x518] sm:$0xf] }
 0x2a7   :  { %v7830_v27 = vld [vmem:[#allocation16 + $0x430] sm:$0xf0]  ;;  %v10361_v19 = vld [vmem:[#allocation16 + $0x534] sm:$0xf0] }
 0x2a8   :  { %2948 = vmatpush.bf16.msra.mxu1 %v7641_v37  ;;  %2970 = vmatpush.bf16.msra.mxu3 %v8281_v39  ;;  %v7833_v35 = vor.u32 %v10324_v26, %v7830_v27  ;;  %v8118_v37 = vld [vmem:[#allocation16 + $0x670] sm:$0xf0]  ;;  %v7421_v39 = vor.u32 %v10225_v29, %v7420_v28  ;;  %v7965_v58 = vor.u32 %v10361_v19, %v7964_v18  ;;  %v8252_v26 = vld [vmem:[#allocation16 + $0x758] sm:$0xf]  ;;  %v7742_v18 = vld [vmem:[#allocation16 + $0x378] sm:$0xf0] }
 0x2a9   :  { %v8121_v52 = vor.u32 %v10396_v36, %v8118_v37  ;;  %v10433_v27 = vld [vmem:[#allocation16 + $0x774] sm:$0xf0] }
 0x2aa   :  { %2937 = vmatpush.bf16.msra.mxu0 %v7321_v41  ;;  %2959 = vmatpush.bf16.msra.mxu2 %v7961_v42  ;;  %v11625_v24 = vpop.f32.mrf.mxu0  ;;  %v7708_v41 = vld [vmem:[#allocation16 + $0x318] sm:$0xf] }
 0x2ab   :  { %v10297_v42 = vld [vmem:[#allocation16 + $0x334] sm:$0xf0] }
 0x2ac   :  { %2949 = vmatpush.bf16.msra.mxu1 %v7609_v59  ;;  %2971 = vmatpush.bf16.msra.mxu3 %v8249_v61  ;;  %v7709_v54 = vor.u32 %v10297_v42, %v7708_v41  ;;  %v8086_v59 = vld [vmem:[#allocation16 + $0x630] sm:$0xf0]  ;;  %v7676_v61 = vld [vmem:[#allocation16 + $0x2d8] sm:$0xf]  ;;  %v10317_v42 = vld [vmem:[#allocation16 + $0x3dc] sm:$0xf] }
 0x2ad   :  { %2938 = vmatmul.bf16.vlgmr.msra.gmra.mxu0 %v11587_v22  ;;  %v8089_v51 = vor.u32 %v10388_v53, %v8086_v59  ;;  %v7677_v60 = vor.u32 %v10289_v63, %v7676_v61  ;;  %v7932_v29 = vld [vmem:[#allocation16 + $0x4d8] sm:$0xf]  ;;  %v7486_v59 = vld [vmem:[#allocation16 + $0x178] sm:$0xf0] }
 0x2ae   :  { %2982 = vmatpush.bf16.msrb.mxu0 %v7549_v47  ;;  %2960 = vmatpush.bf16.msra.mxu2 %v7929_v0  ;;  %v10377_v47 = vld [vmem:[#allocation16 + $0x5b4] sm:$0xf0]  ;;  %v7389_v0 = vor.u32 %v10217_v45, %v7388_v44  ;;  %v7806_v45 = vld [vmem:[#allocation16 + $0x3f8] sm:$0xf0] }
 0x2af   :  { %v8029_v1 = vor.u32 %v10377_v47, %v8028_v14  ;;  %v7580_v36 = vld [vmem:[#allocation16 + $0x218] sm:$0xf] }
 0x2b0   :  { %2950 = vmatpush.bf16.msra.mxu1 %v7577_v4  ;;  %2972 = vmatpush.bf16.msra.mxu3 %v8217_v5  ;;  %v11628_v48 = vpop.f32.mrf.mxu1  ;;  %v8317_v4 = vor.u32 %v10449_v34, %v8316_v21  ;;  %v7644_v5 = vld [vmem:[#allocation16 + $0x298] sm:$0xf] }
 0x2b1   :  { %v10265_v37 = vld [vmem:[#allocation16 + $0x234] sm:$0xf0] }
 0x2b2   :  { %2983 = vmatpush.bf16.msrb.mxu0 %v7517_v46  ;;  %2961 = vmatpush.bf16.msra.mxu2 %v7897_v11  ;;  %v2681_v62 = vpop.f32.mrf.mxu0  ;;  %v7356_v46 = vld [vmem:[#allocation16 + $0x58] sm:$0xf]  ;;  %v7581_v61 = vor.u32 %v10265_v37, %v7580_v36  ;;  %v7710_v36 = vld [vmem:[#allocation16 + $0x338] sm:$0xf0] }
 0x2b3   :  { %2951 = vmatmul.bf16.vlgmr.msra.gmra.mxu1 %v11592_v38  ;;  %v7357_v11 = vor.u32 %v10209_v2, %v7356_v46  ;;  %v10425_v41 = vld [vmem:[#allocation16 + $0x734] sm:$0xf0]  ;;  %v10309_v46 = vld [vmem:[#allocation16 + $0x39c] sm:$0xf] }
 0x2b4   :  { %2995 = vmatpush.bf16.msrb.mxu1 %v7805_v6  ;;  %2973 = vmatpush.bf16.msra.mxu3 %v8185_v17  ;;  %v10281_v6 = vld [vmem:[#allocation16 + $0x2b4] sm:$0xf0]  ;;  %v7550_v17 = vld [vmem:[#allocation16 + $0x1f8] sm:$0xf0] }
 0x2b5   :  { %v7645_v15 = vor.u32 %v10281_v6, %v7644_v5  ;;  %v7553_v28 = vor.u32 %v10253_v55, %v7550_v17  ;;  %v7900_v14 = vld [vmem:[#allocation16 + $0x498] sm:$0xf]  ;;  %v7454_v5 = vld [vmem:[#allocation16 + $0x138] sm:$0xf0] }
 0x2b6   :  { %2984 = vmatpush.bf16.msrb.mxu0 %v7485_v7  ;;  %2962 = vmatpush.bf16.msra.mxu2 %v7865_v57  ;;  %v7324_v7 = vld [vmem:[#allocation16 + $0x18] sm:$0xf]  ;;  %v10213_v37 = vld [vmem:[#allocation16 + $0x9c] sm:$0xf] }
 0x2b7   :  { %v7612_v57 = vld [vmem:[#allocation16 + $0x258] sm:$0xf]  ;;  %v7325_v23 = vor.u32 %v10201_v16, %v7324_v7  ;;  %v10301_v16 = vld [vmem:[#allocation16 + $0x35c] sm:$0xf] }
 0x2b8   :  { %2996 = vmatpush.bf16.msrb.mxu1 %v7773_v10  ;;  %2974 = vmatpush.bf16.msra.mxu3 %v8153_v8  ;;  %v2694_v43 = vpop.f32.mrf.mxu1  ;;  %v8285_v10 = vor.u32 %v10441_v56, %v8284_v13  ;;  %v7518_v8 = vld [vmem:[#allocation16 + $0x1b8] sm:$0xf0]  ;;  %v10345_v47 = vld [vmem:[#allocation16 + $0x4b4] sm:$0xf0]  ;;  %v7777_v13 = vor.u32 %v10309_v46, %v7774_v50 }
 0x2b9   :  { %v7521_v44 = vor.u32 %v10245_v49, %v7518_v8  ;;  %v8188_v21 = vld [vmem:[#allocation16 + $0x6d8] sm:$0xf]  ;;  %v7358_v50 = vld [vmem:[#allocation16 + $0x78] sm:$0xf0] }
 0x2ba   :  { %2985 = vmatpush.bf16.msrb.mxu0 %v7453_v25  ;;  %2963 = vmatpush.bf16.msra.mxu2 %v7833_v35  ;;  %v11631_v20 = vpop.f32.mrf.mxu0  ;;  %v10273_v25 = vld [vmem:[#allocation16 + $0x274] sm:$0xf0]  ;;  %v8253_v35 = vor.u32 %v10433_v27, %v8252_v26  ;;  %v7745_v27 = vor.u32 %v10301_v16, %v7742_v18  ;;  %v10437_v16 = vld [vmem:[#allocation16 + $0x79c] sm:$0xf] }
 0x2bb   :  { %v10417_v34 = vld [vmem:[#allocation16 + $0x6f4] sm:$0xf0]  ;;  %v8286_v18 = vld [vmem:[#allocation16 + $0x7b8] sm:$0xf0] }
 0x2bc   :  { %2997 = vmatpush.bf16.msrb.mxu1 %v7741_v33  ;;  %2975 = vmatpush.bf16.msra.mxu3 %v8121_v52  ;;  %v7613_v33 = vor.u32 %v10273_v25, %v7612_v57  ;;  %v7868_v3 = vld [vmem:[#allocation16 + $0x458] sm:$0xf]  ;;  %v8189_v6 = vor.u32 %v10417_v34, %v8188_v21  ;;  %v7422_v57 = vld [vmem:[#allocation16 + $0xf8] sm:$0xf0] }
 0x2bd   :  { %2964 = vmatmul.bf16.vlgmr.msra.gmra.mxu2 %v11602_v9  ;;  %v10409_v7 = vld [vmem:[#allocation16 + $0x6b4] sm:$0xf0]  ;;  %v10205_v21 = vld [vmem:[#allocation16 + $0x5c] sm:$0xf] }
 0x2be   :  { %2986 = vmatpush.bf16.msrb.mxu0 %v7421_v39  ;;  %3008 = vmatpush.bf16.msrb.mxu2 %v8061_v40  ;;  %v7933_v39 = vor.u32 %v10353_v30, %v7932_v29  ;;  %v8220_v40 = vld [vmem:[#allocation16 + $0x718] sm:$0xf] }
 0x2bf   :  { %v8221_v63 = vor.u32 %v10425_v41, %v8220_v40  ;;  %v7836_v55 = vld [vmem:[#allocation16 + $0x418] sm:$0xf]  ;;  %v7390_v40 = vld [vmem:[#allocation16 + $0xb8] sm:$0xf0] }
 0x2c0   :  { %2998 = vmatpush.bf16.msrb.mxu1 %v7709_v54  ;;  %2976 = vmatpush.bf16.msra.mxu3 %v8089_v51  ;;  %v2705_v52 = vpop.f32.mrf.mxu2  ;;  %v11634_v53 = vpop.f32.mrf.mxu1  ;;  %v10237_v54 = vld [vmem:[#allocation16 + $0x15c] sm:$0xf]  ;;  %v10337_v51 = vld [vmem:[#allocation16 + $0x474] sm:$0xf0] }
 0x2c1   :  { %v7489_v2 = vor.u32 %v10237_v54, %v7486_v59  ;;  %v7869_v56 = vor.u32 %v10337_v51, %v7868_v3  ;;  %v10329_v17 = vld [vmem:[#allocation16 + $0x434] sm:$0xf0]  ;;  %v10373_v41 = vld [vmem:[#allocation16 + $0x59c] sm:$0xf] }
 0x2c2   :  { %2987 = vmatpush.bf16.msrb.mxu0 %v7389_v0  ;;  %3009 = vmatpush.bf16.msrb.mxu2 %v8029_v1  ;;  %v2733_v62 = vpop.f32.mrf.mxu0  ;;  %v7809_v0 = vor.u32 %v10317_v42, %v7806_v45  ;;  %v7901_v1 = vor.u32 %v10345_v47, %v7900_v14  ;;  %v8124_v29 = vld [vmem:[#allocation16 + $0x658] sm:$0xf]  ;;  %v8030_v42 = vld [vmem:[#allocation16 + $0x5b8] sm:$0xf0] }
 0x2c3   :  { %2977 = vmatmul.bf16.vlgmr.msra.gmra.mxu3 %v11606_v31  ;;  %v10401_v30 = vld [vmem:[#allocation16 + $0x674] sm:$0xf0]  ;;  %v10285_v54 = vld [vmem:[#allocation16 + $0x2dc] sm:$0xf]  ;;  %v8033_v62 = vor.u32 %v10373_v41, %v8030_v42 }
 0x2c4   :  { %2999 = vmatpush.bf16.msrb.mxu1 %v7677_v60  ;;  %3021 = vmatpush.bf16.msrb.mxu3 %v8317_v4  ;;  %v2693_v60 = vadd.f32 %v11628_v48, %v11625_v24  ;;  %v10229_v4 = vld [vmem:[#allocation16 + $0x11c] sm:$0xf]  ;;  %v8092_v45 = vld [vmem:[#allocation16 + $0x618] sm:$0xf] }
 0x2c5   :  { %v7457_v43 = vor.u32 %v10229_v4, %v7454_v5  ;;  %v10221_v24 = vld [vmem:[#allocation16 + $0xdc] sm:$0xf]  ;;  %v10393_v14 = vld [vmem:[#allocation16 + $0x634] sm:$0xf0] }
 0x2c6   :  { %2988 = vmatpush.bf16.msrb.mxu0 %v7357_v11  ;;  %3010 = vmatpush.bf16.msrb.mxu2 %v7997_v12  ;;  %v8156_v11 = vld [vmem:[#allocation16 + $0x698] sm:$0xf]  ;;  %v2706_v12 = vadd.f32 %v2705_v52, %v2693_v60  ;;  %v2718_v19 = vpop.f32.mrf.mxu3  ;;  %v7425_v8 = vor.u32 %v10221_v24, %v7422_v57  ;;  %v7678_v59 = vld [vmem:[#allocation16 + $0x2f8] sm:$0xf0]  ;;  %v8093_v60 = vor.u32 %v10393_v14, %v8092_v45 }
 0x2c7   :  { %v8157_v25 = vor.u32 %v10409_v7, %v8156_v11  ;;  %v10365_v3 = vld [vmem:[#allocation16 + $0x55c] sm:$0xf]  ;;  %v7681_v5 = vor.u32 %v10285_v54, %v7678_v59  ;;  %v8520_v57 = vld [vmem:[#allocation20 + $0x188] sm:$0xf] }
 0x2c8   :  { %3000 = vmatpush.bf16.msrb.mxu1 %v7645_v15  ;;  %3022 = vmatpush.bf16.msrb.mxu3 %v8285_v10  ;;  %v11639_v48 = vadd.f32 %v2718_v19, %v2706_v12  ;;  %v2707_v15 = vpop.f32.mrf.mxu2  ;;  %v2746_v10 = vpop.f32.mrf.mxu1  ;;  %v7998_v51 = vld [vmem:[#allocation16 + $0x578] sm:$0xf0] }
 0x2c9   :  { %v10277_v11 = vld [vmem:[#allocation16 + $0x29c] sm:$0xf]  ;;  %v8001_v7 = vor.u32 %v10365_v3, %v7998_v51  ;;  %v8464_v3 = vld [vmem:[#allocation20 + $0x118] sm:$0xf]  ;;  %v10488_v51 = vld [vmem:[#allocation20 + $0x130] sm:$0xf0] }
 0x2ca   :  { %2989 = vmatpush.bf16.msrb.mxu0 %v7325_v23  ;;  %3011 = vmatpush.bf16.msrb.mxu2 %v7965_v58  ;;  %v10381_v23 = vld [vmem:[#allocation16 + $0x5dc] sm:$0xf]  ;;  %v3088_v26 = vrot.slane %v11639_v48, 4  ;;  %v11643_v49 = vpop.f32.mrf.mxu0 }
 0x2cb   :  { %v8062_v58 = vld [vmem:[#allocation16 + $0x5f8] sm:$0xf0] }
 0x2cc   :  { %3001 = vmatpush.bf16.msrb.mxu1 %v7613_v33  ;;  %3023 = vmatpush.bf16.msrb.mxu3 %v8253_v35  ;;  %v8065_v33 = vor.u32 %v10381_v23, %v8062_v58  ;;  %v10293_v35 = vld [vmem:[#allocation16 + $0x31c] sm:$0xf]  ;;  %v10502_v23 = vld [vmem:[#allocation20 + $0x1a0] sm:$0xf0] }
 0x2cd   :  { %2990 = vmatmul.bf16.vlgmr.msrb.gmra.mxu0 %v11587_v22  ;;  %v7713_v52 = vor.u32 %v10293_v35, %v7710_v36  ;;  %v7646_v12 = vld [vmem:[#allocation16 + $0x2b8] sm:$0xf0]  ;;  %v8521_v41 = vor.u32 %v10502_v23, %v8520_v57  ;;  %v10481_v57 = vld [vmem:[#allocation20 + $0xf8] sm:$0xf0] }
 0x2ce   :  { %3034 = vmatpush.bf16.msra.mxu0 %v7553_v28  ;;  %3012 = vmatpush.bf16.msrb.mxu2 %v7933_v39  ;;  %v7837_v28 = vor.u32 %v10329_v17, %v7836_v55  ;;  %v3089_v39 = vadd.f32 %v3088_v26, %v11639_v48  ;;  %v10197_v19 = vld [vmem:[#allocation16 + $0x1c] sm:$0xf]  ;;  %v7649_v10 = vor.u32 %v10277_v11, %v7646_v12 }
 0x2cf   :  { %v7326_v17 = vld [vmem:[#allocation16 + $0x38] sm:$0xf0]  ;;  %v8289_v26 = vor.u32 %v10437_v16, %v8286_v18 }
 0x2d0   :  { %3002 = vmatpush.bf16.msrb.mxu1 %v7581_v61  ;;  %3024 = vmatpush.bf16.msrb.mxu3 %v8221_v63  ;;  %v3090_v47 = vrot.slane %v3089_v39, 2  ;;  %v2720_v61 = vpop.f32.mrf.mxu3  ;;  %v7393_v63 = vor.u32 %v10213_v37, %v7390_v40  ;;  %v2757_v46 = vpop.f32.mrf.mxu2  ;;  %v10357_v24 = vld [vmem:[#allocation16 + $0x51c] sm:$0xf] }
 0x2d1   :  { %v7966_v15 = vld [vmem:[#allocation16 + $0x538] sm:$0xf0] }
 0x2d2   :  { %3035 = vmatpush.bf16.msra.mxu0 %v7521_v44  ;;  %3013 = vmatpush.bf16.msrb.mxu2 %v7901_v1  ;;  %v8125_v44 = vor.u32 %v10401_v30, %v8124_v29  ;;  %v8318_v1 = vld [vmem:[#allocation16 + $0x7f8] sm:$0xf0]  ;;  %v3091_v34 = vadd.f32 %v3090_v47, %v3089_v39  ;;  %v7329_v29 = vor.u32 %v10197_v19, %v7326_v17  ;;  %v8716_v17 = vld [vmem:[#allocation20 + $0x310] sm:$0xf] }
 0x2d3   :  { %3003 = vmatmul.bf16.vlgmr.msrb.gmra.mxu1 %v11592_v38  ;;  %v10429_v30 = vld [vmem:[#allocation16 + $0x75c] sm:$0xf] }
 0x2d4   :  { %3047 = vmatpush.bf16.msra.mxu1 %v7809_v0  ;;  %3025 = vmatpush.bf16.msrb.mxu3 %v8189_v6  ;;  %v10445_v0 = vld [vmem:[#allocation16 + $0x7dc] sm:$0xf]  ;;  %v3092_v4 = vrot.slane %v3091_v34, 1 }
 0x2d5   :  { %v8321_v6 = vor.u32 %v10445_v0, %v8318_v1  ;;  %v10349_v39 = vld [vmem:[#allocation16 + $0x4dc] sm:$0xf] }
 0x2d6   :  { %3036 = vmatpush.bf16.msra.mxu0 %v7489_v2  ;;  %3014 = vmatpush.bf16.msrb.mxu2 %v7869_v56  ;;  %v11646_v2 = vpop.f32.mrf.mxu1  ;;  %v7361_v56 = vor.u32 %v10205_v21, %v7358_v50  ;;  %v3093_v55 = vadd.f32 %v3092_v4, %v3091_v34  ;;  %v7934_v40 = vld [vmem:[#allocation16 + $0x4f8] sm:$0xf0]  ;;  %v10558_v50 = vld [vmem:[#allocation20 + $0x360] sm:$0xf0] }
 0x2d7   :  { %v10261_v42 = vld [vmem:[#allocation16 + $0x21c] sm:$0xf]  ;;  %v7937_v61 = vor.u32 %v10349_v39, %v7934_v40  ;;  %v10544_v39 = vld [vmem:[#allocation20 + $0x2f0] sm:$0xf0]  ;;  %v8408_v40 = vld [vmem:[#allocation20 + $0xa8] sm:$0xf] }
 0x2d8   :  { %3048 = vmatpush.bf16.msra.mxu1 %v7777_v13  ;;  %3026 = vmatpush.bf16.msrb.mxu3 %v8157_v25  ;;  %v2785_v13 = vpop.f32.mrf.mxu0  ;;  %v3136_v58 = vmul.f32 %v3093_v55, %v11488_v32  ;;  %v2759_v36 = vpop.f32.mrf.mxu2  ;;  %v10495_v45 = vld [vmem:[#allocation20 + $0x168] sm:$0xf0]  ;;  %v8465_v55 = vor.u32 %v10488_v51, %v8464_v3 }
 0x2d9   :  { %v7582_v54 = vld [vmem:[#allocation16 + $0x238] sm:$0xf0] }
 0x2da   :  { %3037 = vmatpush.bf16.msra.mxu0 %v7457_v43  ;;  %3015 = vmatpush.bf16.msrb.mxu2 %v7837_v28  ;;  %v2745_v43 = vadd.f32 %v11634_v53, %v11631_v20  ;;  %v2770_v28 = vpop.f32.mrf.mxu3  ;;  %v7969_v20 = vor.u32 %v10357_v24, %v7966_v15  ;;  %v7614_v53 = vld [vmem:[#allocation16 + $0x278] sm:$0xf0] }
 0x2db   :  { %v10421_v59 = vld [vmem:[#allocation16 + $0x71c] sm:$0xf] }
 0x2dc   :  { %3049 = vmatpush.bf16.msra.mxu1 %v7745_v27  ;;  %3027 = vmatpush.bf16.msrb.mxu3 %v8125_v44  ;;  %v2758_v25 = vadd.f32 %v2757_v46, %v2745_v43  ;;  %v10269_v27 = vld [vmem:[#allocation16 + $0x25c] sm:$0xf]  ;;  %v8492_v44 = vld [vmem:[#allocation20 + $0x150] sm:$0xf]  ;;  %v8744_v46 = vld [vmem:[#allocation20 + $0x348] sm:$0xf] }
 0x2dd   :  { %3016 = vmatmul.bf16.vlgmr.msrb.gmra.mxu2 %v11602_v9  ;;  %v7902_v0 = vld [vmem:[#allocation16 + $0x4b8] sm:$0xf0]  ;;  %v8493_v34 = vor.u32 %v10495_v45, %v8492_v44  ;;  %v8745_v18 = vor.u32 %v10558_v50, %v8744_v46  ;;  %v8380_v46 = vld [vmem:[#allocation20 + $0x70] sm:$0xf] }
 0x2de   :  { %3038 = vmatpush.bf16.msra.mxu0 %v7425_v8  ;;  %3060 = vmatpush.bf16.msra.mxu2 %v8065_v33  ;;  %v8254_v8 = vld [vmem:[#allocation16 + $0x778] sm:$0xf0]  ;;  %v11653_v33 = vsub.f32 %v11639_v48, %v3136_v58  ;;  %v11655_v35 = vadd.f32 %v2770_v28, %v2758_v25  ;;  %v2798_v37 = vpop.f32.mrf.mxu1  ;;  %v7617_v48 = vor.u32 %v10269_v27, %v7614_v53 }
 0x2df   :  { %v10413_v11 = vld [vmem:[#allocation16 + $0x6dc] sm:$0xf]  ;;  %v8688_v37 = vld [vmem:[#allocation20 + $0x2d8] sm:$0xf] }
 0x2e0   :  { %3050 = vmatpush.bf16.msra.mxu1 %v7713_v52  ;;  %3028 = vmatpush.bf16.msrb.mxu3 %v8093_v60  ;;  %v3152_v14 = vmul.f32 %v11653_v33, %v11653_v33  ;;  %v3094_v47 = vrot.slane %v11655_v35, 4  ;;  %v8257_v52 = vor.u32 %v10429_v30, %v8254_v8  ;;  %v7870_v16 = vld [vmem:[#allocation16 + $0x478] sm:$0xf0]  ;;  %v2809_v15 = vpop.f32.mrf.mxu2  ;;  %v2797_v30 = vadd.f32 %v11646_v2, %v11643_v49 }
 0x2e1   :  { %v10551_v24 = vld [vmem:[#allocation20 + $0x328] sm:$0xf0] }
 0x2e2   :  { %3039 = vmatpush.bf16.msra.mxu0 %v7393_v63  ;;  %3061 = vmatpush.bf16.msra.mxu2 %v8033_v62  ;;  %v8222_v63 = vld [vmem:[#allocation16 + $0x738] sm:$0xf0]  ;;  %v3160_v1 = vrot.slane %v3152_v14, 4  ;;  %v3095_v21 = vadd.f32 %v3094_v47, %v11655_v35  ;;  %v2772_v12 = vpop.f32.mrf.mxu3  ;;  %v2810_v45 = vadd.f32 %v2809_v15, %v2797_v30  ;;  %v8324_v30 = vld [vmem:[#allocation20] sm:$0xf] }
 0x2e3   :  { %3029 = vmatmul.bf16.vlgmr.msrb.gmra.mxu3 %v11606_v31  ;;  %v10341_v62 = vld [vmem:[#allocation16 + $0x49c] sm:$0xf]  ;;  %v8632_v12 = vld [vmem:[#allocation20 + $0x268] sm:$0xf] }
 0x2e4   :  { %3051 = vmatpush.bf16.msra.mxu1 %v7681_v5  ;;  %3073 = vmatpush.bf16.msra.mxu3 %v8321_v6  ;;  %v3161_v60 = vadd.f32 %v3160_v1, %v3152_v14  ;;  %v3096_v4 = vrot.slane %v3095_v21, 2  ;;  %v7585_v5 = vor.u32 %v10261_v42, %v7582_v54  ;;  %v8225_v6 = vor.u32 %v10421_v59, %v8222_v63  ;;  %v10405_v25 = vld [vmem:[#allocation16 + $0x69c] sm:$0xf]  ;;  %v8968_v59 = vld [vmem:[#allocation20 + $0x508] sm:$0xf] }
 0x2e5   :  { %v7905_v13 = vor.u32 %v10341_v62, %v7902_v0  ;;  %v8158_v27 = vld [vmem:[#allocation16 + $0x6b8] sm:$0xf0]  ;;  %v8689_v54 = vor.u32 %v10544_v39, %v8688_v37  ;;  %v8660_v0 = vld [vmem:[#allocation20 + $0x2a0] sm:$0xf]  ;;  %v10537_v1 = vld [vmem:[#allocation20 + $0x2b8] sm:$0xf0] }
 0x2e6   :  { %3040 = vmatpush.bf16.msra.mxu0 %v7361_v56  ;;  %3062 = vmatpush.bf16.msra.mxu2 %v8001_v7  ;;  %v8190_v56 = vld [vmem:[#allocation16 + $0x6f8] sm:$0xf0]  ;;  %v3162_v19 = vrot.slane %v3161_v60, 2  ;;  %v3097_v43 = vadd.f32 %v3096_v4, %v3095_v21  ;;  %v8161_v14 = vor.u32 %v10405_v25, %v8158_v27  ;;  %v10614_v21 = vld [vmem:[#allocation20 + $0x520] sm:$0xf0] }
 0x2e7   :  { %v10333_v7 = vld [vmem:[#allocation16 + $0x45c] sm:$0xf]  ;;  %v8969_v3 = vor.u32 %v10614_v21, %v8968_v59  ;;  %v8604_v25 = vld [vmem:[#allocation20 + $0x230] sm:$0xf]  ;;  %v8856_v21 = vld [vmem:[#allocation20 + $0x428] sm:$0xf] }
 0x2e8   :  { %3052 = vmatpush.bf16.msra.mxu1 %v7649_v10  ;;  %3074 = vmatpush.bf16.msra.mxu3 %v8289_v26  ;;  %v8436_v10 = vld [vmem:[#allocation20 + $0xe0] sm:$0xf]  ;;  %v3163_v23 = vadd.f32 %v3162_v19, %v3161_v60  ;;  %v3098_v58 = vrot.slane %v3097_v43, 1  ;;  %v7873_v26 = vor.u32 %v10333_v7, %v7870_v16  ;;  %v10325_v28 = vld [vmem:[#allocation16 + $0x41c] sm:$0xf] }
 0x2e9   :  { %v8437_v36 = vor.u32 %v10481_v57, %v8436_v10  ;;  %v10397_v2 = vld [vmem:[#allocation16 + $0x65c] sm:$0xf] }
 0x2ea   :  { %3041 = vmatpush.bf16.msra.mxu0 %v7329_v29  ;;  %3063 = vmatpush.bf16.msra.mxu2 %v7969_v20  ;;  %v7838_v29 = vld [vmem:[#allocation16 + $0x438] sm:$0xf0]  ;;  %v8717_v20 = vor.u32 %v10551_v24, %v8716_v17  ;;  %v3164_v53 = vrot.slane %v3163_v23, 1  ;;  %v3099_v8 = vadd.f32 %v3098_v58, %v3097_v43  ;;  %v2822_v47 = vpop.f32.mrf.mxu3  ;;  %v10460_v17 = vld [vmem:[#allocation20 + $0x50] sm:$0xf0] }
 0x2eb   :  { %v7841_v49 = vor.u32 %v10325_v28, %v7838_v29  ;;  %v11673_v63 = vadd.f32 %v2822_v47, %v2810_v45  ;;  %v10467_v50 = vld [vmem:[#allocation20 + $0x88] sm:$0xf0] }
 0x2ec   :  { %3053 = vmatpush.bf16.msra.mxu1 %v7617_v48  ;;  %3075 = vmatpush.bf16.msra.mxu3 %v8257_v52  ;;  %v3165_v42 = vadd.f32 %v3164_v53, %v3163_v23  ;;  %v3137_v44 = vmul.f32 %v3099_v8, %v11488_v32  ;;  %v11667_v48 = vpop.f32.mrf.mxu0  ;;  %v8126_v52 = vld [vmem:[#allocation16 + $0x678] sm:$0xf0]  ;;  %v8381_v16 = vor.u32 %v10467_v50, %v8380_v46  ;;  %v10600_v53 = vld [vmem:[#allocation20 + $0x4b0] sm:$0xf0]  ;;  %v10453_v8 = vld [vmem:[#allocation20 + $0x18] sm:$0xf0] }
 0x2ed   :  { %3042 = vmatmul.bf16.vlgmr.msra.gmra.mxu0 %v11587_v22  ;;  %v8193_v22 = vor.u32 %v10413_v11, %v8190_v56  ;;  %v3100_v4 = vrot.slane %v11673_v63, 4  ;;  %v8661_v11 = vor.u32 %v10537_v1, %v8660_v0  ;;  %v10607_v19 = vld [vmem:[#allocation20 + $0x4e8] sm:$0xf0]  ;;  %v8325_v47 = vor.u32 %v10453_v8, %v8324_v30 }
 0x2ee   :  { %6210 = vmatpush.bf16.msrb.mxu0 %v8521_v41  ;;  %3064 = vmatpush.bf16.msra.mxu2 %v7937_v61  ;;  %v10474_v41 = vld [vmem:[#allocation20 + $0xc0] sm:$0xf0]  ;;  %v11671_v61 = vsub.f32 %v11655_v35, %v3137_v44  ;;  %v8129_v35 = vor.u32 %v10397_v2, %v8126_v52  ;;  %v8884_v44 = vld [vmem:[#allocation20 + $0x460] sm:$0xf]  ;;  %v10593_v2 = vld [vmem:[#allocation20 + $0x478] sm:$0xf0] }
 0x2ef   :  { %v8409_v62 = vor.u32 %v10474_v41, %v8408_v40  ;;  %v3101_v7 = vadd.f32 %v3100_v4, %v11673_v63  ;;  %v8885_v59 = vor.u32 %v10593_v2, %v8884_v44  ;;  %v11692_v4 = vld [vmem:[#allocation17] sm:$0xff]  ;;  %v10726_v44 = vld [vmem:[#allocation20 + $0x8a0] sm:$0xf0] }
 0x2f0   :  { %3054 = vmatpush.bf16.msra.mxu1 %v7585_v5  ;;  %3076 = vmatpush.bf16.msra.mxu3 %v8225_v6  ;;  %v3153_v60 = vmul.f32 %v11671_v61, %v11671_v61  ;;  %v10389_v5 = vld [vmem:[#allocation16 + $0x61c] sm:$0xf]  ;;  %v11682_v43 = vpop.f32.mrf.mxu1 }
 0x2f1   :  { %v8094_v6 = vld [vmem:[#allocation16 + $0x638] sm:$0xf0]  ;;  %v3102_v10 = vrot.slane %v3101_v7, 2 }
 0x2f2   :  { %6211 = vmatpush.bf16.msrb.mxu0 %v8493_v34  ;;  %3065 = vmatpush.bf16.msra.mxu2 %v7905_v13  ;;  %v2811_v34 = vpop.f32.mrf.mxu2  ;;  %v8940_v13 = vld [vmem:[#allocation20 + $0x4d0] sm:$0xf]  ;;  %v3166_v56 = vrot.slane %v3153_v60, 4  ;;  %v8097_v57 = vor.u32 %v10389_v5, %v8094_v6  ;;  %v2824_v23 = vpop.f32.mrf.mxu3 }
 0x2f3   :  { %3055 = vmatmul.bf16.vlgmr.msra.gmra.mxu1 %v11592_v38  ;;  %v3208_v38 = vmul.f32 %v3165_v42, %v11488_v32  ;;  %v8941_v24 = vor.u32 %v10607_v19, %v8940_v13  ;;  %v3103_v28 = vadd.f32 %v3102_v10, %v3101_v7  ;;  %v8576_v42 = vld [vmem:[#allocation20 + $0x1f8] sm:$0xf]  ;;  %v10586_v34 = vld [vmem:[#allocation20 + $0x440] sm:$0xf0]  ;;  %v8828_v13 = vld [vmem:[#allocation20 + $0x3f0] sm:$0xf] }
 0x2f4   :  { %6223 = vmatpush.bf16.msrb.mxu1 %v8745_v18  ;;  %3077 = vmatpush.bf16.msra.mxu3 %v8193_v22  ;;  %v10530_v18 = vld [vmem:[#allocation20 + $0x280] sm:$0xf0]  ;;  %v3167_v15 = vadd.f32 %v3166_v56, %v3153_v60  ;;  %v2837_v58 = vpop.f32.mrf.mxu0  ;;  %v10509_v60 = vld [vmem:[#allocation20 + $0x1d8] sm:$0xf0]  ;;  %v10579_v56 = vld [vmem:[#allocation20 + $0x408] sm:$0xf0] }
 0x2f5   :  { %v11675_v51 = vadd.f32 1e-05, %v3208_v38  ;;  %v8633_v22 = vor.u32 %v10530_v18, %v8632_v12  ;;  %v3313_v7 = vperm.slane %v11692_v4, 0  ;;  %v8829_v18 = vor.u32 %v10579_v56, %v8828_v13  ;;  %v10572_v10 = vld [vmem:[#allocation20 + $0x3d0] sm:$0xf0] }
 0x2f6   :  { %6212 = vmatpush.bf16.msrb.mxu0 %v8465_v55  ;;  %3066 = vmatpush.bf16.msra.mxu2 %v7873_v26  ;;  %v8352_v55 = vld [vmem:[#allocation20 + $0x38] sm:$0xf]  ;;  %v3168_v27 = vrot.slane %v3167_v15, 2 }
 0x2f7   :  { %10938 = vrsqrt.f32 %v11675_v51  ;;  %v8912_v26 = vld [vmem:[#allocation20 + $0x498] sm:$0xf]  ;;  %v8353_v29 = vor.u32 %v10460_v17, %v8352_v55  ;;  %vm3230_vm6 = vweird.f32 %v11675_v51 }
 0x2f8   :  { %6224 = vmatpush.bf16.msrb.mxu1 %v8717_v20  ;;  %3078 = vmatpush.bf16.msra.mxu3 %v8161_v14  ;;  %v10523_v20 = vld [vmem:[#allocation20 + $0x248] sm:$0xf0]  ;;  %v3169_v39 = vadd.f32 %v3168_v27, %v3167_v15 }
 0x2f9   :  { %v8605_v41 = vor.u32 %v10523_v20, %v8604_v25  ;;  %v10565_v20 = vld [vmem:[#allocation20 + $0x398] sm:$0xf0] }
 0x2fa   :  { %6213 = vmatpush.bf16.msrb.mxu0 %v8437_v36  ;;  %3067 = vmatpush.bf16.msra.mxu2 %v7841_v49  ;;  %v8913_v36 = vor.u32 %v10600_v53, %v8912_v26  ;;  %v3170_v45 = vrot.slane %v3169_v39, 1  ;;  %v10516_v49 = vld [vmem:[#allocation20 + $0x210] sm:$0xf0]  ;;  %v9192_v53 = vld [vmem:[#allocation20 + $0x6c8] sm:$0xf] }
 0x2fb   :  { %v8577_v1 = vor.u32 %v10516_v49, %v8576_v42  ;;  %v9416_v42 = vld [vmem:[#allocation20 + $0x888] sm:$0xf] }
 0x2fc   :  { %6225 = vmatpush.bf16.msrb.mxu1 %v8689_v54  ;;  %3079 = vmatpush.bf16.msra.mxu3 %v8129_v35  ;;  %v2850_v54 = vpop.f32.mrf.mxu1  ;;  %v3171_v38 = vadd.f32 %v3170_v45, %v3169_v39  ;;  %v10670_v39 = vld [vmem:[#allocation20 + $0x6e0] sm:$0xf0] }
 0x2fd   :  { %3068 = vmatmul.bf16.vlgmr.msra.gmra.mxu2 %v11602_v9  ;;  %v10939_v37 = vpop.eup %10938  ;;  %v3104_v9 = vrot.slane %v3103_v28, 1  ;;  %v10663_v54 = vld [vmem:[#allocation20 + $0x6a8] sm:$0xf0] }
 0x2fe   :  { %6214 = vmatpush.bf16.msrb.mxu0 %v8409_v62  ;;  %6236 = vmatpush.bf16.msrb.mxu2 %v8969_v3  ;;  %v3225_v40 = vmul.f32 %v10939_v37, %v11675_v51  ;;  %v3209_v46 = vmul.f32 %v3171_v38, %v11488_v32  ;;  %v8548_v3 = vld [vmem:[#allocation20 + $0x1c0] sm:$0xf]  ;;  %vm3231_vm5 = vweird.f32 %v10939_v37  ;;  %v8800_v51 = vld [vmem:[#allocation20 + $0x3b8] sm:$0xf] }
 0x2ff   :  { %v3105_v14 = vadd.f32 %v3104_v9, %v3103_v28  ;;  %vm3232_vm7 = vmor %vm3230_vm6, %vm3231_vm5  ;;  %v8801_v58 = vor.u32 %v10572_v10, %v8800_v51  ;;  %v10649_v51 = vld [vmem:[#allocation20 + $0x638] sm:$0xf0] }
 0x300   :  { %6226 = vmatpush.bf16.msrb.mxu1 %v8661_v11  ;;  %3080 = vmatpush.bf16.msra.mxu3 %v8097_v57  ;;  %v3226_v52 = vmul.f32 %v10939_v37, %v3225_v40  ;;  %v11694_v5 = vadd.f32 1e-05, %v3209_v46  ;;  %v11698_v11 = vld [vmem:[#allocation19] sm:$0xff]  ;;  %v2861_v55 = vpop.f32.mrf.mxu2 }
 0x301   :  { %v3138_v62 = vmul.f32 %v3105_v14, %v11488_v32 }
 0x302   :  { %6215 = vmatpush.bf16.msrb.mxu0 %v8381_v16  ;;  %6237 = vmatpush.bf16.msrb.mxu2 %v8941_v24  ;;  %v3227_v0 = vmul.f32 0.5, %v3226_v52  ;;  %10940 = vrsqrt.f32 %v11694_v5  ;;  %v3338_v24 = vperm.slane %v11698_v11, 0  ;;  %v9164_v52 = vld [vmem:[#allocation20 + $0x690] sm:$0xf]  ;;  %vm3240_vm9 = vweird.f32 %v11694_v5 }
 0x303   :  { %3081 = vmatmul.bf16.vlgmr.msra.gmra.mxu3 %v11606_v31  ;;  %v11690_v50 = vsub.f32 %v11673_v63, %v3138_v62  ;;  %v8857_v31 = vor.u32 %v10586_v34, %v8856_v21  ;;  %v8549_v63 = vor.u32 %v10509_v60, %v8548_v3  ;;  %v9165_v38 = vor.u32 %v10663_v54, %v9164_v52  ;;  %v10719_v21 = vld [vmem:[#allocation20 + $0x868] sm:$0xf0] }
 0x304   :  { %6227 = vmatpush.bf16.msrb.mxu1 %v8633_v22  ;;  %v3228_v35 = vsub.f32 1.5, %v3227_v0  ;;  %v2849_v22 = vadd.f32 %v11682_v43, %v11667_v48  ;;  %v9193_v43 = vor.u32 %v10670_v39, %v9192_v53  ;;  %v10698_v39 = vld [vmem:[#allocation20 + $0x7c0] sm:$0xf0]  ;;  %v10691_v52 = vld [vmem:[#allocation20 + $0x788] sm:$0xf0] }
 0x305   :  { %v3154_v6 = vmul.f32 %v11690_v50, %v11690_v50 }
 0x306   :  { %6216 = vmatpush.bf16.msrb.mxu0 %v8353_v29  ;;  %6238 = vmatpush.bf16.msrb.mxu2 %v8913_v36  ;;  %v3229_v12 = vmul.f32 %v10939_v37, %v3228_v35  ;;  %v2862_v29 = vadd.f32 %v2861_v55, %v2849_v22  ;;  %v2874_v36 = vpop.f32.mrf.mxu3  ;;  %v9136_v35 = vld [vmem:[#allocation20 + $0x658] sm:$0xf]  ;;  %v3339_v55 = vperm.slane %v11698_v11, 1  ;;  %v10705_v22 = vld [vmem:[#allocation20 + $0x7f8] sm:$0xf0] }
 0x307   :  { %v3172_v16 = vrot.slane %v3154_v6, 4  ;;  %6249 = vmatpush.bf16.msrb.mxu3 %v9193_v43 }
 0x308   :  { %6228 = vmatpush.bf16.msrb.mxu1 %v8605_v41  ;;  %v3233_v19 = vsel %vm3232_vm7, %v10939_v37, %v3229_v12  ;;  %v10941_v25 = vpop.eup %10940  ;;  %v11708_v40 = vadd.f32 %v2874_v36, %v2862_v29  ;;  %v2863_v48 = vpop.f32.mrf.mxu2  ;;  %v3314_v12 = vperm.slane %v11692_v4, 1 }
 0x309   :  { %v3304_v17 = vmul.f32 %v3233_v19, %v11653_v33  ;;  %v3173_v15 = vadd.f32 %v3172_v16, %v3154_v6  ;;  %v3235_v28 = vmul.f32 %v10941_v25, %v11694_v5  ;;  %v8772_v33 = vld [vmem:[#allocation20 + $0x380] sm:$0xf]  ;;  %vm3241_vm8 = vweird.f32 %v10941_v25  ;;  %v10656_v6 = vld [vmem:[#allocation20 + $0x670] sm:$0xf0] }
 0x30a   :  { %6217 = vmatpush.bf16.msrb.mxu0 %v8325_v47  ;;  %6239 = vmatpush.bf16.msrb.mxu2 %v8885_v59  ;;  %v8773_v37 = vor.u32 %v10565_v20, %v8772_v33  ;;  %v11710_v41 = vpop.f32.mrf.mxu0  ;;  %v9417_v47 = vor.u32 %v10726_v44, %v9416_v42  ;;  %v3106_v2 = vrot.slane %v11708_v40, 4  ;;  %vm3242_vm10 = vmor %vm3240_vm9, %vm3241_vm8  ;;  %v9137_v13 = vor.u32 %v10656_v6, %v9136_v35  ;;  %v10712_v19 = vld [vmem:[#allocation20 + $0x830] sm:$0xf0]  ;;  %v9080_v33 = vld [vmem:[#allocation20 + $0x5e8] sm:$0xf] }
 0x30b   :  { %v3329_v57 = vmul.f32 %v3313_v7, %v3304_v17  ;;  %v3174_v23 = vrot.slane %v3173_v15, 2  ;;  %v3236_v9 = vmul.f32 %v10941_v25, %v3235_v28  ;;  %6250 = vmatpush.bf16.msrb.mxu3 %v9165_v38  ;;  %v10642_v20 = vld [vmem:[#allocation20 + $0x600] sm:$0xf0]  ;;  %v9052_v44 = vld [vmem:[#allocation20 + $0x5b0] sm:$0xf] }
 0x30c   :  { %6229 = vmatpush.bf16.msrb.mxu1 %v8577_v1  ;;  %v3107_v0 = vadd.f32 %v3106_v2, %v11708_v40  ;;  %v9388_v1 = vld [vmem:[#allocation20 + $0x850] sm:$0xf]  ;;  %v9248_v35 = vld [vmem:[#allocation20 + $0x738] sm:$0xf]  ;;  %v10684_v6 = vld [vmem:[#allocation20 + $0x750] sm:$0xf0] }
 0x30d   :  { %v3354_v26 = vadd.f32 %v3338_v24, %v3329_v57  ;;  %v3175_v27 = vadd.f32 %v3174_v23, %v3173_v15  ;;  %v3237_v49 = vmul.f32 0.5, %v3236_v9  ;;  %v9389_v46 = vor.u32 %v10719_v21, %v9388_v1  ;;  %v9108_v15 = vld [vmem:[#allocation20 + $0x620] sm:$0xf]  ;;  %v9276_v2 = vld [vmem:[#allocation20 + $0x770] sm:$0xf] }
 0x30e   :  { %6240 = vmatpush.bf16.msrb.mxu2 %v8857_v31  ;;  %6262 = vmatpush.bf16.msra.mxu0 %v9417_v47  ;;  %v3108_v60 = vrot.slane %v3107_v0, 2  ;;  %v9109_v57 = vor.u32 %v10649_v51, %v9108_v15  ;;  %v10628_v1 = vld [vmem:[#allocation20 + $0x590] sm:$0xf0]  ;;  %v3315_v21 = vperm.slane %v11692_v4, 2  ;;  %v10677_v15 = vld [vmem:[#allocation20 + $0x718] sm:$0xf0] }
 0x30f   :  { %v3362_v30 = vmax.f32 %v3354_v26, 0.0  ;;  %v3176_v8 = vrot.slane %v3175_v27, 1  ;;  %v3238_v62 = vsub.f32 1.5, %v3237_v49  ;;  %6251 = vmatpush.bf16.msrb.mxu3 %v9137_v13  ;;  %v9249_v13 = vor.u32 %v10684_v6, %v9248_v35  ;;  %v8438_v35 = vld [vmem:[#allocation20 + $0xfc] sm:$0xf0] }
 0x310   :  { %6230 = vmatpush.bf16.msrb.mxu1 %v8549_v63  ;;  %v11721_v31 = vpop.f32.mrf.mxu1  ;;  %v2876_v63 = vpop.f32.mrf.mxu3  ;;  %v3109_v7 = vadd.f32 %v3108_v60, %v3107_v0  ;;  %v9024_v0 = vld [vmem:[#allocation20 + $0x578] sm:$0xf] }
 0x311   :  { %v11712_v45 = vpack.c.bf16 %v3362_v30, %v3362_v30  ;;  %v3177_v14 = vadd.f32 %v3176_v8, %v3175_v27  ;;  %v3239_v3 = vmul.f32 %v10941_v25, %v3238_v62  ;;  %v9081_v30 = vor.u32 %v10642_v20, %v9080_v33 }
 0x312   :  { %6241 = vmatpush.bf16.msrb.mxu2 %v8829_v18  ;;  %v2889_v16 = vpop.f32.mrf.mxu0  ;;  %6263 = vmatpush.bf16.msra.mxu0 %v9389_v46  ;;  %v9360_v18 = vld [vmem:[#allocation20 + $0x818] sm:$0xf]  ;;  %v3110_v24 = vrot.slane %v3109_v7, 1  ;;  %v9025_v46 = vor.u32 %v10628_v1, %v9024_v0  ;;  %v3340_v63 = vperm.slane %v11698_v11, 2  ;;  %v9556_v1 = vld [vmem:[#allocation20 + $0x9a0] sm:$0xf] }
 0x313   :  { %v3210_v59 = vmul.f32 %v3177_v14, %v11488_v32  ;;  %6218 = vmatmul.bf16.vlgmr.msrb.gmra.mxu0 %v11712_v45  ;;  %v3243_v56 = vsel %vm3242_vm10, %v10941_v25, %v3239_v3  ;;  %v9361_v17 = vor.u32 %v10712_v19, %v9360_v18  ;;  %6252 = vmatpush.bf16.msrb.mxu3 %v9109_v57  ;;  %v10635_v14 = vld [vmem:[#allocation20 + $0x5c8] sm:$0xf0]  ;;  %v10621_v16 = vld [vmem:[#allocation20 + $0x558] sm:$0xf0] }
 0x314   :  { %v3305_v5 = vmul.f32 %v3243_v56, %v11671_v61  ;;  %v3111_v23 = vadd.f32 %v3110_v24, %v3109_v7  ;;  %v9053_v47 = vor.u32 %v10635_v14, %v9052_v44  ;;  %v8996_v7 = vld [vmem:[#allocation20 + $0x540] sm:$0xf] }
 0x315   :  { %v11718_v34 = vadd.f32 1e-05, %v3210_v59  ;;  %v9277_v59 = vor.u32 %v10691_v52, %v9276_v2  ;;  %v9220_v24 = vld [vmem:[#allocation20 + $0x700] sm:$0xf]  ;;  %v10768_v2 = vld [vmem:[#allocation20 + $0x9f0] sm:$0xf0] }
 0x316   :  { %6242 = vmatpush.bf16.msrb.mxu2 %v8801_v58  ;;  %v3330_v10 = vmul.f32 %v3314_v12, %v3305_v5  ;;  %6264 = vmatpush.bf16.msra.mxu0 %v9361_v17  ;;  %v9332_v58 = vld [vmem:[#allocation20 + $0x7e0] sm:$0xf]  ;;  %v3139_v61 = vmul.f32 %v3111_v23, %v11488_v32  ;;  %v8997_v5 = vor.u32 %v10621_v16, %v8996_v7  ;;  %v10485_v52 = vld [vmem:[#allocation20 + $0x11c] sm:$0xf]  ;;  %v9528_v7 = vld [vmem:[#allocation20 + $0x968] sm:$0xf] }
 0x317   :  { %10942 = vrsqrt.f32 %v11718_v34  ;;  %v9333_v27 = vor.u32 %v10705_v22, %v9332_v58  ;;  %6253 = vmatpush.bf16.msrb.mxu3 %v9081_v30  ;;  %vm3250_vm12 = vweird.f32 %v11718_v34  ;;  %v9221_v23 = vor.u32 %v10677_v15, %v9220_v24  ;;  %v10499_v58 = vld [vmem:[#allocation20 + $0x18c] sm:$0xf]  ;;  %v10754_v16 = vld [vmem:[#allocation20 + $0x980] sm:$0xf0] }
 0x318   :  { %v3355_v26 = vadd.f32 %v3339_v55, %v3330_v10  ;;  %v2902_v29 = vpop.f32.mrf.mxu1  ;;  %v11730_v36 = vsub.f32 %v11708_v40, %v3139_v61  ;;  %v10775_v30 = vld [vmem:[#allocation20 + $0xa28] sm:$0xf0] }
 0x31a   :  { %6243 = vmatpush.bf16.msrb.mxu2 %v8773_v37  ;;  %v3363_v53 = vmax.f32 %v3355_v26, 0.0  ;;  %6265 = vmatpush.bf16.msra.mxu0 %v9333_v27  ;;  %v9304_v37 = vld [vmem:[#allocation20 + $0x7a8] sm:$0xf]  ;;  %v3155_v42 = vmul.f32 %v11730_v36, %v11730_v36 }
 0x31b   :  { %v9305_v48 = vor.u32 %v10698_v39, %v9304_v37  ;;  %6254 = vmatpush.bf16.msrb.mxu3 %v9053_v47  ;;  %v8522_v26 = vld [vmem:[#allocation20 + $0x1a4] sm:$0xf0] }
 0x31c   :  { %v11732_v9 = vpack.c.bf16 %v3363_v53, %v3363_v53  ;;  %v3178_v40 = vrot.slane %v3155_v42, 4  ;;  %v8525_v61 = vor.u32 %v10499_v58, %v8522_v26  ;;  %v9612_v53 = vld [vmem:[#allocation20 + $0xa10] sm:$0xf]  ;;  %v3316_v26 = vperm.slane %v11692_v4, 3 }
 0x31d   :  { %v10943_v25 = vpop.eup %10942  ;;  %v9613_v39 = vor.u32 %v10775_v30, %v9612_v53  ;;  %v8382_v58 = vld [vmem:[#allocation20 + $0x8c] sm:$0xf0]  ;;  %v3341_v30 = vperm.slane %v11698_v11, 3 }
 0x31e   :  { %v3245_v28 = vmul.f32 %v10943_v25, %v11718_v34  ;;  %6231 = vmatmul.bf16.vlgmr.msrb.gmra.mxu1 %v11732_v9  ;;  %vm3251_vm11 = vweird.f32 %v10943_v25  ;;  %6266 = vmatpush.bf16.msra.mxu0 %v9305_v48  ;;  %v3179_v62 = vadd.f32 %v3178_v40, %v3155_v42  ;;  %v2901_v34 = vadd.f32 %v11721_v31, %v11710_v41  ;;  %v9640_v41 = vld [vmem:[#allocation20 + $0xa48] sm:$0xf]  ;;  %v10782_v31 = vld [vmem:[#allocation20 + $0xa60] sm:$0xf0]  ;;  %v8494_v48 = vld [vmem:[#allocation20 + $0x16c] sm:$0xf0] }
 0x31f   :  { %vm3252_vm13 = vmor %vm3250_vm12, %vm3251_vm11  ;;  %6255 = vmatpush.bf16.msrb.mxu3 %v9025_v46  ;;  %v9584_v40 = vld [vmem:[#allocation20 + $0x9d8] sm:$0xf]  ;;  %v10478_v46 = vld [vmem:[#allocation20 + $0xe4] sm:$0xf] }
 0x320   :  { %v3246_v8 = vmul.f32 %v10943_v25, %v3245_v28  ;;  %v2913_v54 = vpop.f32.mrf.mxu2  ;;  %v3180_v60 = vrot.slane %v3179_v62, 2 }
 0x321   :  { %v2914_v19 = vadd.f32 %v2913_v54, %v2901_v34  ;;  %v9585_v54 = vor.u32 %v10768_v2, %v9584_v40  ;;  %v8441_v34 = vor.u32 %v10478_v46, %v8438_v35  ;;  %v9444_v2 = vld [vmem:[#allocation20 + $0x8c0] sm:$0xf]  ;;  %v10838_v46 = vld [vmem:[#allocation20 + $0xc20] sm:$0xf0] }
 0x322   :  { %v3247_v43 = vmul.f32 0.5, %v3246_v8  ;;  %6267 = vmatpush.bf16.msra.mxu0 %v9277_v59  ;;  %v3181_v56 = vadd.f32 %v3180_v60, %v3179_v62  ;;  %v10492_v8 = vld [vmem:[#allocation20 + $0x154] sm:$0xf]  ;;  %v8466_v59 = vld [vmem:[#allocation20 + $0x134] sm:$0xf0] }
 0x323   :  { %6256 = vmatpush.bf16.msrb.mxu3 %v8997_v5  ;;  %v8497_v44 = vor.u32 %v10492_v8, %v8494_v48  ;;  %v8469_v62 = vor.u32 %v10485_v52, %v8466_v59  ;;  %v8410_v5 = vld [vmem:[#allocation20 + $0xc4] sm:$0xf0]  ;;  %v8354_v48 = vld [vmem:[#allocation20 + $0x54] sm:$0xf0]  ;;  %v10733_v52 = vld [vmem:[#allocation20 + $0x8d8] sm:$0xf0] }
 0x324   :  { %v3248_v49 = vsub.f32 1.5, %v3247_v43  ;;  %v3182_v55 = vrot.slane %v3181_v56, 1 }
 0x326   :  { %v3249_v38 = vmul.f32 %v10943_v25, %v3248_v49  ;;  %v2926_v17 = vpop.f32.mrf.mxu3  ;;  %6268 = vmatpush.bf16.msra.mxu0 %v9249_v13  ;;  %v3183_v22 = vadd.f32 %v3182_v55, %v3181_v56 }
 0x328   :  { %v3253_v3 = vsel %vm3252_vm13, %v10943_v25, %v3249_v38  ;;  %v2915_v57 = vpop.f32.mrf.mxu2  ;;  %v9641_v25 = vor.u32 %v10782_v31, %v9640_v41  ;;  %v3211_v29 = vmul.f32 %v3183_v22, %v11488_v32  ;;  %v10464_v31 = vld [vmem:[#allocation20 + $0x74] sm:$0xf] }
 0x329   :  { %v3306_v12 = vmul.f32 %v3253_v3, %v11690_v50  ;;  %v2927_v50 = vadd.f32 %v2926_v17, %v2914_v19  ;;  %v9529_v19 = vor.u32 %v10754_v16, %v9528_v7  ;;  %v9500_v57 = vld [vmem:[#allocation20 + $0x930] sm:$0xf] }
 0x32a   :  { %v11743_v10 = vpop.f32.mrf.mxu0  ;;  %6269 = vmatpush.bf16.msra.mxu0 %v9221_v23  ;;  %6275 = vmatpush.bf16.msra.mxu1 %v9641_v25  ;;  %v3219_v37 = vadd.f32 1e-05, %v3211_v29  ;;  %v10747_v23 = vld [vmem:[#allocation20 + $0x948] sm:$0xf0]  ;;  %v9472_v29 = vld [vmem:[#allocation20 + $0x8f8] sm:$0xf] }
 0x32b   :  { %v3331_v18 = vmul.f32 %v3315_v21, %v3306_v12  ;;  %v3112_v28 = vrot.slane %v2927_v50, 4  ;;  %v10761_v21 = vld [vmem:[#allocation20 + $0x9b8] sm:$0xf0]  ;;  %v9501_v41 = vor.u32 %v10747_v23, %v9500_v57 }
 0x32c   :  { %10944 = vrsqrt.f32 %v3219_v37  ;;  %v9557_v60 = vor.u32 %v10761_v21, %v9556_v1  ;;  %vm3260_vm15 = vweird.f32 %v3219_v37 }
 0x32d   :  { %v3356_v51 = vadd.f32 %v3340_v63, %v3331_v18  ;;  %v3113_v20 = vadd.f32 %v3112_v28, %v2927_v50  ;;  %v10471_v18 = vld [vmem:[#allocation20 + $0xac] sm:$0xf] }
 0x32e   :  { %6314 = vmatpush.bf16.msrb.mxu0 %v8525_v61  ;;  %v2928_v14 = vpop.f32.mrf.mxu3  ;;  %6276 = vmatpush.bf16.msra.mxu1 %v9613_v39  ;;  %v8413_v24 = vor.u32 %v10471_v18, %v8410_v5  ;;  %v9836_v18 = vld [vmem:[#allocation20 + $0xbd0] sm:$0xf] }
 0x32f   :  { %v3364_v27 = vmax.f32 %v3356_v51, 0.0  ;;  %v3114_v43 = vrot.slane %v3113_v20, 2 }
 0x330   :  { %v11748_v42 = vpop.f32.mrf.mxu1 }
 0x331   :  { %v11746_v33 = vpack.c.bf16 %v3364_v27, %v3364_v27  ;;  %v3115_v47 = vadd.f32 %v3114_v43, %v3113_v20  ;;  %v8385_v27 = vor.u32 %v10464_v31, %v8382_v58  ;;  %v10740_v20 = vld [vmem:[#allocation20 + $0x910] sm:$0xf0]  ;;  %v2953_v8 = vadd.f32 %v11748_v42, %v11743_v10  ;;  %v10450_v42 = vld [vmem:[#allocation20 + $0x4] sm:$0xf]  ;;  %v10541_v58 = vld [vmem:[#allocation20 + $0x2dc] sm:$0xf] }
 0x332   :  { %v2941_v49 = vpop.f32.mrf.mxu0  ;;  %6315 = vmatpush.bf16.msrb.mxu0 %v8497_v44  ;;  %6277 = vmatpush.bf16.msra.mxu1 %v9585_v54  ;;  %v10945_v3 = vpop.eup %10944  ;;  %v9473_v39 = vor.u32 %v10740_v20, %v9472_v29  ;;  %v9445_v10 = vor.u32 %v10733_v52, %v9444_v2  ;;  %v10824_v31 = vld [vmem:[#allocation20 + $0xbb0] sm:$0xf0]  ;;  %v9780_v29 = vld [vmem:[#allocation20 + $0xb60] sm:$0xf]  ;;  %v10817_v20 = vld [vmem:[#allocation20 + $0xb78] sm:$0xf0] }
 0x333   :  { %6244 = vmatmul.bf16.vlgmr.msrb.gmra.mxu2 %v11746_v33  ;;  %v3116_v38 = vrot.slane %v3115_v47, 1  ;;  %v3255_v6 = vmul.f32 %v10945_v3, %v3219_v37  ;;  %vm3261_vm14 = vweird.f32 %v10945_v3  ;;  %v10457_v37 = vld [vmem:[#allocation20 + $0x3c] sm:$0xf] }
 0x334   :  { %vm3262_vm0 = vmor %vm3260_vm15, %vm3261_vm14  ;;  %v8357_v44 = vor.u32 %v10457_v37, %v8354_v48  ;;  %v9781_v37 = vor.u32 %v10817_v20, %v9780_v29  ;;  %v8662_v48 = vld [vmem:[#allocation20 + $0x2bc] sm:$0xf0] }
 0x335   :  { %v3117_v0 = vadd.f32 %v3116_v38, %v3115_v47  ;;  %v3256_v13 = vmul.f32 %v10945_v3, %v3255_v6  ;;  %v8550_v20 = vld [vmem:[#allocation20 + $0x1dc] sm:$0xf0] }
 0x336   :  { %6316 = vmatpush.bf16.msrb.mxu0 %v8469_v62  ;;  %6278 = vmatpush.bf16.msra.mxu1 %v9557_v60  ;;  %v8326_v62 = vld [vmem:[#allocation20 + $0x1c] sm:$0xf0]  ;;  %v8746_v60 = vld [vmem:[#allocation20 + $0x364] sm:$0xf0] }
 0x337   :  { %v3140_v12 = vmul.f32 %v3117_v0, %v11488_v32  ;;  %v3257_v55 = vmul.f32 0.5, %v3256_v13  ;;  %v9864_v0 = vld [vmem:[#allocation20 + $0xc08] sm:$0xf]  ;;  %v8329_v21 = vor.u32 %v10450_v42, %v8326_v62 }
 0x338   :  { %v2954_v63 = vpop.f32.mrf.mxu1 }
 0x339   :  { %v11752_v56 = vsub.f32 %v2927_v50, %v3140_v12  ;;  %v3258_v15 = vsub.f32 1.5, %v3257_v55  ;;  %v9865_v12 = vor.u32 %v10838_v46, %v9864_v0 }
 0x33a   :  { %6317 = vmatpush.bf16.msrb.mxu0 %v8441_v34  ;;  %6279 = vmatpush.bf16.msra.mxu1 %v9529_v19  ;;  %v10831_v19 = vld [vmem:[#allocation20 + $0xbe8] sm:$0xf0] }
 0x33b   :  { %v3156_v17 = vmul.f32 %v11752_v56, %v11752_v56  ;;  %v3259_v22 = vmul.f32 %v10945_v3, %v3258_v15  ;;  %6288 = vmatpush.bf16.msra.mxu2 %v9865_v12  ;;  %v8718_v15 = vld [vmem:[#allocation20 + $0x32c] sm:$0xf0] }
 0x33d   :  { %v3184_v51 = vrot.slane %v3156_v17, 4  ;;  %v3263_v28 = vsel %vm3262_vm0, %v10945_v3, %v3259_v22  ;;  %v10555_v3 = vld [vmem:[#allocation20 + $0x34c] sm:$0xf] }
 0x33e   :  { %6318 = vmatpush.bf16.msrb.mxu0 %v8413_v24  ;;  %6280 = vmatpush.bf16.msra.mxu1 %v9501_v41  ;;  %v3307_v53 = vmul.f32 %v3263_v28, %v11730_v36  ;;  %v8749_v63 = vor.u32 %v10555_v3, %v8746_v60  ;;  %v10548_v24 = vld [vmem:[#allocation20 + $0x314] sm:$0xf]  ;;  %v9808_v41 = vld [vmem:[#allocation20 + $0xb98] sm:$0xf]  ;;  %v8606_v60 = vld [vmem:[#allocation20 + $0x24c] sm:$0xf0] }
 0x33f   :  { %v3185_v25 = vadd.f32 %v3184_v51, %v3156_v17  ;;  %v9837_v17 = vor.u32 %v10831_v19, %v9836_v18  ;;  %v8721_v57 = vor.u32 %v10548_v24, %v8718_v15 }
 0x340   :  { %v2965_v50 = vpop.f32.mrf.mxu2  ;;  %v3332_v14 = vmul.f32 %v3316_v26, %v3307_v53  ;;  %v8690_v26 = vld [vmem:[#allocation20 + $0x2f4] sm:$0xf0]  ;;  %v10534_v53 = vld [vmem:[#allocation20 + $0x2a4] sm:$0xf] }
 0x341   :  { %v3186_v61 = vrot.slane %v3185_v25, 2  ;;  %v2966_v47 = vadd.f32 %v2965_v50, %v2953_v8  ;;  %6289 = vmatpush.bf16.msra.mxu2 %v9837_v17  ;;  %v10513_v17 = vld [vmem:[#allocation20 + $0x1fc] sm:$0xf] }
 0x342   :  { %6319 = vmatpush.bf16.msrb.mxu0 %v8385_v27  ;;  %6281 = vmatpush.bf16.msra.mxu1 %v9473_v39  ;;  %v3357_v54 = vadd.f32 %v3341_v30, %v3332_v14  ;;  %v8693_v27 = vor.u32 %v10541_v58, %v8690_v26  ;;  %v10723_v58 = vld [vmem:[#allocation20 + $0x88c] sm:$0xf] }
 0x343   :  { %v3187_v43 = vadd.f32 %v3186_v61, %v3185_v25  ;;  %v9809_v25 = vor.u32 %v10824_v31, %v9808_v41 }
 0x344   :  { %v3365_v35 = vmax.f32 %v3357_v54, 0.0 }
 0x345   :  { %v3188_v49 = vrot.slane %v3187_v43, 1  ;;  %6290 = vmatpush.bf16.msra.mxu2 %v9809_v25 }
 0x346   :  { %v2978_v40 = vpop.f32.mrf.mxu3  ;;  %6320 = vmatpush.bf16.msrb.mxu0 %v8357_v44  ;;  %6282 = vmatpush.bf16.msra.mxu1 %v9445_v10  ;;  %v11764_v13 = vpack.c.bf16 %v3365_v35, %v3365_v35  ;;  %v3317_v35 = vperm.slane %v11692_v4, 4 }
 0x347   :  { %v2979_v36 = vadd.f32 %v2978_v40, %v2966_v47  ;;  %v3189_v1 = vadd.f32 %v3188_v49, %v3187_v43  ;;  %v8665_v43 = vor.u32 %v10534_v53, %v8662_v48  ;;  %v9752_v47 = vld [vmem:[#allocation20 + $0xb28] sm:$0xf]  ;;  %v10810_v49 = vld [vmem:[#allocation20 + $0xb40] sm:$0xf0]  ;;  %v10527_v40 = vld [vmem:[#allocation20 + $0x26c] sm:$0xf] }
 0x348   :  { %v2967_v38 = vpop.f32.mrf.mxu2  ;;  %6257 = vmatmul.bf16.vlgmr.msrb.gmra.mxu3 %v11764_v13  ;;  %v9753_v54 = vor.u32 %v10810_v49, %v9752_v47  ;;  %v10611_v47 = vld [vmem:[#allocation20 + $0x50c] sm:$0xf]  ;;  %v8970_v49 = vld [vmem:[#allocation20 + $0x524] sm:$0xf0] }
 0x349   :  { %v3118_v6 = vrot.slane %v2979_v36, 4  ;;  %v3212_v34 = vmul.f32 %v3189_v1, %v11488_v32  ;;  %6291 = vmatpush.bf16.msra.mxu2 %v9781_v37  ;;  %v8634_v38 = vld [vmem:[#allocation20 + $0x284] sm:$0xf0]  ;;  %v10803_v1 = vld [vmem:[#allocation20 + $0xb08] sm:$0xf0] }
 0x34a   :  { %v11761_v59 = vpop.f32.mrf.mxu0  ;;  %6321 = vmatpush.bf16.msrb.mxu0 %v8329_v21  ;;  %6327 = vmatpush.bf16.msrb.mxu1 %v8749_v63  ;;  %v8637_v10 = vor.u32 %v10527_v40, %v8634_v38  ;;  %v10520_v21 = vld [vmem:[#allocation20 + $0x234] sm:$0xf]  ;;  %v10894_v37 = vld [vmem:[#allocation20 + $0xde0] sm:$0xf0]  ;;  %v8973_v38 = vor.u32 %v10611_v47, %v8970_v49  ;;  %v8858_v47 = vld [vmem:[#allocation20 + $0x444] sm:$0xf0] }
 0x34b   :  { %v3119_v7 = vadd.f32 %v3118_v6, %v2979_v36  ;;  %v3220_v16 = vadd.f32 1e-05, %v3212_v34  ;;  %v8609_v12 = vor.u32 %v10520_v21, %v8606_v60  ;;  %v3342_v34 = vperm.slane %v11698_v11, 4  ;;  %v10604_v21 = vld [vmem:[#allocation20 + $0x4d4] sm:$0xf] }
 0x34d   :  { %v3120_v5 = vrot.slane %v3119_v7, 2  ;;  %10946 = vrsqrt.f32 %v3220_v16  ;;  %6292 = vmatpush.bf16.msra.mxu2 %v9753_v54  ;;  %vm3270_vm2 = vweird.f32 %v3220_v16  ;;  %v9390_v54 = vld [vmem:[#allocation20 + $0x86c] sm:$0xf0] }
 0x34e   :  { %v2980_v51 = vpop.f32.mrf.mxu3  ;;  %6328 = vmatpush.bf16.msrb.mxu1 %v8721_v57 }
 0x34f   :  { %v3121_v23 = vadd.f32 %v3120_v5, %v3119_v7  ;;  %v9696_v5 = vld [vmem:[#allocation20 + $0xab8] sm:$0xf] }
 0x350   :  { %v11766_v55 = vpop.f32.mrf.mxu1  ;;  %v8578_v51 = vld [vmem:[#allocation20 + $0x214] sm:$0xf0] }
 0x351   :  { %v3122_v22 = vrot.slane %v3121_v23, 1  ;;  %v3005_v19 = vadd.f32 %v11766_v55, %v11761_v59  ;;  %v9668_v55 = vld [vmem:[#allocation20 + $0xa80] sm:$0xf] }
 0x352   :  { %v2993_v50 = vpop.f32.mrf.mxu0  ;;  %6329 = vmatpush.bf16.msrb.mxu1 %v8693_v27  ;;  %v10789_v27 = vld [vmem:[#allocation20 + $0xa98] sm:$0xf0] }
 0x353   :  { %v3123_v28 = vadd.f32 %v3122_v22, %v3121_v23  ;;  %v10947_v61 = vpop.eup %10946  ;;  %v8581_v50 = vor.u32 %v10513_v17, %v8578_v51  ;;  %v9418_v22 = vld [vmem:[#allocation20 + $0x8a4] sm:$0xf0]  ;;  %v9669_v29 = vor.u32 %v10789_v27, %v9668_v55  ;;  %v8914_v17 = vld [vmem:[#allocation20 + $0x4b4] sm:$0xf0]  ;;  %v8886_v27 = vld [vmem:[#allocation20 + $0x47c] sm:$0xf0] }
 0x354   :  { %v3265_v30 = vmul.f32 %v10947_v61, %v3220_v16  ;;  %vm3271_vm1 = vweird.f32 %v10947_v61  ;;  %v10796_v16 = vld [vmem:[#allocation20 + $0xad0] sm:$0xf0] }
 0x355   :  { %v3141_v8 = vmul.f32 %v3123_v28, %v11488_v32  ;;  %vm3272_vm3 = vmor %vm3270_vm2, %vm3271_vm1  ;;  %v9697_v15 = vor.u32 %v10796_v16, %v9696_v5  ;;  %v10506_v28 = vld [vmem:[#allocation20 + $0x1c4] sm:$0xf]  ;;  %v10597_v16 = vld [vmem:[#allocation20 + $0x49c] sm:$0xf] }
 0x356   :  { %v3266_v44 = vmul.f32 %v10947_v61, %v3265_v30  ;;  %6330 = vmatpush.bf16.msrb.mxu1 %v8665_v43  ;;  %v9421_v43 = vor.u32 %v10723_v58, %v9418_v22  ;;  %v10590_v58 = vld [vmem:[#allocation20 + $0x464] sm:$0xf] }
 0x357   :  { %v11770_v14 = vsub.f32 %v2979_v36, %v3141_v8  ;;  %v9724_v36 = vld [vmem:[#allocation20 + $0xaf0] sm:$0xf]  ;;  %v8553_v8 = vor.u32 %v10506_v28, %v8550_v20 }
 0x358   :  { %v3006_v39 = vpop.f32.mrf.mxu1  ;;  %v3267_v2 = vmul.f32 0.5, %v3266_v44  ;;  %v9725_v6 = vor.u32 %v10803_v1, %v9724_v36 }
 0x359   :  { %v3157_v52 = vmul.f32 %v11770_v14, %v11770_v14  ;;  %v10088_v39 = vld [vmem:[#allocation20 + $0xdc8] sm:$0xf] }
 0x35a   :  { %v3268_v42 = vsub.f32 1.5, %v3267_v2  ;;  %6331 = vmatpush.bf16.msrb.mxu1 %v8637_v10  ;;  %6293 = vmatpush.bf16.msra.mxu2 %v9725_v6  ;;  %v10089_v44 = vor.u32 %v10894_v37, %v10088_v39  ;;  %v10866_v39 = vld [vmem:[#allocation20 + $0xd00] sm:$0xf0]  ;;  %v10583_v37 = vld [vmem:[#allocation20 + $0x42c] sm:$0xf] }
 0x35b   :  { %v3190_v62 = vrot.slane %v3157_v52, 4 }
 0x35c   :  { %v3269_v46 = vmul.f32 %v10947_v61, %v3268_v42  ;;  %6301 = vmatpush.bf16.msra.mxu3 %v10089_v44  ;;  %v10060_v42 = vld [vmem:[#allocation20 + $0xd90] sm:$0xf] }
 0x35d   :  { %v3191_v3 = vadd.f32 %v3190_v62, %v3157_v52  ;;  %v10716_v52 = vld [vmem:[#allocation20 + $0x854] sm:$0xf]  ;;  %v10887_v62 = vld [vmem:[#allocation20 + $0xda8] sm:$0xf0] }
 0x35e   :  { %v3273_v63 = vsel %vm3272_vm3, %v10947_v61, %v3269_v46  ;;  %6332 = vmatpush.bf16.msrb.mxu1 %v8609_v12  ;;  %6294 = vmatpush.bf16.msra.mxu2 %v9697_v15  ;;  %v10061_v1 = vor.u32 %v10887_v62, %v10060_v42  ;;  %v8942_v46 = vld [vmem:[#allocation20 + $0x4ec] sm:$0xf0]  ;;  %v9393_v60 = vor.u32 %v10716_v52, %v9390_v54  ;;  %v10688_v54 = vld [vmem:[#allocation20 + $0x774] sm:$0xf] }
 0x35f   :  { %v3192_v7 = vrot.slane %v3191_v3, 2  ;;  %v3308_v18 = vmul.f32 %v3273_v63, %v11752_v56  ;;  %v10709_v63 = vld [vmem:[#allocation20 + $0x81c] sm:$0xf]  ;;  %v8917_v15 = vor.u32 %v10597_v16, %v8914_v17  ;;  %v9948_v62 = vld [vmem:[#allocation20 + $0xcb0] sm:$0xf] }
 0x360   :  { %v3017_v0 = vpop.f32.mrf.mxu2  ;;  %6302 = vmatpush.bf16.msra.mxu3 %v10061_v1  ;;  %v10576_v1 = vld [vmem:[#allocation20 + $0x3f4] sm:$0xf]  ;;  %v9920_v16 = vld [vmem:[#allocation20 + $0xc78] sm:$0xf] }
 0x361   :  { %v3193_v24 = vadd.f32 %v3192_v7, %v3191_v3  ;;  %v3333_v57 = vmul.f32 %v3317_v35, %v3308_v18  ;;  %v3018_v23 = vadd.f32 %v3017_v0, %v3005_v19  ;;  %v8945_v35 = vor.u32 %v10604_v21, %v8942_v46  ;;  %v10032_v7 = vld [vmem:[#allocation20 + $0xd58] sm:$0xf]  ;;  %v10880_v18 = vld [vmem:[#allocation20 + $0xd70] sm:$0xf0] }
 0x362   :  { %6333 = vmatpush.bf16.msrb.mxu1 %v8581_v50  ;;  %6295 = vmatpush.bf16.msra.mxu2 %v9669_v29  ;;  %v10033_v5 = vor.u32 %v10880_v18, %v10032_v7  ;;  %v10681_v18 = vld [vmem:[#allocation20 + $0x73c] sm:$0xf]  ;;  %v10852_v17 = vld [vmem:[#allocation20 + $0xc90] sm:$0xf0] }
 0x363   :  { %v3194_v41 = vrot.slane %v3193_v24, 1  ;;  %v3358_v25 = vadd.f32 %v3342_v34, %v3333_v57  ;;  %v9362_v34 = vld [vmem:[#allocation20 + $0x834] sm:$0xf0]  ;;  %v10702_v57 = vld [vmem:[#allocation20 + $0x7e4] sm:$0xf] }
 0x364   :  { %6303 = vmatpush.bf16.msra.mxu3 %v10033_v5 }
 0x365   :  { %v3195_v61 = vadd.f32 %v3194_v41, %v3193_v24  ;;  %v3366_v53 = vmax.f32 %v3358_v25, 0.0  ;;  %v9365_v24 = vor.u32 %v10709_v63, %v9362_v34  ;;  %v10004_v41 = vld [vmem:[#allocation20 + $0xd20] sm:$0xf]  ;;  %v3343_v34 = vperm.slane %v11698_v11, 5 }
 0x366   :  { %v3030_v31 = vpop.f32.mrf.mxu3  ;;  %6334 = vmatpush.bf16.msrb.mxu1 %v8553_v8  ;;  %6340 = vmatpush.bf16.msrb.mxu2 %v8973_v38  ;;  %v9976_v8 = vld [vmem:[#allocation20 + $0xce8] sm:$0xf]  ;;  %v9278_v38 = vld [vmem:[#allocation20 + $0x78c] sm:$0xf0] }
 0x367   :  { %v11779_v56 = vadd.f32 %v3030_v31, %v3018_v23  ;;  %v3213_v48 = vmul.f32 %v3195_v61, %v11488_v32  ;;  %v11785_v40 = vpack.c.bf16 %v3366_v53, %v3366_v53  ;;  %v9334_v23 = vld [vmem:[#allocation20 + $0x7fc] sm:$0xf0]  ;;  %v10873_v31 = vld [vmem:[#allocation20 + $0xd38] sm:$0xf0]  ;;  %v8889_v61 = vor.u32 %v10590_v58, %v8886_v27  ;;  %v10695_v53 = vld [vmem:[#allocation20 + $0x7ac] sm:$0xf] }
 0x368   :  { %v3019_v59 = vpop.f32.mrf.mxu2  ;;  %v10005_v55 = vor.u32 %v10873_v31, %v10004_v41  ;;  %v9337_v28 = vor.u32 %v10702_v57, %v9334_v23  ;;  %v9977_v44 = vor.u32 %v10866_v39, %v9976_v8  ;;  %v8802_v57 = vld [vmem:[#allocation20 + $0x3d4] sm:$0xf0]  ;;  %v9222_v41 = vld [vmem:[#allocation20 + $0x71c] sm:$0xf0]  ;;  %v10779_v31 = vld [vmem:[#allocation20 + $0xa4c] sm:$0xf] }
 0x369   :  { %v3124_v30 = vrot.slane %v11779_v56, 4  ;;  %v11788_v10 = vadd.f32 1e-05, %v3213_v48  ;;  %6270 = vmatmul.bf16.vlgmr.msra.gmra.mxu0 %v11785_v40  ;;  %v9642_v58 = vld [vmem:[#allocation20 + $0xa64] sm:$0xf0] }
 0x36a   :  { %v11781_v26 = vpop.f32.mrf.mxu0  ;;  %6366 = vmatpush.bf16.msra.mxu0 %v9421_v43  ;;  %6341 = vmatpush.bf16.msrb.mxu2 %v8945_v35  ;;  %v9281_v35 = vor.u32 %v10688_v54, %v9278_v38  ;;  %v8774_v8 = vld [vmem:[#allocation20 + $0x39c] sm:$0xf0] }
 0x36b   :  { %v3125_v2 = vadd.f32 %v3124_v30, %v11779_v56  ;;  %10948 = vrsqrt.f32 %v11788_v10  ;;  %v9306_v30 = vld [vmem:[#allocation20 + $0x7c4] sm:$0xf0]  ;;  %6304 = vmatpush.bf16.msra.mxu3 %v10005_v55  ;;  %vm3280_vm5 = vweird.f32 %v11788_v10 }
 0x36c   :  { %v9309_v49 = vor.u32 %v10695_v53, %v9306_v30 }
 0x36d   :  { %v3126_v0 = vrot.slane %v3125_v2, 2 }
 0x36e   :  { %v3032_v3 = vpop.f32.mrf.mxu3  ;;  %6367 = vmatpush.bf16.msra.mxu0 %v9393_v60  ;;  %6342 = vmatpush.bf16.msrb.mxu2 %v8917_v15  ;;  %v3318_v60 = vperm.slane %v11692_v4, 5  ;;  %v10674_v15 = vld [vmem:[#allocation20 + $0x704] sm:$0xf] }
 0x36f   :  { %v3127_v6 = vadd.f32 %v3126_v0, %v3125_v2  ;;  %v8861_v2 = vor.u32 %v10583_v37, %v8858_v47  ;;  %6305 = vmatpush.bf16.msra.mxu3 %v9977_v44  ;;  %v10859_v0 = vld [vmem:[#allocation20 + $0xcc8] sm:$0xf0]  ;;  %v8830_v3 = vld [vmem:[#allocation20 + $0x40c] sm:$0xf0]  ;;  %v9645_v47 = vor.u32 %v10779_v31, %v9642_v58 }
 0x370   :  { %v11790_v36 = vpop.f32.mrf.mxu1 }
 0x371   :  { %v3128_v19 = vrot.slane %v3127_v6, 1  ;;  %v10949_v50 = vpop.eup %10948  ;;  %v3057_v5 = vadd.f32 %v11790_v36, %v11781_v26  ;;  %v8528_v26 = vld [vmem:[#allocation20 + $0x190] sm:$0xf]  ;;  %v10503_v36 = vld [vmem:[#allocation20 + $0x1a8] sm:$0xf0] }
 0x372   :  { %v3045_v12 = vpop.f32.mrf.mxu0  ;;  %v3275_v22 = vmul.f32 %v10949_v50, %v11788_v10  ;;  %6368 = vmatpush.bf16.msra.mxu0 %v9365_v24  ;;  %6343 = vmatpush.bf16.msrb.mxu2 %v8889_v61  ;;  %vm3281_vm4 = vweird.f32 %v10949_v50  ;;  %v10569_v24 = vld [vmem:[#allocation20 + $0x3bc] sm:$0xf] }
 0x373   :  { %v3129_v51 = vadd.f32 %v3128_v19, %v3127_v6  ;;  %vm3282_vm6 = vmor %vm3280_vm5, %vm3281_vm4  ;;  %v9949_v6 = vor.u32 %v10859_v0, %v9948_v62  ;;  %v8833_v12 = vor.u32 %v10576_v1, %v8830_v3  ;;  %v9250_v19 = vld [vmem:[#allocation20 + $0x754] sm:$0xf0]  ;;  %v10845_v61 = vld [vmem:[#allocation20 + $0xc58] sm:$0xf0] }
 0x374   :  { %v3276_v29 = vmul.f32 %v10949_v50, %v3275_v22  ;;  %v9253_v11 = vor.u32 %v10681_v18, %v9250_v19  ;;  %v8500_v62 = vld [vmem:[#allocation20 + $0x158] sm:$0xf]  ;;  %v10496_v0 = vld [vmem:[#allocation20 + $0x170] sm:$0xf0]  ;;  %v8472_v18 = vld [vmem:[#allocation20 + $0x120] sm:$0xf] }
 0x375   :  { %v3142_v25 = vmul.f32 %v3129_v51, %v11488_v32  ;;  %6306 = vmatpush.bf16.msra.mxu3 %v9949_v6  ;;  %v9921_v51 = vor.u32 %v10852_v17, %v9920_v16  ;;  %v10660_v3 = vld [vmem:[#allocation20 + $0x694] sm:$0xf]  ;;  %v10489_v19 = vld [vmem:[#allocation20 + $0x138] sm:$0xf0]  ;;  %v9138_v17 = vld [vmem:[#allocation20 + $0x674] sm:$0xf0] }
 0x376   :  { %v3277_v48 = vmul.f32 0.5, %v3276_v29  ;;  %6369 = vmatpush.bf16.msra.mxu0 %v9337_v28  ;;  %6344 = vmatpush.bf16.msrb.mxu2 %v8861_v2  ;;  %v9892_v28 = vld [vmem:[#allocation20 + $0xc40] sm:$0xf]  ;;  %v10562_v29 = vld [vmem:[#allocation20 + $0x384] sm:$0xf] }
 0x377   :  { %v11797_v20 = vsub.f32 %v11779_v56, %v3142_v25  ;;  %v9893_v30 = vor.u32 %v10845_v61, %v9892_v28  ;;  %v10772_v2 = vld [vmem:[#allocation20 + $0xa14] sm:$0xf]  ;;  %v10653_v16 = vld [vmem:[#allocation20 + $0x65c] sm:$0xf]  ;;  %v9530_v61 = vld [vmem:[#allocation20 + $0x984] sm:$0xf0] }
 0x378   :  { %v3058_v59 = vpop.f32.mrf.mxu1  ;;  %v3278_v52 = vsub.f32 1.5, %v3277_v48  ;;  %v9225_v48 = vor.u32 %v10674_v15, %v9222_v41  ;;  %v10758_v15 = vld [vmem:[#allocation20 + $0x9a4] sm:$0xf]  ;;  %v9141_v41 = vor.u32 %v10653_v16, %v9138_v17 }
 0x379   :  { %v3158_v43 = vmul.f32 %v11797_v20, %v11797_v20  ;;  %6322 = vmatmul.bf16.vlgmr.msrb.gmra.mxu0 %v11712_v45  ;;  %6307 = vmatpush.bf16.msra.mxu3 %v9921_v51 }
 0x37a   :  { %v3279_v21 = vmul.f32 %v10949_v50, %v3278_v52  ;;  %6370 = vmatpush.bf16.msra.mxu0 %v9309_v49  ;;  %6345 = vmatpush.bf16.msrb.mxu2 %v8833_v12  ;;  %v8529_v49 = vor.u32 %v10503_v36, %v8528_v26  ;;  %v10667_v52 = vld [vmem:[#allocation20 + $0x6cc] sm:$0xf]  ;;  %v8501_v12 = vor.u32 %v10496_v0, %v8500_v62 }
 0x37b   :  { %v3196_v56 = vrot.slane %v3158_v43, 4 }
 0x37c   :  { %v3283_v63 = vsel %vm3282_vm6, %v10949_v50, %v3279_v21 }
 0x37d   :  { %v3197_v46 = vadd.f32 %v3196_v56, %v3158_v43  ;;  %v3309_v10 = vmul.f32 %v3283_v63, %v11770_v14  ;;  %v8805_v14 = vor.u32 %v10569_v24, %v8802_v57  ;;  %v8777_v43 = vor.u32 %v10562_v29, %v8774_v8  ;;  %v9194_v56 = vld [vmem:[#allocation20 + $0x6e4] sm:$0xf0]  ;;  %6308 = vmatpush.bf16.msra.mxu3 %v9893_v30  ;;  %v10765_v63 = vld [vmem:[#allocation20 + $0x9dc] sm:$0xf]  ;;  %v8416_v29 = vld [vmem:[#allocation20 + $0xb0] sm:$0xf] }
 0x37e   :  { %6371 = vmatpush.bf16.msra.mxu0 %v9281_v35  ;;  %v9197_v1 = vor.u32 %v10667_v52, %v9194_v56 }
 0x37f   :  { %v3198_v7 = vrot.slane %v3197_v46, 2  ;;  %v3334_v23 = vmul.f32 %v3318_v60, %v3309_v10  ;;  %6346 = vmatpush.bf16.msrb.mxu2 %v8805_v14  ;;  %v9166_v60 = vld [vmem:[#allocation20 + $0x6ac] sm:$0xf0] }
 0x380   :  { %v3069_v42 = vpop.f32.mrf.mxu2  ;;  %v9169_v10 = vor.u32 %v10660_v3, %v9166_v60  ;;  %v9054_v3 = vld [vmem:[#allocation20 + $0x5cc] sm:$0xf0] }
 0x381   :  { %v3199_v4 = vadd.f32 %v3198_v7, %v3197_v46  ;;  %v3070_v50 = vadd.f32 %v3069_v42, %v3057_v5  ;;  %v3359_v59 = vadd.f32 %v3343_v34, %v3334_v23  ;;  %v9614_v42 = vld [vmem:[#allocation20 + $0xa2c] sm:$0xf0]  ;;  %v9586_v7 = vld [vmem:[#allocation20 + $0x9f4] sm:$0xf0]  ;;  %6353 = vmatpush.bf16.msrb.mxu3 %v9197_v1  ;;  %v9558_v23 = vld [vmem:[#allocation20 + $0x9bc] sm:$0xf0] }
 0x382   :  { %6372 = vmatpush.bf16.msra.mxu0 %v9253_v11  ;;  %v9617_v6 = vor.u32 %v10772_v2, %v9614_v42  ;;  %v9589_v24 = vor.u32 %v10765_v63, %v9586_v7  ;;  %v10482_v11 = vld [vmem:[#allocation20 + $0x100] sm:$0xf0]  ;;  %v9561_v26 = vor.u32 %v10758_v15, %v9558_v23  ;;  %v9502_v2 = vld [vmem:[#allocation20 + $0x94c] sm:$0xf0]  ;;  %v10468_v42 = vld [vmem:[#allocation20 + $0x90] sm:$0xf0] }
 0x383   :  { %v3200_v22 = vrot.slane %v3199_v4, 1  ;;  %v3367_v39 = vmax.f32 %v3359_v59, 0.0  ;;  %6347 = vmatpush.bf16.msrb.mxu2 %v8777_v43  ;;  %v10751_v59 = vld [vmem:[#allocation20 + $0x96c] sm:$0xf]  ;;  %v3890_v43 = vld [vmem:[#allocation22] sm:$0xff] }
 0x384   :  { %v10737_v7 = vld [vmem:[#allocation20 + $0x8fc] sm:$0xf] }
 0x385   :  { %v3201_v53 = vadd.f32 %v3200_v22, %v3199_v4  ;;  %v11813_v54 = vpack.c.bf16 %v3367_v39, %v3367_v39  ;;  %v8473_v4 = vor.u32 %v10489_v19, %v8472_v18  ;;  %6354 = vmatpush.bf16.msrb.mxu3 %v9169_v10  ;;  %v10646_v22 = vld [vmem:[#allocation20 + $0x624] sm:$0xf]  ;;  %v8360_v10 = vld [vmem:[#allocation20 + $0x40] sm:$0xf]  ;;  %v10625_v23 = vld [vmem:[#allocation20 + $0x57c] sm:$0xf] }
 0x386   :  { %v3082_v25 = vpop.f32.mrf.mxu3  ;;  %6373 = vmatpush.bf16.msra.mxu0 %v9225_v48  ;;  %v9082_v48 = vld [vmem:[#allocation20 + $0x604] sm:$0xf0] }
 0x387   :  { %v11809_v55 = vadd.f32 %v3082_v25, %v3070_v50  ;;  %v3214_v44 = vmul.f32 %v3201_v53, %v11488_v32  ;;  %6283 = vmatmul.bf16.vlgmr.msra.gmra.mxu1 %v11813_v54  ;;  %v8444_v50 = vld [vmem:[#allocation20 + $0xe8] sm:$0xf]  ;;  %v9110_v25 = vld [vmem:[#allocation20 + $0x63c] sm:$0xf0]  ;;  %v10475_v53 = vld [vmem:[#allocation20 + $0xc8] sm:$0xf0] }
 0x388   :  { %v3071_v27 = vpop.f32.mrf.mxu2  ;;  %6379 = vmatpush.bf16.msra.mxu1 %v9645_v47  ;;  %v8445_v36 = vor.u32 %v10482_v11, %v8444_v50  ;;  %v9113_v30 = vor.u32 %v10646_v22, %v9110_v25  ;;  %v8417_v47 = vor.u32 %v10475_v53, %v8416_v29  ;;  %v9026_v50 = vld [vmem:[#allocation20 + $0x594] sm:$0xf0]  ;;  %v8752_v29 = vld [vmem:[#allocation20 + $0x350] sm:$0xf]  ;;  %v10559_v53 = vld [vmem:[#allocation20 + $0x368] sm:$0xf0] }
 0x389   :  { %v3130_v37 = vrot.slane %v11809_v55, 4  ;;  %v11816_v21 = vadd.f32 1e-05, %v3214_v44  ;;  %6374 = vmatmul.bf16.vlgmr.msra.gmra.mxu0 %v11785_v40  ;;  %6355 = vmatpush.bf16.msrb.mxu3 %v9141_v41  ;;  %v9533_v44 = vor.u32 %v10751_v59, %v9530_v61  ;;  %v10835_v61 = vld [vmem:[#allocation20 + $0xc0c] sm:$0xf] }
 0x38a   :  { %6418 = vmatpush.bf16.msrb.mxu0 %v8529_v49  ;;  %v10744_v49 = vld [vmem:[#allocation20 + $0x934] sm:$0xf] }
 0x38b   :  { %v3131_v38 = vadd.f32 %v3130_v37, %v11809_v55  ;;  %10950 = vrsqrt.f32 %v11816_v21  ;;  %v10639_v37 = vld [vmem:[#allocation20 + $0x5ec] sm:$0xf]  ;;  %vm3290_vm8 = vweird.f32 %v11816_v21  ;;  %v9505_v63 = vor.u32 %v10744_v49, %v9502_v2  ;;  %v10828_v49 = vld [vmem:[#allocation20 + $0xbd4] sm:$0xf]  ;;  %v10618_v2 = vld [vmem:[#allocation20 + $0x544] sm:$0xf] }
 0x38c   :  { %6380 = vmatpush.bf16.msra.mxu1 %v9617_v6  ;;  %v9085_v62 = vor.u32 %v10639_v37, %v9082_v48 }
 0x38d   :  { %v3132_v46 = vrot.slane %v3131_v38, 2  ;;  %6356 = vmatpush.bf16.msrb.mxu3 %v9113_v30 }
 0x38e   :  { %v3084_v35 = vpop.f32.mrf.mxu3  ;;  %6419 = vmatpush.bf16.msrb.mxu0 %v8501_v12  ;;  %v3892_v12 = vperm.slane %v3890_v43, 0 }
 0x38f   :  { %v3133_v34 = vadd.f32 %v3132_v46, %v3131_v38  ;;  %v8388_v38 = vld [vmem:[#allocation20 + $0x78] sm:$0xf]  ;;  %v10632_v46 = vld [vmem:[#allocation20 + $0x5b4] sm:$0xf] }
 0x390   :  { %v11821_v57 = vpop.f32.mrf.mxu0  ;;  %6381 = vmatpush.bf16.msra.mxu1 %v9589_v24  ;;  %v11836_v35 = vld [vmem:[#allocation17] sm:$0xff]  ;;  %v9057_v16 = vor.u32 %v10632_v46, %v9054_v3  ;;  %v11842_v24 = vld [vmem:[#allocation19] sm:$0xff] }
 0x391   :  { %v3134_v5 = vrot.slane %v3133_v34, 1  ;;  %v10951_v31 = vpop.eup %10950  ;;  %v3319_v6 = vperm.slane %v11836_v35, 6  ;;  %6357 = vmatpush.bf16.msrb.mxu3 %v9085_v62  ;;  %v6220_v41 = vadd.f32 %v11821_v57, %v3892_v12  ;;  %v9424_v57 = vld [vmem:[#allocation20 + $0x890] sm:$0xf]  ;;  %v8724_v62 = vld [vmem:[#allocation20 + $0x318] sm:$0xf] }
 0x392   :  { %v3285_v58 = vmul.f32 %v10951_v31, %v11816_v21  ;;  %6420 = vmatpush.bf16.msrb.mxu0 %v8473_v4  ;;  %vm3291_vm7 = vweird.f32 %v10951_v31  ;;  %v9474_v21 = vld [vmem:[#allocation20 + $0x914] sm:$0xf0]  ;;  %v3344_v4 = vperm.slane %v11842_v24, 6  ;;  %v10720_v3 = vld [vmem:[#allocation20 + $0x870] sm:$0xf0] }
 0x393   :  { %v3135_v51 = vadd.f32 %v3134_v5, %v3133_v34  ;;  %vm11832_vm9 = vmor %vm3290_vm8, %vm3291_vm7  ;;  %v8389_v34 = vor.u32 %v10468_v42, %v8388_v38  ;;  %v10461_v5 = vld [vmem:[#allocation20 + $0x58] sm:$0xf0]  ;;  %v9838_v42 = vld [vmem:[#allocation20 + $0xbec] sm:$0xf0] }
 0x394   :  { %v3286_v27 = vmul.f32 %v10951_v31, %v3285_v58  ;;  %6382 = vmatpush.bf16.msra.mxu1 %v9561_v26  ;;  %v10730_v58 = vld [vmem:[#allocation20 + $0x8c4] sm:$0xf]  ;;  %v8332_v26 = vld [vmem:[#allocation20 + $0x8] sm:$0xf]  ;;  %v9396_v46 = vld [vmem:[#allocation20 + $0x858] sm:$0xf]  ;;  %v9841_v12 = vor.u32 %v10828_v49, %v9838_v42 }
 0x395   :  { %v3143_v14 = vmul.f32 %v3135_v51, %v11488_v32  ;;  %v9477_v51 = vor.u32 %v10737_v7, %v9474_v21  ;;  %6358 = vmatpush.bf16.msrb.mxu3 %v9057_v16  ;;  %v8696_v7 = vld [vmem:[#allocation20 + $0x2e0] sm:$0xf]  ;;  %v10545_v21 = vld [vmem:[#allocation20 + $0x2f8] sm:$0xf0]  ;;  %v9284_v49 = vld [vmem:[#allocation20 + $0x778] sm:$0xf] }
 0x396   :  { %v3287_v8 = vmul.f32 0.5, %v3286_v27  ;;  %6421 = vmatpush.bf16.msrb.mxu0 %v8445_v36  ;;  %v9029_v36 = vor.u32 %v10625_v23, %v9026_v50  ;;  %v9782_v50 = vld [vmem:[#allocation20 + $0xb7c] sm:$0xf0]  ;;  %v3345_v42 = vperm.slane %v11842_v24, 7 }
 0x397   :  { %v11826_v28 = vsub.f32 %v11809_v55, %v3143_v14  ;;  %6335 = vmatmul.bf16.vlgmr.msrb.gmra.mxu1 %v11732_v9  ;;  %v9446_v14 = vld [vmem:[#allocation20 + $0x8dc] sm:$0xf0] }
 0x398   :  { %v3288_v55 = vsub.f32 1.5, %v3287_v8  ;;  %v6221_v56 = vpop.f32.mrf.mxu0  ;;  %6383 = vmatpush.bf16.msra.mxu1 %v9533_v44  ;;  %v9866_v8 = vld [vmem:[#allocation20 + $0xc24] sm:$0xf0]  ;;  %v9449_v48 = vor.u32 %v10730_v58, %v9446_v14 }
 0x399   :  { %v3159_v39 = vmul.f32 %v11826_v28, %v11826_v28  ;;  %6359 = vmatpush.bf16.msrb.mxu3 %v9029_v36  ;;  %v9869_v56 = vor.u32 %v10835_v61, %v9866_v8  ;;  %v10531_v36 = vld [vmem:[#allocation20 + $0x288] sm:$0xf0]  ;;  %v9312_v61 = vld [vmem:[#allocation20 + $0x7b0] sm:$0xf]  ;;  %v10800_v8 = vld [vmem:[#allocation20 + $0xaf4] sm:$0xf] }
 0x39a   :  { %v3289_v0 = vmul.f32 %v10951_v31, %v3288_v55  ;;  %6422 = vmatpush.bf16.msrb.mxu0 %v8417_v47  ;;  %v8753_v47 = vor.u32 %v10559_v53, %v8752_v29  ;;  %v8998_v55 = vld [vmem:[#allocation20 + $0x55c] sm:$0xf0]  ;;  %v10699_v29 = vld [vmem:[#allocation20 + $0x7c8] sm:$0xf0] }
 0x39b   :  { %v3202_v52 = vrot.slane %v3159_v39, 4  ;;  %v6232_v25 = vpop.f32.mrf.mxu1  ;;  %v9001_v60 = vor.u32 %v10618_v2, %v8998_v55  ;;  %v10692_v2 = vld [vmem:[#allocation20 + $0x790] sm:$0xf0] }
 0x39c   :  { %v3293_v18 = vsel %vm11832_vm9, %v10951_v31, %v3289_v0  ;;  %6384 = vmatpush.bf16.msra.mxu1 %v9505_v63  ;;  %v8361_v31 = vor.u32 %v10461_v5, %v8360_v10  ;;  %v11846_v27 = vadd.f32 %v6232_v25, %v6220_v41  ;;  %v10552_v0 = vld [vmem:[#allocation20 + $0x330] sm:$0xf0]  ;;  %v9397_v63 = vor.u32 %v10720_v3, %v9396_v46  ;;  %v10713_v10 = vld [vmem:[#allocation20 + $0x838] sm:$0xf0]  ;;  %v10706_v41 = vld [vmem:[#allocation20 + $0x800] sm:$0xf0] }
 0x39d   :  { %v3203_v1 = vadd.f32 %v3202_v52, %v3159_v39  ;;  %v3310_v17 = vmul.f32 %v3293_v18, %v11797_v20  ;;  %v10454_v20 = vld [vmem:[#allocation20 + $0x20] sm:$0xf0]  ;;  %v10727_v39 = vld [vmem:[#allocation20 + $0x8a8] sm:$0xf0]  ;;  %v9810_v18 = vld [vmem:[#allocation20 + $0xbb4] sm:$0xf0]  ;;  %6360 = vmatpush.bf16.msrb.mxu3 %v9001_v60  ;;  %v8697_v5 = vor.u32 %v10545_v21, %v8696_v7  ;;  %v9285_v3 = vor.u32 %v10692_v2, %v9284_v49 }
 0x39e   :  { %6423 = vmatpush.bf16.msrb.mxu0 %v8389_v34  ;;  %v8333_v43 = vor.u32 %v10454_v20, %v8332_v26  ;;  %v9425_v38 = vor.u32 %v10727_v39, %v9424_v57  ;;  %v10821_v34 = vld [vmem:[#allocation20 + $0xb9c] sm:$0xf]  ;;  %v10807_v26 = vld [vmem:[#allocation20 + $0xb2c] sm:$0xf]  ;;  %v8640_v20 = vld [vmem:[#allocation20 + $0x270] sm:$0xf] }
 0x39f   :  { %v3204_v19 = vrot.slane %v3203_v1, 2  ;;  %v3335_v11 = vmul.f32 %v3319_v6, %v3310_v17  ;;  %v8725_v6 = vor.u32 %v10552_v0, %v8724_v62  ;;  %v9813_v16 = vor.u32 %v10821_v34, %v9810_v18  ;;  %v10793_v60 = vld [vmem:[#allocation20 + $0xabc] sm:$0xf]  ;;  %v10786_v34 = vld [vmem:[#allocation20 + $0xa84] sm:$0xf] }
 0x3a0   :  { %6385 = vmatpush.bf16.msra.mxu1 %v9477_v51  ;;  %v10538_v51 = vld [vmem:[#allocation20 + $0x2c0] sm:$0xf0]  ;;  %v9670_v7 = vld [vmem:[#allocation20 + $0xa9c] sm:$0xf0]  ;;  %v8556_v21 = vld [vmem:[#allocation20 + $0x1c8] sm:$0xf] }
 0x3a1   :  { %v3205_v15 = vadd.f32 %v3204_v19, %v3203_v1  ;;  %v3360_v59 = vadd.f32 %v3344_v4, %v3335_v11  ;;  %v9368_v19 = vld [vmem:[#allocation20 + $0x820] sm:$0xf]  ;;  %v10814_v4 = vld [vmem:[#allocation20 + $0xb64] sm:$0xf]  ;;  %v9340_v11 = vld [vmem:[#allocation20 + $0x7e8] sm:$0xf] }
 0x3a2   :  { %6424 = vmatpush.bf16.msrb.mxu0 %v8361_v31  ;;  %v9369_v17 = vor.u32 %v10713_v10, %v9368_v19  ;;  %v9341_v25 = vor.u32 %v10706_v41, %v9340_v11  ;;  %v10510_v10 = vld [vmem:[#allocation20 + $0x1e0] sm:$0xf0]  ;;  %v10783_v11 = vld [vmem:[#allocation20 + $0xa68] sm:$0xf0]  ;;  %v10034_v49 = vld [vmem:[#allocation20 + $0xd74] sm:$0xf0] }
 0x3a3   :  { %v3206_v22 = vrot.slane %v3205_v15, 1  ;;  %v3368_v37 = vmax.f32 %v3360_v59, 0.0  ;;  %v9754_v59 = vld [vmem:[#allocation20 + $0xb44] sm:$0xf0] }
 0x3a4   :  { %6386 = vmatpush.bf16.msra.mxu1 %v9449_v48  ;;  %v9757_v39 = vor.u32 %v10807_v26, %v9754_v59  ;;  %v8612_v48 = vld [vmem:[#allocation20 + $0x238] sm:$0xf]  ;;  %v10884_v59 = vld [vmem:[#allocation20 + $0xd94] sm:$0xf] }
 0x3a5   :  { %v3207_v30 = vadd.f32 %v3206_v22, %v3205_v15  ;;  %v11849_v52 = vpack.c.bf16 %v3368_v37, %v3368_v37  ;;  %v8668_v15 = vld [vmem:[#allocation20 + $0x2a8] sm:$0xf]  ;;  %v9785_v22 = vor.u32 %v10814_v4, %v9782_v50  ;;  %v9313_v37 = vor.u32 %v10699_v29, %v9312_v61  ;;  %v9648_v50 = vld [vmem:[#allocation20 + $0xa50] sm:$0xf] }
 0x3a6   :  { %6425 = vmatpush.bf16.msrb.mxu0 %v8333_v43  ;;  %v8669_v58 = vor.u32 %v10538_v51, %v8668_v15  ;;  %v10524_v43 = vld [vmem:[#allocation20 + $0x250] sm:$0xf0]  ;;  %v10891_v15 = vld [vmem:[#allocation20 + $0xdcc] sm:$0xf]  ;;  %v8976_v51 = vld [vmem:[#allocation20 + $0x510] sm:$0xf]  ;;  %v9649_v29 = vor.u32 %v10783_v11, %v9648_v50 }
 0x3a7   :  { %v3215_v44 = vmul.f32 %v3207_v30, %v11488_v32  ;;  %6296 = vmatmul.bf16.vlgmr.msra.gmra.mxu2 %v11849_v52  ;;  %v6234_v32 = vpop.f32.mrf.mxu1  ;;  %6387 = vmatmul.bf16.vlgmr.msra.gmra.mxu1 %v11813_v54  ;;  %v8641_v30 = vor.u32 %v10531_v36, %v8640_v20  ;;  %v8613_v62 = vor.u32 %v10524_v43, %v8612_v48  ;;  %v10062_v61 = vld [vmem:[#allocation20 + $0xdac] sm:$0xf0]  ;;  %v8502_v48 = vld [vmem:[#allocation20 + $0x174] sm:$0xf0] }
 0x3a8   :  { %6431 = vmatpush.bf16.msrb.mxu1 %v8753_v47  ;;  %6392 = vmatpush.bf16.msra.mxu2 %v9869_v56  ;;  %v9726_v47 = vld [vmem:[#allocation20 + $0xb0c] sm:$0xf0]  ;;  %v8584_v32 = vld [vmem:[#allocation20 + $0x200] sm:$0xf]  ;;  %v10065_v43 = vor.u32 %v10884_v59, %v10062_v61  ;;  %v9508_v59 = vld [vmem:[#allocation20 + $0x938] sm:$0xf] }
 0x3a9   :  { %v11851_v1 = vadd.f32 1e-05, %v3215_v44  ;;  %6426 = vmatmul.bf16.vlgmr.msrb.gmra.mxu0 %v11712_v45  ;;  %v9729_v46 = vor.u32 %v10800_v8, %v9726_v47  ;;  %v10608_v8 = vld [vmem:[#allocation20 + $0x4f0] sm:$0xf0]  ;;  %v10877_v47 = vld [vmem:[#allocation20 + $0xd5c] sm:$0xf] }
 0x3aa   :  { %6470 = vmatpush.bf16.msra.mxu0 %v9425_v38  ;;  %v3320_v38 = vperm.slane %v11836_v35, 7  ;;  %v8418_v50 = vld [vmem:[#allocation20 + $0xcc] sm:$0xf0] }
 0x3ab   :  { %10952 = vrsqrt.f32 %v11851_v1  ;;  %vm3300_vm11 = vweird.f32 %v11851_v1 }
 0x3ac   :  { %6432 = vmatpush.bf16.msrb.mxu1 %v8725_v6  ;;  %6393 = vmatpush.bf16.msra.mxu2 %v9841_v12  ;;  %v9698_v6 = vld [vmem:[#allocation20 + $0xad4] sm:$0xf0]  ;;  %v9256_v12 = vld [vmem:[#allocation20 + $0x740] sm:$0xf] }
 0x3ad   :  { %v9701_v18 = vor.u32 %v10793_v60, %v9698_v6  ;;  %v10037_v60 = vor.u32 %v10877_v47, %v10034_v49  ;;  %v10573_v47 = vld [vmem:[#allocation20 + $0x3d8] sm:$0xf0]  ;;  %v9480_v49 = vld [vmem:[#allocation20 + $0x900] sm:$0xf] }
 0x3ae   :  { %6471 = vmatpush.bf16.msra.mxu0 %v9397_v63  ;;  %v10685_v63 = vld [vmem:[#allocation20 + $0x758] sm:$0xf0] }
 0x3af   :  { %v9257_v19 = vor.u32 %v10685_v63, %v9256_v12  ;;  %v8892_v63 = vld [vmem:[#allocation20 + $0x468] sm:$0xf] }
 0x3b0   :  { %6433 = vmatpush.bf16.msrb.mxu1 %v8697_v5  ;;  %6394 = vmatpush.bf16.msra.mxu2 %v9813_v16  ;;  %v9228_v5 = vld [vmem:[#allocation20 + $0x708] sm:$0xf]  ;;  %v10678_v16 = vld [vmem:[#allocation20 + $0x720] sm:$0xf0] }
 0x3b1   :  { %v10953_v23 = vpop.eup %10952 }
 0x3b2   :  { %v3295_v31 = vmul.f32 %v10953_v23, %v11851_v1  ;;  %6472 = vmatpush.bf16.msra.mxu0 %v9369_v17  ;;  %vm3301_vm10 = vweird.f32 %v10953_v23  ;;  %v10517_v1 = vld [vmem:[#allocation20 + $0x218] sm:$0xf0] }
 0x3b3   :  { %vm3302_vm12 = vmor %vm3300_vm11, %vm3301_vm10  ;;  %v8585_v24 = vor.u32 %v10517_v1, %v8584_v32  ;;  %v10870_v1 = vld [vmem:[#allocation20 + $0xd24] sm:$0xf] }
 0x3b4   :  { %v3296_v14 = vmul.f32 %v10953_v23, %v3295_v31  ;;  %6434 = vmatpush.bf16.msrb.mxu1 %v8669_v58  ;;  %6395 = vmatpush.bf16.msra.mxu2 %v9785_v22  ;;  %v8557_v31 = vor.u32 %v10510_v10, %v8556_v21  ;;  %v10500_v58 = vld [vmem:[#allocation20 + $0x194] sm:$0xf]  ;;  %v9673_v22 = vor.u32 %v10786_v34, %v9670_v7  ;;  %v10762_v34 = vld [vmem:[#allocation20 + $0x9c0] sm:$0xf0]  ;;  %v10479_v7 = vld [vmem:[#allocation20 + $0xec] sm:$0xf] }
 0x3b5   :  { %v8446_v21 = vld [vmem:[#allocation20 + $0x104] sm:$0xf0]  ;;  %v10863_v10 = vld [vmem:[#allocation20 + $0xcec] sm:$0xf] }
 0x3b6   :  { %v3297_v53 = vmul.f32 0.5, %v3296_v14  ;;  %6473 = vmatpush.bf16.msra.mxu0 %v9341_v25  ;;  %v6245_v44 = vpop.f32.mrf.mxu2  ;;  %v8530_v14 = vld [vmem:[#allocation20 + $0x1ac] sm:$0xf0]  ;;  %v9229_v25 = vor.u32 %v10678_v16, %v9228_v5  ;;  %v9978_v5 = vld [vmem:[#allocation20 + $0xd04] sm:$0xf0] }
 0x3b7   :  { %v11860_v56 = vadd.f32 %v6245_v44, %v11846_v27  ;;  %6348 = vmatmul.bf16.vlgmr.msrb.gmra.mxu2 %v11746_v33  ;;  %v9981_v11 = vor.u32 %v10863_v10, %v9978_v5  ;;  %v8754_v10 = vld [vmem:[#allocation20 + $0x36c] sm:$0xf0]  ;;  %v10724_v5 = vld [vmem:[#allocation20 + $0x894] sm:$0xf] }
 0x3b8   :  { %v3298_v57 = vsub.f32 1.5, %v3297_v53  ;;  %6435 = vmatpush.bf16.msrb.mxu1 %v8641_v30  ;;  %6396 = vmatpush.bf16.msra.mxu2 %v9757_v39  ;;  %v8533_v53 = vor.u32 %v10500_v58, %v8530_v14  ;;  %v8948_v30 = vld [vmem:[#allocation20 + $0x4d8] sm:$0xf]  ;;  %v10776_v39 = vld [vmem:[#allocation20 + $0xa30] sm:$0xf0] }
 0x3b9   :  { %v8949_v44 = vor.u32 %v10608_v8, %v8948_v30  ;;  %v9950_v58 = vld [vmem:[#allocation20 + $0xccc] sm:$0xf0]  ;;  %v8390_v30 = vld [vmem:[#allocation20 + $0x94] sm:$0xf0] }
 0x3ba   :  { %v3299_v55 = vmul.f32 %v10953_v23, %v3298_v57  ;;  %6474 = vmatpush.bf16.msra.mxu0 %v9313_v37  ;;  %v9620_v57 = vld [vmem:[#allocation20 + $0xa18] sm:$0xf]  ;;  %v10493_v37 = vld [vmem:[#allocation20 + $0x15c] sm:$0xf] }
 0x3bb   :  { %v9621_v2 = vor.u32 %v10776_v39, %v9620_v57  ;;  %v10849_v39 = vld [vmem:[#allocation20 + $0xc7c] sm:$0xf] }
 0x3bc   :  { %v3303_v0 = vsel %vm3302_vm12, %v10953_v23, %v3299_v55  ;;  %6436 = vmatpush.bf16.msrb.mxu1 %v8613_v62  ;;  %6397 = vmatpush.bf16.msra.mxu2 %v9729_v46  ;;  %v10615_v23 = vld [vmem:[#allocation20 + $0x528] sm:$0xf0]  ;;  %v8505_v55 = vor.u32 %v10493_v37, %v8502_v48  ;;  %v9592_v62 = vld [vmem:[#allocation20 + $0x9e0] sm:$0xf]  ;;  %v10486_v46 = vld [vmem:[#allocation20 + $0x124] sm:$0xf] }
 0x3bd   :  { %v3311_v27 = vmul.f32 %v3303_v0, %v11826_v28  ;;  %v10090_v28 = vld [vmem:[#allocation20 + $0xde4] sm:$0xf0]  ;;  %v8977_v36 = vor.u32 %v10615_v23, %v8976_v51  ;;  %v10769_v0 = vld [vmem:[#allocation20 + $0x9f8] sm:$0xf0]  ;;  %v10755_v51 = vld [vmem:[#allocation20 + $0x988] sm:$0xf0] }
 0x3be   :  { %6475 = vmatpush.bf16.msra.mxu0 %v9285_v3  ;;  %v6247_v4 = vpop.f32.mrf.mxu2  ;;  %v10093_v20 = vor.u32 %v10891_v15, %v10090_v28  ;;  %v8474_v3 = vld [vmem:[#allocation20 + $0x13c] sm:$0xf0]  ;;  %v9593_v6 = vor.u32 %v10769_v0, %v9592_v62  ;;  %v10587_v15 = vld [vmem:[#allocation20 + $0x448] sm:$0xf0]  ;;  %v9536_v28 = vld [vmem:[#allocation20 + $0x970] sm:$0xf] }
 0x3bf   :  { %v3336_v35 = vmul.f32 %v3320_v38, %v3311_v27  ;;  %v8920_v38 = vld [vmem:[#allocation20 + $0x4a0] sm:$0xf]  ;;  %v8477_v12 = vor.u32 %v10486_v46, %v8474_v3  ;;  %v8864_v4 = vld [vmem:[#allocation20 + $0x430] sm:$0xf]  ;;  %v10472_v23 = vld [vmem:[#allocation20 + $0xb4] sm:$0xf] }
 0x3c0   :  { %6437 = vmatpush.bf16.msrb.mxu1 %v8585_v24  ;;  %6398 = vmatpush.bf16.msra.mxu2 %v9701_v18  ;;  %v10006_v27 = vld [vmem:[#allocation20 + $0xd3c] sm:$0xf0]  ;;  %v9564_v24 = vld [vmem:[#allocation20 + $0x9a8] sm:$0xf]  ;;  %v9922_v37 = vld [vmem:[#allocation20 + $0xc94] sm:$0xf0] }
 0x3c1   :  { %v3361_v17 = vadd.f32 %v3345_v42, %v3336_v35  ;;  %v10601_v42 = vld [vmem:[#allocation20 + $0x4b8] sm:$0xf0]  ;;  %v10594_v35 = vld [vmem:[#allocation20 + $0x480] sm:$0xf0]  ;;  %v10009_v18 = vor.u32 %v10870_v1, %v10006_v27  ;;  %v9565_v16 = vor.u32 %v10762_v34, %v9564_v24  ;;  %v9894_v0 = vld [vmem:[#allocation20 + $0xc5c] sm:$0xf0] }
 0x3c2   :  { %6476 = vmatpush.bf16.msra.mxu0 %v9257_v19  ;;  %v8921_v32 = vor.u32 %v10601_v42, %v8920_v38  ;;  %v8893_v19 = vor.u32 %v10594_v35, %v8892_v63  ;;  %v10842_v38 = vld [vmem:[#allocation20 + $0xc44] sm:$0xf]  ;;  %v9925_v42 = vor.u32 %v10849_v39, %v9922_v37  ;;  %v8780_v46 = vld [vmem:[#allocation20 + $0x388] sm:$0xf]  ;;  %v9200_v35 = vld [vmem:[#allocation20 + $0x6d0] sm:$0xf] }
 0x3c3   :  { %v3369_v41 = vmax.f32 %v3361_v17, 0.0  ;;  %v8449_v17 = vor.u32 %v10479_v7, %v8446_v21  ;;  %v10566_v3 = vld [vmem:[#allocation20 + $0x3a0] sm:$0xf0]  ;;  %v9452_v27 = vld [vmem:[#allocation20 + $0x8c8] sm:$0xf] }
 0x3c4   :  { %6438 = vmatpush.bf16.msrb.mxu1 %v8557_v31  ;;  %6399 = vmatpush.bf16.msra.mxu2 %v9673_v22  ;;  %v10856_v31 = vld [vmem:[#allocation20 + $0xcb4] sm:$0xf]  ;;  %v9537_v22 = vor.u32 %v10755_v51, %v9536_v28  ;;  %v8334_v63 = vld [vmem:[#allocation20 + $0x24] sm:$0xf0]  ;;  %v10671_v24 = vld [vmem:[#allocation20 + $0x6e8] sm:$0xf0] }
 0x3c5   :  { %v11866_v26 = vpack.c.bf16 %v3369_v41, %v3369_v41  ;;  %v8865_v41 = vor.u32 %v10587_v15, %v8864_v4  ;;  %v9953_v8 = vor.u32 %v10856_v31, %v9950_v58  ;;  %v9872_v34 = vld [vmem:[#allocation20 + $0xc10] sm:$0xf]  ;;  %v10839_v7 = vld [vmem:[#allocation20 + $0xc28] sm:$0xf0]  ;;  %v10556_v21 = vld [vmem:[#allocation20 + $0x354] sm:$0xf]  ;;  %v9201_v15 = vor.u32 %v10671_v24, %v9200_v35 }
 0x3c6   :  { %6477 = vmatpush.bf16.msra.mxu0 %v9229_v25  ;;  %v8421_v25 = vor.u32 %v10472_v23, %v8418_v50  ;;  %v9873_v28 = vor.u32 %v10839_v7, %v9872_v34  ;;  %v9172_v51 = vld [vmem:[#allocation20 + $0x698] sm:$0xf]  ;;  %v10664_v23 = vld [vmem:[#allocation20 + $0x6b0] sm:$0xf0]  ;;  %v8757_v50 = vor.u32 %v10556_v21, %v8754_v10  ;;  %v10549_v58 = vld [vmem:[#allocation20 + $0x31c] sm:$0xf] }
 0x3c7   :  { %6309 = vmatmul.bf16.vlgmr.msra.gmra.mxu3 %v11866_v26  ;;  %6439 = vmatmul.bf16.vlgmr.msrb.gmra.mxu1 %v11732_v9  ;;  %v10832_v31 = vld [vmem:[#allocation20 + $0xbf0] sm:$0xf0]  ;;  %v10542_v39 = vld [vmem:[#allocation20 + $0x2e4] sm:$0xf]  ;;  %v8698_v37 = vld [vmem:[#allocation20 + $0x2fc] sm:$0xf0] }
 0x3c8   :  { %6405 = vmatpush.bf16.msra.mxu3 %v10093_v20  ;;  %6444 = vmatpush.bf16.msrb.mxu2 %v8977_v36  ;;  %v8836_v20 = vld [vmem:[#allocation20 + $0x3f8] sm:$0xf]  ;;  %v10580_v36 = vld [vmem:[#allocation20 + $0x410] sm:$0xf0]  ;;  %v9760_v24 = vld [vmem:[#allocation20 + $0xb30] sm:$0xf] }
 0x3c9   :  { %6483 = vmatpush.bf16.msra.mxu1 %v9649_v29  ;;  %6478 = vmatmul.bf16.vlgmr.msra.gmra.mxu0 %v11785_v40  ;;  %v10748_v29 = vld [vmem:[#allocation20 + $0x950] sm:$0xf0]  ;;  %v8837_v57 = vor.u32 %v10580_v36, %v8836_v20  ;;  %v9173_v20 = vor.u32 %v10664_v23, %v9172_v51  ;;  %v10811_v34 = vld [vmem:[#allocation20 + $0xb48] sm:$0xf0]  ;;  %v8642_v21 = vld [vmem:[#allocation20 + $0x28c] sm:$0xf0] }
 0x3ca   :  { %6522 = vmatpush.bf16.msrb.mxu0 %v8533_v53  ;;  %6400 = vmatmul.bf16.vlgmr.msra.gmra.mxu2 %v11849_v52  ;;  %v10465_v53 = vld [vmem:[#allocation20 + $0x7c] sm:$0xf]  ;;  %v9509_v48 = vor.u32 %v10748_v29, %v9508_v59  ;;  %v9144_v59 = vld [vmem:[#allocation20 + $0x660] sm:$0xf]  ;;  %v10528_v7 = vld [vmem:[#allocation20 + $0x274] sm:$0xf]  ;;  %v9761_v10 = vor.u32 %v10811_v34, %v9760_v24 }
 0x3cb   :  { %v6258_v14 = vpop.f32.mrf.mxu3  ;;  %v10657_v29 = vld [vmem:[#allocation20 + $0x678] sm:$0xf0] }
 0x3cc   :  { %6406 = vmatpush.bf16.msra.mxu3 %v10065_v43  ;;  %6445 = vmatpush.bf16.msrb.mxu2 %v8949_v44  ;;  %v11873_v61 = vadd.f32 %v6258_v14, %v11860_v56  ;;  %v8393_v43 = vor.u32 %v10465_v53, %v8390_v30  ;;  %v8808_v44 = vld [vmem:[#allocation20 + $0x3c0] sm:$0xf]  ;;  %v10741_v56 = vld [vmem:[#allocation20 + $0x918] sm:$0xf0]  ;;  %v8726_v14 = vld [vmem:[#allocation20 + $0x334] sm:$0xf0] }
 0x3cd   :  { %6484 = vmatpush.bf16.msra.mxu1 %v9621_v2  ;;  %v10458_v2 = vld [vmem:[#allocation20 + $0x44] sm:$0xf]  ;;  %v8809_v62 = vor.u32 %v10573_v47, %v8808_v44  ;;  %v8729_v53 = vor.u32 %v10549_v58, %v8726_v14  ;;  %v9145_v44 = vor.u32 %v10657_v29, %v9144_v59  ;;  %v10521_v51 = vld [vmem:[#allocation20 + $0x23c] sm:$0xf]  ;;  %v9032_v14 = vld [vmem:[#allocation20 + $0x580] sm:$0xf] }
 0x3ce   :  { %6523 = vmatpush.bf16.msrb.mxu0 %v8505_v55  ;;  %v8362_v55 = vld [vmem:[#allocation20 + $0x5c] sm:$0xf0]  ;;  %v10797_v59 = vld [vmem:[#allocation20 + $0xad8] sm:$0xf0]  ;;  %v10514_v29 = vld [vmem:[#allocation20 + $0x204] sm:$0xf] }
 0x3cf   :  { %v8365_v1 = vor.u32 %v10458_v2, %v8362_v55  ;;  %v8701_v2 = vor.u32 %v10542_v39, %v8698_v37 }
 0x3d0   :  { %6407 = vmatpush.bf16.msra.mxu3 %v10037_v60  ;;  %6446 = vmatpush.bf16.msrb.mxu2 %v8921_v32  ;;  %v9481_v32 = vor.u32 %v10741_v56, %v9480_v49  ;;  %v9116_v49 = vld [vmem:[#allocation20 + $0x628] sm:$0xf]  ;;  %v10650_v56 = vld [vmem:[#allocation20 + $0x640] sm:$0xf0] }
 0x3d1   :  { %6485 = vmatpush.bf16.msra.mxu1 %v9593_v6  ;;  %v10734_v6 = vld [vmem:[#allocation20 + $0x8e0] sm:$0xf0] }
 0x3d2   :  { %6524 = vmatpush.bf16.msrb.mxu0 %v8477_v12  ;;  %v10451_v12 = vld [vmem:[#allocation20 + $0xc] sm:$0xf] }
 0x3d3   :  { %v6260_v60 = vpop.f32.mrf.mxu3  ;;  %v8337_v4 = vor.u32 %v10451_v12, %v8334_v63  ;;  %v10643_v12 = vld [vmem:[#allocation20 + $0x608] sm:$0xf0] }
 0x3d4   :  { %6408 = vmatpush.bf16.msra.mxu3 %v10009_v18  ;;  %6447 = vmatpush.bf16.msrb.mxu2 %v8893_v19  ;;  %v9897_v18 = vor.u32 %v10842_v38, %v9894_v0  ;;  %v8781_v19 = vor.u32 %v10566_v3, %v8780_v46  ;;  %v9788_v38 = vld [vmem:[#allocation20 + $0xb68] sm:$0xf]  ;;  %v10703_v3 = vld [vmem:[#allocation20 + $0x7ec] sm:$0xf] }
 0x3d5   :  { %6486 = vmatpush.bf16.msra.mxu1 %v9565_v16  ;;  %v9426_v16 = vld [vmem:[#allocation20 + $0x8ac] sm:$0xf0]  ;;  %v8670_v46 = vld [vmem:[#allocation20 + $0x2c4] sm:$0xf0] }
 0x3d6   :  { %6525 = vmatpush.bf16.msrb.mxu0 %v8449_v17  ;;  %v9453_v17 = vor.u32 %v10734_v6, %v9452_v27  ;;  %v9342_v60 = vld [vmem:[#allocation20 + $0x804] sm:$0xf0]  ;;  %v9088_v6 = vld [vmem:[#allocation20 + $0x5f0] sm:$0xf] }
 0x3d7   :  { %6361 = vmatmul.bf16.vlgmr.msrb.gmra.mxu3 %v11764_v13  ;;  %v9345_v35 = vor.u32 %v10703_v3, %v9342_v60  ;;  %v8978_v3 = vld [vmem:[#allocation20 + $0x52c] sm:$0xf0]  ;;  %v10780_v60 = vld [vmem:[#allocation20 + $0xa54] sm:$0xf] }
 0x3d8   :  { %6409 = vmatpush.bf16.msra.mxu3 %v9981_v11  ;;  %6448 = vmatpush.bf16.msrb.mxu2 %v8865_v41  ;;  %v9429_v11 = vor.u32 %v10724_v5, %v9426_v16  ;;  %v9844_v41 = vld [vmem:[#allocation20 + $0xbd8] sm:$0xf]  ;;  %v10636_v16 = vld [vmem:[#allocation20 + $0x5d0] sm:$0xf0] }
 0x3d9   :  { %6487 = vmatpush.bf16.msra.mxu1 %v9537_v22  ;;  %v10717_v22 = vld [vmem:[#allocation20 + $0x85c] sm:$0xf]  ;;  %v9845_v36 = vor.u32 %v10832_v31, %v9844_v41  ;;  %v9060_v5 = vld [vmem:[#allocation20 + $0x5b8] sm:$0xf] }
 0x3da   :  { %6526 = vmatpush.bf16.msrb.mxu0 %v8421_v25  ;;  %v9398_v25 = vld [vmem:[#allocation20 + $0x874] sm:$0xf0]  ;;  %v9061_v31 = vor.u32 %v10636_v16, %v9060_v5  ;;  %v10773_v16 = vld [vmem:[#allocation20 + $0xa1c] sm:$0xf] }
 0x3db   :  { %v9401_v30 = vor.u32 %v10717_v22, %v9398_v25  ;;  %v9286_v41 = vld [vmem:[#allocation20 + $0x794] sm:$0xf0]  ;;  %v10629_v22 = vld [vmem:[#allocation20 + $0x598] sm:$0xf0] }
 0x3dc   :  { %6410 = vmatpush.bf16.msra.mxu3 %v9953_v8  ;;  %6449 = vmatpush.bf16.msrb.mxu2 %v8837_v57  ;;  %v9816_v8 = vld [vmem:[#allocation20 + $0xba0] sm:$0xf]  ;;  %v10825_v57 = vld [vmem:[#allocation20 + $0xbb8] sm:$0xf0]  ;;  %v9033_v39 = vor.u32 %v10629_v22, %v9032_v14  ;;  %v8950_v5 = vld [vmem:[#allocation20 + $0x4f4] sm:$0xf0] }
 0x3dd   :  { %6488 = vmatpush.bf16.msra.mxu1 %v9509_v48  ;;  %v10710_v48 = vld [vmem:[#allocation20 + $0x824] sm:$0xf]  ;;  %v9817_v47 = vor.u32 %v10825_v57, %v9816_v8  ;;  %v9258_v8 = vld [vmem:[#allocation20 + $0x75c] sm:$0xf0]  ;;  %v9004_v57 = vld [vmem:[#allocation20 + $0x548] sm:$0xf] }
 0x3de   :  { %6527 = vmatpush.bf16.msrb.mxu0 %v8393_v43  ;;  %v9370_v43 = vld [vmem:[#allocation20 + $0x83c] sm:$0xf0]  ;;  %v10766_v22 = vld [vmem:[#allocation20 + $0x9e4] sm:$0xf] }
 0x3df   :  { %v9373_v55 = vor.u32 %v10710_v48, %v9370_v43  ;;  %v10622_v48 = vld [vmem:[#allocation20 + $0x560] sm:$0xf0]  ;;  %v9676_v43 = vld [vmem:[#allocation20 + $0xa88] sm:$0xf]  ;;  %v8922_v14 = vld [vmem:[#allocation20 + $0x4bc] sm:$0xf0] }
 0x3e0   :  { %6411 = vmatpush.bf16.msra.mxu3 %v9925_v42  ;;  %6450 = vmatpush.bf16.msrb.mxu2 %v8809_v62  ;;  %v10818_v42 = vld [vmem:[#allocation20 + $0xb80] sm:$0xf0]  ;;  %v10535_v62 = vld [vmem:[#allocation20 + $0x2ac] sm:$0xf] }
 0x3e1   :  { %6489 = vmatpush.bf16.msra.mxu1 %v9481_v32  ;;  %v9789_v27 = vor.u32 %v10818_v42, %v9788_v38  ;;  %v8673_v63 = vor.u32 %v10535_v62, %v8670_v46  ;;  %v9230_v42 = vld [vmem:[#allocation20 + $0x724] sm:$0xf0]  ;;  %v10096_v62 = vld [vmem:[#allocation20 + $0xdd0] sm:$0xf]  ;;  %v10612_v46 = vld [vmem:[#allocation20 + $0x514] sm:$0xf] }
 0x3e2   :  { %6528 = vmatpush.bf16.msrb.mxu0 %v8365_v1  ;;  %v9117_v1 = vor.u32 %v10650_v56, %v9116_v49  ;;  %v10507_v56 = vld [vmem:[#allocation20 + $0x1cc] sm:$0xf] }
 0x3e4   :  { %6412 = vmatpush.bf16.msra.mxu3 %v9897_v18  ;;  %6451 = vmatpush.bf16.msrb.mxu2 %v8781_v19  ;;  %v10696_v18 = vld [vmem:[#allocation20 + $0x7b4] sm:$0xf]  ;;  %v9314_v19 = vld [vmem:[#allocation20 + $0x7cc] sm:$0xf0] }
 0x3e5   :  { %6490 = vmatpush.bf16.msra.mxu1 %v9453_v17  ;;  %v8645_v17 = vor.u32 %v10528_v7, %v8642_v21  ;;  %v8981_v7 = vor.u32 %v10612_v46, %v8978_v3  ;;  %v10068_v21 = vld [vmem:[#allocation20 + $0xd98] sm:$0xf]  ;;  %v10584_v3 = vld [vmem:[#allocation20 + $0x434] sm:$0xf] }
 0x3e6   :  { %6529 = vmatpush.bf16.msrb.mxu0 %v8337_v4  ;;  %v6271_v0 = vpop.f32.mrf.mxu0  ;;  %v9317_v4 = vor.u32 %v10696_v18, %v9314_v19  ;;  %v10888_v18 = vld [vmem:[#allocation20 + $0xdb0] sm:$0xf0] }
 0x3e7   :  { %6452 = vmatmul.bf16.vlgmr.msrb.gmra.mxu2 %v11746_v33  ;;  %6413 = vmatmul.bf16.vlgmr.msra.gmra.mxu3 %v11866_v26  ;;  %v11881_v32 = vadd.f32 %v6271_v0, %v11873_v61  ;;  %v9089_v61 = vor.u32 %v10643_v12, %v9088_v6  ;;  %v10895_v0 = vld [vmem:[#allocation20 + $0xde8] sm:$0xf0]  ;;  %v9650_v6 = vld [vmem:[#allocation20 + $0xa6c] sm:$0xf0]  ;;  %v8536_v12 = vld [vmem:[#allocation20 + $0x198] sm:$0xf] }
 0x3e8   :  { %6457 = vmatpush.bf16.msrb.mxu3 %v9201_v15  ;;  %6496 = vmatpush.bf16.msra.mxu2 %v9873_v28  ;;  %v9732_v15 = vld [vmem:[#allocation20 + $0xaf8] sm:$0xf]  ;;  %v10804_v28 = vld [vmem:[#allocation20 + $0xb10] sm:$0xf0]  ;;  %v10097_v34 = vor.u32 %v10895_v0, %v10096_v62  ;;  %v9653_v19 = vor.u32 %v10780_v60, %v9650_v6  ;;  %v10867_v62 = vld [vmem:[#allocation20 + $0xd08] sm:$0xf0] }
 0x3e9   :  { %6535 = vmatpush.bf16.msrb.mxu1 %v8757_v50  ;;  %6530 = vmatmul.bf16.vlgmr.msrb.gmra.mxu0 %v11712_v45  ;;  %v8614_v50 = vld [vmem:[#allocation20 + $0x254] sm:$0xf0]  ;;  %v9733_v58 = vor.u32 %v10804_v28, %v9732_v15  ;;  %v10497_v15 = vld [vmem:[#allocation20 + $0x178] sm:$0xf0]  ;;  %v8866_v60 = vld [vmem:[#allocation20 + $0x44c] sm:$0xf0] }
 0x3ea   :  { %6574 = vmatpush.bf16.msra.mxu0 %v9429_v11  ;;  %6491 = vmatmul.bf16.vlgmr.msra.gmra.mxu1 %v11813_v54  ;;  %v10689_v11 = vld [vmem:[#allocation20 + $0x77c] sm:$0xf]  ;;  %v8617_v25 = vor.u32 %v10521_v51, %v8614_v50  ;;  %v10069_v51 = vor.u32 %v10888_v18, %v10068_v21  ;;  %v10040_v50 = vld [vmem:[#allocation20 + $0xd60] sm:$0xf]  ;;  %v8424_v6 = vld [vmem:[#allocation20 + $0xb8] sm:$0xf] }
 0x3ec   :  { %6458 = vmatpush.bf16.msrb.mxu3 %v9173_v20  ;;  %6497 = vmatpush.bf16.msra.mxu2 %v9845_v36  ;;  %v9289_v20 = vor.u32 %v10689_v11, %v9286_v41  ;;  %v9704_v36 = vld [vmem:[#allocation20 + $0xac0] sm:$0xf]  ;;  %v10881_v11 = vld [vmem:[#allocation20 + $0xd78] sm:$0xf0] }
 0x3ed   :  { %6536 = vmatpush.bf16.msrb.mxu1 %v8729_v53  ;;  %v8586_v53 = vld [vmem:[#allocation20 + $0x21c] sm:$0xf0]  ;;  %v9705_v37 = vor.u32 %v10797_v59, %v9704_v36  ;;  %v10490_v36 = vld [vmem:[#allocation20 + $0x140] sm:$0xf0]  ;;  %v10041_v59 = vor.u32 %v10881_v11, %v10040_v50  ;;  %v10853_v11 = vld [vmem:[#allocation20 + $0xc98] sm:$0xf0] }
 0x3ee   :  { %6575 = vmatpush.bf16.msra.mxu0 %v9401_v30  ;;  %v6273_v23 = vpop.f32.mrf.mxu0  ;;  %v10682_v30 = vld [vmem:[#allocation20 + $0x744] sm:$0xf]  ;;  %v9928_v50 = vld [vmem:[#allocation20 + $0xc80] sm:$0xf] }
 0x3ef   :  { %v9261_v49 = vor.u32 %v10682_v30, %v9258_v8  ;;  %v10874_v30 = vld [vmem:[#allocation20 + $0xd40] sm:$0xf0] }
 0x3f0   :  { %6459 = vmatpush.bf16.msrb.mxu3 %v9145_v44  ;;  %6498 = vmatpush.bf16.msra.mxu2 %v9817_v47  ;;  %v10790_v44 = vld [vmem:[#allocation20 + $0xaa0] sm:$0xf0]  ;;  %v8589_v47 = vor.u32 %v10514_v29, %v8586_v53  ;;  %v10012_v53 = vld [vmem:[#allocation20 + $0xd28] sm:$0xf] }
 0x3f1   :  { %6537 = vmatpush.bf16.msrb.mxu1 %v8701_v2  ;;  %v8558_v2 = vld [vmem:[#allocation20 + $0x1e4] sm:$0xf0] }
 0x3f2   :  { %6576 = vmatpush.bf16.msra.mxu0 %v9373_v55  ;;  %v10675_v55 = vld [vmem:[#allocation20 + $0x70c] sm:$0xf] }
 0x3f3   :  { %v9233_v24 = vor.u32 %v10675_v55, %v9230_v42  ;;  %v9984_v42 = vld [vmem:[#allocation20 + $0xcf0] sm:$0xf] }
 0x3f4   :  { %6460 = vmatpush.bf16.msrb.mxu3 %v9117_v1  ;;  %6499 = vmatpush.bf16.msra.mxu2 %v9789_v27  ;;  %v9005_v1 = vor.u32 %v10622_v48, %v9004_v57  ;;  %v9677_v27 = vor.u32 %v10790_v44, %v9676_v43  ;;  %v8894_v48 = vld [vmem:[#allocation20 + $0x484] sm:$0xf0]  ;;  %v10759_v43 = vld [vmem:[#allocation20 + $0x9ac] sm:$0xf] }
 0x3f5   :  { %6538 = vmatpush.bf16.msrb.mxu1 %v8673_v63  ;;  %v10504_v63 = vld [vmem:[#allocation20 + $0x1b0] sm:$0xf0]  ;;  %v9566_v44 = vld [vmem:[#allocation20 + $0x9c4] sm:$0xf0] }
 0x3f6   :  { %6577 = vmatpush.bf16.msra.mxu0 %v9345_v35  ;;  %v11883_v38 = vpop.f32.mrf.mxu0  ;;  %v8561_v35 = vor.u32 %v10507_v56, %v8558_v2  ;;  %v10013_v2 = vor.u32 %v10874_v30, %v10012_v53  ;;  %v9569_v0 = vor.u32 %v10759_v43, %v9566_v44  ;;  %v9929_v53 = vor.u32 %v10853_v11, %v9928_v50  ;;  %v10654_v50 = vld [vmem:[#allocation20 + $0x664] sm:$0xf]  ;;  %v9146_v11 = vld [vmem:[#allocation20 + $0x67c] sm:$0xf0] }
 0x3f8   :  { %6461 = vmatpush.bf16.msrb.mxu3 %v9089_v61  ;;  %6500 = vmatpush.bf16.msra.mxu2 %v9761_v10  ;;  %v8537_v61 = vor.u32 %v10504_v63, %v8536_v12  ;;  %v10605_v10 = vld [vmem:[#allocation20 + $0x4dc] sm:$0xf]  ;;  %v10476_v12 = vld [vmem:[#allocation20 + $0xd0] sm:$0xf0]  ;;  %v9985_v63 = vor.u32 %v10867_v62, %v9984_v42  ;;  %v10455_v42 = vld [vmem:[#allocation20 + $0x28] sm:$0xf0] }
 0x3f9   :  { %6539 = vmatpush.bf16.msrb.mxu1 %v8645_v17  ;;  %v9622_v17 = vld [vmem:[#allocation20 + $0xa34] sm:$0xf0]  ;;  %v8953_v23 = vor.u32 %v10605_v10, %v8950_v5  ;;  %v8425_v21 = vor.u32 %v10476_v12, %v8424_v6  ;;  %v10745_v10 = vld [vmem:[#allocation20 + $0x93c] sm:$0xf]  ;;  %v10668_v62 = vld [vmem:[#allocation20 + $0x6d4] sm:$0xf] }
 0x3fa   :  { %6578 = vmatpush.bf16.msra.mxu0 %v9317_v4  ;;  %v8508_v4 = vld [vmem:[#allocation20 + $0x160] sm:$0xf]  ;;  %v9625_v41 = vor.u32 %v10773_v16, %v9622_v17  ;;  %v9510_v5 = vld [vmem:[#allocation20 + $0x954] sm:$0xf0]  ;;  %v10469_v17 = vld [vmem:[#allocation20 + $0x98] sm:$0xf0] }
 0x3fb   :  { %v8396_v16 = vld [vmem:[#allocation20 + $0x80] sm:$0xf]  ;;  %v9432_v6 = vld [vmem:[#allocation20 + $0x898] sm:$0xf]  ;;  %v10728_v12 = vld [vmem:[#allocation20 + $0x8b0] sm:$0xf0] }
 0x3fc   :  { %6462 = vmatpush.bf16.msrb.mxu3 %v9061_v31  ;;  %6501 = vmatpush.bf16.msra.mxu2 %v9733_v58  ;;  %v8509_v31 = vor.u32 %v10497_v15, %v8508_v4  ;;  %v10598_v58 = vld [vmem:[#allocation20 + $0x4a4] sm:$0xf] }
 0x3fd   :  { %6540 = vmatpush.bf16.msrb.mxu1 %v8617_v25  ;;  %v9594_v25 = vld [vmem:[#allocation20 + $0x9fc] sm:$0xf0]  ;;  %v8925_v29 = vor.u32 %v10598_v58, %v8922_v14  ;;  %v10570_v58 = vld [vmem:[#allocation20 + $0x3c4] sm:$0xf] }
 0x3fe   :  { %6579 = vmatpush.bf16.msra.mxu0 %v9289_v20  ;;  %v6325_v28 = vpop.f32.mrf.mxu0  ;;  %v8480_v20 = vld [vmem:[#allocation20 + $0x128] sm:$0xf]  ;;  %v9597_v8 = vor.u32 %v10766_v22, %v9594_v25  ;;  %v11893_v4 = vld [vmem:[#allocation22] sm:$0xff] }
 0x3ff   :  { %v8481_v57 = vor.u32 %v10490_v36, %v8480_v20  ;;  %v3893_v15 = vperm.slane %v11893_v4, 1  ;;  %v8810_v14 = vld [vmem:[#allocation20 + $0x3dc] sm:$0xf0]  ;;  %v10738_v22 = vld [vmem:[#allocation20 + $0x904] sm:$0xf] }
 0x400   :  { %6463 = vmatpush.bf16.msrb.mxu3 %v9033_v39  ;;  %6502 = vmatpush.bf16.msra.mxu2 %v9705_v37  ;;  %v10591_v37 = vld [vmem:[#allocation20 + $0x46c] sm:$0xf]  ;;  %v9482_v25 = vld [vmem:[#allocation20 + $0x91c] sm:$0xf0]  ;;  %v8368_v20 = vld [vmem:[#allocation20 + $0x48] sm:$0xf]  ;;  %v8813_v30 = vor.u32 %v10570_v58, %v8810_v14 }
 0x401   :  { %6541 = vmatpush.bf16.msrb.mxu1 %v8589_v47  ;;  %v8452_v47 = vld [vmem:[#allocation20 + $0xf0] sm:$0xf]  ;;  %v8897_v55 = vor.u32 %v10591_v37, %v8894_v48  ;;  %v10462_v36 = vld [vmem:[#allocation20 + $0x60] sm:$0xf0]  ;;  %v8782_v37 = vld [vmem:[#allocation20 + $0x3a4] sm:$0xf0]  ;;  %v9485_v48 = vor.u32 %v10738_v22, %v9482_v25 }
 0x402   :  { %6580 = vmatpush.bf16.msra.mxu0 %v9261_v49  ;;  %v10483_v49 = vld [vmem:[#allocation20 + $0x108] sm:$0xf0]  ;;  %v8369_v43 = vor.u32 %v10462_v36, %v8368_v20  ;;  %v10822_v58 = vld [vmem:[#allocation20 + $0xba4] sm:$0xf]  ;;  %v9818_v14 = vld [vmem:[#allocation20 + $0xbbc] sm:$0xf0] }
 0x403   :  { %v8453_v46 = vor.u32 %v10483_v49, %v8452_v47  ;;  %v10731_v47 = vld [vmem:[#allocation20 + $0x8cc] sm:$0xf]  ;;  %v9454_v49 = vld [vmem:[#allocation20 + $0x8e4] sm:$0xf0]  ;;  %v10546_v25 = vld [vmem:[#allocation20 + $0x300] sm:$0xf0] }
 0x404   :  { %6464 = vmatpush.bf16.msrb.mxu3 %v9005_v1  ;;  %6503 = vmatpush.bf16.msra.mxu2 %v9677_v27  ;;  %v11889_v39 = vpop.f32.mrf.mxu1  ;;  %v10752_v1 = vld [vmem:[#allocation20 + $0x974] sm:$0xf]  ;;  %v9538_v27 = vld [vmem:[#allocation20 + $0x98c] sm:$0xf0]  ;;  %v8704_v22 = vld [vmem:[#allocation20 + $0x2e8] sm:$0xf] }
 0x405   :  { %6542 = vmatpush.bf16.msrb.mxu1 %v8561_v35  ;;  %v8869_v35 = vor.u32 %v10584_v3, %v8866_v60  ;;  %v8760_v3 = vld [vmem:[#allocation20 + $0x358] sm:$0xf]  ;;  %v9376_v20 = vld [vmem:[#allocation20 + $0x828] sm:$0xf]  ;;  %v10714_v36 = vld [vmem:[#allocation20 + $0x840] sm:$0xf0] }
 0x406   :  { %6581 = vmatpush.bf16.msra.mxu0 %v9233_v24  ;;  %v11891_v56 = vpop.f32.mrf.mxu0  ;;  %v9956_v24 = vld [vmem:[#allocation20 + $0xcb8] sm:$0xf] }
 0x407   :  { %6465 = vmatmul.bf16.vlgmr.msrb.gmra.mxu3 %v11764_v13  ;;  %6504 = vmatmul.bf16.vlgmr.msra.gmra.mxu2 %v11849_v52 }
 0x408   :  { %6509 = vmatpush.bf16.msra.mxu3 %v10097_v34  ;;  %6548 = vmatpush.bf16.msrb.mxu2 %v8981_v7  ;;  %v10860_v34 = vld [vmem:[#allocation20 + $0xcd0] sm:$0xf0]  ;;  %v9541_v7 = vor.u32 %v10752_v1, %v9538_v27 }
 0x409   :  { %6587 = vmatpush.bf16.msra.mxu1 %v9653_v19  ;;  %6582 = vmatmul.bf16.vlgmr.msra.gmra.mxu0 %v11785_v40  ;;  %v10577_v19 = vld [vmem:[#allocation20 + $0x3fc] sm:$0xf]  ;;  %v10560_v27 = vld [vmem:[#allocation20 + $0x370] sm:$0xf0] }
 0x40a   :  { %6626 = vmatpush.bf16.msrb.mxu0 %v8537_v61  ;;  %6543 = vmatmul.bf16.vlgmr.msrb.gmra.mxu1 %v11732_v9  ;;  %v8838_v61 = vld [vmem:[#allocation20 + $0x414] sm:$0xf0] }
 0x40c   :  { %6510 = vmatpush.bf16.msra.mxu3 %v10069_v51  ;;  %6549 = vmatpush.bf16.msrb.mxu2 %v8953_v23  ;;  %v6286_v18 = vpop.f32.mrf.mxu1  ;;  %v9957_v51 = vor.u32 %v10860_v34, %v9956_v24  ;;  %v8841_v23 = vor.u32 %v10577_v19, %v8838_v61  ;;  %v9433_v19 = vor.u32 %v10728_v12, %v9432_v6  ;;  %v10829_v61 = vld [vmem:[#allocation20 + $0xbdc] sm:$0xf]  ;;  %v8648_v6 = vld [vmem:[#allocation20 + $0x278] sm:$0xf]  ;;  %v10532_v12 = vld [vmem:[#allocation20 + $0x290] sm:$0xf0] }
 0x40d   :  { %6588 = vmatpush.bf16.msra.mxu1 %v9625_v41  ;;  %v9513_v41 = vor.u32 %v10745_v10, %v9510_v5  ;;  %v8761_v18 = vor.u32 %v10560_v27, %v8760_v3  ;;  %v9846_v10 = vld [vmem:[#allocation20 + $0xbf4] sm:$0xf0]  ;;  %v8732_v5 = vld [vmem:[#allocation20 + $0x320] sm:$0xf]  ;;  %v9762_v27 = vld [vmem:[#allocation20 + $0xb4c] sm:$0xf0] }
 0x40e   :  { %6627 = vmatpush.bf16.msrb.mxu0 %v8509_v31  ;;  %v6377_v28 = vpop.f32.mrf.mxu0  ;;  %v8397_v31 = vor.u32 %v10469_v17, %v8396_v16  ;;  %v10553_v16 = vld [vmem:[#allocation20 + $0x338] sm:$0xf0]  ;;  %v9404_v17 = vld [vmem:[#allocation20 + $0x860] sm:$0xf] }
 0x410   :  { %6511 = vmatpush.bf16.msra.mxu3 %v10041_v59  ;;  %6550 = vmatpush.bf16.msrb.mxu2 %v8925_v29  ;;  %v9900_v59 = vld [vmem:[#allocation20 + $0xc48] sm:$0xf]  ;;  %v6324_v29 = vadd.f32 %v11883_v38, %v3893_v15  ;;  %v9202_v38 = vld [vmem:[#allocation20 + $0x6ec] sm:$0xf0]  ;;  %v10721_v15 = vld [vmem:[#allocation20 + $0x878] sm:$0xf0] }
 0x411   :  { %6589 = vmatpush.bf16.msra.mxu1 %v9597_v8  ;;  %v10846_v8 = vld [vmem:[#allocation20 + $0xc60] sm:$0xf0]  ;;  %v9205_v24 = vor.u32 %v10668_v62, %v9202_v38 }
 0x412   :  { %6628 = vmatpush.bf16.msrb.mxu0 %v8481_v57  ;;  %v10563_v57 = vld [vmem:[#allocation20 + $0x38c] sm:$0xf]  ;;  %v9901_v60 = vor.u32 %v10846_v8, %v9900_v59  ;;  %v9149_v59 = vor.u32 %v10654_v50, %v9146_v11  ;;  %v8705_v8 = vor.u32 %v10546_v25, %v8704_v22  ;;  %v10794_v22 = vld [vmem:[#allocation20 + $0xac4] sm:$0xf]  ;;  %v9706_v25 = vld [vmem:[#allocation20 + $0xadc] sm:$0xf0] }
 0x413   :  { %v8785_v1 = vor.u32 %v10563_v57, %v8782_v37  ;;  %v9377_v57 = vor.u32 %v10714_v36, %v9376_v20  ;;  %v10815_v37 = vld [vmem:[#allocation20 + $0xb6c] sm:$0xf]  ;;  %v8592_v20 = vld [vmem:[#allocation20 + $0x208] sm:$0xf]  ;;  %v10518_v36 = vld [vmem:[#allocation20 + $0x220] sm:$0xf0] }
 0x414   :  { %6512 = vmatpush.bf16.msra.mxu3 %v10013_v2  ;;  %6551 = vmatpush.bf16.msrb.mxu2 %v8897_v55  ;;  %v6336_v44 = vpop.f32.mrf.mxu1  ;;  %v8340_v2 = vld [vmem:[#allocation20 + $0x10] sm:$0xf] }
 0x415   :  { %6590 = vmatpush.bf16.msra.mxu1 %v9569_v0  ;;  %v11897_v55 = vadd.f32 %v6336_v44, %v6324_v29  ;;  %v10836_v0 = vld [vmem:[#allocation20 + $0xc14] sm:$0xf]  ;;  %v9821_v29 = vor.u32 %v10822_v58, %v9818_v14  ;;  %v10539_v44 = vld [vmem:[#allocation20 + $0x2c8] sm:$0xf0] }
 0x416   :  { %6629 = vmatpush.bf16.msrb.mxu0 %v8453_v46  ;;  %v9874_v46 = vld [vmem:[#allocation20 + $0xc2c] sm:$0xf0] }
 0x417   :  { %v9877_v34 = vor.u32 %v10836_v0, %v9874_v46  ;;  %v10640_v0 = vld [vmem:[#allocation20 + $0x5f4] sm:$0xf]  ;;  %v9090_v46 = vld [vmem:[#allocation20 + $0x60c] sm:$0xf0] }
 0x418   :  { %6513 = vmatpush.bf16.msra.mxu3 %v9985_v63  ;;  %6552 = vmatpush.bf16.msrb.mxu2 %v8869_v35  ;;  %v9457_v63 = vor.u32 %v10731_v47, %v9454_v49  ;;  %v8341_v35 = vor.u32 %v10455_v42, %v8340_v2  ;;  %v9348_v47 = vld [vmem:[#allocation20 + $0x7f0] sm:$0xf]  ;;  %v10707_v49 = vld [vmem:[#allocation20 + $0x808] sm:$0xf0] }
 0x419   :  { %6591 = vmatpush.bf16.msra.mxu1 %v9541_v7  ;;  %v10661_v7 = vld [vmem:[#allocation20 + $0x69c] sm:$0xf] }
 0x41a   :  { %6630 = vmatpush.bf16.msrb.mxu0 %v8425_v21  ;;  %v9174_v21 = vld [vmem:[#allocation20 + $0x6b4] sm:$0xf0] }
 0x41c   :  { %6514 = vmatpush.bf16.msra.mxu3 %v9957_v51  ;;  %6553 = vmatpush.bf16.msrb.mxu2 %v8841_v23  ;;  %v6338_v28 = vpop.f32.mrf.mxu1  ;;  %v9177_v51 = vor.u32 %v10661_v7, %v9174_v21  ;;  %v9849_v23 = vor.u32 %v10829_v61, %v9846_v10  ;;  %v10633_v21 = vld [vmem:[#allocation20 + $0x5bc] sm:$0xf] }
 0x41d   :  { %6592 = vmatpush.bf16.msra.mxu1 %v9513_v41  ;;  %v8733_v41 = vor.u32 %v10553_v16, %v8732_v5  ;;  %v10801_v10 = vld [vmem:[#allocation20 + $0xafc] sm:$0xf]  ;;  %v9734_v5 = vld [vmem:[#allocation20 + $0xb14] sm:$0xf0]  ;;  %v8620_v16 = vld [vmem:[#allocation20 + $0x240] sm:$0xf] }
 0x41e   :  { %6631 = vmatpush.bf16.msrb.mxu0 %v8397_v31  ;;  %v9405_v31 = vor.u32 %v10721_v15, %v9404_v17  ;;  %v10525_v17 = vld [vmem:[#allocation20 + $0x258] sm:$0xf0]  ;;  %v9292_v15 = vld [vmem:[#allocation20 + $0x780] sm:$0xf]  ;;  %v9737_v11 = vor.u32 %v10801_v10, %v9734_v5  ;;  %v10070_v10 = vld [vmem:[#allocation20 + $0xdb4] sm:$0xf0] }
 0x41f   :  { %v10693_v28 = vld [vmem:[#allocation20 + $0x798] sm:$0xf0]  ;;  %v8621_v58 = vor.u32 %v10525_v17, %v8620_v16 }
 0x420   :  { %6515 = vmatpush.bf16.msra.mxu3 %v9929_v53  ;;  %6554 = vmatpush.bf16.msrb.mxu2 %v8813_v30  ;;  %v10647_v53 = vld [vmem:[#allocation20 + $0x62c] sm:$0xf]  ;;  %v9118_v30 = vld [vmem:[#allocation20 + $0x644] sm:$0xf0]  ;;  %v9293_v14 = vor.u32 %v10693_v28, %v9292_v15  ;;  %v8956_v15 = vld [vmem:[#allocation20 + $0x4e0] sm:$0xf] }
 0x421   :  { %6593 = vmatpush.bf16.msra.mxu1 %v9485_v48  ;;  %v9790_v48 = vld [vmem:[#allocation20 + $0xb84] sm:$0xf0]  ;;  %v9121_v62 = vor.u32 %v10647_v53, %v9118_v30  ;;  %v10619_v30 = vld [vmem:[#allocation20 + $0x54c] sm:$0xf]  ;;  %v10609_v28 = vld [vmem:[#allocation20 + $0x4f8] sm:$0xf0] }
 0x422   :  { %6632 = vmatpush.bf16.msrb.mxu0 %v8369_v43  ;;  %v8676_v43 = vld [vmem:[#allocation20 + $0x2b0] sm:$0xf]  ;;  %v9793_v38 = vor.u32 %v10815_v37, %v9790_v48  ;;  %v9006_v37 = vld [vmem:[#allocation20 + $0x564] sm:$0xf0]  ;;  %v10787_v48 = vld [vmem:[#allocation20 + $0xa8c] sm:$0xf] }
 0x423   :  { %v8677_v3 = vor.u32 %v10539_v44, %v8676_v43  ;;  %v9678_v43 = vld [vmem:[#allocation20 + $0xaa4] sm:$0xf0]  ;;  %v8593_v44 = vor.u32 %v10518_v36, %v8592_v20 }
 0x424   :  { %6516 = vmatpush.bf16.msra.mxu3 %v9901_v60  ;;  %6555 = vmatpush.bf16.msrb.mxu2 %v8785_v1  ;;  %v11905_v42 = vpop.f32.mrf.mxu1  ;;  %v9349_v60 = vor.u32 %v10707_v49, %v9348_v47  ;;  %v10808_v1 = vld [vmem:[#allocation20 + $0xb34] sm:$0xf]  ;;  %v8564_v49 = vld [vmem:[#allocation20 + $0x1d0] sm:$0xf]  ;;  %v8928_v36 = vld [vmem:[#allocation20 + $0x4a8] sm:$0xf] }
 0x425   :  { %6594 = vmatpush.bf16.msra.mxu1 %v9457_v63  ;;  %v9320_v63 = vld [vmem:[#allocation20 + $0x7b8] sm:$0xf]  ;;  %v9765_v7 = vor.u32 %v10808_v1, %v9762_v27  ;;  %v10616_v1 = vld [vmem:[#allocation20 + $0x530] sm:$0xf0] }
 0x426   :  { %6633 = vmatpush.bf16.msrb.mxu0 %v8341_v35  ;;  %v11903_v2 = vpop.f32.mrf.mxu0  ;;  %v10700_v35 = vld [vmem:[#allocation20 + $0x7d0] sm:$0xf0]  ;;  %v9656_v27 = vld [vmem:[#allocation20 + $0xa58] sm:$0xf] }
 0x427   :  { %6517 = vmatmul.bf16.vlgmr.msra.gmra.mxu3 %v11866_v26  ;;  %6556 = vmatmul.bf16.vlgmr.msrb.gmra.mxu2 %v11746_v33  ;;  %v9321_v61 = vor.u32 %v10700_v35, %v9320_v63  ;;  %v10784_v63 = vld [vmem:[#allocation20 + $0xa70] sm:$0xf0]  ;;  %v10501_v35 = vld [vmem:[#allocation20 + $0x19c] sm:$0xf] }
 0x428   :  { %6561 = vmatpush.bf16.msrb.mxu3 %v9205_v24  ;;  %6600 = vmatpush.bf16.msra.mxu2 %v9877_v34  ;;  %v9093_v34 = vor.u32 %v10640_v0, %v9090_v46  ;;  %v10679_v0 = vld [vmem:[#allocation20 + $0x728] sm:$0xf0]  ;;  %v10892_v46 = vld [vmem:[#allocation20 + $0xdd4] sm:$0xf]  ;;  %v9657_v5 = vor.u32 %v10784_v63, %v9656_v27 }
 0x429   :  { %6639 = vmatpush.bf16.msrb.mxu1 %v8761_v18  ;;  %6634 = vmatmul.bf16.vlgmr.msrb.gmra.mxu0 %v11712_v45  ;;  %v9062_v18 = vld [vmem:[#allocation20 + $0x5d4] sm:$0xf0] }
 0x42a   :  { %6678 = vmatpush.bf16.msra.mxu0 %v9433_v19  ;;  %6595 = vmatmul.bf16.vlgmr.msra.gmra.mxu1 %v11813_v54  ;;  %v11907_v24 = vpop.f32.mrf.mxu2  ;;  %v8649_v19 = vor.u32 %v10532_v12, %v8648_v6  ;;  %v9065_v50 = vor.u32 %v10633_v21, %v9062_v18  ;;  %v9009_v6 = vor.u32 %v10619_v30, %v9006_v37  ;;  %v10487_v30 = vld [vmem:[#allocation20 + $0x12c] sm:$0xf] }
 0x42b   :  { %v9681_v12 = vor.u32 %v10787_v48, %v9678_v43  ;;  %v10871_v37 = vld [vmem:[#allocation20 + $0xd2c] sm:$0xf]  ;;  %v10014_v48 = vld [vmem:[#allocation20 + $0xd44] sm:$0xf0] }
 0x42c   :  { %6562 = vmatpush.bf16.msrb.mxu3 %v9177_v51  ;;  %6601 = vmatpush.bf16.msra.mxu2 %v9849_v23  ;;  %v6390_v23 = vpop.f32.mrf.mxu1 }
 0x42d   :  { %6640 = vmatpush.bf16.msrb.mxu1 %v8733_v41  ;;  %v10626_v41 = vld [vmem:[#allocation20 + $0x584] sm:$0xf]  ;;  %v10777_v23 = vld [vmem:[#allocation20 + $0xa38] sm:$0xf0] }
 0x42e   :  { %6679 = vmatpush.bf16.msra.mxu0 %v9405_v31  ;;  %v6429_v51 = vpop.f32.mrf.mxu0  ;;  %v9034_v31 = vld [vmem:[#allocation20 + $0x59c] sm:$0xf0] }
 0x42f   :  { %v9628_v51 = vld [vmem:[#allocation20 + $0xa20] sm:$0xf] }
 0x430   :  { %6563 = vmatpush.bf16.msrb.mxu3 %v9149_v59  ;;  %6602 = vmatpush.bf16.msra.mxu2 %v9821_v29  ;;  %v9264_v59 = vld [vmem:[#allocation20 + $0x748] sm:$0xf]  ;;  %v10686_v29 = vld [vmem:[#allocation20 + $0x760] sm:$0xf0] }
 0x431   :  { %6641 = vmatpush.bf16.msrb.mxu1 %v8705_v8  ;;  %v9037_v8 = vor.u32 %v10626_v41, %v9034_v31  ;;  %v9265_v47 = vor.u32 %v10686_v29, %v9264_v59  ;;  %v3894_v41 = vperm.slane %v11893_v4, 2  ;;  %v10602_v59 = vld [vmem:[#allocation20 + $0x4c0] sm:$0xf0]  ;;  %v9600_v29 = vld [vmem:[#allocation20 + $0x9e8] sm:$0xf] }
 0x432   :  { %6680 = vmatpush.bf16.msra.mxu0 %v9377_v57  ;;  %v6299_v53 = vpop.f32.mrf.mxu2  ;;  %v9709_v57 = vor.u32 %v10794_v22, %v9706_v25  ;;  %v10042_v22 = vld [vmem:[#allocation20 + $0xd7c] sm:$0xf0]  ;;  %v9629_v25 = vor.u32 %v10777_v23, %v9628_v51  ;;  %v8482_v4 = vld [vmem:[#allocation20 + $0x144] sm:$0xf0]  ;;  %v10857_v51 = vld [vmem:[#allocation20 + $0xcbc] sm:$0xf] }
 0x433   :  { %v10770_v53 = vld [vmem:[#allocation20 + $0xa00] sm:$0xf0]  ;;  %v9958_v23 = vld [vmem:[#allocation20 + $0xcd4] sm:$0xf0] }
 0x434   :  { %6564 = vmatpush.bf16.msrb.mxu3 %v9121_v62  ;;  %6603 = vmatpush.bf16.msra.mxu2 %v9793_v38  ;;  %v10511_v62 = vld [vmem:[#allocation20 + $0x1e8] sm:$0xf0]  ;;  %v9236_v38 = vld [vmem:[#allocation20 + $0x710] sm:$0xf]  ;;  %v9601_v43 = vor.u32 %v10770_v53, %v9600_v29  ;;  %v9961_v29 = vor.u32 %v10857_v51, %v9958_v23 }
 0x435   :  { %6642 = vmatpush.bf16.msrb.mxu1 %v8677_v3  ;;  %v10098_v3 = vld [vmem:[#allocation20 + $0xdec] sm:$0xf0]  ;;  %v9237_v21 = vor.u32 %v10679_v0, %v9236_v38  ;;  %v6285_v0 = vadd.f32 %v11889_v39, %v11881_v32 }
 0x436   :  { %6681 = vmatpush.bf16.msra.mxu0 %v9349_v60  ;;  %v8984_v60 = vld [vmem:[#allocation20 + $0x518] sm:$0xf]  ;;  %v10101_v18 = vor.u32 %v10892_v46, %v10098_v3  ;;  %v9572_v38 = vld [vmem:[#allocation20 + $0x9b0] sm:$0xf]  ;;  %v6428_v46 = vadd.f32 %v11903_v2, %v3894_v41  ;;  %v10763_v3 = vld [vmem:[#allocation20 + $0x9c8] sm:$0xf0] }
 0x437   :  { %v6298_v63 = vadd.f32 %v11907_v24, %v6285_v0  ;;  %v9573_v32 = vor.u32 %v10763_v3, %v9572_v38  ;;  %v8844_v41 = vld [vmem:[#allocation20 + $0x400] sm:$0xf]  ;;  %v8370_v38 = vld [vmem:[#allocation20 + $0x64] sm:$0xf0]  ;;  %v10843_v0 = vld [vmem:[#allocation20 + $0xc4c] sm:$0xf] }
 0x438   :  { %6565 = vmatpush.bf16.msrb.mxu3 %v9093_v34  ;;  %6604 = vmatpush.bf16.msra.mxu2 %v9765_v7  ;;  %v8538_v34 = vld [vmem:[#allocation20 + $0x1b4] sm:$0xf0]  ;;  %v8565_v7 = vor.u32 %v10511_v62, %v8564_v49  ;;  %v8900_v49 = vld [vmem:[#allocation20 + $0x470] sm:$0xf]  ;;  %v10595_v62 = vld [vmem:[#allocation20 + $0x488] sm:$0xf0] }
 0x439   :  { %6643 = vmatpush.bf16.msrb.mxu1 %v8649_v19  ;;  %v8985_v19 = vor.u32 %v10616_v1, %v8984_v60  ;;  %v8541_v16 = vor.u32 %v10501_v35, %v8538_v34  ;;  %v10480_v60 = vld [vmem:[#allocation20 + $0xf4] sm:$0xf]  ;;  %v8454_v1 = vld [vmem:[#allocation20 + $0x10c] sm:$0xf0]  ;;  %v8901_v34 = vor.u32 %v10595_v62, %v8900_v49  ;;  %v10742_v49 = vld [vmem:[#allocation20 + $0x920] sm:$0xf0] }
 0x43a   :  { %6682 = vmatpush.bf16.msra.mxu0 %v9321_v61  ;;  %v10885_v61 = vld [vmem:[#allocation20 + $0xd9c] sm:$0xf]  ;;  %v11909_v17 = vpop.f32.mrf.mxu2  ;;  %v8457_v39 = vor.u32 %v10480_v60, %v8454_v1  ;;  %v10459_v62 = vld [vmem:[#allocation20 + $0x4c] sm:$0xf]  ;;  %v9902_v60 = vld [vmem:[#allocation20 + $0xc64] sm:$0xf0] }
 0x43b   :  { %v10073_v31 = vor.u32 %v10885_v61, %v10070_v10  ;;  %v9544_v61 = vld [vmem:[#allocation20 + $0x978] sm:$0xf]  ;;  %v8788_v1 = vld [vmem:[#allocation20 + $0x390] sm:$0xf] }
 0x43c   :  { %6566 = vmatpush.bf16.msrb.mxu3 %v9065_v50  ;;  %6605 = vmatpush.bf16.msra.mxu2 %v9737_v11  ;;  %v10494_v50 = vld [vmem:[#allocation20 + $0x164] sm:$0xf]  ;;  %v8510_v11 = vld [vmem:[#allocation20 + $0x17c] sm:$0xf0] }
 0x43d   :  { %6644 = vmatpush.bf16.msrb.mxu1 %v8621_v58  ;;  %v8957_v58 = vor.u32 %v10609_v28, %v8956_v15  ;;  %v8513_v20 = vor.u32 %v10494_v50, %v8510_v11  ;;  %v8426_v15 = vld [vmem:[#allocation20 + $0xd4] sm:$0xf0] }
 0x43e   :  { %6683 = vmatpush.bf16.msra.mxu0 %v9293_v14  ;;  %v10878_v14 = vld [vmem:[#allocation20 + $0xd64] sm:$0xf] }
 0x440   :  { %6567 = vmatpush.bf16.msrb.mxu3 %v9037_v8  ;;  %6606 = vmatpush.bf16.msra.mxu2 %v9709_v57  ;;  %v10045_v8 = vor.u32 %v10878_v14, %v10042_v22  ;;  %v8929_v57 = vor.u32 %v10602_v59, %v8928_v36  ;;  %v10749_v22 = vld [vmem:[#allocation20 + $0x958] sm:$0xf0] }
 0x441   :  { %6645 = vmatpush.bf16.msrb.mxu1 %v8593_v44  ;;  %v8485_v44 = vor.u32 %v10487_v30, %v8482_v4  ;;  %v10850_v30 = vld [vmem:[#allocation20 + $0xc84] sm:$0xf]  ;;  %v9930_v4 = vld [vmem:[#allocation20 + $0xc9c] sm:$0xf0] }
 0x442   :  { %6684 = vmatpush.bf16.msra.mxu0 %v9265_v47  ;;  %v6351_v47 = vpop.f32.mrf.mxu2 }
 0x444   :  { %6568 = vmatpush.bf16.msrb.mxu3 %v9009_v6  ;;  %6607 = vmatpush.bf16.msra.mxu2 %v9681_v12  ;;  %v6440_v27 = vpop.f32.mrf.mxu1  ;;  %v10017_v12 = vor.u32 %v10871_v37, %v10014_v48  ;;  %v8816_v48 = vld [vmem:[#allocation20 + $0x3c8] sm:$0xf] }
 0x445   :  { %6646 = vmatpush.bf16.msrb.mxu1 %v8565_v7  ;;  %v11922_v35 = vadd.f32 %v6440_v27, %v6428_v46  ;;  %v10864_v7 = vld [vmem:[#allocation20 + $0xcf4] sm:$0xf]  ;;  %v9933_v46 = vor.u32 %v10850_v30, %v9930_v4  ;;  %v10567_v27 = vld [vmem:[#allocation20 + $0x3a8] sm:$0xf0]  ;;  %v9406_v30 = vld [vmem:[#allocation20 + $0x87c] sm:$0xf0]  ;;  %v6350_v4 = vadd.f32 %v11909_v17, %v11897_v55 }
 0x446   :  { %6685 = vmatpush.bf16.msra.mxu0 %v9237_v21  ;;  %v11919_v6 = vpop.f32.mrf.mxu0  ;;  %v9986_v21 = vld [vmem:[#allocation20 + $0xd0c] sm:$0xf0]  ;;  %v8706_v55 = vld [vmem:[#allocation20 + $0x304] sm:$0xf0]  ;;  %v10711_v17 = vld [vmem:[#allocation20 + $0x82c] sm:$0xf] }
 0x447   :  { %6569 = vmatmul.bf16.vlgmr.msrb.gmra.mxu3 %v11764_v13  ;;  %6608 = vmatmul.bf16.vlgmr.msra.gmra.mxu2 %v11849_v52  ;;  %v9989_v24 = vor.u32 %v10864_v7, %v9986_v21  ;;  %v10735_v7 = vld [vmem:[#allocation20 + $0x8e8] sm:$0xf0]  ;;  %v10452_v21 = vld [vmem:[#allocation20 + $0x14] sm:$0xf] }
 0x448   :  { %6613 = vmatpush.bf16.msra.mxu3 %v10101_v18  ;;  %6652 = vmatpush.bf16.msrb.mxu2 %v8985_v19  ;;  %v8872_v18 = vld [vmem:[#allocation20 + $0x438] sm:$0xf]  ;;  %v10588_v19 = vld [vmem:[#allocation20 + $0x450] sm:$0xf0] }
 0x449   :  { %6691 = vmatpush.bf16.msra.mxu1 %v9657_v5  ;;  %6686 = vmatmul.bf16.vlgmr.msra.gmra.mxu0 %v11785_v40  ;;  %v10756_v5 = vld [vmem:[#allocation20 + $0x990] sm:$0xf0]  ;;  %v8873_v28 = vor.u32 %v10588_v19, %v8872_v18  ;;  %v9880_v19 = vld [vmem:[#allocation20 + $0xc18] sm:$0xf] }
 0x44a   :  { %6730 = vmatpush.bf16.msrb.mxu0 %v8541_v16  ;;  %6647 = vmatmul.bf16.vlgmr.msrb.gmra.mxu1 %v11732_v9  ;;  %v6310_v2 = vpop.f32.mrf.mxu3  ;;  %v10473_v16 = vld [vmem:[#allocation20 + $0xbc] sm:$0xf]  ;;  %v9545_v50 = vor.u32 %v10756_v5, %v9544_v61  ;;  %v10672_v18 = vld [vmem:[#allocation20 + $0x6f0] sm:$0xf0]  ;;  %v9905_v5 = vor.u32 %v10843_v0, %v9902_v60  ;;  %v9378_v0 = vld [vmem:[#allocation20 + $0x844] sm:$0xf0] }
 0x44b   :  { %v6311_v10 = vadd.f32 %v6310_v2, %v6298_v63  ;;  %v8429_v11 = vor.u32 %v10473_v16, %v8426_v15  ;;  %v8373_v63 = vor.u32 %v10459_v62, %v8370_v38  ;;  %v9208_v2 = vld [vmem:[#allocation20 + $0x6d8] sm:$0xf]  ;;  %v10840_v61 = vld [vmem:[#allocation20 + $0xc30] sm:$0xf0]  ;;  %v8789_v16 = vor.u32 %v10567_v27, %v8788_v1  ;;  %v10826_v62 = vld [vmem:[#allocation20 + $0xbc0] sm:$0xf0] }
 0x44c   :  { %6614 = vmatpush.bf16.msra.mxu3 %v10073_v31  ;;  %6653 = vmatpush.bf16.msrb.mxu2 %v8957_v58  ;;  %v10581_v31 = vld [vmem:[#allocation20 + $0x418] sm:$0xf0]  ;;  %v9516_v58 = vld [vmem:[#allocation20 + $0x940] sm:$0xf]  ;;  %v6442_v36 = vpop.f32.mrf.mxu1  ;;  %v8762_v15 = vld [vmem:[#allocation20 + $0x374] sm:$0xf0] }
 0x44d   :  { %6692 = vmatpush.bf16.msra.mxu1 %v9629_v25  ;;  %10954 = vtanh.f32 %v6311_v10  ;;  %v11924_v14 = vpop.f32.mrf.mxu2  ;;  %v10466_v25 = vld [vmem:[#allocation20 + $0x84] sm:$0xf]  ;;  %v8845_v53 = vor.u32 %v10581_v31, %v8844_v41  ;;  %v10557_v10 = vld [vmem:[#allocation20 + $0x35c] sm:$0xf]  ;;  %v9881_v41 = vor.u32 %v10840_v61, %v9880_v19  ;;  %v9180_v31 = vld [vmem:[#allocation20 + $0x6a0] sm:$0xf] }
 0x44e   :  { %6731 = vmatpush.bf16.msrb.mxu0 %v8513_v20  ;;  %v8398_v20 = vld [vmem:[#allocation20 + $0x9c] sm:$0xf0]  ;;  %v6481_v59 = vpop.f32.mrf.mxu0  ;;  %v10833_v36 = vld [vmem:[#allocation20 + $0xbf8] sm:$0xf0]  ;;  %v10543_v38 = vld [vmem:[#allocation20 + $0x2ec] sm:$0xf] }
 0x44f   :  { %v10550_v59 = vld [vmem:[#allocation20 + $0x324] sm:$0xf]  ;;  %v9124_v1 = vld [vmem:[#allocation20 + $0x630] sm:$0xf]  ;;  %v10651_v27 = vld [vmem:[#allocation20 + $0x648] sm:$0xf0] }
 0x450   :  { %6615 = vmatpush.bf16.msra.mxu3 %v10045_v8  ;;  %6654 = vmatpush.bf16.msrb.mxu2 %v8929_v57  ;;  %v9517_v8 = vor.u32 %v10749_v22, %v9516_v58  ;;  %v8401_v57 = vor.u32 %v10466_v25, %v8398_v20  ;;  %v10665_v58 = vld [vmem:[#allocation20 + $0x6b8] sm:$0xf0]  ;;  %v8765_v22 = vor.u32 %v10557_v10, %v8762_v15  ;;  %v9852_v20 = vld [vmem:[#allocation20 + $0xbe0] sm:$0xf] }
 0x451   :  { %6693 = vmatpush.bf16.msra.mxu1 %v9601_v43  ;;  %v10574_v43 = vld [vmem:[#allocation20 + $0x3e0] sm:$0xf0]  ;;  %v9125_v10 = vor.u32 %v10651_v27, %v9124_v1  ;;  %v10683_v1 = vld [vmem:[#allocation20 + $0x74c] sm:$0xf]  ;;  %v9266_v27 = vld [vmem:[#allocation20 + $0x764] sm:$0xf0] }
 0x452   :  { %6732 = vmatpush.bf16.msrb.mxu0 %v8485_v44  ;;  %v6312_v37 = vpop.f32.mrf.mxu3  ;;  %v9488_v44 = vld [vmem:[#allocation20 + $0x908] sm:$0xf]  ;;  %v8817_v3 = vor.u32 %v10574_v43, %v8816_v48  ;;  %v10658_v48 = vld [vmem:[#allocation20 + $0x680] sm:$0xf0] }
 0x453   :  { %v10955_v47 = vpop.eup %10954  ;;  %v9152_v37 = vld [vmem:[#allocation20 + $0x668] sm:$0xf] }
 0x454   :  { %6616 = vmatpush.bf16.msra.mxu3 %v10017_v12  ;;  %6655 = vmatpush.bf16.msrb.mxu2 %v8901_v34  ;;  %6945 = vst [vmem:[#allocation23] sm:$0xff] %v10955_v47  ;;  %v9489_v12 = vor.u32 %v10742_v49, %v9488_v44  ;;  %v9460_v34 = vld [vmem:[#allocation20 + $0x8d0] sm:$0xf]  ;;  %v9824_v49 = vld [vmem:[#allocation20 + $0xba8] sm:$0xf] }
 0x455   :  { %6694 = vmatpush.bf16.msra.mxu1 %v9573_v32  ;;  %v6403_v32 = vpop.f32.mrf.mxu2  ;;  %v9461_v51 = vor.u32 %v10735_v7, %v9460_v34  ;;  %v9825_v60 = vor.u32 %v10826_v62, %v9824_v49  ;;  %v9381_v34 = vor.u32 %v10711_v17, %v9378_v0  ;;  %v9796_v7 = vld [vmem:[#allocation20 + $0xb70] sm:$0xf]  ;;  %v9712_v0 = vld [vmem:[#allocation20 + $0xac8] sm:$0xf] }
 0x456   :  { %6733 = vmatpush.bf16.msrb.mxu0 %v8457_v39  ;;  %v8342_v39 = vld [vmem:[#allocation20 + $0x2c] sm:$0xf0]  ;;  %v10536_v32 = vld [vmem:[#allocation20 + $0x2b4] sm:$0xf] }
 0x457   :  { %v8345_v23 = vor.u32 %v10452_v21, %v8342_v39  ;;  %v10819_v21 = vld [vmem:[#allocation20 + $0xb88] sm:$0xf0]  ;;  %v8678_v39 = vld [vmem:[#allocation20 + $0x2cc] sm:$0xf0] }
 0x458   :  { %6617 = vmatpush.bf16.msra.mxu3 %v9989_v24  ;;  %6656 = vmatpush.bf16.msrb.mxu2 %v8873_v28  ;;  %v10725_v24 = vld [vmem:[#allocation20 + $0x89c] sm:$0xf]  ;;  %v9434_v28 = vld [vmem:[#allocation20 + $0x8b4] sm:$0xf0]  ;;  %v8681_v15 = vor.u32 %v10536_v32, %v8678_v39  ;;  %v10791_v32 = vld [vmem:[#allocation20 + $0xaa8] sm:$0xf0] }
 0x459   :  { %6695 = vmatpush.bf16.msra.mxu1 %v9545_v50  ;;  %v9437_v25 = vor.u32 %v10725_v24, %v9434_v28  ;;  %v9768_v28 = vld [vmem:[#allocation20 + $0xb38] sm:$0xf]  ;;  %v10508_v39 = vld [vmem:[#allocation20 + $0x1d4] sm:$0xf] }
 0x45a   :  { %6734 = vmatpush.bf16.msrb.mxu0 %v8429_v11  ;;  %v6362_v50 = vpop.f32.mrf.mxu3  ;;  %v9209_v11 = vor.u32 %v10672_v18, %v9208_v2  ;;  %v10704_v2 = vld [vmem:[#allocation20 + $0x7f4] sm:$0xf]  ;;  %v9350_v18 = vld [vmem:[#allocation20 + $0x80c] sm:$0xf0] }
 0x45b   :  { %v6363_v43 = vadd.f32 %v6362_v50, %v6350_v4  ;;  %v9353_v24 = vor.u32 %v10704_v2, %v9350_v18  ;;  %v10805_v4 = vld [vmem:[#allocation20 + $0xb18] sm:$0xf0]  ;;  %v9269_v18 = vor.u32 %v10683_v1, %v9266_v27  ;;  %v8488_v1 = vld [vmem:[#allocation20 + $0x130] sm:$0xf]  ;;  %v10491_v27 = vld [vmem:[#allocation20 + $0x148] sm:$0xf0] }
 0x45c   :  { %6618 = vmatpush.bf16.msra.mxu3 %v9961_v29  ;;  %6657 = vmatpush.bf16.msrb.mxu2 %v8845_v53  ;;  %v8734_v29 = vld [vmem:[#allocation20 + $0x33c] sm:$0xf0]  ;;  %v10718_v53 = vld [vmem:[#allocation20 + $0x864] sm:$0xf] }
 0x45d   :  { %6696 = vmatpush.bf16.msra.mxu1 %v9517_v8  ;;  %v9181_v8 = vor.u32 %v10665_v58, %v9180_v31  ;;  %v8737_v44 = vor.u32 %v10550_v59, %v8734_v29  ;;  %v9409_v47 = vor.u32 %v10718_v53, %v9406_v30  ;;  %v9322_v31 = vld [vmem:[#allocation20 + $0x7d4] sm:$0xf0]  ;;  %v9740_v30 = vld [vmem:[#allocation20 + $0xb00] sm:$0xf] }
 0x45e   :  { %6735 = vmatpush.bf16.msrb.mxu0 %v8401_v57  ;;  %v9853_v57 = vor.u32 %v10833_v36, %v9852_v20  ;;  %v10637_v20 = vld [vmem:[#allocation20 + $0x5d8] sm:$0xf0]  ;;  %v9741_v62 = vor.u32 %v10805_v4, %v9740_v30  ;;  %v10076_v30 = vld [vmem:[#allocation20 + $0xda0] sm:$0xf] }
 0x45f   :  { %v10889_v4 = vld [vmem:[#allocation20 + $0xdb8] sm:$0xf0] }
 0x460   :  { %6619 = vmatpush.bf16.msra.mxu3 %v9933_v46  ;;  %6658 = vmatpush.bf16.msrb.mxu2 %v8817_v3  ;;  %v9153_v3 = vor.u32 %v10658_v48, %v9152_v37  ;;  %v10690_v37 = vld [vmem:[#allocation20 + $0x784] sm:$0xf]  ;;  %v9294_v48 = vld [vmem:[#allocation20 + $0x79c] sm:$0xf0] }
 0x461   :  { %6697 = vmatpush.bf16.msra.mxu1 %v9489_v12  ;;  %v6376_v12 = vadd.f32 %v11891_v56, %v6363_v43  ;;  %v10644_v56 = vld [vmem:[#allocation20 + $0x610] sm:$0xf0]  ;;  %v9297_v17 = vor.u32 %v10690_v37, %v9294_v48  ;;  %v8958_v37 = vld [vmem:[#allocation20 + $0x4fc] sm:$0xf0]  ;;  %v10774_v48 = vld [vmem:[#allocation20 + $0xa24] sm:$0xf] }
 0x462   :  { %6736 = vmatpush.bf16.msrb.mxu0 %v8373_v63  ;;  %v6364_v46 = vpop.f32.mrf.mxu3  ;;  %v8709_v63 = vor.u32 %v10543_v38, %v8706_v55  ;;  %v9040_v38 = vld [vmem:[#allocation20 + $0x588] sm:$0xf]  ;;  %v10630_v55 = vld [vmem:[#allocation20 + $0x5a0] sm:$0xf0] }
 0x463   :  { %v6389_v50 = vadd.f32 %v11905_v42, %v6376_v12  ;;  %v10522_v42 = vld [vmem:[#allocation20 + $0x244] sm:$0xf]  ;;  %v9012_v12 = vld [vmem:[#allocation20 + $0x550] sm:$0xf] }
 0x464   :  { %6620 = vmatpush.bf16.msra.mxu3 %v9905_v5  ;;  %6659 = vmatpush.bf16.msrb.mxu2 %v8789_v16  ;;  %v9797_v5 = vor.u32 %v10819_v21, %v9796_v7  ;;  %v9096_v16 = vld [vmem:[#allocation20 + $0x5f8] sm:$0xf]  ;;  %v10798_v46 = vld [vmem:[#allocation20 + $0xae0] sm:$0xf0]  ;;  %v9684_v21 = vld [vmem:[#allocation20 + $0xa90] sm:$0xf] }
 0x465   :  { %6698 = vmatpush.bf16.msra.mxu1 %v9461_v51  ;;  %v10812_v51 = vld [vmem:[#allocation20 + $0xb50] sm:$0xf0]  ;;  %v9097_v58 = vor.u32 %v10644_v56, %v9096_v16  ;;  %v6402_v53 = vadd.f32 %v11924_v14, %v6389_v50  ;;  %v9713_v7 = vor.u32 %v10798_v46, %v9712_v0  ;;  %v9238_v56 = vld [vmem:[#allocation20 + $0x72c] sm:$0xf0]  ;;  %v8986_v50 = vld [vmem:[#allocation20 + $0x534] sm:$0xf0] }
 0x466   :  { %6737 = vmatpush.bf16.msrb.mxu0 %v8345_v23  ;;  %v11935_v61 = vpop.f32.mrf.mxu0  ;;  %v10529_v23 = vld [vmem:[#allocation20 + $0x27c] sm:$0xf]  ;;  %v10676_v16 = vld [vmem:[#allocation20 + $0x714] sm:$0xf]  ;;  %v10599_v0 = vld [vmem:[#allocation20 + $0x4ac] sm:$0xf] }
 0x467   :  { %6621 = vmatmul.bf16.vlgmr.msra.gmra.mxu3 %v11866_v26  ;;  %6660 = vmatmul.bf16.vlgmr.msrb.gmra.mxu2 %v11746_v33  ;;  %v11933_v19 = vpop.f32.mrf.mxu1  ;;  %v8930_v46 = vld [vmem:[#allocation20 + $0x4c4] sm:$0xf0] }
 0x468   :  { %6665 = vmatpush.bf16.msrb.mxu3 %v9209_v11  ;;  %6704 = vmatpush.bf16.msra.mxu2 %v9881_v41  ;;  %v8650_v11 = vld [vmem:[#allocation20 + $0x294] sm:$0xf0]  ;;  %v10697_v41 = vld [vmem:[#allocation20 + $0x7bc] sm:$0xf] }
 0x469   :  { %6743 = vmatpush.bf16.msrb.mxu1 %v8765_v22  ;;  %6738 = vmatmul.bf16.vlgmr.msrb.gmra.mxu0 %v11712_v45  ;;  %v9769_v22 = vor.u32 %v10812_v51, %v9768_v28  ;;  %v8653_v36 = vor.u32 %v10529_v23, %v8650_v11  ;;  %v9325_v59 = vor.u32 %v10697_v41, %v9322_v31  ;;  %v10896_v28 = vld [vmem:[#allocation20 + $0xdf0] sm:$0xf0]  ;;  %v10613_v51 = vld [vmem:[#allocation20 + $0x51c] sm:$0xf]  ;;  %v9658_v41 = vld [vmem:[#allocation20 + $0xa74] sm:$0xf0] }
 0x46a   :  { %6782 = vmatpush.bf16.msra.mxu0 %v9437_v25  ;;  %6699 = vmatmul.bf16.vlgmr.msra.gmra.mxu1 %v11813_v54  ;;  %v9068_v25 = vld [vmem:[#allocation20 + $0x5c0] sm:$0xf]  ;;  %v11938_v29 = vpop.f32.mrf.mxu2  ;;  %v10781_v11 = vld [vmem:[#allocation20 + $0xa5c] sm:$0xf] }
 0x46b   :  { %v9069_v49 = vor.u32 %v10637_v20, %v9068_v25  ;;  %v10505_v25 = vld [vmem:[#allocation20 + $0x1b8] sm:$0xf0] }
 0x46c   :  { %6666 = vmatpush.bf16.msrb.mxu3 %v9181_v8  ;;  %6705 = vmatpush.bf16.msra.mxu2 %v9853_v57  ;;  %v6414_v8 = vpop.f32.mrf.mxu3  ;;  %v8622_v57 = vld [vmem:[#allocation20 + $0x25c] sm:$0xf0] }
 0x46d   :  { %6744 = vmatpush.bf16.msrb.mxu1 %v8737_v44  ;;  %v6415_v43 = vadd.f32 %v6414_v8, %v6402_v53  ;;  %v8625_v14 = vor.u32 %v10522_v42, %v8622_v57  ;;  %v8989_v53 = vor.u32 %v10613_v51, %v8986_v50  ;;  %v9661_v42 = vor.u32 %v10781_v11, %v9658_v41  ;;  %v10606_v57 = vld [vmem:[#allocation20 + $0x4e4] sm:$0xf]  ;;  %v9992_v11 = vld [vmem:[#allocation20 + $0xcf8] sm:$0xf]  ;;  %v10868_v41 = vld [vmem:[#allocation20 + $0xd10] sm:$0xf0] }
 0x46e   :  { %6783 = vmatpush.bf16.msra.mxu0 %v9409_v47  ;;  %v6533_v47 = vpop.f32.mrf.mxu0 }
 0x46f   :  { %v6494_v44 = vpop.f32.mrf.mxu1  ;;  %10956 = vtanh.f32 %v6415_v43  ;;  %v9630_v43 = vld [vmem:[#allocation20 + $0xa3c] sm:$0xf0]  ;;  %v10498_v47 = vld [vmem:[#allocation20 + $0x180] sm:$0xf0] }
 0x470   :  { %6667 = vmatpush.bf16.msrb.mxu3 %v9153_v3  ;;  %6706 = vmatpush.bf16.msra.mxu2 %v9825_v60  ;;  %v10515_v3 = vld [vmem:[#allocation20 + $0x20c] sm:$0xf]  ;;  %v8594_v60 = vld [vmem:[#allocation20 + $0x224] sm:$0xf0] }
 0x471   :  { %6745 = vmatpush.bf16.msrb.mxu1 %v8709_v63  ;;  %v10623_v63 = vld [vmem:[#allocation20 + $0x568] sm:$0xf0]  ;;  %v8597_v2 = vor.u32 %v10515_v3, %v8594_v60  ;;  %v8516_v44 = vld [vmem:[#allocation20 + $0x168] sm:$0xf] }
 0x472   :  { %6784 = vmatpush.bf16.msra.mxu0 %v9381_v34  ;;  %v9041_v34 = vor.u32 %v10630_v55, %v9040_v38  ;;  %v9013_v31 = vor.u32 %v10623_v63, %v9012_v12  ;;  %v10048_v38 = vld [vmem:[#allocation20 + $0xd68] sm:$0xf]  ;;  %v10882_v55 = vld [vmem:[#allocation20 + $0xd80] sm:$0xf0]  ;;  %v10767_v3 = vld [vmem:[#allocation20 + $0x9ec] sm:$0xf] }
 0x473   :  { %v9602_v60 = vld [vmem:[#allocation20 + $0xa04] sm:$0xf0]  ;;  %v11943_v12 = vld [vmem:[#allocation22] sm:$0xff] }
 0x474   :  { %6668 = vmatpush.bf16.msrb.mxu3 %v9125_v10  ;;  %6707 = vmatpush.bf16.msra.mxu2 %v9797_v5  ;;  %v6455_v10 = vpop.f32.mrf.mxu2  ;;  %v8566_v5 = vld [vmem:[#allocation20 + $0x1ec] sm:$0xf0]  ;;  %v3895_v63 = vperm.slane %v11943_v12, 3 }
 0x475   :  { %6746 = vmatpush.bf16.msrb.mxu1 %v8681_v15  ;;  %v6416_v15 = vpop.f32.mrf.mxu3  ;;  %v10957_v23 = vpop.eup %10956  ;;  %v8569_v20 = vor.u32 %v10508_v39, %v8566_v5  ;;  %v9605_v39 = vor.u32 %v10767_v3, %v9602_v60  ;;  %v8902_v10 = vld [vmem:[#allocation20 + $0x48c] sm:$0xf0]  ;;  %v10760_v5 = vld [vmem:[#allocation20 + $0x9b4] sm:$0xf]  ;;  %v9936_v60 = vld [vmem:[#allocation20 + $0xc88] sm:$0xf] }
 0x476   :  { %6785 = vmatpush.bf16.msra.mxu0 %v9353_v24  ;;  %v10104_v24 = vld [vmem:[#allocation20 + $0xdd8] sm:$0xf]  ;;  %6946 = vst [vmem:[#allocation23 + $0x8] sm:$0xff] %v10957_v23  ;;  %v10484_v15 = vld [vmem:[#allocation20 + $0x110] sm:$0xf0] }
 0x478   :  { %6669 = vmatpush.bf16.msrb.mxu3 %v9097_v58  ;;  %6708 = vmatpush.bf16.msra.mxu2 %v9769_v22  ;;  %v9685_v58 = vor.u32 %v10791_v32, %v9684_v21  ;;  %v8544_v22 = vld [vmem:[#allocation20 + $0x1a0] sm:$0xf]  ;;  %v10020_v21 = vld [vmem:[#allocation20 + $0xd30] sm:$0xf]  ;;  %v10875_v32 = vld [vmem:[#allocation20 + $0xd48] sm:$0xf0] }
 0x479   :  { %6747 = vmatpush.bf16.msrb.mxu1 %v8653_v36  ;;  %v9241_v36 = vor.u32 %v10676_v16, %v9238_v56  ;;  %v8545_v8 = vor.u32 %v10505_v25, %v8544_v22  ;;  %v9574_v16 = vld [vmem:[#allocation20 + $0x9cc] sm:$0xf0]  ;;  %v8460_v56 = vld [vmem:[#allocation20 + $0xf8] sm:$0xf]  ;;  %v10021_v23 = vor.u32 %v10875_v32, %v10020_v21  ;;  %v10585_v25 = vld [vmem:[#allocation20 + $0x43c] sm:$0xf] }
 0x47a   :  { %6786 = vmatpush.bf16.msra.mxu0 %v9325_v59  ;;  %v10105_v59 = vor.u32 %v10896_v28, %v10104_v24  ;;  %v6532_v24 = vadd.f32 %v11935_v61, %v3895_v63  ;;  %v8461_v22 = vor.u32 %v10484_v15, %v8460_v56  ;;  %v8432_v61 = vld [vmem:[#allocation20 + $0xc0] sm:$0xf]  ;;  %v10739_v21 = vld [vmem:[#allocation20 + $0x90c] sm:$0xf]  ;;  %v9490_v32 = vld [vmem:[#allocation20 + $0x924] sm:$0xf0] }
 0x47b   :  { %v8790_v56 = vld [vmem:[#allocation20 + $0x3ac] sm:$0xf0]  ;;  %v9493_v15 = vor.u32 %v10739_v21, %v9490_v32  ;;  %v10547_v32 = vld [vmem:[#allocation20 + $0x308] sm:$0xf0] }
 0x47c   :  { %6670 = vmatpush.bf16.msrb.mxu3 %v9069_v49  ;;  %6709 = vmatpush.bf16.msra.mxu2 %v9741_v62  ;;  %v10077_v49 = vor.u32 %v10889_v4, %v10076_v30  ;;  %v8961_v62 = vor.u32 %v10606_v57, %v8958_v37  ;;  %v6454_v30 = vadd.f32 %v11938_v29, %v11922_v35  ;;  %v10861_v57 = vld [vmem:[#allocation20 + $0xcd8] sm:$0xf0]  ;;  %v10470_v35 = vld [vmem:[#allocation20 + $0xa0] sm:$0xf0]  ;;  %v8712_v21 = vld [vmem:[#allocation20 + $0x2f0] sm:$0xf] }
 0x47d   :  { %6748 = vmatpush.bf16.msrb.mxu1 %v8625_v14  ;;  %v9633_v14 = vor.u32 %v10774_v48, %v9630_v43  ;;  %v9993_v4 = vor.u32 %v10868_v41, %v9992_v11  ;;  %v9462_v11 = vld [vmem:[#allocation20 + $0x8ec] sm:$0xf0]  ;;  %v8348_v41 = vld [vmem:[#allocation20 + $0x18] sm:$0xf] }
 0x47e   :  { %6787 = vmatpush.bf16.msra.mxu0 %v9297_v17  ;;  %v8517_v17 = vor.u32 %v10498_v47, %v8516_v44  ;;  %v10578_v47 = vld [vmem:[#allocation20 + $0x404] sm:$0xf] }
 0x480   :  { %6671 = vmatpush.bf16.msrb.mxu3 %v9041_v34  ;;  %6710 = vmatpush.bf16.msra.mxu2 %v9713_v7  ;;  %v10049_v34 = vor.u32 %v10882_v55, %v10048_v38  ;;  %v8933_v7 = vor.u32 %v10599_v0, %v8930_v46  ;;  %v9518_v55 = vld [vmem:[#allocation20 + $0x95c] sm:$0xf0] }
 0x481   :  { %6749 = vmatpush.bf16.msrb.mxu1 %v8597_v2  ;;  %v8489_v2 = vor.u32 %v10491_v27, %v8488_v1  ;;  %v10854_v1 = vld [vmem:[#allocation20 + $0xca0] sm:$0xf0] }
 0x482   :  { %6788 = vmatpush.bf16.msra.mxu0 %v9269_v18  ;;  %v10592_v18 = vld [vmem:[#allocation20 + $0x474] sm:$0xf] }
 0x483   :  { %v8905_v50 = vor.u32 %v10592_v18, %v8902_v10  ;;  %v9908_v18 = vld [vmem:[#allocation20 + $0xc50] sm:$0xf] }
 0x484   :  { %6672 = vmatpush.bf16.msrb.mxu3 %v9013_v31  ;;  %6711 = vmatpush.bf16.msra.mxu2 %v9685_v58  ;;  %v9577_v58 = vor.u32 %v10760_v5, %v9574_v16  ;;  %v10847_v5 = vld [vmem:[#allocation20 + $0xc68] sm:$0xf0]  ;;  %v10564_v16 = vld [vmem:[#allocation20 + $0x394] sm:$0xf] }
 0x485   :  { %6750 = vmatpush.bf16.msrb.mxu1 %v8569_v20  ;;  %v8874_v20 = vld [vmem:[#allocation20 + $0x454] sm:$0xf0] }
 0x486   :  { %6789 = vmatpush.bf16.msra.mxu0 %v9241_v36  ;;  %v11949_v51 = vpop.f32.mrf.mxu0  ;;  %v10753_v36 = vld [vmem:[#allocation20 + $0x97c] sm:$0xf] }
 0x487   :  { %6673 = vmatmul.bf16.vlgmr.msrb.gmra.mxu3 %v11764_v13  ;;  %6712 = vmatmul.bf16.vlgmr.msra.gmra.mxu2 %v11849_v52  ;;  %v6544_v28 = vpop.f32.mrf.mxu1 }
 0x488   :  { %6717 = vmatpush.bf16.msra.mxu3 %v10105_v59  ;;  %6756 = vmatpush.bf16.msrb.mxu2 %v8989_v53  ;;  %v11951_v31 = vadd.f32 %v6544_v28, %v6532_v24  ;;  %v9546_v59 = vld [vmem:[#allocation20 + $0x994] sm:$0xf0]  ;;  %v10477_v53 = vld [vmem:[#allocation20 + $0xd8] sm:$0xf0] }
 0x489   :  { %6795 = vmatpush.bf16.msra.mxu1 %v9661_v42  ;;  %6790 = vmatmul.bf16.vlgmr.msra.gmra.mxu0 %v11785_v40  ;;  %v8877_v42 = vor.u32 %v10585_v25, %v8874_v20  ;;  %v9549_v37 = vor.u32 %v10753_v36, %v9546_v59  ;;  %v8433_v48 = vor.u32 %v10477_v53, %v8432_v61  ;;  %v9210_v25 = vld [vmem:[#allocation20 + $0x6f4] sm:$0xf0]  ;;  %v10837_v20 = vld [vmem:[#allocation20 + $0xc1c] sm:$0xf]  ;;  %v8768_v59 = vld [vmem:[#allocation20 + $0x360] sm:$0xf] }
 0x48a   :  { %6834 = vmatpush.bf16.msrb.mxu0 %v8545_v8  ;;  %6751 = vmatmul.bf16.vlgmr.msrb.gmra.mxu1 %v11732_v9  ;;  %v9964_v8 = vld [vmem:[#allocation20 + $0xcc0] sm:$0xf]  ;;  %v6466_v43 = vpop.f32.mrf.mxu3  ;;  %v11955_v44 = vpop.f32.mrf.mxu2  ;;  %v9882_v36 = vld [vmem:[#allocation20 + $0xc34] sm:$0xf0]  ;;  %v9909_v61 = vor.u32 %v10847_v5, %v9908_v18  ;;  %v8793_v53 = vor.u32 %v10564_v16, %v8790_v56  ;;  %v9126_v5 = vld [vmem:[#allocation20 + $0x64c] sm:$0xf0]  ;;  %v8713_v16 = vor.u32 %v10547_v32, %v8712_v21 }
 0x48b   :  { %v6467_v38 = vadd.f32 %v6466_v43, %v6454_v30  ;;  %v9965_v46 = vor.u32 %v10861_v57, %v9964_v8  ;;  %v10561_v30 = vld [vmem:[#allocation20 + $0x378] sm:$0xf0]  ;;  %v10662_v43 = vld [vmem:[#allocation20 + $0x6a4] sm:$0xf]  ;;  %v10795_v32 = vld [vmem:[#allocation20 + $0xacc] sm:$0xf] }
 0x48c   :  { %6718 = vmatpush.bf16.msra.mxu3 %v10077_v49  ;;  %6757 = vmatpush.bf16.msrb.mxu2 %v8961_v62  ;;  %v8846_v49 = vld [vmem:[#allocation20 + $0x41c] sm:$0xf0]  ;;  %v10746_v62 = vld [vmem:[#allocation20 + $0x944] sm:$0xf] }
 0x48d   :  { %6796 = vmatpush.bf16.msra.mxu1 %v9633_v14  ;;  %v8404_v14 = vld [vmem:[#allocation20 + $0x88] sm:$0xf]  ;;  %v11958_v29 = vadd.f32 %v11919_v6, %v6467_v38  ;;  %v8849_v3 = vor.u32 %v10578_v47, %v8846_v49  ;;  %v9521_v27 = vor.u32 %v10746_v62, %v9518_v55  ;;  %v9937_v6 = vor.u32 %v10854_v1, %v9936_v60  ;;  %v9182_v47 = vld [vmem:[#allocation20 + $0x6bc] sm:$0xf0]  ;;  %v10830_v38 = vld [vmem:[#allocation20 + $0xbe4] sm:$0xf] }
 0x48e   :  { %6835 = vmatpush.bf16.msrb.mxu0 %v8517_v17  ;;  %v6585_v0 = vpop.f32.mrf.mxu0  ;;  %v8405_v63 = vor.u32 %v10470_v35, %v8404_v14  ;;  %v8769_v49 = vor.u32 %v10561_v30, %v8768_v59  ;;  %v9854_v55 = vld [vmem:[#allocation20 + $0xbfc] sm:$0xf0]  ;;  %v8740_v14 = vld [vmem:[#allocation20 + $0x328] sm:$0xf]  ;;  %v10554_v35 = vld [vmem:[#allocation20 + $0x340] sm:$0xf0] }
 0x48f   :  { %v6546_v17 = vpop.f32.mrf.mxu1  ;;  %v10722_v0 = vld [vmem:[#allocation20 + $0x880] sm:$0xf0]  ;;  %v10655_v60 = vld [vmem:[#allocation20 + $0x66c] sm:$0xf]  ;;  %v9154_v1 = vld [vmem:[#allocation20 + $0x684] sm:$0xf0] }
 0x490   :  { %6719 = vmatpush.bf16.msra.mxu3 %v10049_v34  ;;  %6758 = vmatpush.bf16.msrb.mxu2 %v8933_v7  ;;  %v10571_v34 = vld [vmem:[#allocation20 + $0x3cc] sm:$0xf]  ;;  %v8818_v7 = vld [vmem:[#allocation20 + $0x3e4] sm:$0xf0]  ;;  %v9157_v18 = vor.u32 %v10655_v60, %v9154_v1  ;;  %v9770_v30 = vld [vmem:[#allocation20 + $0xb54] sm:$0xf0] }
 0x491   :  { %6797 = vmatpush.bf16.msra.mxu1 %v9605_v39  ;;  %v8376_v39 = vld [vmem:[#allocation20 + $0x50] sm:$0xf]  ;;  %v8821_v10 = vor.u32 %v10571_v34, %v8818_v7  ;;  %v9412_v17 = vld [vmem:[#allocation20 + $0x868] sm:$0xf]  ;;  %v10823_v34 = vld [vmem:[#allocation20 + $0xbac] sm:$0xf] }
 0x492   :  { %6836 = vmatpush.bf16.msrb.mxu0 %v8489_v2  ;;  %v10463_v2 = vld [vmem:[#allocation20 + $0x68] sm:$0xf0]  ;;  %v6468_v28 = vpop.f32.mrf.mxu3  ;;  %v9826_v7 = vld [vmem:[#allocation20 + $0xbc4] sm:$0xf0] }
 0x493   :  { %v8377_v24 = vor.u32 %v10463_v2, %v8376_v39  ;;  %v9384_v39 = vld [vmem:[#allocation20 + $0x830] sm:$0xf]  ;;  %v10715_v2 = vld [vmem:[#allocation20 + $0x848] sm:$0xf0]  ;;  %v8684_v28 = vld [vmem:[#allocation20 + $0x2b8] sm:$0xf] }
 0x494   :  { %6720 = vmatpush.bf16.msra.mxu3 %v10021_v23  ;;  %6759 = vmatpush.bf16.msrb.mxu2 %v8905_v50  ;;  %v6507_v23 = vpop.f32.mrf.mxu2  ;;  %v10732_v50 = vld [vmem:[#allocation20 + $0x8d4] sm:$0xf]  ;;  %v9385_v56 = vor.u32 %v10715_v2, %v9384_v39  ;;  %v9714_v39 = vld [vmem:[#allocation20 + $0xae4] sm:$0xf0]  ;;  %v8600_v2 = vld [vmem:[#allocation20 + $0x210] sm:$0xf] }
 0x495   :  { %6798 = vmatpush.bf16.msra.mxu1 %v9577_v58  ;;  %v10456_v58 = vld [vmem:[#allocation20 + $0x30] sm:$0xf0]  ;;  %v9465_v8 = vor.u32 %v10732_v50, %v9462_v11  ;;  %v9356_v50 = vld [vmem:[#allocation20 + $0x7f8] sm:$0xf] }
 0x496   :  { %6837 = vmatpush.bf16.msrb.mxu0 %v8461_v22  ;;  %v10669_v22 = vld [vmem:[#allocation20 + $0x6dc] sm:$0xf]  ;;  %v8349_v57 = vor.u32 %v10456_v58, %v8348_v41  ;;  %v10540_v23 = vld [vmem:[#allocation20 + $0x2d0] sm:$0xf0]  ;;  %v6493_v41 = vadd.f32 %v11933_v19, %v11958_v29 }
 0x497   :  { %v10708_v11 = vld [vmem:[#allocation20 + $0x810] sm:$0xf0]  ;;  %v8685_v59 = vor.u32 %v10540_v23, %v8684_v28  ;;  %v10701_v19 = vld [vmem:[#allocation20 + $0x7d8] sm:$0xf0]  ;;  %v9686_v28 = vld [vmem:[#allocation20 + $0xaac] sm:$0xf0] }
 0x498   :  { %6721 = vmatpush.bf16.msra.mxu3 %v9993_v4  ;;  %6760 = vmatpush.bf16.msrb.mxu2 %v8877_v42  ;;  %v9440_v4 = vld [vmem:[#allocation20 + $0x8a0] sm:$0xf]  ;;  %v10729_v42 = vld [vmem:[#allocation20 + $0x8b8] sm:$0xf0]  ;;  %v6506_v29 = vadd.f32 %v11955_v44, %v6493_v41  ;;  %v10694_v44 = vld [vmem:[#allocation20 + $0x7a0] sm:$0xf0] }
 0x499   :  { %6799 = vmatpush.bf16.msra.mxu1 %v9549_v37  ;;  %v9213_v37 = vor.u32 %v10669_v22, %v9210_v25  ;;  %v9441_v62 = vor.u32 %v10729_v42, %v9440_v4  ;;  %v8656_v4 = vld [vmem:[#allocation20 + $0x280] sm:$0xf]  ;;  %v10533_v42 = vld [vmem:[#allocation20 + $0x298] sm:$0xf0] }
 0x49a   :  { %6838 = vmatpush.bf16.msrb.mxu0 %v8433_v48  ;;  %v9885_v48 = vor.u32 %v10837_v20, %v9882_v36  ;;  %v10641_v20 = vld [vmem:[#allocation20 + $0x5fc] sm:$0xf]  ;;  %v9098_v36 = vld [vmem:[#allocation20 + $0x614] sm:$0xf0] }
 0x49c   :  { %6722 = vmatpush.bf16.msra.mxu3 %v9965_v46  ;;  %6761 = vmatpush.bf16.msrb.mxu2 %v8849_v3  ;;  %v9185_v46 = vor.u32 %v10662_v43, %v9182_v47  ;;  %v9857_v3 = vor.u32 %v10830_v38, %v9854_v55  ;;  %v9070_v43 = vld [vmem:[#allocation20 + $0x5dc] sm:$0xf0]  ;;  %v8657_v47 = vor.u32 %v10533_v42, %v8656_v4  ;;  %v10802_v55 = vld [vmem:[#allocation20 + $0xb04] sm:$0xf]  ;;  %v10617_v4 = vld [vmem:[#allocation20 + $0x538] sm:$0xf0] }
 0x49d   :  { %6800 = vmatpush.bf16.msra.mxu1 %v9521_v27  ;;  %v8741_v27 = vor.u32 %v10554_v35, %v8740_v14  ;;  %v9742_v14 = vld [vmem:[#allocation20 + $0xb1c] sm:$0xf0]  ;;  %v8628_v35 = vld [vmem:[#allocation20 + $0x248] sm:$0xf] }
 0x49e   :  { %6839 = vmatpush.bf16.msrb.mxu0 %v8405_v63  ;;  %v9413_v63 = vor.u32 %v10722_v0, %v9412_v17  ;;  %v10526_v0 = vld [vmem:[#allocation20 + $0x260] sm:$0xf0] }
 0x4a0   :  { %6723 = vmatpush.bf16.msra.mxu3 %v9937_v6  ;;  %6762 = vmatpush.bf16.msrb.mxu2 %v8821_v10  ;;  %v9829_v6 = vor.u32 %v10823_v34, %v9826_v7  ;;  %v10648_v10 = vld [vmem:[#allocation20 + $0x634] sm:$0xf]  ;;  %v9042_v34 = vld [vmem:[#allocation20 + $0x5a4] sm:$0xf0]  ;;  %v8629_v7 = vor.u32 %v10526_v0, %v8628_v35 }
 0x4a1   :  { %6801 = vmatpush.bf16.msra.mxu1 %v9493_v15  ;;  %v10816_v15 = vld [vmem:[#allocation20 + $0xb74] sm:$0xf]  ;;  %v9129_v22 = vor.u32 %v10648_v10, %v9126_v5  ;;  %v10687_v10 = vld [vmem:[#allocation20 + $0x768] sm:$0xf0]  ;;  %v9636_v35 = vld [vmem:[#allocation20 + $0xa28] sm:$0xf] }
 0x4a2   :  { %6840 = vmatpush.bf16.msrb.mxu0 %v8377_v24  ;;  %v9798_v24 = vld [vmem:[#allocation20 + $0xb8c] sm:$0xf0]  ;;  %v10620_v5 = vld [vmem:[#allocation20 + $0x554] sm:$0xf] }
 0x4a3   :  { %v9801_v25 = vor.u32 %v10816_v15, %v9798_v24  ;;  %v9014_v15 = vld [vmem:[#allocation20 + $0x56c] sm:$0xf0]  ;;  %v10788_v24 = vld [vmem:[#allocation20 + $0xa94] sm:$0xf] }
 0x4a4   :  { %6724 = vmatpush.bf16.msra.mxu3 %v9909_v61  ;;  %6763 = vmatpush.bf16.msrb.mxu2 %v8793_v53  ;;  %v9357_v61 = vor.u32 %v10708_v11, %v9356_v50  ;;  %v10809_v53 = vld [vmem:[#allocation20 + $0xb3c] sm:$0xf]  ;;  %v9017_v42 = vor.u32 %v10620_v5, %v9014_v15  ;;  %v9580_v5 = vld [vmem:[#allocation20 + $0x9b8] sm:$0xf] }
 0x4a5   :  { %6802 = vmatpush.bf16.msra.mxu1 %v9465_v8  ;;  %v9328_v8 = vld [vmem:[#allocation20 + $0x7c0] sm:$0xf] }
 0x4a6   :  { %6841 = vmatpush.bf16.msrb.mxu0 %v8349_v57  ;;  %v11968_v58 = vpop.f32.mrf.mxu0  ;;  %v9101_v57 = vor.u32 %v10641_v20, %v9098_v36  ;;  %v9244_v20 = vld [vmem:[#allocation20 + $0x718] sm:$0xf] }
 0x4a7   :  { %6725 = vmatmul.bf16.vlgmr.msra.gmra.mxu3 %v11866_v26  ;;  %6764 = vmatmul.bf16.vlgmr.msrb.gmra.mxu2 %v11746_v33 }
 0x4a8   :  { %6769 = vmatpush.bf16.msrb.mxu3 %v9213_v37  ;;  %6808 = vmatpush.bf16.msra.mxu2 %v9885_v48  ;;  %v9773_v37 = vor.u32 %v10809_v53, %v9770_v30  ;;  %v10634_v48 = vld [vmem:[#allocation20 + $0x5c4] sm:$0xf]  ;;  %v10106_v53 = vld [vmem:[#allocation20 + $0xdf4] sm:$0xf0]  ;;  %v8992_v30 = vld [vmem:[#allocation20 + $0x520] sm:$0xf] }
 0x4a9   :  { %6847 = vmatpush.bf16.msrb.mxu1 %v8769_v49  ;;  %6842 = vmatmul.bf16.vlgmr.msrb.gmra.mxu0 %v11712_v45  ;;  %v11966_v45 = vpop.f32.mrf.mxu1  ;;  %v9329_v49 = vor.u32 %v10701_v19, %v9328_v8  ;;  %v9073_v1 = vor.u32 %v10634_v48, %v9070_v43  ;;  %v9689_v8 = vor.u32 %v10788_v24, %v9686_v28  ;;  %v9664_v19 = vld [vmem:[#allocation20 + $0xa60] sm:$0xf]  ;;  %v10865_v28 = vld [vmem:[#allocation20 + $0xcfc] sm:$0xf] }
 0x4aa   :  { %6886 = vmatpush.bf16.msra.mxu0 %v9441_v62  ;;  %6803 = vmatmul.bf16.vlgmr.msra.gmra.mxu1 %v11813_v54  ;;  %v6518_v62 = vpop.f32.mrf.mxu3  ;;  %v11971_v38 = vpop.f32.mrf.mxu2  ;;  %v8993_v43 = vor.u32 %v10617_v4, %v8992_v30 }
 0x4ab   :  { %v6519_v17 = vadd.f32 %v6518_v62, %v6506_v29  ;;  %v10785_v29 = vld [vmem:[#allocation20 + $0xa78] sm:$0xf0]  ;;  %v10078_v62 = vld [vmem:[#allocation20 + $0xdbc] sm:$0xf0] }
 0x4ac   :  { %6770 = vmatpush.bf16.msrb.mxu3 %v9185_v46  ;;  %6809 = vmatpush.bf16.msra.mxu2 %v9857_v3  ;;  %v9300_v46 = vld [vmem:[#allocation20 + $0x788] sm:$0xf] }
 0x4ad   :  { %6848 = vmatpush.bf16.msrb.mxu1 %v8741_v27  ;;  %10958 = vtanh.f32 %v6519_v17  ;;  %v9745_v27 = vor.u32 %v10802_v55, %v9742_v14  ;;  %v9301_v21 = vor.u32 %v10694_v44, %v9300_v46  ;;  %v8964_v55 = vld [vmem:[#allocation20 + $0x4e8] sm:$0xf]  ;;  %v10610_v14 = vld [vmem:[#allocation20 + $0x500] sm:$0xf0]  ;;  %v10879_v44 = vld [vmem:[#allocation20 + $0xd6c] sm:$0xf] }
 0x4ae   :  { %6887 = vmatpush.bf16.msra.mxu0 %v9413_v63  ;;  %v6637_v60 = vpop.f32.mrf.mxu0  ;;  %v10627_v63 = vld [vmem:[#allocation20 + $0x58c] sm:$0xf]  ;;  %v10778_v17 = vld [vmem:[#allocation20 + $0xa40] sm:$0xf0]  ;;  %v8965_v46 = vor.u32 %v10610_v14, %v8964_v55  ;;  %v9938_v55 = vld [vmem:[#allocation20 + $0xca4] sm:$0xf0] }
 0x4af   :  { %v10050_v60 = vld [vmem:[#allocation20 + $0xd84] sm:$0xf0]  ;;  %v8824_v14 = vld [vmem:[#allocation20 + $0x3d0] sm:$0xf] }
 0x4b0   :  { %6771 = vmatpush.bf16.msrb.mxu3 %v9157_v18  ;;  %6810 = vmatpush.bf16.msra.mxu2 %v9829_v6  ;;  %v10519_v18 = vld [vmem:[#allocation20 + $0x228] sm:$0xf0]  ;;  %v9272_v6 = vld [vmem:[#allocation20 + $0x750] sm:$0xf] }
 0x4b1   :  { %6849 = vmatpush.bf16.msrb.mxu1 %v8713_v16  ;;  %v6598_v3 = vpop.f32.mrf.mxu1  ;;  %v9045_v16 = vor.u32 %v10627_v63, %v9042_v34  ;;  %v8601_v23 = vor.u32 %v10519_v18, %v8600_v2  ;;  %v9273_v50 = vor.u32 %v10687_v10, %v9272_v6  ;;  %v9608_v63 = vld [vmem:[#allocation20 + $0x9f0] sm:$0xf]  ;;  %v10771_v34 = vld [vmem:[#allocation20 + $0xa08] sm:$0xf0]  ;;  %v8908_v6 = vld [vmem:[#allocation20 + $0x478] sm:$0xf] }
 0x4b2   :  { %6888 = vmatpush.bf16.msra.mxu0 %v9385_v56  ;;  %v9717_v56 = vor.u32 %v10795_v32, %v9714_v39  ;;  %v6520_v11 = vpop.f32.mrf.mxu3  ;;  %v6559_v41 = vpop.f32.mrf.mxu2  ;;  %v9637_v3 = vor.u32 %v10778_v17, %v9636_v35  ;;  %v10872_v39 = vld [vmem:[#allocation20 + $0xd34] sm:$0xf]  ;;  %v9609_v2 = vor.u32 %v10771_v34, %v9608_v63  ;;  %v10022_v18 = vld [vmem:[#allocation20 + $0xd4c] sm:$0xf0]  ;;  %v10575_v35 = vld [vmem:[#allocation20 + $0x3e8] sm:$0xf0] }
 0x4b3   :  { %v10959_v36 = vpop.eup %10958  ;;  %v10596_v10 = vld [vmem:[#allocation20 + $0x490] sm:$0xf0]  ;;  %v9994_v11 = vld [vmem:[#allocation20 + $0xd14] sm:$0xf0]  ;;  %v8880_v41 = vld [vmem:[#allocation20 + $0x440] sm:$0xf] }
 0x4b4   :  { %6772 = vmatpush.bf16.msrb.mxu3 %v9129_v22  ;;  %6811 = vmatpush.bf16.msra.mxu2 %v9801_v25  ;;  %v8572_v22 = vld [vmem:[#allocation20 + $0x1d8] sm:$0xf]  ;;  %v10512_v25 = vld [vmem:[#allocation20 + $0x1f0] sm:$0xf0]  ;;  %6947 = vst [vmem:[#allocation23 + $0x10] sm:$0xff] %v10959_v36  ;;  %v8909_v24 = vor.u32 %v10596_v10, %v8908_v6  ;;  %v9997_v36 = vor.u32 %v10865_v28, %v9994_v11 }
 0x4b5   :  { %6850 = vmatpush.bf16.msrb.mxu1 %v8685_v59  ;;  %v10680_v59 = vld [vmem:[#allocation20 + $0x730] sm:$0xf0]  ;;  %v9496_v17 = vld [vmem:[#allocation20 + $0x910] sm:$0xf]  ;;  %v8796_v63 = vld [vmem:[#allocation20 + $0x398] sm:$0xf] }
 0x4b6   :  { %6889 = vmatpush.bf16.msra.mxu0 %v9357_v61  ;;  %v10893_v61 = vld [vmem:[#allocation20 + $0xddc] sm:$0xf]  ;;  %v10568_v34 = vld [vmem:[#allocation20 + $0x3b0] sm:$0xf0]  ;;  %v10834_v28 = vld [vmem:[#allocation20 + $0xc00] sm:$0xf0] }
 0x4b7   :  { %v10109_v48 = vor.u32 %v10893_v61, %v10106_v53  ;;  %v10858_v61 = vld [vmem:[#allocation20 + $0xcc4] sm:$0xf]  ;;  %v8797_v10 = vor.u32 %v10568_v34, %v8796_v63  ;;  %v9020_v63 = vld [vmem:[#allocation20 + $0x558] sm:$0xf]  ;;  %v10624_v34 = vld [vmem:[#allocation20 + $0x570] sm:$0xf0] }
 0x4b8   :  { %6773 = vmatpush.bf16.msrb.mxu3 %v9101_v57  ;;  %6812 = vmatpush.bf16.msra.mxu2 %v9773_v37  ;;  %v8573_v57 = vor.u32 %v10512_v25, %v8572_v22  ;;  %v9245_v37 = vor.u32 %v10680_v59, %v9244_v20  ;;  %v10589_v22 = vld [vmem:[#allocation20 + $0x458] sm:$0xf0]  ;;  %v9552_v25 = vld [vmem:[#allocation20 + $0x980] sm:$0xf] }
 0x4b9   :  { %6851 = vmatpush.bf16.msrb.mxu1 %v8657_v47  ;;  %v10886_v47 = vld [vmem:[#allocation20 + $0xda4] sm:$0xf]  ;;  %v10757_v20 = vld [vmem:[#allocation20 + $0x998] sm:$0xf0]  ;;  %v8881_v59 = vor.u32 %v10589_v22, %v8880_v41  ;;  %v9160_v41 = vld [vmem:[#allocation20 + $0x670] sm:$0xf] }
 0x4ba   :  { %6890 = vmatpush.bf16.msra.mxu0 %v9329_v49  ;;  %v9665_v49 = vor.u32 %v10785_v29, %v9664_v19  ;;  %v10081_v0 = vor.u32 %v10886_v47, %v10078_v62  ;;  %v9553_v53 = vor.u32 %v10757_v20, %v9552_v25  ;;  %v10582_v19 = vld [vmem:[#allocation20 + $0x420] sm:$0xf0]  ;;  %v10659_v22 = vld [vmem:[#allocation20 + $0x688] sm:$0xf0]  ;;  %v9832_v25 = vld [vmem:[#allocation20 + $0xbb0] sm:$0xf] }
 0x4bb   :  { %v10827_v20 = vld [vmem:[#allocation20 + $0xbc8] sm:$0xf0] }
 0x4bc   :  { %6774 = vmatpush.bf16.msrb.mxu3 %v9073_v1  ;;  %6813 = vmatpush.bf16.msra.mxu2 %v9745_v27  ;;  %v8936_v1 = vld [vmem:[#allocation20 + $0x4b0] sm:$0xf]  ;;  %v10603_v27 = vld [vmem:[#allocation20 + $0x4c8] sm:$0xf0] }
 0x4bd   :  { %6852 = vmatpush.bf16.msrb.mxu1 %v8629_v7  ;;  %v3896_v7 = vperm.slane %v11943_v12, 4  ;;  %v8937_v32 = vor.u32 %v10603_v27, %v8936_v1 }
 0x4be   :  { %6891 = vmatpush.bf16.msra.mxu0 %v9301_v21  ;;  %v10053_v21 = vor.u32 %v10879_v44, %v10050_v60  ;;  %v8825_v44 = vor.u32 %v10575_v35, %v8824_v14  ;;  %v9910_v60 = vld [vmem:[#allocation20 + $0xc6c] sm:$0xf0]  ;;  %v10806_v14 = vld [vmem:[#allocation20 + $0xb20] sm:$0xf0] }
 0x4c0   :  { %6775 = vmatpush.bf16.msrb.mxu3 %v9045_v16  ;;  %6814 = vmatpush.bf16.msra.mxu2 %v9717_v56  ;;  %v10764_v16 = vld [vmem:[#allocation20 + $0x9d0] sm:$0xf0] }
 0x4c1   :  { %6853 = vmatpush.bf16.msrb.mxu1 %v8601_v23 }
 0x4c2   :  { %6892 = vmatpush.bf16.msra.mxu0 %v9273_v50  ;;  %v9581_v50 = vor.u32 %v10764_v16, %v9580_v5 }
 0x4c4   :  { %6776 = vmatpush.bf16.msrb.mxu3 %v9017_v42  ;;  %6815 = vmatpush.bf16.msra.mxu2 %v9689_v8  ;;  %v9966_v42 = vld [vmem:[#allocation20 + $0xcdc] sm:$0xf0]  ;;  %v8852_v8 = vld [vmem:[#allocation20 + $0x408] sm:$0xf] }
 0x4c5   :  { %6854 = vmatpush.bf16.msrb.mxu1 %v8573_v57  ;;  %v9524_v57 = vld [vmem:[#allocation20 + $0x948] sm:$0xf]  ;;  %v8853_v47 = vor.u32 %v10582_v19, %v8852_v8 }
 0x4c6   :  { %6893 = vmatpush.bf16.msra.mxu0 %v9245_v37  ;;  %v11979_v15 = vpop.f32.mrf.mxu0  ;;  %v10750_v37 = vld [vmem:[#allocation20 + $0x960] sm:$0xf0] }
 0x4c7   :  { %6777 = vmatmul.bf16.vlgmr.msrb.gmra.mxu3 %v11764_v13  ;;  %6816 = vmatmul.bf16.vlgmr.msra.gmra.mxu2 %v11849_v52  ;;  %v6648_v56 = vpop.f32.mrf.mxu1  ;;  %v9525_v62 = vor.u32 %v10750_v37, %v9524_v57  ;;  %v10645_v57 = vld [vmem:[#allocation20 + $0x618] sm:$0xf0]  ;;  %v9776_v37 = vld [vmem:[#allocation20 + $0xb40] sm:$0xf] }
 0x4c8   :  { %6821 = vmatpush.bf16.msra.mxu3 %v10109_v48  ;;  %6860 = vmatpush.bf16.msrb.mxu2 %v8993_v43  ;;  %v9969_v43 = vor.u32 %v10858_v61, %v9966_v42  ;;  %v10652_v61 = vld [vmem:[#allocation20 + $0x650] sm:$0xf0] }
 0x4c9   :  { %6899 = vmatpush.bf16.msra.mxu1 %v9665_v49  ;;  %6894 = vmatmul.bf16.vlgmr.msra.gmra.mxu0 %v11785_v40  ;;  %v10025_v40 = vor.u32 %v10872_v39, %v10022_v18  ;;  %v10851_v49 = vld [vmem:[#allocation20 + $0xc8c] sm:$0xf]  ;;  %v10673_v39 = vld [vmem:[#allocation20 + $0x6f8] sm:$0xf0] }
 0x4ca   :  { %6855 = vmatmul.bf16.vlgmr.msrb.gmra.mxu1 %v11732_v9  ;;  %v6636_v9 = vadd.f32 %v11968_v58, %v3896_v7  ;;  %v6558_v58 = vadd.f32 %v11971_v38, %v11951_v31  ;;  %v6570_v30 = vpop.f32.mrf.mxu3  ;;  %v11985_v4 = vpop.f32.mrf.mxu2  ;;  %v9468_v7 = vld [vmem:[#allocation20 + $0x8d8] sm:$0xf]  ;;  %v10841_v18 = vld [vmem:[#allocation20 + $0xc38] sm:$0xf0] }
 0x4cc   :  { %6822 = vmatpush.bf16.msra.mxu3 %v10081_v0  ;;  %6861 = vmatpush.bf16.msrb.mxu2 %v8965_v46  ;;  %v11981_v23 = vadd.f32 %v6648_v56, %v6636_v9  ;;  %v6571_v29 = vadd.f32 %v6570_v30, %v6558_v58  ;;  %v10743_v0 = vld [vmem:[#allocation20 + $0x928] sm:$0xf0]  ;;  %v9941_v46 = vor.u32 %v10851_v49, %v9938_v55  ;;  %v9188_v56 = vld [vmem:[#allocation20 + $0x6a8] sm:$0xf]  ;;  %v10820_v30 = vld [vmem:[#allocation20 + $0xb90] sm:$0xf0] }
 0x4cd   :  { %6900 = vmatpush.bf16.msra.mxu1 %v9637_v3  ;;  %v10844_v3 = vld [vmem:[#allocation20 + $0xc54] sm:$0xf]  ;;  %v9161_v58 = vor.u32 %v10659_v22, %v9160_v41  ;;  %v9076_v49 = vld [vmem:[#allocation20 + $0x5c8] sm:$0xf]  ;;  %v10028_v41 = vld [vmem:[#allocation20 + $0xd38] sm:$0xf] }
 0x4ce   :  { %v11988_v31 = vadd.f32 %v11949_v51, %v6571_v29  ;;  %v6689_v48 = vpop.f32.mrf.mxu0  ;;  %v9497_v51 = vor.u32 %v10743_v0, %v9496_v17  ;;  %v9913_v6 = vor.u32 %v10844_v3, %v9910_v60  ;;  %v9048_v3 = vld [vmem:[#allocation20 + $0x590] sm:$0xf]  ;;  %v10631_v60 = vld [vmem:[#allocation20 + $0x5a8] sm:$0xf0]  ;;  %v10876_v22 = vld [vmem:[#allocation20 + $0xd50] sm:$0xf0] }
 0x4cf   :  { %v6650_v38 = vpop.f32.mrf.mxu1 }
 0x4d0   :  { %6823 = vmatpush.bf16.msra.mxu3 %v10053_v21  ;;  %6862 = vmatpush.bf16.msrb.mxu2 %v8937_v32  ;;  %v10736_v21 = vld [vmem:[#allocation20 + $0x8f0] sm:$0xf0]  ;;  %v9216_v32 = vld [vmem:[#allocation20 + $0x6e0] sm:$0xf]  ;;  %v6597_v8 = vadd.f32 %v11966_v45, %v11988_v31  ;;  %v10813_v38 = vld [vmem:[#allocation20 + $0xb58] sm:$0xf0] }
 0x4d1   :  { %6901 = vmatpush.bf16.msra.mxu1 %v9609_v2  ;;  %v9888_v2 = vld [vmem:[#allocation20 + $0xc20] sm:$0xf]  ;;  %v9469_v5 = vor.u32 %v10736_v21, %v9468_v7  ;;  %v9217_v16 = vor.u32 %v10673_v39, %v9216_v32  ;;  %v9748_v31 = vld [vmem:[#allocation20 + $0xb08] sm:$0xf]  ;;  %v9692_v7 = vld [vmem:[#allocation20 + $0xa98] sm:$0xf] }
 0x4d2   :  { %v6572_v1 = vpop.f32.mrf.mxu3  ;;  %v6611_v27 = vpop.f32.mrf.mxu2  ;;  %v9889_v9 = vor.u32 %v10841_v18, %v9888_v2  ;;  %v10792_v39 = vld [vmem:[#allocation20 + $0xab0] sm:$0xf0]  ;;  %v10112_v2 = vld [vmem:[#allocation20 + $0xde0] sm:$0xf]  ;;  %v10897_v18 = vld [vmem:[#allocation20 + $0xdf8] sm:$0xf0] }
 0x4d3   :  { %v9049_v1 = vor.u32 %v10631_v60, %v9048_v3 }
 0x4d4   :  { %6824 = vmatpush.bf16.msra.mxu3 %v10025_v40  ;;  %6863 = vmatpush.bf16.msrb.mxu2 %v8909_v24  ;;  %v10666_v40 = vld [vmem:[#allocation20 + $0x6c0] sm:$0xf0]  ;;  %v9860_v24 = vld [vmem:[#allocation20 + $0xbe8] sm:$0xf] }
 0x4d5   :  { %6902 = vmatpush.bf16.msra.mxu1 %v9581_v50  ;;  %v9189_v50 = vor.u32 %v10666_v40, %v9188_v56  ;;  %v9861_v11 = vor.u32 %v10834_v28, %v9860_v24  ;;  %v10890_v56 = vld [vmem:[#allocation20 + $0xdc0] sm:$0xf0]  ;;  %v10056_v24 = vld [vmem:[#allocation20 + $0xd70] sm:$0xf]  ;;  %v10883_v28 = vld [vmem:[#allocation20 + $0xd88] sm:$0xf0] }
 0x4d8   :  { %6825 = vmatpush.bf16.msra.mxu3 %v9997_v36  ;;  %6864 = vmatpush.bf16.msrb.mxu2 %v8881_v59  ;;  %v9833_v36 = vor.u32 %v10827_v20, %v9832_v25  ;;  %v9132_v59 = vld [vmem:[#allocation20 + $0x638] sm:$0xf]  ;;  %v10029_v25 = vor.u32 %v10876_v22, %v10028_v41 }
 0x4d9   :  { %6903 = vmatpush.bf16.msra.mxu1 %v9553_v53  ;;  %v9804_v53 = vld [vmem:[#allocation20 + $0xb78] sm:$0xf]  ;;  %v9133_v42 = vor.u32 %v10652_v61, %v9132_v59 }
 0x4da   :  { %v9805_v29 = vor.u32 %v10820_v30, %v9804_v53 }
 0x4dc   :  { %6826 = vmatpush.bf16.msra.mxu3 %v9969_v43  ;;  %6865 = vmatpush.bf16.msrb.mxu2 %v8853_v47  ;;  %v6610_v43 = vadd.f32 %v11985_v4, %v6597_v8  ;;  %v9777_v47 = vor.u32 %v10813_v38, %v9776_v37  ;;  %v10799_v4 = vld [vmem:[#allocation20 + $0xae8] sm:$0xf0] }
 0x4dd   :  { %6904 = vmatpush.bf16.msra.mxu1 %v9525_v62  ;;  %v10638_v62 = vld [vmem:[#allocation20 + $0x5e0] sm:$0xf0]  ;;  %v10855_v37 = vld [vmem:[#allocation20 + $0xca8] sm:$0xf0] }
 0x4de   :  { %v9077_v17 = vor.u32 %v10638_v62, %v9076_v49  ;;  %v10848_v49 = vld [vmem:[#allocation20 + $0xc70] sm:$0xf0] }
 0x4e0   :  { %6827 = vmatpush.bf16.msra.mxu3 %v9941_v46  ;;  %6866 = vmatpush.bf16.msrb.mxu2 %v8825_v44  ;;  %v9749_v44 = vor.u32 %v10806_v14, %v9748_v31 }
 0x4e1   :  { %6905 = vmatpush.bf16.msra.mxu1 %v9497_v51  ;;  %v9720_v51 = vld [vmem:[#allocation20 + $0xad0] sm:$0xf] }
 0x4e2   :  { %v9721_v27 = vor.u32 %v10799_v4, %v9720_v51  ;;  %v10972_v4 = vld [vmem:[#allocation22] sm:$0xff] }
 0x4e4   :  { %6828 = vmatpush.bf16.msra.mxu3 %v9913_v6  ;;  %6867 = vmatpush.bf16.msrb.mxu2 %v8797_v10  ;;  %v9021_v10 = vor.u32 %v10624_v34, %v9020_v63 }
 0x4e5   :  { %6906 = vmatpush.bf16.msra.mxu1 %v9469_v5  ;;  %v9693_v5 = vor.u32 %v10792_v39, %v9692_v7 }
 0x4e7   :  { %6829 = vmatmul.bf16.vlgmr.msra.gmra.mxu3 %v11866_v26  ;;  %6868 = vmatmul.bf16.vlgmr.msrb.gmra.mxu2 %v11746_v33  ;;  %v11995_v19 = vpop.f32.mrf.mxu1  ;;  %v11997_v33 = vpop.f32.mrf.mxu0 }
 0x4e8   :  { %6873 = vmatpush.bf16.msrb.mxu3 %v9217_v16  ;;  %6912 = vmatpush.bf16.msra.mxu2 %v9889_v9  ;;  %v10113_v16 = vor.u32 %v10897_v18, %v10112_v2  ;;  %v10084_v9 = vld [vmem:[#allocation20 + $0xda8] sm:$0xf] }
 0x4e9   :  { %6907 = vmatmul.bf16.vlgmr.msra.gmra.mxu1 %v11813_v54  ;;  %v9104_v54 = vld [vmem:[#allocation20 + $0x600] sm:$0xf]  ;;  %v10085_v40 = vor.u32 %v10890_v56, %v10084_v9 }
 0x4ea   :  { %v9105_v48 = vor.u32 %v10645_v57, %v9104_v54  ;;  %v6622_v55 = vpop.f32.mrf.mxu3  ;;  %v6661_v45 = vpop.f32.mrf.mxu2  ;;  %v9944_v57 = vld [vmem:[#allocation20 + $0xc90] sm:$0xf] }
 0x4eb   :  { %v6623_v35 = vadd.f32 %v6622_v55, %v6610_v43  ;;  %v9945_v43 = vor.u32 %v10855_v37, %v9944_v57 }
 0x4ec   :  { %6874 = vmatpush.bf16.msrb.mxu3 %v9189_v50  ;;  %6913 = vmatpush.bf16.msra.mxu2 %v9861_v11  ;;  %v10057_v50 = vor.u32 %v10883_v28, %v10056_v24  ;;  %v3897_v11 = vperm.slane %v11943_v12, 5 }
 0x4ed   :  { %10960 = vtanh.f32 %v6623_v35 }
 0x4ee   :  { %v6740_v20 = vadd.f32 %v11997_v33, %v3897_v11 }
 0x4ef   :  { %v6702_v0 = vpop.f32.mrf.mxu1  ;;  %v6741_v46 = vpop.f32.mrf.mxu0 }
 0x4f0   :  { %6875 = vmatpush.bf16.msrb.mxu3 %v9161_v58  ;;  %6914 = vmatpush.bf16.msra.mxu2 %v9833_v36  ;;  %v10000_v58 = vld [vmem:[#allocation20 + $0xd00] sm:$0xf]  ;;  %v10869_v36 = vld [vmem:[#allocation20 + $0xd18] sm:$0xf0] }
 0x4f1   :  { %v10001_v30 = vor.u32 %v10869_v36, %v10000_v58 }
 0x4f2   :  { %v6624_v21 = vpop.f32.mrf.mxu3  ;;  %v6663_v32 = vpop.f32.mrf.mxu2 }
 0x4f3   :  { %v10961_v6 = vpop.eup %10960 }
 0x4f4   :  { %6876 = vmatpush.bf16.msrb.mxu3 %v9133_v42  ;;  %6915 = vmatpush.bf16.msra.mxu2 %v9805_v29  ;;  %6948 = vst [vmem:[#allocation23 + $0x18] sm:$0xff] %v10961_v6  ;;  %v10862_v42 = vld [vmem:[#allocation20 + $0xce0] sm:$0xf0] }
 0x4f8   :  { %6877 = vmatpush.bf16.msrb.mxu3 %v9105_v48  ;;  %6916 = vmatpush.bf16.msra.mxu2 %v9777_v47  ;;  %v9916_v47 = vld [vmem:[#allocation20 + $0xc58] sm:$0xf] }
 0x4f9   :  { %v9917_v31 = vor.u32 %v10848_v49, %v9916_v47 }
 0x4fc   :  { %6878 = vmatpush.bf16.msrb.mxu3 %v9077_v17  ;;  %6917 = vmatpush.bf16.msra.mxu2 %v9749_v44 }
 0x500   :  { %6879 = vmatpush.bf16.msrb.mxu3 %v9049_v1  ;;  %6918 = vmatpush.bf16.msra.mxu2 %v9721_v27  ;;  %v3898_v1 = vperm.slane %v10972_v4, 6 }
 0x504   :  { %6880 = vmatpush.bf16.msrb.mxu3 %v9021_v10  ;;  %6919 = vmatpush.bf16.msra.mxu2 %v9693_v5 }
 0x506   :  { %v6791_v61 = vpop.f32.mrf.mxu0 }
 0x507   :  { %6881 = vmatmul.bf16.vlgmr.msrb.gmra.mxu3 %v11764_v13  ;;  %6920 = vmatmul.bf16.vlgmr.msra.gmra.mxu2 %v11849_v52  ;;  %v6752_v59 = vpop.f32.mrf.mxu1  ;;  %v9972_v13 = vld [vmem:[#allocation20 + $0xcc8] sm:$0xf]  ;;  %v6662_v52 = vadd.f32 %v6661_v45, %v11981_v23 }
 0x508   :  { %6925 = vmatpush.bf16.msra.mxu3 %v10113_v16  ;;  %v6753_v53 = vadd.f32 %v6752_v59, %v6740_v20  ;;  %v9973_v54 = vor.u32 %v10862_v42, %v9972_v13 }
 0x50a   :  { %v6674_v8 = vpop.f32.mrf.mxu3  ;;  %v6713_v29 = vpop.f32.mrf.mxu2 }
 0x50b   :  { %v6675_v12 = vadd.f32 %v6674_v8, %v6662_v52 }
 0x50c   :  { %6926 = vmatpush.bf16.msra.mxu3 %v10085_v40 }
 0x50d   :  { %v6688_v33 = vadd.f32 %v11979_v15, %v6675_v12 }
 0x50e   :  { %v6793_v48 = vpop.f32.mrf.mxu0 }
 0x50f   :  { %v6754_v38 = vpop.f32.mrf.mxu1  ;;  %v6701_v23 = vadd.f32 %v11995_v19, %v6688_v33 }
 0x510   :  { %6927 = vmatpush.bf16.msra.mxu3 %v10057_v50 }
 0x511   :  { %v6714_v35 = vadd.f32 %v6713_v29, %v6701_v23 }
 0x512   :  { %v6676_v62 = vpop.f32.mrf.mxu3  ;;  %v6715_v55 = vpop.f32.mrf.mxu2 }
 0x514   :  { %6928 = vmatpush.bf16.msra.mxu3 %v10029_v25 }
 0x518   :  { %6929 = vmatpush.bf16.msra.mxu3 %v10001_v30 }
 0x51c   :  { %6930 = vmatpush.bf16.msra.mxu3 %v9973_v54 }
 0x520   :  { %6931 = vmatpush.bf16.msra.mxu3 %v9945_v43 }
 0x524   :  { %6932 = vmatpush.bf16.msra.mxu3 %v9917_v31 }
 0x526   :  { %v6843_v14 = vpop.f32.mrf.mxu0 }
 0x527   :  { %6933 = vmatmul.bf16.vlgmr.msra.gmra.mxu3 %v11866_v26  ;;  %v6804_v45 = vpop.f32.mrf.mxu1  ;;  %v6844_v27 = vadd.f32 %v6843_v14, %v3898_v1 }
 0x52a   :  { %v6726_v17 = vpop.f32.mrf.mxu3  ;;  %v6765_v15 = vpop.f32.mrf.mxu2 }
 0x52b   :  { %v6727_v0 = vadd.f32 %v6726_v17, %v6714_v35  ;;  %v6766_v19 = vadd.f32 %v6765_v15, %v6753_v53 }
 0x52d   :  { %10962 = vtanh.f32 %v6727_v0 }
 0x52e   :  { %v6845_v44 = vpop.f32.mrf.mxu0 }
 0x52f   :  { %v6806_v46 = vpop.f32.mrf.mxu1 }
 0x532   :  { %v6728_v3 = vpop.f32.mrf.mxu3  ;;  %v6767_v60 = vpop.f32.mrf.mxu2 }
 0x533   :  { %v10963_v51 = vpop.eup %10962 }
 0x534   :  { %6949 = vst [vmem:[#allocation23 + $0x20] sm:$0xff] %v10963_v51 }
 0x546   :  { %v6895_v34 = vpop.f32.mrf.mxu0 }
 0x547   :  { %v6856_v63 = vpop.f32.mrf.mxu1 }
 0x548   :  { %v6857_v26 = vadd.f32 %v6856_v63, %v6844_v27 }
 0x54a   :  { %v6778_v7 = vpop.f32.mrf.mxu3  ;;  %v6817_v32 = vpop.f32.mrf.mxu2 }
 0x54b   :  { %v6779_v21 = vadd.f32 %v6778_v7, %v6766_v19 }
 0x54d   :  { %v6792_v39 = vadd.f32 %v6791_v61, %v6779_v21 }
 0x54e   :  { %v6897_v18 = vpop.f32.mrf.mxu0 }
 0x54f   :  { %v6858_v2 = vpop.f32.mrf.mxu1  ;;  %v6805_v5 = vadd.f32 %v6804_v45, %v6792_v39 }
 0x551   :  { %v6818_v9 = vadd.f32 %v6817_v32, %v6805_v5 }
 0x552   :  { %v6780_v6 = vpop.f32.mrf.mxu3  ;;  %v6819_v10 = vpop.f32.mrf.mxu2 }
 0x566   :  { %v6908_v16 = vpop.f32.mrf.mxu1 }
 0x56a   :  { %v6830_v56 = vpop.f32.mrf.mxu3  ;;  %v6869_v40 = vpop.f32.mrf.mxu2 }
 0x56b   :  { %v6831_v24 = vadd.f32 %v6830_v56, %v6818_v9  ;;  %v6870_v22 = vadd.f32 %v6869_v40, %v6857_v26 }
 0x56d   :  { %10964 = vtanh.f32 %v6831_v24 }
 0x56e   :  { %v6910_v28 = vpop.f32.mrf.mxu1 }
 0x572   :  { %v6832_v50 = vpop.f32.mrf.mxu3  ;;  %v6871_v11 = vpop.f32.mrf.mxu2 }
 0x573   :  { %v10965_v41 = vpop.eup %10964 }
 0x574   :  { %6950 = vst [vmem:[#allocation23 + $0x28] sm:$0xff] %v10965_v41 }
 0x58a   :  { %v6882_v25 = vpop.f32.mrf.mxu3  ;;  %v6921_v58 = vpop.f32.mrf.mxu2 }
 0x58b   :  { %v6883_v20 = vadd.f32 %v6882_v25, %v6870_v22 }
 0x58d   :  { %v6896_v36 = vadd.f32 %v6895_v34, %v6883_v20 }
 0x58f   :  { %v6909_v53 = vadd.f32 %v6908_v16, %v6896_v36 }
 0x591   :  { %v6922_v30 = vadd.f32 %v6921_v58, %v6909_v53 }
 0x592   :  { %v6884_v59 = vpop.f32.mrf.mxu3  ;;  %v6923_v61 = vpop.f32.mrf.mxu2 }
 0x5aa   :  { %v6934_v13 = vpop.f32.mrf.mxu3 }
 0x5ab   :  { %v6935_v42 = vadd.f32 %v6934_v13, %v6922_v30 }
 0x5ad   :  { %10966 = vtanh.f32 %v6935_v42 }
 0x5b2   :  { %v6936_v52 = vpop.f32.mrf.mxu3 }
 0x5b3   :  { %v10967_v8 = vpop.eup %10966 }
 0x5b4   :  { %6951 = vst [vmem:[#allocation23 + $0x30] sm:$0xff] %v10967_v8 }
 0x5b5   :  { %6962 = dma.vmem_to_hbm [thread:$0]  %s6958_s19, 896, %s6960_s20, [#allocation4]  }
 0x5b6   :  { %11323 = dma.done.wait [#allocation4], 896  }
 0x5b7   :  { %11324 = vsyncadd [#allocation4], 4294966400 }
 0x5b8   :  { %6967 = vsyncpa [#allocation3], 1 }
 0x5b9   :  { %6968 = vsyncpa [#allocation6], 1 }
 0x5ba   :  { %6969 = vsyncpa [#allocation9], 1 }
 0x5bb   :  { %6970 = vsyncpa [#allocation12], 1 }
 0x5bc   :  { %6971 = vsyncpa [#allocation15], 1 }
 0x5bd   :  { %6972 = vsyncpa [#allocation18], 1 }
 0x5be   :  { %6973 = vsyncpa [#allocation21], 1 }
 0x5bf   :  { %6974 = vsyncpa [#allocation4], 1 }

</bundles_post_ra>
